<compile_context>
chip_gen: v5e
topology: v5e:2x2
jax: 0.10.0
libtpu: 0.0.40
codegen_flags: <defaults>
</compile_context>

<pallas_src>
import jax
import jax.numpy as jnp
from jax.experimental import pallas as pl
from jax.experimental.pallas import tpu as pltpu


def _round_up(x, m):
    return (x + m - 1) // m * m


# ---------------------------------------------------------------------------
# Pallas kernels
# ---------------------------------------------------------------------------

def _conv_pool_kernel(p_ref, w_ref, b_ref, o_ref):
    """Fused conv (im2col matmul) + bias + LeakyReLU(0.2) + 2x2 max-pool.

    p_ref : (4, Rblk, K) bf16  -- patches for the 4 positions of each 2x2
                                  pooling window; rows are (b, ho, wo)-ordered
                                  and batched across images (K = 25*Cin)
    w_ref : (K, Cout)    bf16
    b_ref : (1, Cout)    f32
    o_ref : (Rblk, Cout) bf16  -- pooled, activated output rows

    max-pool commutes with the per-channel bias add and the monotone LeakyReLU,
    so we max the raw matmul results and apply bias + LeakyReLU once.
    """
    w = w_ref[...]
    acc = jnp.dot(p_ref[0], w, preferred_element_type=jnp.float32)
    for i in range(1, 4):
        acc = jnp.maximum(
            acc, jnp.dot(p_ref[i], w, preferred_element_type=jnp.float32))
    y = acc + b_ref[...]
    y = jnp.maximum(y, 0.2 * y)                 # LeakyReLU(0.2), f32 epilogue
    o_ref[...] = y.astype(o_ref.dtype)          # bf16 store


def _fc_head_kernel(x_ref, w1_ref, b1_ref, w2_ref, o_ref, acc_ref):
    """Fused fc1 (feature-tiled) + LeakyReLU(0.2) + fc2 partial accumulation.

    Grid = (batch_tiles, feature_halves, inner_feature_tiles); the inner axis
    walks fc1 output features, accumulating each tile's fc2 contribution into
    an f32 VMEM scratch.  Each (batch_tile, half) writes its own partial
    (bblk, 10) output slot; halves are summed (+bias, sigmoid) in the wrapper.
    """
    n = pl.program_id(2)

    @pl.when(n == 0)
    def _init():
        acc_ref[...] = jnp.zeros_like(acc_ref)

    h = jnp.dot(x_ref[...], w1_ref[...], preferred_element_type=jnp.float32)
    h = h + b1_ref[...]
    h = jnp.maximum(h, 0.2 * h)                                   # LeakyReLU, f32
    acc_ref[...] += jnp.dot(h.astype(jnp.bfloat16), w2_ref[...],
                            preferred_element_type=jnp.float32)

    @pl.when(n == pl.num_programs(2) - 1)
    def _finalize():
        o_ref[0] = acc_ref[...]


# ---------------------------------------------------------------------------
# Wrappers (pallas_call + small XLA glue)
# ---------------------------------------------------------------------------

def _build_pool_patches(x_nhwc, k=5, pad=2):
    """(B,H,W,Cin) -> (4, B*Ho*Wo, k*k*Cin) im2col patches, one patch matrix per
    position of each 2x2 pooling window.  Column order is (dh, dw, cin); rows
    are (b, ho, wo)-ordered so the conv output reshapes back to NHWC for free."""
    B, H, W, Cin = x_nhwc.shape
    Ho, Wo = H // 2, W // 2
    xp = jnp.pad(x_nhwc, ((0, 0), (pad, pad), (pad, pad), (0, 0)))
    pos = []
    for i in range(2):
        for j in range(2):
            taps = []
            for dh in range(k):
                for dw in range(k):
                    hs, ws = i + dh, j + dw
                    taps.append(xp[:, hs:hs + 2 * Ho - 1:2,
                                   ws:ws + 2 * Wo - 1:2, :])      # (B,Ho,Wo,Cin)
            t = jnp.stack(taps, axis=-2)                          # (B,Ho,Wo,25,Cin)
            pos.append(t.reshape(B * Ho * Wo, k * k * Cin))
    return jnp.stack(pos, axis=0)                                 # (4, R, K)


def conv_lrelu_pool(x_nhwc, w_mat, b_row, r_target=512):
    """5x5 'same' conv (PyTorch cross-correlation) + LeakyReLU(0.2) + 2x2 maxpool,
    row-batched across the whole batch so each grid step is a big MXU matmul."""
    B, H, W, Cin = x_nhwc.shape
    Ho, Wo = H // 2, W // 2
    K, Cout = w_mat.shape
    assert K == 25 * Cin
    R = B * Ho * Wo

    patches = _build_pool_patches(x_nhwc).astype(jnp.bfloat16)    # (4, R, K)
    rblk = min(r_target, _round_up(R, 8))
    Rp = _round_up(R, rblk)
    if Rp != R:
        patches = jnp.pad(patches, ((0, 0), (0, Rp - R), (0, 0)))

    out = pl.pallas_call(
        _conv_pool_kernel,
        out_shape=jax.ShapeDtypeStruct((Rp, Cout), jnp.bfloat16),
        grid_spec=pltpu.PrefetchScalarGridSpec(
            num_scalar_prefetch=0,
            grid=(Rp // rblk,),
            in_specs=[
                pl.BlockSpec((4, rblk, K), lambda r: (0, r, 0)),
                pl.BlockSpec((K, Cout), lambda r: (0, 0)),
                pl.BlockSpec((1, Cout), lambda r: (0, 0)),
            ],
            out_specs=pl.BlockSpec((rblk, Cout), lambda r: (r, 0)),
        ),
        compiler_params=pltpu.CompilerParams(
            dimension_semantics=("parallel",)),
    )(patches, w_mat, b_row)
    return out[:R].reshape(B, Ho, Wo, Cout)


def fc_head(x_flat_bf16, w1, b1, w2, b2, tn=512, n_splits=2):
    """Fused Linear(3136,1024)+LeakyReLU+Linear(1024,10), split into two parallel
    feature halves (partial (B,10) outputs); bias2 + sigmoid applied on the sum."""
    B, Kin = x_flat_bf16.shape
    N1 = w1.shape[1]
    N2 = w2.shape[1]
    assert N1 % (tn * n_splits) == 0
    n_inner = N1 // (tn * n_splits)

    # VMEM guard: tile the batch (extra parallel axis) when the resident x
    # block would be large (keeps v7x's smaller VMEM comfortable).
    if B > 256 and B % 256 == 0:
        bblk = 256
    else:
        bblk = B
    nb = B // bblk

    parts = pl.pallas_call(
        _fc_head_kernel,
        out_shape=jax.ShapeDtypeStruct((n_splits, B, N2), jnp.float32),
        grid_spec=pltpu.PrefetchScalarGridSpec(
            num_scalar_prefetch=0,
            grid=(nb, n_splits, n_inner),
            in_specs=[
                pl.BlockSpec((bblk, Kin), lambda b, c, n: (b, 0)),
                pl.BlockSpec((Kin, tn), lambda b, c, n: (0, c * n_inner + n)),
                pl.BlockSpec((1, tn), lambda b, c, n: (0, c * n_inner + n)),
                pl.BlockSpec((tn, N2), lambda b, c, n: (c * n_inner + n, 0)),
            ],
            out_specs=pl.BlockSpec((1, bblk, N2), lambda b, c, n: (c, b, 0)),
            scratch_shapes=[pltpu.VMEM((bblk, N2), jnp.float32)],
        ),
        compiler_params=pltpu.CompilerParams(
            dimension_semantics=("parallel", "parallel", "arbitrary")),
    )(x_flat_bf16, w1, b1, w2)

    y = parts.sum(axis=0) + b2                    # (B, 10) f32
    return jax.nn.sigmoid(y)


def discriminator_forward(x_nchw, kp):
    x = jnp.transpose(x_nchw, (0, 2, 3, 1))                # NCHW -> NHWC (Cin=1)
    x = conv_lrelu_pool(x, kp["w1"], kp["b1"])             # (B,14,14,32) bf16
    x = conv_lrelu_pool(x, kp["w2"], kp["b2"])             # (B,7,7,64)  bf16
    B = x.shape[0]
    # NHWC flatten (free reshape); fc1 rows were permuted at init to match it.
    x = x.reshape(B, -1)                                   # (B, 3136) bf16
    return fc_head(x, kp["fc1_w"], kp["fc1_b"], kp["fc2_w"], kp["fc2_b"])


# ---------------------------------------------------------------------------
# Parameters: PyTorch-layout init + one-time kernel-layout conversion
# ---------------------------------------------------------------------------

def init_params(key):
    ks = jax.random.split(key, 8)

    def u(k, shape, fan_in):
        bound = 1.0 / float(fan_in) ** 0.5
        return jax.random.uniform(k, shape, jnp.float32, -bound, bound)

    return {
        "w1": u(ks[0], (32, 1, 5, 5), 1 * 25),
        "b1": u(ks[1], (32,), 1 * 25),
        "w2": u(ks[2], (64, 32, 5, 5), 32 * 25),
        "b2": u(ks[3], (64,), 32 * 25),
        "fc1_w": u(ks[4], (1024, 3136), 3136),
        "fc1_b": u(ks[5], (1024,), 3136),
        "fc2_w": u(ks[6], (10, 1024), 1024),
        "fc2_b": u(ks[7], (10,), 1024),
    }


def prepare_params(p):
    """One-time layout/dtype conversion (no runtime transposes):
    conv weights (Cout,Cin,5,5) -> (25*Cin,Cout) bf16 in (dh,dw,cin) order;
    fc1 transposed AND its 3136 input rows permuted from NCHW-flatten order to
    NHWC-flatten order; fc2 transposed; biases kept f32 as (1,N) rows."""
    def conv_w(w):
        cout, cin = w.shape[0], w.shape[1]
        return jnp.transpose(w, (2, 3, 1, 0)).reshape(25 * cin, cout).astype(jnp.bfloat16)

    fc1 = (p["fc1_w"].reshape(1024, 64, 7, 7)     # (out, c, h, w): NCHW flatten
           .transpose(2, 3, 1, 0)                 # (h, w, c, out): NHWC flatten
           .reshape(7 * 7 * 64, 1024)
           .astype(jnp.bfloat16))
    return {
        "w1": conv_w(p["w1"]), "b1": p["b1"].reshape(1, -1),
        "w2": conv_w(p["w2"]), "b2": p["b2"].reshape(1, -1),
        "fc1_w": fc1, "fc1_b": p["fc1_b"].reshape(1, -1),
        "fc2_w": p["fc2_w"].T.astype(jnp.bfloat16), "fc2_b": p["fc2_b"].reshape(1, -1),
    }


# ---------------------------------------------------------------------------
# Pure-JAX reference (PyTorch semantics) for a correctness check
# ---------------------------------------------------------------------------

def reference_forward(x_nchw, p):
    def conv(x, w, b):
        y = jax.lax.conv_general_dilated(
            x, w, window_strides=(1, 1), padding=((2, 2), (2, 2)),
            dimension_numbers=("NCHW", "OIHW", "NCHW"))
        return y + b[None, :, None, None]

    def pool(x):
        return jax.lax.reduce_window(x, -jnp.inf, jax.lax.max,
                                     (1, 1, 2, 2), (1, 1, 2, 2), "VALID")

    x = conv(x_nchw, p["w1"], p["b1"]); x = jnp.maximum(x, 0.2 * x); x = pool(x)
    x = conv(x, p["w2"], p["b2"]);      x = jnp.maximum(x, 0.2 * x); x = pool(x)
    x = x.reshape(x.shape[0], -1)
    x = x @ p["fc1_w"].T + p["fc1_b"];  x = jnp.maximum(x, 0.2 * x)
    x = x @ p["fc2_w"].T + p["fc2_b"]
    return jax.nn.sigmoid(x)


if __name__ == "__main__":
    key = jax.random.PRNGKey(0)
    pkey, xkey = jax.random.split(key)
    params = init_params(pkey)              # PyTorch-layout parameters
    kparams = prepare_params(params)        # one-time kernel-layout conversion
    # Module geometry implies 28x28 single-channel inputs (7*7*64 flatten).
    x = jax.random.normal(xkey, (2, 1, 28, 28), dtype=jnp.float32)

    out = jax.jit(discriminator_forward)(x, kparams)
    out = jax.block_until_ready(out)

    assert out.shape == (2, 10), out.shape
    assert bool(jnp.all((out > 0.0) & (out < 1.0))), "sigmoid range violated"

    ref = jax.jit(reference_forward)(x, params)
    err = float(jnp.max(jnp.abs(out - ref)))
    assert err < 5e-2, f"mismatch vs reference: {err}"
    print("KERNEL_OK")
</pallas_src>

<mosaic_0001>
module attributes {stable_mosaic.version = 11 : i64} {
  func.func @_conv_pool_kernel(%arg0: i32, %arg1: memref<4x392x25xbf16, #tpu.memory_space<vmem>>, %arg2: memref<25x32xbf16, #tpu.memory_space<vmem>>, %arg3: memref<1x32xf32, #tpu.memory_space<vmem>>, %arg4: memref<392x32xbf16, #tpu.memory_space<vmem>>) attributes {dimension_semantics = [#tpu.dimension_semantics<parallel>], iteration_bounds = array<i64: 1>, scalar_prefetch = 0 : i64, scratch_operands = 0 : i64, tpu.core_type = #tpu.core_type<tc>, window_params = [{transform_indices = @transform_0, window_bounds = array<i64: 4, 392, 25>}, {pipeline_mode = #tpu.pipeline_mode<synchronous>, transform_indices = @transform_1, window_bounds = array<i64: 25, 32>}, {pipeline_mode = #tpu.pipeline_mode<synchronous>, transform_indices = @transform_2, window_bounds = array<i64: 1, 32>}, {transform_indices = @transform_3, window_bounds = array<i64: 392, 32>}]} {
    %c0 = arith.constant 0 : index
    %c0_0 = arith.constant 0 : index
    %0 = vector.load %arg2[%c0, %c0_0] : memref<25x32xbf16, #tpu.memory_space<vmem>>, vector<25x32xbf16>
    %c0_1 = arith.constant 0 : index
    %c0_2 = arith.constant 0 : index
    %c0_3 = arith.constant 0 : index
    %1 = vector.load %arg1[%c0_1, %c0_2, %c0_3] : memref<4x392x25xbf16, #tpu.memory_space<vmem>>, vector<1x392x25xbf16>
    %2 = vector.shape_cast %1 : vector<1x392x25xbf16> to vector<392x25xbf16>
    %cst = arith.constant dense<0.000000e+00> : vector<392x32xf32>
    %3 = tpu.matmul %2, %0, %cst {dimension_numbers = #tpu.dot_dimension_numbers<[1], [0], [0], [1], [0, 0, 1, 1], [], []>} : vector<392x25xbf16>, vector<25x32xbf16>, vector<392x32xf32> -> vector<392x32xf32>
    %c1 = arith.constant 1 : index
    %c0_4 = arith.constant 0 : index
    %c0_5 = arith.constant 0 : index
    %4 = vector.load %arg1[%c1, %c0_4, %c0_5] : memref<4x392x25xbf16, #tpu.memory_space<vmem>>, vector<1x392x25xbf16>
    %5 = vector.shape_cast %4 : vector<1x392x25xbf16> to vector<392x25xbf16>
    %cst_6 = arith.constant dense<0.000000e+00> : vector<392x32xf32>
    %6 = tpu.matmul %5, %0, %cst_6 {dimension_numbers = #tpu.dot_dimension_numbers<[1], [0], [0], [1], [0, 0, 1, 1], [], []>} : vector<392x25xbf16>, vector<25x32xbf16>, vector<392x32xf32> -> vector<392x32xf32>
    %7 = arith.maximumf %3, %6 : vector<392x32xf32>
    %c2 = arith.constant 2 : index
    %c0_7 = arith.constant 0 : index
    %c0_8 = arith.constant 0 : index
    %8 = vector.load %arg1[%c2, %c0_7, %c0_8] : memref<4x392x25xbf16, #tpu.memory_space<vmem>>, vector<1x392x25xbf16>
    %9 = vector.shape_cast %8 : vector<1x392x25xbf16> to vector<392x25xbf16>
    %cst_9 = arith.constant dense<0.000000e+00> : vector<392x32xf32>
    %10 = tpu.matmul %9, %0, %cst_9 {dimension_numbers = #tpu.dot_dimension_numbers<[1], [0], [0], [1], [0, 0, 1, 1], [], []>} : vector<392x25xbf16>, vector<25x32xbf16>, vector<392x32xf32> -> vector<392x32xf32>
    %11 = arith.maximumf %7, %10 : vector<392x32xf32>
    %c3 = arith.constant 3 : index
    %c0_10 = arith.constant 0 : index
    %c0_11 = arith.constant 0 : index
    %12 = vector.load %arg1[%c3, %c0_10, %c0_11] : memref<4x392x25xbf16, #tpu.memory_space<vmem>>, vector<1x392x25xbf16>
    %13 = vector.shape_cast %12 : vector<1x392x25xbf16> to vector<392x25xbf16>
    %cst_12 = arith.constant dense<0.000000e+00> : vector<392x32xf32>
    %14 = tpu.matmul %13, %0, %cst_12 {dimension_numbers = #tpu.dot_dimension_numbers<[1], [0], [0], [1], [0, 0, 1, 1], [], []>} : vector<392x25xbf16>, vector<25x32xbf16>, vector<392x32xf32> -> vector<392x32xf32>
    %15 = arith.maximumf %11, %14 : vector<392x32xf32>
    %c0_13 = arith.constant 0 : index
    %c0_14 = arith.constant 0 : index
    %16 = vector.load %arg3[%c0_13, %c0_14] : memref<1x32xf32, #tpu.memory_space<vmem>>, vector<1x32xf32>
    %17 = vector.broadcast %16 : vector<1x32xf32> to vector<392x32xf32>
    %18 = arith.addf %15, %17 : vector<392x32xf32>
    %cst_15 = arith.constant 2.000000e-01 : f32
    %19 = vector.broadcast %cst_15 : f32 to vector<392x32xf32>
    %20 = arith.mulf %19, %18 : vector<392x32xf32>
    %21 = arith.maximumf %18, %20 : vector<392x32xf32>
    %22 = arith.truncf %21 : vector<392x32xf32> to vector<392x32xbf16>
    %c0_16 = arith.constant 0 : index
    %c0_17 = arith.constant 0 : index
    %23 = vector.load %arg4[%c0_16, %c0_17] : memref<392x32xbf16, #tpu.memory_space<vmem>>, vector<392x32xbf16>
    tpu.vector_store %arg4[%c0_16, %c0_17], %22 {strides = array<i32>} : memref<392x32xbf16, #tpu.memory_space<vmem>>, vector<392x32xbf16>,
    return
  }
  func.func @transform_0(%arg0: i32) -> (i32, i32, i32) {
    %c0_i32 = arith.constant 0 : i32
    %c0_i32_0 = arith.constant 0 : i32
    %c0_i32_1 = arith.constant 0 : i32
    return %c0_i32, %arg0, %c0_i32_0 : i32, i32, i32
  }
  func.func @transform_1(%arg0: i32) -> (i32, i32) {
    %c0_i32 = arith.constant 0 : i32
    %c0_i32_0 = arith.constant 0 : i32
    %c0_i32_1 = arith.constant 0 : i32
    return %c0_i32, %c0_i32_0 : i32, i32
  }
  func.func @transform_2(%arg0: i32) -> (i32, i32) {
    %c0_i32 = arith.constant 0 : i32
    %c0_i32_0 = arith.constant 0 : i32
    %c0_i32_1 = arith.constant 0 : i32
    return %c0_i32, %c0_i32_0 : i32, i32
  }
  func.func @transform_3(%arg0: i32) -> (i32, i32) {
    %c0_i32 = arith.constant 0 : i32
    %c0_i32_0 = arith.constant 0 : i32
    return %arg0, %c0_i32 : i32, i32
  }
}

module attributes {stable_mosaic.version = 11 : i64} {
  func.func @_conv_pool_kernel(%arg0: i32, %arg1: memref<4x104x800xbf16, #tpu.memory_space<vmem>>, %arg2: memref<800x64xbf16, #tpu.memory_space<vmem>>, %arg3: memref<1x64xf32, #tpu.memory_space<vmem>>, %arg4: memref<104x64xbf16, #tpu.memory_space<vmem>>) attributes {dimension_semantics = [#tpu.dimension_semantics<parallel>], iteration_bounds = array<i64: 1>, scalar_prefetch = 0 : i64, scratch_operands = 0 : i64, tpu.core_type = #tpu.core_type<tc>, window_params = [{transform_indices = @transform_0, window_bounds = array<i64: 4, 104, 800>}, {pipeline_mode = #tpu.pipeline_mode<synchronous>, transform_indices = @transform_1, window_bounds = array<i64: 800, 64>}, {pipeline_mode = #tpu.pipeline_mode<synchronous>, transform_indices = @transform_2, window_bounds = array<i64: 1, 64>}, {transform_indices = @transform_3, window_bounds = array<i64: 104, 64>}]} {
    %c0 = arith.constant 0 : index
    %c0_0 = arith.constant 0 : index
    %0 = vector.load %arg2[%c0, %c0_0] : memref<800x64xbf16, #tpu.memory_space<vmem>>, vector<800x64xbf16>
    %c0_1 = arith.constant 0 : index
    %c0_2 = arith.constant 0 : index
    %c0_3 = arith.constant 0 : index
    %1 = vector.load %arg1[%c0_1, %c0_2, %c0_3] : memref<4x104x800xbf16, #tpu.memory_space<vmem>>, vector<1x104x800xbf16>
    %2 = vector.shape_cast %1 : vector<1x104x800xbf16> to vector<104x800xbf16>
    %cst = arith.constant dense<0.000000e+00> : vector<104x64xf32>
    %3 = tpu.matmul %2, %0, %cst {dimension_numbers = #tpu.dot_dimension_numbers<[1], [0], [0], [1], [0, 0, 1, 1], [], []>} : vector<104x800xbf16>, vector<800x64xbf16>, vector<104x64xf32> -> vector<104x64xf32>
    %c1 = arith.constant 1 : index
    %c0_4 = arith.constant 0 : index
    %c0_5 = arith.constant 0 : index
    %4 = vector.load %arg1[%c1, %c0_4, %c0_5] : memref<4x104x800xbf16, #tpu.memory_space<vmem>>, vector<1x104x800xbf16>
    %5 = vector.shape_cast %4 : vector<1x104x800xbf16> to vector<104x800xbf16>
    %cst_6 = arith.constant dense<0.000000e+00> : vector<104x64xf32>
    %6 = tpu.matmul %5, %0, %cst_6 {dimension_numbers = #tpu.dot_dimension_numbers<[1], [0], [0], [1], [0, 0, 1, 1], [], []>} : vector<104x800xbf16>, vector<800x64xbf16>, vector<104x64xf32> -> vector<104x64xf32>
    %7 = arith.maximumf %3, %6 : vector<104x64xf32>
    %c2 = arith.constant 2 : index
    %c0_7 = arith.constant 0 : index
    %c0_8 = arith.constant 0 : index
    %8 = vector.load %arg1[%c2, %c0_7, %c0_8] : memref<4x104x800xbf16, #tpu.memory_space<vmem>>, vector<1x104x800xbf16>
    %9 = vector.shape_cast %8 : vector<1x104x800xbf16> to vector<104x800xbf16>
    %cst_9 = arith.constant dense<0.000000e+00> : vector<104x64xf32>
    %10 = tpu.matmul %9, %0, %cst_9 {dimension_numbers = #tpu.dot_dimension_numbers<[1], [0], [0], [1], [0, 0, 1, 1], [], []>} : vector<104x800xbf16>, vector<800x64xbf16>, vector<104x64xf32> -> vector<104x64xf32>
    %11 = arith.maximumf %7, %10 : vector<104x64xf32>
    %c3 = arith.constant 3 : index
    %c0_10 = arith.constant 0 : index
    %c0_11 = arith.constant 0 : index
    %12 = vector.load %arg1[%c3, %c0_10, %c0_11] : memref<4x104x800xbf16, #tpu.memory_space<vmem>>, vector<1x104x800xbf16>
    %13 = vector.shape_cast %12 : vector<1x104x800xbf16> to vector<104x800xbf16>
    %cst_12 = arith.constant dense<0.000000e+00> : vector<104x64xf32>
    %14 = tpu.matmul %13, %0, %cst_12 {dimension_numbers = #tpu.dot_dimension_numbers<[1], [0], [0], [1], [0, 0, 1, 1], [], []>} : vector<104x800xbf16>, vector<800x64xbf16>, vector<104x64xf32> -> vector<104x64xf32>
    %15 = arith.maximumf %11, %14 : vector<104x64xf32>
    %c0_13 = arith.constant 0 : index
    %c0_14 = arith.constant 0 : index
    %16 = vector.load %arg3[%c0_13, %c0_14] : memref<1x64xf32, #tpu.memory_space<vmem>>, vector<1x64xf32>
    %17 = vector.broadcast %16 : vector<1x64xf32> to vector<104x64xf32>
    %18 = arith.addf %15, %17 : vector<104x64xf32>
    %cst_15 = arith.constant 2.000000e-01 : f32
    %19 = vector.broadcast %cst_15 : f32 to vector<104x64xf32>
    %20 = arith.mulf %19, %18 : vector<104x64xf32>
    %21 = arith.maximumf %18, %20 : vector<104x64xf32>
    %22 = arith.truncf %21 : vector<104x64xf32> to vector<104x64xbf16>
    %c0_16 = arith.constant 0 : index
    %c0_17 = arith.constant 0 : index
    %23 = vector.load %arg4[%c0_16, %c0_17] : memref<104x64xbf16, #tpu.memory_space<vmem>>, vector<104x64xbf16>
    tpu.vector_store %arg4[%c0_16, %c0_17], %22 {strides = array<i32>} : memref<104x64xbf16, #tpu.memory_space<vmem>>, vector<104x64xbf16>,
    return
  }
  func.func @transform_0(%arg0: i32) -> (i32, i32, i32) {
    %c0_i32 = arith.constant 0 : i32
    %c0_i32_0 = arith.constant 0 : i32
    %c0_i32_1 = arith.constant 0 : i32
    return %c0_i32, %arg0, %c0_i32_0 : i32, i32, i32
  }
  func.func @transform_1(%arg0: i32) -> (i32, i32) {
    %c0_i32 = arith.constant 0 : i32
    %c0_i32_0 = arith.constant 0 : i32
    %c0_i32_1 = arith.constant 0 : i32
    return %c0_i32, %c0_i32_0 : i32, i32
  }
  func.func @transform_2(%arg0: i32) -> (i32, i32) {
    %c0_i32 = arith.constant 0 : i32
    %c0_i32_0 = arith.constant 0 : i32
    %c0_i32_1 = arith.constant 0 : i32
    return %c0_i32, %c0_i32_0 : i32, i32
  }
  func.func @transform_3(%arg0: i32) -> (i32, i32) {
    %c0_i32 = arith.constant 0 : i32
    %c0_i32_0 = arith.constant 0 : i32
    return %arg0, %c0_i32 : i32, i32
  }
}

module attributes {stable_mosaic.version = 11 : i64} {
  func.func @_fc_head_kernel(%arg0: i32, %arg1: i32, %arg2: i32, %arg3: memref<2x3136xbf16, #tpu.memory_space<vmem>>, %arg4: memref<3136x512xbf16, #tpu.memory_space<vmem>>, %arg5: memref<1x512xf32, #tpu.memory_space<vmem>>, %arg6: memref<512x10xbf16, #tpu.memory_space<vmem>>, %arg7: memref<1x2x10xf32, #tpu.memory_space<vmem>>, %arg8: memref<2x10xf32, #tpu.memory_space<vmem>>) attributes {dimension_semantics = [#tpu.dimension_semantics<parallel>, #tpu.dimension_semantics<parallel>, #tpu.dimension_semantics<arbitrary>], iteration_bounds = array<i64: 1, 2, 1>, scalar_prefetch = 0 : i64, scratch_operands = 1 : i64, tpu.core_type = #tpu.core_type<tc>, window_params = [{transform_indices = @transform_0, window_bounds = array<i64: 2, 3136>}, {transform_indices = @transform_1, window_bounds = array<i64: 3136, 512>}, {transform_indices = @transform_2, window_bounds = array<i64: 1, 512>}, {transform_indices = @transform_3, window_bounds = array<i64: 512, 10>}, {transform_indices = @transform_4, window_bounds = array<i64: 1, 2, 10>}]} {
    %c0_i32 = arith.constant 0 : i32
    %0 = arith.cmpi eq, %arg2, %c0_i32 : i32
    %1 = arith.extui %0 : i1 to i32
    %c0_i32_0 = arith.constant 0 : i32
    %2 = arith.cmpi ne, %1, %c0_i32_0 : i32
    scf.if %2 {
      %cst_16 = arith.constant 0.000000e+00 : f32
      %21 = vector.broadcast %cst_16 : f32 to vector<2x10xf32>
      %c0_17 = arith.constant 0 : index
      %c0_18 = arith.constant 0 : index
      %22 = vector.load %arg8[%c0_17, %c0_18] : memref<2x10xf32, #tpu.memory_space<vmem>>, vector<2x10xf32>
      tpu.vector_store %arg8[%c0_17, %c0_18], %21 {strides = array<i32>} : memref<2x10xf32, #tpu.memory_space<vmem>>, vector<2x10xf32>,
    } else {
    }
    %c0 = arith.constant 0 : index
    %c0_1 = arith.constant 0 : index
    %3 = vector.load %arg3[%c0, %c0_1] : memref<2x3136xbf16, #tpu.memory_space<vmem>>, vector<2x3136xbf16>
    %c0_2 = arith.constant 0 : index
    %c0_3 = arith.constant 0 : index
    %4 = vector.load %arg4[%c0_2, %c0_3] : memref<3136x512xbf16, #tpu.memory_space<vmem>>, vector<3136x512xbf16>
    %cst = arith.constant dense<0.000000e+00> : vector<2x512xf32>
    %5 = tpu.matmul %3, %4, %cst {dimension_numbers = #tpu.dot_dimension_numbers<[1], [0], [0], [1], [0, 0, 1, 1], [], []>} : vector<2x3136xbf16>, vector<3136x512xbf16>, vector<2x512xf32> -> vector<2x512xf32>
    %c0_4 = arith.constant 0 : index
    %c0_5 = arith.constant 0 : index
    %6 = vector.load %arg5[%c0_4, %c0_5] : memref<1x512xf32, #tpu.memory_space<vmem>>, vector<1x512xf32>
    %7 = vector.broadcast %6 : vector<1x512xf32> to vector<2x512xf32>
    %8 = arith.addf %5, %7 : vector<2x512xf32>
    %cst_6 = arith.constant 2.000000e-01 : f32
    %9 = vector.broadcast %cst_6 : f32 to vector<2x512xf32>
    %10 = arith.mulf %9, %8 : vector<2x512xf32>
    %11 = arith.maximumf %8, %10 : vector<2x512xf32>
    %c0_7 = arith.constant 0 : index
    %c0_8 = arith.constant 0 : index
    %12 = vector.load %arg8[%c0_7, %c0_8] : memref<2x10xf32, #tpu.memory_space<vmem>>, vector<2x10xf32>
    %13 = arith.truncf %11 : vector<2x512xf32> to vector<2x512xbf16>
    %c0_9 = arith.constant 0 : index
    %c0_10 = arith.constant 0 : index
    %14 = vector.load %arg6[%c0_9, %c0_10] : memref<512x10xbf16, #tpu.memory_space<vmem>>, vector<512x10xbf16>
    %cst_11 = arith.constant dense<0.000000e+00> : vector<2x10xf32>
    %15 = tpu.matmul %13, %14, %cst_11 {dimension_numbers = #tpu.dot_dimension_numbers<[1], [0], [0], [1], [0, 0, 1, 1], [], []>} : vector<2x512xbf16>, vector<512x10xbf16>, vector<2x10xf32> -> vector<2x10xf32>
    %16 = arith.addf %12, %15 : vector<2x10xf32>
    %c0_12 = arith.constant 0 : index
    %c0_13 = arith.constant 0 : index
    %17 = vector.load %arg8[%c0_12, %c0_13] : memref<2x10xf32, #tpu.memory_space<vmem>>, vector<2x10xf32>
    tpu.vector_store %arg8[%c0_12, %c0_13], %16 {strides = array<i32>} : memref<2x10xf32, #tpu.memory_space<vmem>>, vector<2x10xf32>,
    %c0_i32_14 = arith.constant 0 : i32
    %18 = arith.cmpi eq, %arg2, %c0_i32_14 : i32
    %19 = arith.extui %18 : i1 to i32
    %c0_i32_15 = arith.constant 0 : i32
    %20 = arith.cmpi ne, %19, %c0_i32_15 : i32
    scf.if %20 {
      %c0_16 = arith.constant 0 : index
      %c0_17 = arith.constant 0 : index
      %21 = vector.load %arg8[%c0_16, %c0_17] : memref<2x10xf32, #tpu.memory_space<vmem>>, vector<2x10xf32>
      %c0_18 = arith.constant 0 : index
      %c0_19 = arith.constant 0 : index
      %c0_20 = arith.constant 0 : index
      %22 = vector.load %arg7[%c0_18, %c0_19, %c0_20] : memref<1x2x10xf32, #tpu.memory_space<vmem>>, vector<1x2x10xf32>
      %23 = vector.shape_cast %22 : vector<1x2x10xf32> to vector<2x10xf32>
      %24 = vector.shape_cast %21 : vector<2x10xf32> to vector<1x2x10xf32>
      tpu.vector_store %arg7[%c0_18, %c0_19, %c0_20], %24 {strides = array<i32>} : memref<1x2x10xf32, #tpu.memory_space<vmem>>, vector<1x2x10xf32>,
    } else {
    }
    return
  }
  func.func @transform_0(%arg0: i32, %arg1: i32, %arg2: i32) -> (i32, i32) {
    %c0_i32 = arith.constant 0 : i32
    %c0_i32_0 = arith.constant 0 : i32
    return %arg0, %c0_i32 : i32, i32
  }
  func.func @transform_1(%arg0: i32, %arg1: i32, %arg2: i32) -> (i32, i32) {
    %c1_i32 = arith.constant 1 : i32
    %0 = arith.muli %arg1, %c1_i32 : i32
    %1 = arith.addi %0, %arg2 : i32
    %c0_i32 = arith.constant 0 : i32
    %c0_i32_0 = arith.constant 0 : i32
    return %c0_i32, %1 : i32, i32
  }
  func.func @transform_2(%arg0: i32, %arg1: i32, %arg2: i32) -> (i32, i32) {
    %c1_i32 = arith.constant 1 : i32
    %0 = arith.muli %arg1, %c1_i32 : i32
    %1 = arith.addi %0, %arg2 : i32
    %c0_i32 = arith.constant 0 : i32
    %c0_i32_0 = arith.constant 0 : i32
    return %c0_i32, %1 : i32, i32
  }
  func.func @transform_3(%arg0: i32, %arg1: i32, %arg2: i32) -> (i32, i32) {
    %c1_i32 = arith.constant 1 : i32
    %0 = arith.muli %arg1, %c1_i32 : i32
    %1 = arith.addi %0, %arg2 : i32
    %c0_i32 = arith.constant 0 : i32
    %c0_i32_0 = arith.constant 0 : i32
    return %1, %c0_i32 : i32, i32
  }
  func.func @transform_4(%arg0: i32, %arg1: i32, %arg2: i32) -> (i32, i32, i32) {
    %c0_i32 = arith.constant 0 : i32
    %c0_i32_0 = arith.constant 0 : i32
    return %arg1, %arg0, %c0_i32 : i32, i32, i32
  }
}

</mosaic_0001>

<bundles_post_ra>
// kernel: discriminator_forward.3
= control target key start
LH: loop header
LB: loop body
LE: loop exit
PB: predicated region body
PF: predicated region fallthrough
CT: control target
= control target key end

     0   :  { %vm278_vm0 = vcmask 1043456   ;;  %vm279_vm1 = vcmask 1044480   ;;  %v2702_v2 = vmov 65535   ;;  %vm202_vm2 = vcmask 203776   ;;  %s3387_s1 = inlined_call_operand.vmem [shape: bf16[25,32], index: 1, kind: input, shape index: {}]   ;;  %s3388_s0 = inlined_call_operand.vmem [shape: bf16[4,392,25], index: 0, kind: input, shape index: {}]   ;;  %s3389_s2 = inlined_call_operand.vmem [shape: f32[1,32], index: 2, kind: input, shape index: {}]   ;;  %s3390_s3 = inlined_call_operand.vmem [shape: bf16[392,32], index: 3, kind: output, shape index: {}]  }
   0x1   :  { %v2064_v0 = vld [vmem:[%s3387_s1 + $0x8] sm:$0xf]  ;;  %v2602_v1 = vld [vmem:[%s3387_s1 + $0x8] sm:$0x10]  ;;  %v280_v3 = vsel %vm278_vm0, 4294967295, %v2702_v2  ;;  %v2601_v7 = vld [vmem:[%s3387_s1] sm:$0xff] }
   0x2   :  { %v2065_v4 = vor.u32 %v2602_v1, %v2064_v0  ;;  %v281_v5 = vsel %vm279_vm1, %v280_v3, 0  ;;  %v2603_v8 = vld [vmem:[%s3388_s0] sm:$0xff]  ;;  %v2651_v10 = vld [vmem:[%s3388_s0 + $0x188] sm:$0xff]  ;;  %v2652_v14 = vld [vmem:[%s3388_s0 + $0x190] sm:$0xff]  ;;  %vm1908_vm3 = vcmask 257024  }
   0x3   :  { %v2627_v9 = vld [vmem:[%s3388_s0 + $0xc4] sm:$0xff]  ;;  %v2675_v11 = vld [vmem:[%s3388_s0 + $0x24c] sm:$0xff]  ;;  %v2676_v15 = vld [vmem:[%s3388_s0 + $0x254] sm:$0xff] }
   0x4   :  { %v283_v6 = vand.u32 %v2065_v4, %v281_v5  ;;  %v2604_v12 = vld [vmem:[%s3388_s0 + $0x8] sm:$0xff]  ;;  %v2605_v16 = vld [vmem:[%s3388_s0 + $0x10] sm:$0xff]  ;;  %v2653_v18 = vld [vmem:[%s3388_s0 + $0x198] sm:$0xff] }
   0x5   :  { %v2628_v13 = vld [vmem:[%s3388_s0 + $0xcc] sm:$0xff]  ;;  %v2629_v17 = vld [vmem:[%s3388_s0 + $0xd4] sm:$0xff]  ;;  %v2677_v19 = vld [vmem:[%s3388_s0 + $0x25c] sm:$0xff] }
   0x6   :  { %291 = vmatpush.bf16.msra.mxu0 %v283_v6  ;;  %672 = vmatpush.bf16.msra.mxu1 %v283_v6  ;;  %v2606_v20 = vld [vmem:[%s3388_s0 + $0x18] sm:$0xff]  ;;  %v2654_v22 = vld [vmem:[%s3388_s0 + $0x1a0] sm:$0xff]  ;;  %v2655_v26 = vld [vmem:[%s3388_s0 + $0x1a8] sm:$0xff] }
   0x7   :  { %1102 = vmatpush.bf16.msra.mxu2 %v283_v6  ;;  %1532 = vmatpush.bf16.msra.mxu3 %v283_v6  ;;  %v2630_v21 = vld [vmem:[%s3388_s0 + $0xdc] sm:$0xff]  ;;  %v2678_v23 = vld [vmem:[%s3388_s0 + $0x264] sm:$0xff]  ;;  %v2679_v27 = vld [vmem:[%s3388_s0 + $0x26c] sm:$0xff] }
   0x8   :  { %v2607_v24 = vld [vmem:[%s3388_s0 + $0x20] sm:$0xff]  ;;  %v2608_v28 = vld [vmem:[%s3388_s0 + $0x28] sm:$0xff]  ;;  %v2656_v30 = vld [vmem:[%s3388_s0 + $0x1b0] sm:$0xff] }
   0x9   :  { %v2631_v25 = vld [vmem:[%s3388_s0 + $0xe4] sm:$0xff]  ;;  %v2632_v29 = vld [vmem:[%s3388_s0 + $0xec] sm:$0xff]  ;;  %v2680_v31 = vld [vmem:[%s3388_s0 + $0x274] sm:$0xff] }
   0xa   :  { %292 = vmatpush.bf16.msra.mxu0 %v2601_v7  ;;  %673 = vmatpush.bf16.msra.mxu1 %v2601_v7  ;;  %v2609_v32 = vld [vmem:[%s3388_s0 + $0x30] sm:$0xff]  ;;  %v2657_v34 = vld [vmem:[%s3388_s0 + $0x1b8] sm:$0xff]  ;;  %v2658_v38 = vld [vmem:[%s3388_s0 + $0x1c0] sm:$0xff] }
   0xb   :  { %1103 = vmatpush.bf16.msra.mxu2 %v2601_v7  ;;  %1533 = vmatpush.bf16.msra.mxu3 %v2601_v7  ;;  %v2633_v33 = vld [vmem:[%s3388_s0 + $0xf4] sm:$0xff]  ;;  %v2681_v35 = vld [vmem:[%s3388_s0 + $0x27c] sm:$0xff]  ;;  %v2682_v39 = vld [vmem:[%s3388_s0 + $0x284] sm:$0xff] }
   0xc   :  { %v2610_v36 = vld [vmem:[%s3388_s0 + $0x38] sm:$0xff]  ;;  %v2611_v40 = vld [vmem:[%s3388_s0 + $0x40] sm:$0xff]  ;;  %v2659_v44 = vld [vmem:[%s3388_s0 + $0x1c8] sm:$0xff] }
   0xd   :  { %2066 = vmatmul.msk.bf16.vlgmr.msra.gmra.mxu0 %vm202_vm2, %v2603_v8  ;;  %2236 = vmatmul.msk.bf16.vlgmr.msra.gmra.mxu1 %vm202_vm2, %v2627_v9  ;;  %v2634_v37 = vld [vmem:[%s3388_s0 + $0xfc] sm:$0xff]  ;;  %v2635_v41 = vld [vmem:[%s3388_s0 + $0x104] sm:$0xff]  ;;  %v2683_v45 = vld [vmem:[%s3388_s0 + $0x28c] sm:$0xff] }
   0xe   :  { %2406 = vmatmul.msk.bf16.vlgmr.msra.gmra.mxu2 %vm202_vm2, %v2651_v10  ;;  %2576 = vmatmul.msk.bf16.vlgmr.msra.gmra.mxu3 %vm202_vm2, %v2675_v11  ;;  %v2879_v50 = vld [vmem:[%s3389_s2] ss:$0 sm:$0xff]  ;;  %v2612_v59 = vld [vmem:[%s3388_s0 + $0x48] sm:$0xff]  ;;  %v2660_v1 = vld [vmem:[%s3388_s0 + $0x1d0] sm:$0xff] }
   0xf   :  { %v2636_v60 = vld [vmem:[%s3388_s0 + $0x10c] sm:$0xff]  ;;  %v2684_v2 = vld [vmem:[%s3388_s0 + $0x294] sm:$0xff] }
  0x1d   :  { %2067 = vmatmul.msk.bf16.gmra.mxu0 %vm202_vm2, %v2604_v12  ;;  %2237 = vmatmul.msk.bf16.gmra.mxu1 %vm202_vm2, %v2628_v13 }
  0x1e   :  { %2407 = vmatmul.msk.bf16.gmra.mxu2 %vm202_vm2, %v2652_v14  ;;  %2577 = vmatmul.msk.bf16.gmra.mxu3 %vm202_vm2, %v2676_v15 }
  0x2d   :  { %2068 = vmatmul.msk.bf16.gmra.mxu0 %vm202_vm2, %v2605_v16  ;;  %2238 = vmatmul.msk.bf16.gmra.mxu1 %vm202_vm2, %v2629_v17 }
  0x2e   :  { %2408 = vmatmul.msk.bf16.gmra.mxu2 %vm202_vm2, %v2653_v18  ;;  %2578 = vmatmul.msk.bf16.gmra.mxu3 %vm202_vm2, %v2677_v19 }
  0x3d   :  { %2069 = vmatmul.msk.bf16.gmra.mxu0 %vm202_vm2, %v2606_v20  ;;  %2239 = vmatmul.msk.bf16.gmra.mxu1 %vm202_vm2, %v2630_v21  ;;  %v2613_v21 = vld [vmem:[%s3388_s0 + $0x50] sm:$0xff] }
  0x3e   :  { %2409 = vmatmul.msk.bf16.gmra.mxu2 %vm202_vm2, %v2654_v22  ;;  %2579 = vmatmul.msk.bf16.gmra.mxu3 %vm202_vm2, %v2678_v23  ;;  %v2637_v22 = vld [vmem:[%s3388_s0 + $0x114] sm:$0xff] }
  0x4d   :  { %2070 = vmatmul.msk.bf16.gmra.mxu0 %vm202_vm2, %v2607_v24  ;;  %2240 = vmatmul.msk.bf16.gmra.mxu1 %vm202_vm2, %v2631_v25 }
  0x4e   :  { %2410 = vmatmul.msk.bf16.gmra.mxu2 %vm202_vm2, %v2655_v26  ;;  %2580 = vmatmul.msk.bf16.gmra.mxu3 %vm202_vm2, %v2679_v27  ;;  %v2661_v27 = vld [vmem:[%s3388_s0 + $0x1d8] sm:$0xff] }
  0x5d   :  { %2071 = vmatmul.msk.bf16.gmra.mxu0 %vm202_vm2, %v2608_v28  ;;  %2241 = vmatmul.msk.bf16.gmra.mxu1 %vm202_vm2, %v2632_v29  ;;  %v2685_v28 = vld [vmem:[%s3388_s0 + $0x29c] sm:$0xff] }
  0x5e   :  { %2411 = vmatmul.msk.bf16.gmra.mxu2 %vm202_vm2, %v2656_v30  ;;  %2581 = vmatmul.msk.bf16.gmra.mxu3 %vm202_vm2, %v2680_v31 }
  0x6d   :  { %2072 = vmatmul.msk.bf16.gmra.mxu0 %vm202_vm2, %v2609_v32  ;;  %2242 = vmatmul.msk.bf16.gmra.mxu1 %vm202_vm2, %v2633_v33 }
  0x6e   :  { %2412 = vmatmul.msk.bf16.gmra.mxu2 %vm202_vm2, %v2657_v34  ;;  %2582 = vmatmul.msk.bf16.gmra.mxu3 %vm202_vm2, %v2681_v35 }
  0x7d   :  { %2073 = vmatmul.msk.bf16.gmra.mxu0 %vm202_vm2, %v2610_v36  ;;  %2243 = vmatmul.msk.bf16.gmra.mxu1 %vm202_vm2, %v2634_v37 }
  0x7e   :  { %2413 = vmatmul.msk.bf16.gmra.mxu2 %vm202_vm2, %v2658_v38  ;;  %2583 = vmatmul.msk.bf16.gmra.mxu3 %vm202_vm2, %v2682_v39 }
  0x8a   :  { %v294_v42 = vpop.f32.mrf.mxu0  ;;  %v675_v43 = vpop.f32.mrf.mxu1 }
  0x8b   :  { %v799_v46 = vmax.f32 %v294_v42, %v675_v43 }
  0x8d   :  { %2074 = vmatmul.msk.bf16.gmra.mxu0 %vm202_vm2, %v2611_v40  ;;  %2244 = vmatmul.msk.bf16.gmra.mxu1 %vm202_vm2, %v2635_v41 }
  0x8e   :  { %2414 = vmatmul.msk.bf16.gmra.mxu2 %vm202_vm2, %v2659_v44  ;;  %2584 = vmatmul.msk.bf16.gmra.mxu3 %vm202_vm2, %v2683_v45 }
  0x91   :  { %v1105_v47 = vpop.f32.mrf.mxu2  ;;  %v1535_v48 = vpop.f32.mrf.mxu3 }
  0x92   :  { %v1229_v49 = vmax.f32 %v799_v46, %v1105_v47  ;;  %v296_v51 = vpop.f32.mrf.mxu0  ;;  %v677_v52 = vpop.f32.mrf.mxu1  ;;  %v2614_v47 = vld [vmem:[%s3388_s0 + $0x58] sm:$0xff] }
  0x93   :  { %v800_v56 = vmax.f32 %v296_v51, %v677_v52 }
  0x94   :  { %v1659_v53 = vmax.f32 %v1229_v49, %v1535_v48  ;;  %v2638_v48 = vld [vmem:[%s3388_s0 + $0x11c] sm:$0xff] }
  0x96   :  { %v1712_v54 = vadd.f32 %v2879_v50, %v1659_v53 }
  0x98   :  { %v1761_v55 = vmul.f32 0.2, %v1712_v54 }
  0x99   :  { %v1107_v57 = vpop.f32.mrf.mxu2  ;;  %v1537_v58 = vpop.f32.mrf.mxu3 }
  0x9a   :  { %v1810_v61 = vmax.f32 %v1712_v54, %v1761_v55  ;;  %v1230_v62 = vmax.f32 %v800_v56, %v1107_v57  ;;  %v299_v63 = vpop.f32.mrf.mxu0  ;;  %v680_v0 = vpop.f32.mrf.mxu1  ;;  %v2662_v54 = vld [vmem:[%s3388_s0 + $0x1e0] sm:$0xff] }
  0x9b   :  { %v801_v6 = vmax.f32 %v299_v63, %v680_v0  ;;  %v2686_v55 = vld [vmem:[%s3388_s0 + $0x2a4] sm:$0xff] }
  0x9c   :  { %v1859_v3 = vpack.c.bf16 %v1810_v61, %v1810_v61  ;;  %v1660_v4 = vmax.f32 %v1230_v62, %v1537_v58 }
  0x9d   :  { %2075 = vmatmul.msk.bf16.gmra.mxu0 %vm202_vm2, %v2612_v59  ;;  %2245 = vmatmul.msk.bf16.gmra.mxu1 %vm202_vm2, %v2636_v60 }
  0x9e   :  { %1909 = vst.msk [vmem:[%s3390_s3] sm:$0xf] %vm1908_vm3, %v1859_v3  ;;  %v1713_v5 = vadd.f32 %v2879_v50, %v1660_v4  ;;  %2415 = vmatmul.msk.bf16.gmra.mxu2 %vm202_vm2, %v2660_v1  ;;  %2585 = vmatmul.msk.bf16.gmra.mxu3 %vm202_vm2, %v2684_v2 }
  0xa0   :  { %v1762_v7 = vmul.f32 0.2, %v1713_v5 }
  0xa1   :  { %v1110_v8 = vpop.f32.mrf.mxu2  ;;  %v1540_v9 = vpop.f32.mrf.mxu3 }
  0xa2   :  { %v1811_v10 = vmax.f32 %v1713_v5, %v1762_v7  ;;  %v1231_v11 = vmax.f32 %v801_v6, %v1110_v8  ;;  %v301_v12 = vpop.f32.mrf.mxu0  ;;  %v682_v13 = vpop.f32.mrf.mxu1 }
  0xa3   :  { %v802_v18 = vmax.f32 %v301_v12, %v682_v13 }
  0xa4   :  { %v1860_v14 = vpack.c.bf16 %v1811_v10, %v1811_v10  ;;  %v1661_v15 = vmax.f32 %v1231_v11, %v1540_v9  ;;  %v2615_v10 = vld [vmem:[%s3388_s0 + $0x60] sm:$0xff] }
  0xa5   :  { %v2639_v11 = vld [vmem:[%s3388_s0 + $0x124] sm:$0xff] }
  0xa6   :  { %1910 = vst.msk [vmem:[%s3390_s3 + $0x4] sm:$0xf] %vm1908_vm3, %v1860_v14  ;;  %v1714_v16 = vadd.f32 %v2879_v50, %v1661_v15 }
  0xa8   :  { %v1763_v17 = vmul.f32 0.2, %v1714_v16 }
  0xa9   :  { %v1112_v19 = vpop.f32.mrf.mxu2  ;;  %v1542_v20 = vpop.f32.mrf.mxu3 }
  0xaa   :  { %v1812_v23 = vmax.f32 %v1714_v16, %v1763_v17  ;;  %v1232_v24 = vmax.f32 %v802_v18, %v1112_v19  ;;  %v304_v25 = vpop.f32.mrf.mxu0  ;;  %v685_v26 = vpop.f32.mrf.mxu1  ;;  %v2663_v16 = vld [vmem:[%s3388_s0 + $0x1e8] sm:$0xff] }
  0xab   :  { %v803_v32 = vmax.f32 %v304_v25, %v685_v26  ;;  %v2687_v17 = vld [vmem:[%s3388_s0 + $0x2ac] sm:$0xff] }
  0xac   :  { %v1861_v29 = vpack.c.bf16 %v1812_v23, %v1812_v23  ;;  %v1662_v30 = vmax.f32 %v1232_v24, %v1542_v20 }
  0xad   :  { %2076 = vmatmul.msk.bf16.gmra.mxu0 %vm202_vm2, %v2613_v21  ;;  %2246 = vmatmul.msk.bf16.gmra.mxu1 %vm202_vm2, %v2637_v22 }
  0xae   :  { %1911 = vst.msk [vmem:[%s3390_s3 + $0x8] sm:$0xf] %vm1908_vm3, %v1861_v29  ;;  %v1715_v31 = vadd.f32 %v2879_v50, %v1662_v30  ;;  %2416 = vmatmul.msk.bf16.gmra.mxu2 %vm202_vm2, %v2661_v27  ;;  %2586 = vmatmul.msk.bf16.gmra.mxu3 %vm202_vm2, %v2685_v28 }
  0xb0   :  { %v1764_v33 = vmul.f32 0.2, %v1715_v31 }
  0xb1   :  { %v1115_v34 = vpop.f32.mrf.mxu2  ;;  %v1545_v35 = vpop.f32.mrf.mxu3 }
  0xb2   :  { %v1813_v36 = vmax.f32 %v1715_v31, %v1764_v33  ;;  %v1233_v37 = vmax.f32 %v803_v32, %v1115_v34  ;;  %v306_v38 = vpop.f32.mrf.mxu0  ;;  %v687_v39 = vpop.f32.mrf.mxu1 }
  0xb3   :  { %v804_v44 = vmax.f32 %v306_v38, %v687_v39 }
  0xb4   :  { %v1862_v40 = vpack.c.bf16 %v1813_v36, %v1813_v36  ;;  %v1663_v41 = vmax.f32 %v1233_v37, %v1545_v35  ;;  %v2616_v36 = vld [vmem:[%s3388_s0 + $0x68] sm:$0xff] }
  0xb5   :  { %v2640_v37 = vld [vmem:[%s3388_s0 + $0x12c] sm:$0xff] }
  0xb6   :  { %1912 = vst.msk [vmem:[%s3390_s3 + $0xc] sm:$0xf] %vm1908_vm3, %v1862_v40  ;;  %v1716_v42 = vadd.f32 %v2879_v50, %v1663_v41 }
  0xb8   :  { %v1765_v43 = vmul.f32 0.2, %v1716_v42 }
  0xb9   :  { %v1117_v45 = vpop.f32.mrf.mxu2  ;;  %v1547_v46 = vpop.f32.mrf.mxu3 }
  0xba   :  { %v1814_v49 = vmax.f32 %v1716_v42, %v1765_v43  ;;  %v1234_v51 = vmax.f32 %v804_v44, %v1117_v45  ;;  %v309_v52 = vpop.f32.mrf.mxu0  ;;  %v690_v53 = vpop.f32.mrf.mxu1  ;;  %v2664_v42 = vld [vmem:[%s3388_s0 + $0x1f0] sm:$0xff] }
  0xbb   :  { %v805_v59 = vmax.f32 %v309_v52, %v690_v53  ;;  %v2688_v43 = vld [vmem:[%s3388_s0 + $0x2b4] sm:$0xff] }
  0xbc   :  { %v1863_v56 = vpack.c.bf16 %v1814_v49, %v1814_v49  ;;  %v1664_v57 = vmax.f32 %v1234_v51, %v1547_v46 }
  0xbd   :  { %2077 = vmatmul.msk.bf16.gmra.mxu0 %vm202_vm2, %v2614_v47  ;;  %2247 = vmatmul.msk.bf16.gmra.mxu1 %vm202_vm2, %v2638_v48 }
  0xbe   :  { %1913 = vst.msk [vmem:[%s3390_s3 + $0x10] sm:$0xf] %vm1908_vm3, %v1863_v56  ;;  %v1717_v58 = vadd.f32 %v2879_v50, %v1664_v57  ;;  %2417 = vmatmul.msk.bf16.gmra.mxu2 %vm202_vm2, %v2662_v54  ;;  %2587 = vmatmul.msk.bf16.gmra.mxu3 %vm202_vm2, %v2686_v55 }
  0xc0   :  { %v1766_v60 = vmul.f32 0.2, %v1717_v58 }
  0xc1   :  { %v1120_v61 = vpop.f32.mrf.mxu2  ;;  %v1550_v62 = vpop.f32.mrf.mxu3 }
  0xc2   :  { %v1815_v63 = vmax.f32 %v1717_v58, %v1766_v60  ;;  %v1235_v0 = vmax.f32 %v805_v59, %v1120_v61  ;;  %v311_v1 = vpop.f32.mrf.mxu0  ;;  %v692_v2 = vpop.f32.mrf.mxu1 }
  0xc3   :  { %v806_v7 = vmax.f32 %v311_v1, %v692_v2 }
  0xc4   :  { %v1864_v3 = vpack.c.bf16 %v1815_v63, %v1815_v63  ;;  %v1665_v4 = vmax.f32 %v1235_v0, %v1550_v62  ;;  %v2617_v63 = vld [vmem:[%s3388_s0 + $0x70] sm:$0xff] }
  0xc5   :  { %v2641_v0 = vld [vmem:[%s3388_s0 + $0x134] sm:$0xff] }
  0xc6   :  { %1914 = vst.msk [vmem:[%s3390_s3 + $0x14] sm:$0xf] %vm1908_vm3, %v1864_v3  ;;  %v1718_v5 = vadd.f32 %v2879_v50, %v1665_v4 }
  0xc8   :  { %v1767_v6 = vmul.f32 0.2, %v1718_v5 }
  0xc9   :  { %v1122_v8 = vpop.f32.mrf.mxu2  ;;  %v1552_v9 = vpop.f32.mrf.mxu3 }
  0xca   :  { %v1816_v12 = vmax.f32 %v1718_v5, %v1767_v6  ;;  %v1236_v13 = vmax.f32 %v806_v7, %v1122_v8  ;;  %v314_v14 = vpop.f32.mrf.mxu0  ;;  %v695_v15 = vpop.f32.mrf.mxu1  ;;  %v2665_v5 = vld [vmem:[%s3388_s0 + $0x1f8] sm:$0xff] }
  0xcb   :  { %v807_v21 = vmax.f32 %v314_v14, %v695_v15  ;;  %v2689_v6 = vld [vmem:[%s3388_s0 + $0x2bc] sm:$0xff] }
  0xcc   :  { %v1865_v18 = vpack.c.bf16 %v1816_v12, %v1816_v12  ;;  %v1666_v19 = vmax.f32 %v1236_v13, %v1552_v9 }
  0xcd   :  { %2078 = vmatmul.msk.bf16.gmra.mxu0 %vm202_vm2, %v2615_v10  ;;  %2248 = vmatmul.msk.bf16.gmra.mxu1 %vm202_vm2, %v2639_v11 }
  0xce   :  { %1915 = vst.msk [vmem:[%s3390_s3 + $0x18] sm:$0xf] %vm1908_vm3, %v1865_v18  ;;  %v1719_v20 = vadd.f32 %v2879_v50, %v1666_v19  ;;  %2418 = vmatmul.msk.bf16.gmra.mxu2 %vm202_vm2, %v2663_v16  ;;  %2588 = vmatmul.msk.bf16.gmra.mxu3 %vm202_vm2, %v2687_v17 }
  0xd0   :  { %v1768_v22 = vmul.f32 0.2, %v1719_v20 }
  0xd1   :  { %v1125_v23 = vpop.f32.mrf.mxu2  ;;  %v1555_v24 = vpop.f32.mrf.mxu3 }
  0xd2   :  { %v1817_v25 = vmax.f32 %v1719_v20, %v1768_v22  ;;  %v1237_v26 = vmax.f32 %v807_v21, %v1125_v23  ;;  %v316_v27 = vpop.f32.mrf.mxu0  ;;  %v697_v28 = vpop.f32.mrf.mxu1 }
  0xd3   :  { %v808_v33 = vmax.f32 %v316_v27, %v697_v28 }
  0xd4   :  { %v1866_v29 = vpack.c.bf16 %v1817_v25, %v1817_v25  ;;  %v1667_v30 = vmax.f32 %v1237_v26, %v1555_v24  ;;  %v2618_v25 = vld [vmem:[%s3388_s0 + $0x78] sm:$0xff] }
  0xd5   :  { %v2642_v26 = vld [vmem:[%s3388_s0 + $0x13c] sm:$0xff] }
  0xd6   :  { %1916 = vst.msk [vmem:[%s3390_s3 + $0x1c] sm:$0xf] %vm1908_vm3, %v1866_v29  ;;  %v1720_v31 = vadd.f32 %v2879_v50, %v1667_v30 }
  0xd8   :  { %v1769_v32 = vmul.f32 0.2, %v1720_v31 }
  0xd9   :  { %v1127_v34 = vpop.f32.mrf.mxu2  ;;  %v1557_v35 = vpop.f32.mrf.mxu3 }
  0xda   :  { %v1818_v38 = vmax.f32 %v1720_v31, %v1769_v32  ;;  %v1238_v39 = vmax.f32 %v808_v33, %v1127_v34  ;;  %v319_v40 = vpop.f32.mrf.mxu0  ;;  %v700_v41 = vpop.f32.mrf.mxu1  ;;  %v2666_v31 = vld [vmem:[%s3388_s0 + $0x200] sm:$0xff] }
  0xdb   :  { %v809_v47 = vmax.f32 %v319_v40, %v700_v41  ;;  %v2690_v32 = vld [vmem:[%s3388_s0 + $0x2c4] sm:$0xff] }
  0xdc   :  { %v1867_v44 = vpack.c.bf16 %v1818_v38, %v1818_v38  ;;  %v1668_v45 = vmax.f32 %v1238_v39, %v1557_v35 }
  0xdd   :  { %2079 = vmatmul.msk.bf16.gmra.mxu0 %vm202_vm2, %v2616_v36  ;;  %2249 = vmatmul.msk.bf16.gmra.mxu1 %vm202_vm2, %v2640_v37 }
  0xde   :  { %1917 = vst.msk [vmem:[%s3390_s3 + $0x20] sm:$0xf] %vm1908_vm3, %v1867_v44  ;;  %v1721_v46 = vadd.f32 %v2879_v50, %v1668_v45  ;;  %2419 = vmatmul.msk.bf16.gmra.mxu2 %vm202_vm2, %v2664_v42  ;;  %2589 = vmatmul.msk.bf16.gmra.mxu3 %vm202_vm2, %v2688_v43 }
  0xe0   :  { %v1770_v48 = vmul.f32 0.2, %v1721_v46 }
  0xe1   :  { %v1130_v49 = vpop.f32.mrf.mxu2  ;;  %v1560_v51 = vpop.f32.mrf.mxu3 }
  0xe2   :  { %v1819_v52 = vmax.f32 %v1721_v46, %v1770_v48  ;;  %v1239_v53 = vmax.f32 %v809_v47, %v1130_v49  ;;  %v321_v54 = vpop.f32.mrf.mxu0  ;;  %v702_v55 = vpop.f32.mrf.mxu1 }
  0xe3   :  { %v810_v60 = vmax.f32 %v321_v54, %v702_v55 }
  0xe4   :  { %v1868_v56 = vpack.c.bf16 %v1819_v52, %v1819_v52  ;;  %v1669_v57 = vmax.f32 %v1239_v53, %v1560_v51  ;;  %v2619_v52 = vld [vmem:[%s3388_s0 + $0x80] sm:$0xff] }
  0xe5   :  { %v2643_v53 = vld [vmem:[%s3388_s0 + $0x144] sm:$0xff] }
  0xe6   :  { %1918 = vst.msk [vmem:[%s3390_s3 + $0x24] sm:$0xf] %vm1908_vm3, %v1868_v56  ;;  %v1722_v58 = vadd.f32 %v2879_v50, %v1669_v57 }
  0xe8   :  { %v1771_v59 = vmul.f32 0.2, %v1722_v58 }
  0xe9   :  { %v1132_v61 = vpop.f32.mrf.mxu2  ;;  %v1562_v62 = vpop.f32.mrf.mxu3 }
  0xea   :  { %v1820_v1 = vmax.f32 %v1722_v58, %v1771_v59  ;;  %v1240_v2 = vmax.f32 %v810_v60, %v1132_v61  ;;  %v324_v3 = vpop.f32.mrf.mxu0  ;;  %v705_v4 = vpop.f32.mrf.mxu1  ;;  %v2667_v58 = vld [vmem:[%s3388_s0 + $0x208] sm:$0xff] }
  0xeb   :  { %v811_v10 = vmax.f32 %v324_v3, %v705_v4  ;;  %v2691_v59 = vld [vmem:[%s3388_s0 + $0x2cc] sm:$0xff] }
  0xec   :  { %v1869_v7 = vpack.c.bf16 %v1820_v1, %v1820_v1  ;;  %v1670_v8 = vmax.f32 %v1240_v2, %v1562_v62 }
  0xed   :  { %2080 = vmatmul.msk.bf16.gmra.mxu0 %vm202_vm2, %v2617_v63  ;;  %2250 = vmatmul.msk.bf16.gmra.mxu1 %vm202_vm2, %v2641_v0 }
  0xee   :  { %1919 = vst.msk [vmem:[%s3390_s3 + $0x28] sm:$0xf] %vm1908_vm3, %v1869_v7  ;;  %v1723_v9 = vadd.f32 %v2879_v50, %v1670_v8  ;;  %2420 = vmatmul.msk.bf16.gmra.mxu2 %vm202_vm2, %v2665_v5  ;;  %2590 = vmatmul.msk.bf16.gmra.mxu3 %vm202_vm2, %v2689_v6 }
  0xf0   :  { %v1772_v11 = vmul.f32 0.2, %v1723_v9 }
  0xf1   :  { %v1135_v12 = vpop.f32.mrf.mxu2  ;;  %v1565_v13 = vpop.f32.mrf.mxu3 }
  0xf2   :  { %v1821_v14 = vmax.f32 %v1723_v9, %v1772_v11  ;;  %v1241_v15 = vmax.f32 %v811_v10, %v1135_v12  ;;  %v326_v16 = vpop.f32.mrf.mxu0  ;;  %v707_v17 = vpop.f32.mrf.mxu1 }
  0xf3   :  { %v812_v22 = vmax.f32 %v326_v16, %v707_v17 }
  0xf4   :  { %v1870_v18 = vpack.c.bf16 %v1821_v14, %v1821_v14  ;;  %v1671_v19 = vmax.f32 %v1241_v15, %v1565_v13  ;;  %v2620_v14 = vld [vmem:[%s3388_s0 + $0x88] sm:$0xff] }
  0xf5   :  { %v2644_v15 = vld [vmem:[%s3388_s0 + $0x14c] sm:$0xff] }
  0xf6   :  { %1920 = vst.msk [vmem:[%s3390_s3 + $0x2c] sm:$0xf] %vm1908_vm3, %v1870_v18  ;;  %v1724_v20 = vadd.f32 %v2879_v50, %v1671_v19 }
  0xf8   :  { %v1773_v21 = vmul.f32 0.2, %v1724_v20 }
  0xf9   :  { %v1137_v23 = vpop.f32.mrf.mxu2  ;;  %v1567_v24 = vpop.f32.mrf.mxu3 }
  0xfa   :  { %v1822_v27 = vmax.f32 %v1724_v20, %v1773_v21  ;;  %v1242_v28 = vmax.f32 %v812_v22, %v1137_v23  ;;  %v329_v29 = vpop.f32.mrf.mxu0  ;;  %v710_v30 = vpop.f32.mrf.mxu1  ;;  %v2668_v20 = vld [vmem:[%s3388_s0 + $0x210] sm:$0xff] }
  0xfb   :  { %v813_v36 = vmax.f32 %v329_v29, %v710_v30  ;;  %v2692_v21 = vld [vmem:[%s3388_s0 + $0x2d4] sm:$0xff] }
  0xfc   :  { %v1871_v33 = vpack.c.bf16 %v1822_v27, %v1822_v27  ;;  %v1672_v34 = vmax.f32 %v1242_v28, %v1567_v24 }
  0xfd   :  { %2081 = vmatmul.msk.bf16.gmra.mxu0 %vm202_vm2, %v2618_v25  ;;  %2251 = vmatmul.msk.bf16.gmra.mxu1 %vm202_vm2, %v2642_v26 }
  0xfe   :  { %1921 = vst.msk [vmem:[%s3390_s3 + $0x30] sm:$0xf] %vm1908_vm3, %v1871_v33  ;;  %v1725_v35 = vadd.f32 %v2879_v50, %v1672_v34  ;;  %2421 = vmatmul.msk.bf16.gmra.mxu2 %vm202_vm2, %v2666_v31  ;;  %2591 = vmatmul.msk.bf16.gmra.mxu3 %vm202_vm2, %v2690_v32 }
 0x100   :  { %v1774_v37 = vmul.f32 0.2, %v1725_v35 }
 0x101   :  { %v1140_v38 = vpop.f32.mrf.mxu2  ;;  %v1570_v39 = vpop.f32.mrf.mxu3 }
 0x102   :  { %v1823_v40 = vmax.f32 %v1725_v35, %v1774_v37  ;;  %v1243_v41 = vmax.f32 %v813_v36, %v1140_v38  ;;  %v331_v42 = vpop.f32.mrf.mxu0  ;;  %v712_v43 = vpop.f32.mrf.mxu1 }
 0x103   :  { %v814_v48 = vmax.f32 %v331_v42, %v712_v43 }
 0x104   :  { %v1872_v44 = vpack.c.bf16 %v1823_v40, %v1823_v40  ;;  %v1673_v45 = vmax.f32 %v1243_v41, %v1570_v39  ;;  %v2621_v40 = vld [vmem:[%s3388_s0 + $0x90] sm:$0xff] }
 0x105   :  { %v2645_v41 = vld [vmem:[%s3388_s0 + $0x154] sm:$0xff] }
 0x106   :  { %1922 = vst.msk [vmem:[%s3390_s3 + $0x34] sm:$0xf] %vm1908_vm3, %v1872_v44  ;;  %v1726_v46 = vadd.f32 %v2879_v50, %v1673_v45 }
 0x108   :  { %v1775_v47 = vmul.f32 0.2, %v1726_v46 }
 0x109   :  { %v1142_v49 = vpop.f32.mrf.mxu2  ;;  %v1572_v51 = vpop.f32.mrf.mxu3 }
 0x10a   :  { %v1824_v54 = vmax.f32 %v1726_v46, %v1775_v47  ;;  %v1244_v55 = vmax.f32 %v814_v48, %v1142_v49  ;;  %v334_v56 = vpop.f32.mrf.mxu0  ;;  %v715_v57 = vpop.f32.mrf.mxu1  ;;  %v2669_v46 = vld [vmem:[%s3388_s0 + $0x218] sm:$0xff] }
 0x10b   :  { %v815_v63 = vmax.f32 %v334_v56, %v715_v57  ;;  %v2693_v47 = vld [vmem:[%s3388_s0 + $0x2dc] sm:$0xff] }
 0x10c   :  { %v1873_v60 = vpack.c.bf16 %v1824_v54, %v1824_v54  ;;  %v1674_v61 = vmax.f32 %v1244_v55, %v1572_v51 }
 0x10d   :  { %2082 = vmatmul.msk.bf16.gmra.mxu0 %vm202_vm2, %v2619_v52  ;;  %2252 = vmatmul.msk.bf16.gmra.mxu1 %vm202_vm2, %v2643_v53 }
 0x10e   :  { %1923 = vst.msk [vmem:[%s3390_s3 + $0x38] sm:$0xf] %vm1908_vm3, %v1873_v60  ;;  %v1727_v62 = vadd.f32 %v2879_v50, %v1674_v61  ;;  %2422 = vmatmul.msk.bf16.gmra.mxu2 %vm202_vm2, %v2667_v58  ;;  %2592 = vmatmul.msk.bf16.gmra.mxu3 %vm202_vm2, %v2691_v59 }
 0x110   :  { %v1776_v0 = vmul.f32 0.2, %v1727_v62 }
 0x111   :  { %v1145_v1 = vpop.f32.mrf.mxu2  ;;  %v1575_v2 = vpop.f32.mrf.mxu3 }
 0x112   :  { %v1825_v3 = vmax.f32 %v1727_v62, %v1776_v0  ;;  %v1245_v4 = vmax.f32 %v815_v63, %v1145_v1  ;;  %v336_v5 = vpop.f32.mrf.mxu0  ;;  %v717_v6 = vpop.f32.mrf.mxu1 }
 0x113   :  { %v816_v11 = vmax.f32 %v336_v5, %v717_v6 }
 0x114   :  { %v1874_v7 = vpack.c.bf16 %v1825_v3, %v1825_v3  ;;  %v1675_v8 = vmax.f32 %v1245_v4, %v1575_v2  ;;  %v2622_v3 = vld [vmem:[%s3388_s0 + $0x98] sm:$0xff] }
 0x115   :  { %v2646_v4 = vld [vmem:[%s3388_s0 + $0x15c] sm:$0xff] }
 0x116   :  { %1924 = vst.msk [vmem:[%s3390_s3 + $0x3c] sm:$0xf] %vm1908_vm3, %v1874_v7  ;;  %v1728_v9 = vadd.f32 %v2879_v50, %v1675_v8 }
 0x118   :  { %v1777_v10 = vmul.f32 0.2, %v1728_v9 }
 0x119   :  { %v1147_v12 = vpop.f32.mrf.mxu2  ;;  %v1577_v13 = vpop.f32.mrf.mxu3 }
 0x11a   :  { %v1826_v16 = vmax.f32 %v1728_v9, %v1777_v10  ;;  %v1246_v17 = vmax.f32 %v816_v11, %v1147_v12  ;;  %v339_v18 = vpop.f32.mrf.mxu0  ;;  %v720_v19 = vpop.f32.mrf.mxu1  ;;  %v2670_v9 = vld [vmem:[%s3388_s0 + $0x220] sm:$0xff] }
 0x11b   :  { %v817_v25 = vmax.f32 %v339_v18, %v720_v19  ;;  %v2694_v10 = vld [vmem:[%s3388_s0 + $0x2e4] sm:$0xff] }
 0x11c   :  { %v1875_v22 = vpack.c.bf16 %v1826_v16, %v1826_v16  ;;  %v1676_v23 = vmax.f32 %v1246_v17, %v1577_v13 }
 0x11d   :  { %2083 = vmatmul.msk.bf16.gmra.mxu0 %vm202_vm2, %v2620_v14  ;;  %2253 = vmatmul.msk.bf16.gmra.mxu1 %vm202_vm2, %v2644_v15 }
 0x11e   :  { %1925 = vst.msk [vmem:[%s3390_s3 + $0x40] sm:$0xf] %vm1908_vm3, %v1875_v22  ;;  %v1729_v24 = vadd.f32 %v2879_v50, %v1676_v23  ;;  %2423 = vmatmul.msk.bf16.gmra.mxu2 %vm202_vm2, %v2668_v20  ;;  %2593 = vmatmul.msk.bf16.gmra.mxu3 %vm202_vm2, %v2692_v21 }
 0x120   :  { %v1778_v26 = vmul.f32 0.2, %v1729_v24 }
 0x121   :  { %v1150_v27 = vpop.f32.mrf.mxu2  ;;  %v1580_v28 = vpop.f32.mrf.mxu3 }
 0x122   :  { %v1827_v29 = vmax.f32 %v1729_v24, %v1778_v26  ;;  %v1247_v30 = vmax.f32 %v817_v25, %v1150_v27  ;;  %v341_v31 = vpop.f32.mrf.mxu0  ;;  %v722_v32 = vpop.f32.mrf.mxu1 }
 0x123   :  { %v818_v37 = vmax.f32 %v341_v31, %v722_v32 }
 0x124   :  { %v1876_v33 = vpack.c.bf16 %v1827_v29, %v1827_v29  ;;  %v1677_v34 = vmax.f32 %v1247_v30, %v1580_v28  ;;  %v2623_v29 = vld [vmem:[%s3388_s0 + $0xa0] sm:$0xff] }
 0x125   :  { %v2647_v30 = vld [vmem:[%s3388_s0 + $0x164] sm:$0xff] }
 0x126   :  { %1926 = vst.msk [vmem:[%s3390_s3 + $0x44] sm:$0xf] %vm1908_vm3, %v1876_v33  ;;  %v1730_v35 = vadd.f32 %v2879_v50, %v1677_v34 }
 0x128   :  { %v1779_v36 = vmul.f32 0.2, %v1730_v35 }
 0x129   :  { %v1152_v38 = vpop.f32.mrf.mxu2  ;;  %v1582_v39 = vpop.f32.mrf.mxu3 }
 0x12a   :  { %v1828_v42 = vmax.f32 %v1730_v35, %v1779_v36  ;;  %v1248_v43 = vmax.f32 %v818_v37, %v1152_v38  ;;  %v344_v44 = vpop.f32.mrf.mxu0  ;;  %v725_v45 = vpop.f32.mrf.mxu1  ;;  %v2671_v35 = vld [vmem:[%s3388_s0 + $0x228] sm:$0xff] }
 0x12b   :  { %v819_v52 = vmax.f32 %v344_v44, %v725_v45  ;;  %v2695_v36 = vld [vmem:[%s3388_s0 + $0x2ec] sm:$0xff] }
 0x12c   :  { %v1877_v48 = vpack.c.bf16 %v1828_v42, %v1828_v42  ;;  %v1678_v49 = vmax.f32 %v1248_v43, %v1582_v39 }
 0x12d   :  { %2084 = vmatmul.msk.bf16.gmra.mxu0 %vm202_vm2, %v2621_v40  ;;  %2254 = vmatmul.msk.bf16.gmra.mxu1 %vm202_vm2, %v2645_v41 }
 0x12e   :  { %1927 = vst.msk [vmem:[%s3390_s3 + $0x48] sm:$0xf] %vm1908_vm3, %v1877_v48  ;;  %v1731_v51 = vadd.f32 %v2879_v50, %v1678_v49  ;;  %2424 = vmatmul.msk.bf16.gmra.mxu2 %vm202_vm2, %v2669_v46  ;;  %2594 = vmatmul.msk.bf16.gmra.mxu3 %vm202_vm2, %v2693_v47 }
 0x130   :  { %v1780_v53 = vmul.f32 0.2, %v1731_v51 }
 0x131   :  { %v1155_v54 = vpop.f32.mrf.mxu2  ;;  %v1585_v55 = vpop.f32.mrf.mxu3 }
 0x132   :  { %v1829_v56 = vmax.f32 %v1731_v51, %v1780_v53  ;;  %v1249_v57 = vmax.f32 %v819_v52, %v1155_v54  ;;  %v346_v58 = vpop.f32.mrf.mxu0  ;;  %v727_v59 = vpop.f32.mrf.mxu1 }
 0x133   :  { %v820_v0 = vmax.f32 %v346_v58, %v727_v59 }
 0x134   :  { %v1878_v60 = vpack.c.bf16 %v1829_v56, %v1829_v56  ;;  %v1679_v61 = vmax.f32 %v1249_v57, %v1585_v55  ;;  %v2624_v56 = vld [vmem:[%s3388_s0 + $0xa8] sm:$0xff] }
 0x135   :  { %v2648_v57 = vld [vmem:[%s3388_s0 + $0x16c] sm:$0xff] }
 0x136   :  { %1928 = vst.msk [vmem:[%s3390_s3 + $0x4c] sm:$0xf] %vm1908_vm3, %v1878_v60  ;;  %v1732_v62 = vadd.f32 %v2879_v50, %v1679_v61 }
 0x138   :  { %v1781_v63 = vmul.f32 0.2, %v1732_v62 }
 0x139   :  { %v1157_v1 = vpop.f32.mrf.mxu2  ;;  %v1587_v2 = vpop.f32.mrf.mxu3 }
 0x13a   :  { %v1830_v5 = vmax.f32 %v1732_v62, %v1781_v63  ;;  %v1250_v6 = vmax.f32 %v820_v0, %v1157_v1  ;;  %v349_v7 = vpop.f32.mrf.mxu0  ;;  %v730_v8 = vpop.f32.mrf.mxu1  ;;  %v2672_v62 = vld [vmem:[%s3388_s0 + $0x230] sm:$0xff] }
 0x13b   :  { %v821_v14 = vmax.f32 %v349_v7, %v730_v8  ;;  %v2696_v63 = vld [vmem:[%s3388_s0 + $0x2f4] sm:$0xff] }
 0x13c   :  { %v1879_v11 = vpack.c.bf16 %v1830_v5, %v1830_v5  ;;  %v1680_v12 = vmax.f32 %v1250_v6, %v1587_v2 }
 0x13d   :  { %2085 = vmatmul.msk.bf16.gmra.mxu0 %vm202_vm2, %v2622_v3  ;;  %2255 = vmatmul.msk.bf16.gmra.mxu1 %vm202_vm2, %v2646_v4 }
 0x13e   :  { %1929 = vst.msk [vmem:[%s3390_s3 + $0x50] sm:$0xf] %vm1908_vm3, %v1879_v11  ;;  %v1733_v13 = vadd.f32 %v2879_v50, %v1680_v12  ;;  %2425 = vmatmul.msk.bf16.gmra.mxu2 %vm202_vm2, %v2670_v9  ;;  %2595 = vmatmul.msk.bf16.gmra.mxu3 %vm202_vm2, %v2694_v10 }
 0x140   :  { %v1782_v15 = vmul.f32 0.2, %v1733_v13 }
 0x141   :  { %v1160_v16 = vpop.f32.mrf.mxu2  ;;  %v1590_v17 = vpop.f32.mrf.mxu3 }
 0x142   :  { %v1831_v18 = vmax.f32 %v1733_v13, %v1782_v15  ;;  %v1251_v19 = vmax.f32 %v821_v14, %v1160_v16  ;;  %v351_v20 = vpop.f32.mrf.mxu0  ;;  %v732_v21 = vpop.f32.mrf.mxu1 }
 0x143   :  { %v822_v26 = vmax.f32 %v351_v20, %v732_v21 }
 0x144   :  { %v1880_v22 = vpack.c.bf16 %v1831_v18, %v1831_v18  ;;  %v1681_v23 = vmax.f32 %v1251_v19, %v1590_v17  ;;  %v2625_v18 = vld [vmem:[%s3388_s0 + $0xb0] sm:$0xff] }
 0x145   :  { %v2649_v19 = vld [vmem:[%s3388_s0 + $0x174] sm:$0xff] }
 0x146   :  { %1930 = vst.msk [vmem:[%s3390_s3 + $0x54] sm:$0xf] %vm1908_vm3, %v1880_v22  ;;  %v1734_v24 = vadd.f32 %v2879_v50, %v1681_v23 }
 0x148   :  { %v1783_v25 = vmul.f32 0.2, %v1734_v24 }
 0x149   :  { %v1162_v27 = vpop.f32.mrf.mxu2  ;;  %v1592_v28 = vpop.f32.mrf.mxu3 }
 0x14a   :  { %v1832_v31 = vmax.f32 %v1734_v24, %v1783_v25  ;;  %v1252_v32 = vmax.f32 %v822_v26, %v1162_v27  ;;  %v354_v33 = vpop.f32.mrf.mxu0  ;;  %v735_v34 = vpop.f32.mrf.mxu1  ;;  %v2673_v24 = vld [vmem:[%s3388_s0 + $0x238] sm:$0xff] }
 0x14b   :  { %v823_v40 = vmax.f32 %v354_v33, %v735_v34  ;;  %v2697_v25 = vld [vmem:[%s3388_s0 + $0x2fc] sm:$0xff] }
 0x14c   :  { %v1881_v37 = vpack.c.bf16 %v1832_v31, %v1832_v31  ;;  %v1682_v38 = vmax.f32 %v1252_v32, %v1592_v28 }
 0x14d   :  { %2086 = vmatmul.msk.bf16.gmra.mxu0 %vm202_vm2, %v2623_v29  ;;  %2256 = vmatmul.msk.bf16.gmra.mxu1 %vm202_vm2, %v2647_v30 }
 0x14e   :  { %1931 = vst.msk [vmem:[%s3390_s3 + $0x58] sm:$0xf] %vm1908_vm3, %v1881_v37  ;;  %v1735_v39 = vadd.f32 %v2879_v50, %v1682_v38  ;;  %2426 = vmatmul.msk.bf16.gmra.mxu2 %vm202_vm2, %v2671_v35  ;;  %2596 = vmatmul.msk.bf16.gmra.mxu3 %vm202_vm2, %v2695_v36 }
 0x150   :  { %v1784_v41 = vmul.f32 0.2, %v1735_v39 }
 0x151   :  { %v1165_v42 = vpop.f32.mrf.mxu2  ;;  %v1595_v43 = vpop.f32.mrf.mxu3 }
 0x152   :  { %v1833_v44 = vmax.f32 %v1735_v39, %v1784_v41  ;;  %v1253_v45 = vmax.f32 %v823_v40, %v1165_v42  ;;  %v356_v46 = vpop.f32.mrf.mxu0  ;;  %v737_v47 = vpop.f32.mrf.mxu1 }
 0x153   :  { %v824_v53 = vmax.f32 %v356_v46, %v737_v47 }
 0x154   :  { %v1882_v48 = vpack.c.bf16 %v1833_v44, %v1833_v44  ;;  %v1683_v49 = vmax.f32 %v1253_v45, %v1595_v43  ;;  %v2626_v44 = vld [vmem:[%s3388_s0 + $0xb8] sm:$0xff] }
 0x155   :  { %v2650_v45 = vld [vmem:[%s3388_s0 + $0x17c] sm:$0xff] }
 0x156   :  { %1932 = vst.msk [vmem:[%s3390_s3 + $0x5c] sm:$0xf] %vm1908_vm3, %v1882_v48  ;;  %v1736_v51 = vadd.f32 %v2879_v50, %v1683_v49 }
 0x158   :  { %v1785_v52 = vmul.f32 0.2, %v1736_v51 }
 0x159   :  { %v1167_v54 = vpop.f32.mrf.mxu2  ;;  %v1597_v55 = vpop.f32.mrf.mxu3 }
 0x15a   :  { %v1834_v58 = vmax.f32 %v1736_v51, %v1785_v52  ;;  %v1254_v59 = vmax.f32 %v824_v53, %v1167_v54  ;;  %v359_v60 = vpop.f32.mrf.mxu0  ;;  %v740_v61 = vpop.f32.mrf.mxu1  ;;  %v2674_v51 = vld [vmem:[%s3388_s0 + $0x240] sm:$0xff] }
 0x15b   :  { %v825_v3 = vmax.f32 %v359_v60, %v740_v61  ;;  %v2698_v52 = vld [vmem:[%s3388_s0 + $0x304] sm:$0xff] }
 0x15c   :  { %v1883_v0 = vpack.c.bf16 %v1834_v58, %v1834_v58  ;;  %v1684_v1 = vmax.f32 %v1254_v59, %v1597_v55 }
 0x15d   :  { %2087 = vmatmul.msk.bf16.gmra.mxu0 %vm202_vm2, %v2624_v56  ;;  %2257 = vmatmul.msk.bf16.gmra.mxu1 %vm202_vm2, %v2648_v57 }
 0x15e   :  { %1933 = vst.msk [vmem:[%s3390_s3 + $0x60] sm:$0xf] %vm1908_vm3, %v1883_v0  ;;  %v1737_v2 = vadd.f32 %v2879_v50, %v1684_v1  ;;  %2427 = vmatmul.msk.bf16.gmra.mxu2 %vm202_vm2, %v2672_v62  ;;  %2597 = vmatmul.msk.bf16.gmra.mxu3 %vm202_vm2, %v2696_v63  ;;  %v67_v0 = vld [vmem:[%s3388_s0 + $0xc0] sm:$0xf]  ;;  %v2139_v1 = vld [vmem:[%s3388_s0 + $0x184] sm:$0xf] }
 0x160   :  { %v1786_v4 = vmul.f32 0.2, %v1737_v2 }
 0x161   :  { %v1170_v5 = vpop.f32.mrf.mxu2  ;;  %v1600_v6 = vpop.f32.mrf.mxu3 }
 0x162   :  { %v1835_v7 = vmax.f32 %v1737_v2, %v1786_v4  ;;  %v1255_v8 = vmax.f32 %v825_v3, %v1170_v5  ;;  %v361_v9 = vpop.f32.mrf.mxu0  ;;  %v742_v10 = vpop.f32.mrf.mxu1  ;;  %v2309_v2 = vld [vmem:[%s3388_s0 + $0x248] sm:$0xf]  ;;  %v2479_v3 = vld [vmem:[%s3388_s0 + $0x30c] sm:$0xf] }
 0x163   :  { %v826_v15 = vmax.f32 %v361_v9, %v742_v10  ;;  %v995_v9 = vunpack.c.l.b16 %v2309_v2  ;;  %v1425_v10 = vunpack.c.l.b16 %v2479_v3 }
 0x164   :  { %v1884_v11 = vpack.c.bf16 %v1835_v7, %v1835_v7  ;;  %v1685_v12 = vmax.f32 %v1255_v8, %v1600_v6  ;;  %v165_v6 = vunpack.c.l.b16 %v67_v0  ;;  %v565_v7 = vunpack.c.l.b16 %v2139_v1 }
 0x166   :  { %1934 = vst.msk [vmem:[%s3390_s3 + $0x64] sm:$0xf] %vm1908_vm3, %v1884_v11  ;;  %v1738_v13 = vadd.f32 %v2879_v50, %v1685_v12 }
 0x168   :  { %v1787_v14 = vmul.f32 0.2, %v1738_v13 }
 0x169   :  { %v1172_v16 = vpop.f32.mrf.mxu2  ;;  %v1602_v17 = vpop.f32.mrf.mxu3 }
 0x16a   :  { %v1836_v20 = vmax.f32 %v1738_v13, %v1787_v14  ;;  %v1256_v21 = vmax.f32 %v826_v15, %v1172_v16  ;;  %v364_v22 = vpop.f32.mrf.mxu0  ;;  %v745_v23 = vpop.f32.mrf.mxu1  ;;  %v190_v15 = vpack.c.b16 %v165_v6, %v165_v6  ;;  %v590_v16 = vpack.c.b16 %v565_v7, %v565_v7 }
 0x16b   :  { %v827_v29 = vmax.f32 %v364_v22, %v745_v23  ;;  %v1450_v22 = vpack.c.b16 %v1425_v10, %v1425_v10 }
 0x16c   :  { %v1885_v26 = vpack.c.bf16 %v1836_v20, %v1836_v20  ;;  %v1686_v27 = vmax.f32 %v1256_v21, %v1602_v17  ;;  %v1020_v21 = vpack.c.b16 %v995_v9, %v995_v9 }
 0x16d   :  { %2088 = vmatmul.msk.bf16.gmra.mxu0 %vm202_vm2, %v2625_v18  ;;  %2258 = vmatmul.msk.bf16.gmra.mxu1 %vm202_vm2, %v2649_v19 }
 0x16e   :  { %1935 = vst.msk [vmem:[%s3390_s3 + $0x68] sm:$0xf] %vm1908_vm3, %v1885_v26  ;;  %v1739_v28 = vadd.f32 %v2879_v50, %v1686_v27  ;;  %2428 = vmatmul.msk.bf16.gmra.mxu2 %vm202_vm2, %v2673_v24  ;;  %2598 = vmatmul.msk.bf16.gmra.mxu3 %vm202_vm2, %v2697_v25 }
 0x170   :  { %v1788_v30 = vmul.f32 0.2, %v1739_v28 }
 0x171   :  { %v1175_v31 = vpop.f32.mrf.mxu2  ;;  %v1605_v32 = vpop.f32.mrf.mxu3 }
 0x172   :  { %v1837_v33 = vmax.f32 %v1739_v28, %v1788_v30  ;;  %v1257_v34 = vmax.f32 %v827_v29, %v1175_v31  ;;  %v366_v35 = vpop.f32.mrf.mxu0  ;;  %v747_v36 = vpop.f32.mrf.mxu1 }
 0x173   :  { %v828_v41 = vmax.f32 %v366_v35, %v747_v36 }
 0x174   :  { %v1886_v37 = vpack.c.bf16 %v1837_v33, %v1837_v33  ;;  %v1687_v38 = vmax.f32 %v1257_v34, %v1605_v32 }
 0x176   :  { %1936 = vst.msk [vmem:[%s3390_s3 + $0x6c] sm:$0xf] %vm1908_vm3, %v1886_v37  ;;  %v1740_v39 = vadd.f32 %v2879_v50, %v1687_v38 }
 0x178   :  { %v1789_v40 = vmul.f32 0.2, %v1740_v39 }
 0x179   :  { %v1177_v42 = vpop.f32.mrf.mxu2  ;;  %v1607_v43 = vpop.f32.mrf.mxu3 }
 0x17a   :  { %v1838_v46 = vmax.f32 %v1740_v39, %v1789_v40  ;;  %v1258_v47 = vmax.f32 %v828_v41, %v1177_v42  ;;  %v369_v48 = vpop.f32.mrf.mxu0  ;;  %v750_v49 = vpop.f32.mrf.mxu1 }
 0x17b   :  { %v829_v56 = vmax.f32 %v369_v48, %v750_v49 }
 0x17c   :  { %v1887_v53 = vpack.c.bf16 %v1838_v46, %v1838_v46  ;;  %v1688_v54 = vmax.f32 %v1258_v47, %v1607_v43 }
 0x17d   :  { %2089 = vmatmul.msk.bf16.gmra.mxu0 %vm202_vm2, %v2626_v44  ;;  %2259 = vmatmul.msk.bf16.gmra.mxu1 %vm202_vm2, %v2650_v45 }
 0x17e   :  { %1937 = vst.msk [vmem:[%s3390_s3 + $0x70] sm:$0xf] %vm1908_vm3, %v1887_v53  ;;  %v1741_v55 = vadd.f32 %v2879_v50, %v1688_v54  ;;  %2429 = vmatmul.msk.bf16.gmra.mxu2 %vm202_vm2, %v2674_v51  ;;  %2599 = vmatmul.msk.bf16.gmra.mxu3 %vm202_vm2, %v2698_v52 }
 0x180   :  { %v1790_v57 = vmul.f32 0.2, %v1741_v55 }
 0x181   :  { %v1180_v58 = vpop.f32.mrf.mxu2  ;;  %v1610_v59 = vpop.f32.mrf.mxu3 }
 0x182   :  { %v1839_v60 = vmax.f32 %v1741_v55, %v1790_v57  ;;  %v1259_v61 = vmax.f32 %v829_v56, %v1180_v58  ;;  %v371_v62 = vpop.f32.mrf.mxu0  ;;  %v752_v63 = vpop.f32.mrf.mxu1 }
 0x183   :  { %v830_v12 = vmax.f32 %v371_v62, %v752_v63 }
 0x184   :  { %v1888_v4 = vpack.c.bf16 %v1839_v60, %v1839_v60  ;;  %v1689_v5 = vmax.f32 %v1259_v61, %v1610_v59 }
 0x186   :  { %1938 = vst.msk [vmem:[%s3390_s3 + $0x74] sm:$0xf] %vm1908_vm3, %v1888_v4  ;;  %v1742_v8 = vadd.f32 %v2879_v50, %v1689_v5  ;;  %v3293_v50 = vld [vmem:[%s3389_s2] ss:$0 sm:$0xff] }
 0x188   :  { %v1791_v11 = vmul.f32 0.2, %v1742_v8 }
 0x189   :  { %v1182_v13 = vpop.f32.mrf.mxu2  ;;  %v1612_v14 = vpop.f32.mrf.mxu3 }
 0x18a   :  { %v1840_v17 = vmax.f32 %v1742_v8, %v1791_v11  ;;  %v1260_v18 = vmax.f32 %v830_v12, %v1182_v13  ;;  %v374_v19 = vpop.f32.mrf.mxu0  ;;  %v755_v20 = vpop.f32.mrf.mxu1 }
 0x18b   :  { %v831_v26 = vmax.f32 %v374_v19, %v755_v20 }
 0x18c   :  { %v1889_v23 = vpack.c.bf16 %v1840_v17, %v1840_v17  ;;  %v1690_v24 = vmax.f32 %v1260_v18, %v1612_v14 }
 0x18d   :  { %2090 = vmatmul.msk.bf16.gmra.mxu0 %vm202_vm2, %v190_v15  ;;  %2260 = vmatmul.msk.bf16.gmra.mxu1 %vm202_vm2, %v590_v16 }
 0x18e   :  { %1939 = vst.msk [vmem:[%s3390_s3 + $0x78] sm:$0xf] %vm1908_vm3, %v1889_v23  ;;  %v1743_v25 = vadd.f32 %v3293_v50, %v1690_v24  ;;  %2430 = vmatmul.msk.bf16.gmra.mxu2 %vm202_vm2, %v1020_v21  ;;  %2600 = vmatmul.msk.bf16.gmra.mxu3 %vm202_vm2, %v1450_v22 }
 0x190   :  { %v1792_v27 = vmul.f32 0.2, %v1743_v25 }
 0x191   :  { %v1185_v28 = vpop.f32.mrf.mxu2  ;;  %v1615_v29 = vpop.f32.mrf.mxu3 }
 0x192   :  { %v1841_v30 = vmax.f32 %v1743_v25, %v1792_v27  ;;  %v1261_v31 = vmax.f32 %v831_v26, %v1185_v28  ;;  %v376_v32 = vpop.f32.mrf.mxu0  ;;  %v757_v33 = vpop.f32.mrf.mxu1 }
 0x193   :  { %v832_v38 = vmax.f32 %v376_v32, %v757_v33 }
 0x194   :  { %v1890_v34 = vpack.c.bf16 %v1841_v30, %v1841_v30  ;;  %v1691_v35 = vmax.f32 %v1261_v31, %v1615_v29 }
 0x196   :  { %1940 = vst.msk [vmem:[%s3390_s3 + $0x7c] sm:$0xf] %vm1908_vm3, %v1890_v34  ;;  %v1744_v36 = vadd.f32 %v3293_v50, %v1691_v35 }
 0x198   :  { %v1793_v37 = vmul.f32 0.2, %v1744_v36 }
 0x199   :  { %v1187_v39 = vpop.f32.mrf.mxu2  ;;  %v1617_v40 = vpop.f32.mrf.mxu3 }
 0x19a   :  { %v1842_v41 = vmax.f32 %v1744_v36, %v1793_v37  ;;  %v1262_v42 = vmax.f32 %v832_v38, %v1187_v39  ;;  %v379_v43 = vpop.f32.mrf.mxu0  ;;  %v760_v44 = vpop.f32.mrf.mxu1 }
 0x19b   :  { %v833_v48 = vmax.f32 %v379_v43, %v760_v44 }
 0x19c   :  { %v1891_v45 = vpack.c.bf16 %v1842_v41, %v1842_v41  ;;  %v1692_v46 = vmax.f32 %v1262_v42, %v1617_v40 }
 0x19e   :  { %1941 = vst.msk [vmem:[%s3390_s3 + $0x80] sm:$0xf] %vm1908_vm3, %v1891_v45  ;;  %v1745_v47 = vadd.f32 %v3293_v50, %v1692_v46 }
 0x1a0   :  { %v1794_v49 = vmul.f32 0.2, %v1745_v47 }
 0x1a1   :  { %v1190_v51 = vpop.f32.mrf.mxu2  ;;  %v1620_v52 = vpop.f32.mrf.mxu3 }
 0x1a2   :  { %v1843_v53 = vmax.f32 %v1745_v47, %v1794_v49  ;;  %v1263_v54 = vmax.f32 %v833_v48, %v1190_v51  ;;  %v381_v55 = vpop.f32.mrf.mxu0  ;;  %v762_v56 = vpop.f32.mrf.mxu1 }
 0x1a3   :  { %v834_v61 = vmax.f32 %v381_v55, %v762_v56 }
 0x1a4   :  { %v1892_v57 = vpack.c.bf16 %v1843_v53, %v1843_v53  ;;  %v1693_v58 = vmax.f32 %v1263_v54, %v1620_v52 }
 0x1a6   :  { %1942 = vst.msk [vmem:[%s3390_s3 + $0x84] sm:$0xf] %vm1908_vm3, %v1892_v57  ;;  %v1746_v59 = vadd.f32 %v3293_v50, %v1693_v58 }
 0x1a8   :  { %v1795_v60 = vmul.f32 0.2, %v1746_v59 }
 0x1a9   :  { %v1192_v62 = vpop.f32.mrf.mxu2  ;;  %v1622_v63 = vpop.f32.mrf.mxu3 }
 0x1aa   :  { %v1844_v0 = vmax.f32 %v1746_v59, %v1795_v60  ;;  %v1264_v1 = vmax.f32 %v834_v61, %v1192_v62  ;;  %v384_v2 = vpop.f32.mrf.mxu0  ;;  %v765_v3 = vpop.f32.mrf.mxu1 }
 0x1ab   :  { %v835_v7 = vmax.f32 %v384_v2, %v765_v3 }
 0x1ac   :  { %v1893_v4 = vpack.c.bf16 %v1844_v0, %v1844_v0  ;;  %v1694_v5 = vmax.f32 %v1264_v1, %v1622_v63 }
 0x1ae   :  { %1943 = vst.msk [vmem:[%s3390_s3 + $0x88] sm:$0xf] %vm1908_vm3, %v1893_v4  ;;  %v1747_v6 = vadd.f32 %v3293_v50, %v1694_v5 }
 0x1b0   :  { %v1796_v8 = vmul.f32 0.2, %v1747_v6 }
 0x1b1   :  { %v1195_v9 = vpop.f32.mrf.mxu2  ;;  %v1625_v10 = vpop.f32.mrf.mxu3 }
 0x1b2   :  { %v1845_v11 = vmax.f32 %v1747_v6, %v1796_v8  ;;  %v1265_v12 = vmax.f32 %v835_v7, %v1195_v9  ;;  %v386_v13 = vpop.f32.mrf.mxu0  ;;  %v767_v14 = vpop.f32.mrf.mxu1 }
 0x1b3   :  { %v836_v19 = vmax.f32 %v386_v13, %v767_v14 }
 0x1b4   :  { %v1894_v15 = vpack.c.bf16 %v1845_v11, %v1845_v11  ;;  %v1695_v16 = vmax.f32 %v1265_v12, %v1625_v10 }
 0x1b6   :  { %1944 = vst.msk [vmem:[%s3390_s3 + $0x8c] sm:$0xf] %vm1908_vm3, %v1894_v15  ;;  %v1748_v17 = vadd.f32 %v3293_v50, %v1695_v16 }
 0x1b8   :  { %v1797_v18 = vmul.f32 0.2, %v1748_v17 }
 0x1b9   :  { %v1197_v20 = vpop.f32.mrf.mxu2  ;;  %v1627_v21 = vpop.f32.mrf.mxu3 }
 0x1ba   :  { %v1846_v22 = vmax.f32 %v1748_v17, %v1797_v18  ;;  %v1266_v23 = vmax.f32 %v836_v19, %v1197_v20  ;;  %v389_v24 = vpop.f32.mrf.mxu0  ;;  %v770_v25 = vpop.f32.mrf.mxu1 }
 0x1bb   :  { %v837_v29 = vmax.f32 %v389_v24, %v770_v25 }
 0x1bc   :  { %v1895_v26 = vpack.c.bf16 %v1846_v22, %v1846_v22  ;;  %v1696_v27 = vmax.f32 %v1266_v23, %v1627_v21 }
 0x1be   :  { %1945 = vst.msk [vmem:[%s3390_s3 + $0x90] sm:$0xf] %vm1908_vm3, %v1895_v26  ;;  %v1749_v28 = vadd.f32 %v3293_v50, %v1696_v27 }
 0x1c0   :  { %v1798_v30 = vmul.f32 0.2, %v1749_v28 }
 0x1c1   :  { %v1200_v31 = vpop.f32.mrf.mxu2  ;;  %v1630_v32 = vpop.f32.mrf.mxu3 }
 0x1c2   :  { %v1847_v33 = vmax.f32 %v1749_v28, %v1798_v30  ;;  %v1267_v34 = vmax.f32 %v837_v29, %v1200_v31  ;;  %v391_v35 = vpop.f32.mrf.mxu0  ;;  %v772_v36 = vpop.f32.mrf.mxu1 }
 0x1c3   :  { %v838_v41 = vmax.f32 %v391_v35, %v772_v36 }
 0x1c4   :  { %v1896_v37 = vpack.c.bf16 %v1847_v33, %v1847_v33  ;;  %v1697_v38 = vmax.f32 %v1267_v34, %v1630_v32 }
 0x1c6   :  { %1946 = vst.msk [vmem:[%s3390_s3 + $0x94] sm:$0xf] %vm1908_vm3, %v1896_v37  ;;  %v1750_v39 = vadd.f32 %v3293_v50, %v1697_v38 }
 0x1c8   :  { %v1799_v40 = vmul.f32 0.2, %v1750_v39 }
 0x1c9   :  { %v1202_v42 = vpop.f32.mrf.mxu2  ;;  %v1632_v43 = vpop.f32.mrf.mxu3 }
 0x1ca   :  { %v1848_v44 = vmax.f32 %v1750_v39, %v1799_v40  ;;  %v1268_v45 = vmax.f32 %v838_v41, %v1202_v42  ;;  %v394_v46 = vpop.f32.mrf.mxu0  ;;  %v775_v47 = vpop.f32.mrf.mxu1 }
 0x1cb   :  { %v839_v52 = vmax.f32 %v394_v46, %v775_v47 }
 0x1cc   :  { %v1897_v48 = vpack.c.bf16 %v1848_v44, %v1848_v44  ;;  %v1698_v49 = vmax.f32 %v1268_v45, %v1632_v43 }
 0x1ce   :  { %1947 = vst.msk [vmem:[%s3390_s3 + $0x98] sm:$0xf] %vm1908_vm3, %v1897_v48  ;;  %v1751_v51 = vadd.f32 %v3293_v50, %v1698_v49 }
 0x1d0   :  { %v1800_v53 = vmul.f32 0.2, %v1751_v51 }
 0x1d1   :  { %v1205_v54 = vpop.f32.mrf.mxu2  ;;  %v1635_v55 = vpop.f32.mrf.mxu3 }
 0x1d2   :  { %v1849_v56 = vmax.f32 %v1751_v51, %v1800_v53  ;;  %v1269_v57 = vmax.f32 %v839_v52, %v1205_v54  ;;  %v396_v58 = vpop.f32.mrf.mxu0  ;;  %v777_v59 = vpop.f32.mrf.mxu1 }
 0x1d3   :  { %v840_v0 = vmax.f32 %v396_v58, %v777_v59 }
 0x1d4   :  { %v1898_v60 = vpack.c.bf16 %v1849_v56, %v1849_v56  ;;  %v1699_v61 = vmax.f32 %v1269_v57, %v1635_v55 }
 0x1d6   :  { %1948 = vst.msk [vmem:[%s3390_s3 + $0x9c] sm:$0xf] %vm1908_vm3, %v1898_v60  ;;  %v1752_v62 = vadd.f32 %v3293_v50, %v1699_v61 }
 0x1d8   :  { %v1801_v63 = vmul.f32 0.2, %v1752_v62 }
 0x1d9   :  { %v1207_v1 = vpop.f32.mrf.mxu2  ;;  %v1637_v2 = vpop.f32.mrf.mxu3 }
 0x1da   :  { %v1850_v3 = vmax.f32 %v1752_v62, %v1801_v63  ;;  %v1270_v4 = vmax.f32 %v840_v0, %v1207_v1  ;;  %v399_v5 = vpop.f32.mrf.mxu0  ;;  %v780_v6 = vpop.f32.mrf.mxu1 }
 0x1db   :  { %v841_v10 = vmax.f32 %v399_v5, %v780_v6 }
 0x1dc   :  { %v1899_v7 = vpack.c.bf16 %v1850_v3, %v1850_v3  ;;  %v1700_v8 = vmax.f32 %v1270_v4, %v1637_v2 }
 0x1de   :  { %1949 = vst.msk [vmem:[%s3390_s3 + $0xa0] sm:$0xf] %vm1908_vm3, %v1899_v7  ;;  %v1753_v9 = vadd.f32 %v3293_v50, %v1700_v8 }
 0x1e0   :  { %v1802_v11 = vmul.f32 0.2, %v1753_v9 }
 0x1e1   :  { %v1210_v12 = vpop.f32.mrf.mxu2  ;;  %v1640_v13 = vpop.f32.mrf.mxu3 }
 0x1e2   :  { %v1851_v14 = vmax.f32 %v1753_v9, %v1802_v11  ;;  %v1271_v15 = vmax.f32 %v841_v10, %v1210_v12  ;;  %v401_v16 = vpop.f32.mrf.mxu0  ;;  %v782_v17 = vpop.f32.mrf.mxu1 }
 0x1e3   :  { %v842_v22 = vmax.f32 %v401_v16, %v782_v17 }
 0x1e4   :  { %v1900_v18 = vpack.c.bf16 %v1851_v14, %v1851_v14  ;;  %v1701_v19 = vmax.f32 %v1271_v15, %v1640_v13 }
 0x1e6   :  { %1950 = vst.msk [vmem:[%s3390_s3 + $0xa4] sm:$0xf] %vm1908_vm3, %v1900_v18  ;;  %v1754_v20 = vadd.f32 %v3293_v50, %v1701_v19 }
 0x1e8   :  { %v1803_v21 = vmul.f32 0.2, %v1754_v20 }
 0x1e9   :  { %v1212_v23 = vpop.f32.mrf.mxu2  ;;  %v1642_v24 = vpop.f32.mrf.mxu3 }
 0x1ea   :  { %v1852_v25 = vmax.f32 %v1754_v20, %v1803_v21  ;;  %v1272_v26 = vmax.f32 %v842_v22, %v1212_v23  ;;  %v404_v27 = vpop.f32.mrf.mxu0  ;;  %v785_v28 = vpop.f32.mrf.mxu1 }
 0x1eb   :  { %v843_v32 = vmax.f32 %v404_v27, %v785_v28 }
 0x1ec   :  { %v1901_v29 = vpack.c.bf16 %v1852_v25, %v1852_v25  ;;  %v1702_v30 = vmax.f32 %v1272_v26, %v1642_v24 }
 0x1ee   :  { %1951 = vst.msk [vmem:[%s3390_s3 + $0xa8] sm:$0xf] %vm1908_vm3, %v1901_v29  ;;  %v1755_v31 = vadd.f32 %v3293_v50, %v1702_v30 }
 0x1f0   :  { %v1804_v33 = vmul.f32 0.2, %v1755_v31 }
 0x1f1   :  { %v1215_v34 = vpop.f32.mrf.mxu2  ;;  %v1645_v35 = vpop.f32.mrf.mxu3 }
 0x1f2   :  { %v1853_v36 = vmax.f32 %v1755_v31, %v1804_v33  ;;  %v1273_v37 = vmax.f32 %v843_v32, %v1215_v34  ;;  %v406_v38 = vpop.f32.mrf.mxu0  ;;  %v787_v39 = vpop.f32.mrf.mxu1 }
 0x1f3   :  { %v844_v44 = vmax.f32 %v406_v38, %v787_v39 }
 0x1f4   :  { %v1902_v40 = vpack.c.bf16 %v1853_v36, %v1853_v36  ;;  %v1703_v41 = vmax.f32 %v1273_v37, %v1645_v35 }
 0x1f6   :  { %1952 = vst.msk [vmem:[%s3390_s3 + $0xac] sm:$0xf] %vm1908_vm3, %v1902_v40  ;;  %v1756_v42 = vadd.f32 %v3293_v50, %v1703_v41 }
 0x1f8   :  { %v1805_v43 = vmul.f32 0.2, %v1756_v42 }
 0x1f9   :  { %v1217_v45 = vpop.f32.mrf.mxu2  ;;  %v1647_v46 = vpop.f32.mrf.mxu3 }
 0x1fa   :  { %v1854_v47 = vmax.f32 %v1756_v42, %v1805_v43  ;;  %v1274_v48 = vmax.f32 %v844_v44, %v1217_v45  ;;  %v409_v49 = vpop.f32.mrf.mxu0  ;;  %v790_v51 = vpop.f32.mrf.mxu1 }
 0x1fb   :  { %v845_v55 = vmax.f32 %v409_v49, %v790_v51 }
 0x1fc   :  { %v1903_v52 = vpack.c.bf16 %v1854_v47, %v1854_v47  ;;  %v1704_v53 = vmax.f32 %v1274_v48, %v1647_v46 }
 0x1fe   :  { %1953 = vst.msk [vmem:[%s3390_s3 + $0xb0] sm:$0xf] %vm1908_vm3, %v1903_v52  ;;  %v1757_v54 = vadd.f32 %v3293_v50, %v1704_v53 }
 0x200   :  { %v1806_v56 = vmul.f32 0.2, %v1757_v54 }
 0x201   :  { %v1220_v57 = vpop.f32.mrf.mxu2  ;;  %v1650_v58 = vpop.f32.mrf.mxu3 }
 0x202   :  { %v1855_v59 = vmax.f32 %v1757_v54, %v1806_v56  ;;  %v1275_v60 = vmax.f32 %v845_v55, %v1220_v57  ;;  %v411_v61 = vpop.f32.mrf.mxu0  ;;  %v792_v62 = vpop.f32.mrf.mxu1 }
 0x203   :  { %v846_v3 = vmax.f32 %v411_v61, %v792_v62 }
 0x204   :  { %v1904_v63 = vpack.c.bf16 %v1855_v59, %v1855_v59  ;;  %v1705_v0 = vmax.f32 %v1275_v60, %v1650_v58 }
 0x206   :  { %1954 = vst.msk [vmem:[%s3390_s3 + $0xb4] sm:$0xf] %vm1908_vm3, %v1904_v63  ;;  %v1758_v1 = vadd.f32 %v3293_v50, %v1705_v0 }
 0x208   :  { %v1807_v2 = vmul.f32 0.2, %v1758_v1 }
 0x209   :  { %v1222_v4 = vpop.f32.mrf.mxu2  ;;  %v1652_v5 = vpop.f32.mrf.mxu3 }
 0x20a   :  { %v1856_v6 = vmax.f32 %v1758_v1, %v1807_v2  ;;  %v1276_v7 = vmax.f32 %v846_v3, %v1222_v4  ;;  %v414_v8 = vpop.f32.mrf.mxu0  ;;  %v795_v9 = vpop.f32.mrf.mxu1 }
 0x20b   :  { %v847_v13 = vmax.f32 %v414_v8, %v795_v9 }
 0x20c   :  { %v1905_v10 = vpack.c.bf16 %v1856_v6, %v1856_v6  ;;  %v1706_v11 = vmax.f32 %v1276_v7, %v1652_v5 }
 0x20e   :  { %1955 = vst.msk [vmem:[%s3390_s3 + $0xb8] sm:$0xf] %vm1908_vm3, %v1905_v10  ;;  %v1759_v12 = vadd.f32 %v3293_v50, %v1706_v11 }
 0x210   :  { %v1808_v14 = vmul.f32 0.2, %v1759_v12 }
 0x211   :  { %v1225_v15 = vpop.f32.mrf.mxu2  ;;  %v1655_v16 = vpop.f32.mrf.mxu3 }
 0x212   :  { %v1857_v17 = vmax.f32 %v1759_v12, %v1808_v14  ;;  %v1277_v18 = vmax.f32 %v847_v13, %v1225_v15  ;;  %v416_v19 = vpop.f32.mrf.mxu0  ;;  %v797_v20 = vpop.f32.mrf.mxu1 }
 0x214   :  { %v1906_v21 = vpack.c.bf16 %v1857_v17, %v1857_v17  ;;  %v1707_v22 = vmax.f32 %v1277_v18, %v1655_v16 }
 0x216   :  { %1956 = vst.msk [vmem:[%s3390_s3 + $0xbc] sm:$0xf] %vm1908_vm3, %v1906_v21  ;;  %v1760_v23 = vadd.f32 %v3293_v50, %v1707_v22 }
 0x218   :  { %v1809_v24 = vmul.f32 0.2, %v1760_v23 }
 0x219   :  { %v1227_v25 = vpop.f32.mrf.mxu2  ;;  %v1657_v26 = vpop.f32.mrf.mxu3 }
 0x21a   :  { %v1858_v27 = vmax.f32 %v1760_v23, %v1809_v24 }
 0x21c   :  { %v1907_v28 = vpack.c.bf16 %v1858_v27, %v1858_v27 }
 0x21e   :  { %1957 = vst.msk [vmem:[%s3390_s3 + $0xc0] sm:$0xf] %vm1908_vm3, %v1907_v28 }

// kernel: discriminator_forward.4
= control target key start
LH: loop header
LB: loop body
LE: loop exit
PB: predicated region body
PF: predicated region fallthrough
CT: control target
= control target key end

     0   :  { %vm701_vm0 = vcmask 261120   ;;  %vm2946_vm1 = vcmask 519168   ;;  %s6427_s1 = inlined_call_operand.vmem [shape: bf16[800,64], index: 1, kind: input, shape index: {}]   ;;  %s6428_s0 = inlined_call_operand.vmem [shape: bf16[4,104,800], index: 0, kind: input, shape index: {}]   ;;  %s6429_s2 = inlined_call_operand.vmem [shape: f32[1,64], index: 2, kind: input, shape index: {}]   ;;  %s6430_s3 = inlined_call_operand.vmem [shape: bf16[104,64], index: 3, kind: output, shape index: {}]  }
   0x1   :  { %v4312_v0 = vld [vmem:[%s6427_s1 + $0x38] sm:$0xff]  ;;  %v4334_v4 = vld [vmem:[%s6427_s1 + $0x30] sm:$0xff]  ;;  %v4358_v8 = vld [vmem:[%s6427_s1 + $0x28] sm:$0xff] }
   0x2   :  { %v4317_v1 = vld [vmem:[%s6427_s1 + $0x78] sm:$0xff]  ;;  %723 = vmatpush.bf16.msra.mxu0 %v4312_v0  ;;  %v4339_v5 = vld [vmem:[%s6427_s1 + $0x70] sm:$0xff]  ;;  %v4363_v9 = vld [vmem:[%s6427_s1 + $0x68] sm:$0xff] }
   0x3   :  { %v4322_v2 = vld [vmem:[%s6427_s1 + $0xb8] sm:$0xff]  ;;  %766 = vmatpush.bf16.msra.mxu1 %v4317_v1  ;;  %v4346_v6 = vld [vmem:[%s6427_s1 + $0xb0] sm:$0xff]  ;;  %v4370_v10 = vld [vmem:[%s6427_s1 + $0xa8] sm:$0xff] }
   0x4   :  { %v4327_v3 = vld [vmem:[%s6427_s1 + $0xf8] sm:$0xff]  ;;  %809 = vmatpush.bf16.msra.mxu2 %v4322_v2  ;;  %v4351_v7 = vld [vmem:[%s6427_s1 + $0xf0] sm:$0xff]  ;;  %v4375_v11 = vld [vmem:[%s6427_s1 + $0xe8] sm:$0xff] }
   0x5   :  { %852 = vmatpush.bf16.msra.mxu3 %v4327_v3  ;;  %v4382_v12 = vld [vmem:[%s6427_s1 + $0x20] sm:$0xff]  ;;  %v4406_v16 = vld [vmem:[%s6427_s1 + $0x18] sm:$0xff]  ;;  %v4430_v20 = vld [vmem:[%s6427_s1 + $0x10] sm:$0xff] }
   0x6   :  { %724 = vmatpush.bf16.msra.mxu0 %v4334_v4  ;;  %v4387_v13 = vld [vmem:[%s6427_s1 + $0x60] sm:$0xff]  ;;  %v4411_v17 = vld [vmem:[%s6427_s1 + $0x58] sm:$0xff]  ;;  %v4435_v21 = vld [vmem:[%s6427_s1 + $0x50] sm:$0xff] }
   0x7   :  { %767 = vmatpush.bf16.msra.mxu1 %v4339_v5  ;;  %v4394_v14 = vld [vmem:[%s6427_s1 + $0xa0] sm:$0xff]  ;;  %v4418_v18 = vld [vmem:[%s6427_s1 + $0x98] sm:$0xff]  ;;  %v4442_v22 = vld [vmem:[%s6427_s1 + $0x90] sm:$0xff] }
   0x8   :  { %810 = vmatpush.bf16.msra.mxu2 %v4346_v6  ;;  %v4399_v15 = vld [vmem:[%s6427_s1 + $0xe0] sm:$0xff]  ;;  %v4423_v19 = vld [vmem:[%s6427_s1 + $0xd8] sm:$0xff]  ;;  %v4447_v23 = vld [vmem:[%s6427_s1 + $0xd0] sm:$0xff] }
   0x9   :  { %853 = vmatpush.bf16.msra.mxu3 %v4351_v7  ;;  %v4454_v24 = vld [vmem:[%s6427_s1 + $0x8] sm:$0xff]  ;;  %v4476_v28 = vld [vmem:[%s6427_s1] sm:$0xff]  ;;  %v4073_v33 = vld [vmem:[%s6428_s0 + $0x18] sm:$0xf0] }
   0xa   :  { %725 = vmatpush.bf16.msra.mxu0 %v4358_v8  ;;  %v4459_v25 = vld [vmem:[%s6427_s1 + $0x48] sm:$0xff]  ;;  %v4481_v29 = vld [vmem:[%s6427_s1 + $0x40] sm:$0xff]  ;;  %v4529_v41 = vld [vmem:[%s6427_s1 + $0x138] sm:$0xff] }
   0xb   :  { %768 = vmatpush.bf16.msra.mxu1 %v4363_v9  ;;  %v4466_v26 = vld [vmem:[%s6427_s1 + $0x88] sm:$0xff]  ;;  %v4486_v30 = vld [vmem:[%s6427_s1 + $0x80] sm:$0xff]  ;;  %v4538_v46 = vld [vmem:[%s6427_s1 + $0x178] sm:$0xff] }
   0xc   :  { %811 = vmatpush.bf16.msra.mxu2 %v4370_v10  ;;  %v4471_v27 = vld [vmem:[%s6427_s1 + $0xc8] sm:$0xff]  ;;  %v4491_v31 = vld [vmem:[%s6427_s1 + $0xc0] sm:$0xff]  ;;  %v4545_v47 = vld [vmem:[%s6427_s1 + $0x130] sm:$0xff] }
   0xd   :  { %854 = vmatpush.bf16.msra.mxu3 %v4375_v11  ;;  %v2966_v32 = vld [vmem:[%s6428_s0] sm:$0xf]  ;;  %v4070_v34 = vld [vmem:[%s6428_s0 + $0x4] sm:$0xf]  ;;  %v2974_v36 = vld [vmem:[%s6428_s0 + $0x8] sm:$0xf] }
   0xe   :  { %726 = vmatpush.bf16.msra.mxu0 %v4382_v12  ;;  %v2968_v35 = vld [vmem:[%s6428_s0 + $0x1c] sm:$0xf0]  ;;  %v4074_v37 = vld [vmem:[%s6428_s0 + $0x20] sm:$0xf0]  ;;  %v4071_v38 = vld [vmem:[%s6428_s0 + $0xc] sm:$0xf]  ;;  %v2967_v42 = vor.u32 %v4073_v33, %v2966_v32 }
   0xf   :  { %769 = vmatpush.bf16.msra.mxu1 %v4387_v13  ;;  %v2976_v39 = vld [vmem:[%s6428_s0 + $0x24] sm:$0xf0]  ;;  %v2971_v43 = vor.u32 %v4070_v34, %v2968_v35  ;;  %v2975_v44 = vor.u32 %v4074_v37, %v2974_v36  ;;  %v4552_v48 = vld [vmem:[%s6427_s1 + $0x170] sm:$0xff]  ;;  %v4571_v51 = vld [vmem:[%s6427_s1 + $0x120] sm:$0xff] }
  0x10   :  { %812 = vmatpush.bf16.msra.mxu2 %v4394_v14  ;;  %v4524_v40 = vld [vmem:[%s6427_s1 + $0x188] sm:$0xff]  ;;  %v2979_v45 = vor.u32 %v4071_v38, %v2976_v39  ;;  %v2994_v52 = vld [vmem:[%s6428_s0 + $0x38] sm:$0xf]  ;;  %v4080_v53 = vld [vmem:[%s6428_s0 + $0x50] sm:$0xf0] }
  0x11   :  { %855 = vmatpush.bf16.msra.mxu3 %v4399_v15  ;;  %v4558_v49 = vld [vmem:[%s6427_s1 + $0x128] sm:$0xff]  ;;  %v4077_v54 = vld [vmem:[%s6428_s0 + $0x3c] sm:$0xf]  ;;  %v2996_v55 = vld [vmem:[%s6428_s0 + $0x54] sm:$0xf0]  ;;  %v2995_v61 = vor.u32 %v4080_v53, %v2994_v52 }
  0x12   :  { %727 = vmatpush.bf16.msra.mxu0 %v4406_v16  ;;  %v4565_v50 = vld [vmem:[%s6427_s1 + $0x168] sm:$0xff]  ;;  %v3002_v56 = vld [vmem:[%s6428_s0 + $0x40] sm:$0xf]  ;;  %v4081_v57 = vld [vmem:[%s6428_s0 + $0x58] sm:$0xf0]  ;;  %v2999_v62 = vor.u32 %v4077_v54, %v2996_v55 }
  0x13   :  { %770 = vmatpush.bf16.msra.mxu1 %v4411_v17  ;;  %v4078_v58 = vld [vmem:[%s6428_s0 + $0x44] sm:$0xf]  ;;  %v3004_v59 = vld [vmem:[%s6428_s0 + $0x5c] sm:$0xf0]  ;;  %v3003_v63 = vor.u32 %v4081_v57, %v3002_v56  ;;  %v4615_v34 = vld [vmem:[%s6427_s1 + $0x118] sm:$0xff] }
  0x14   :  { %813 = vmatpush.bf16.msra.mxu2 %v4418_v18  ;;  %v4602_v60 = vld [vmem:[%s6427_s1 + $0x160] sm:$0xff]  ;;  %v3007_v32 = vor.u32 %v4078_v58, %v3004_v59  ;;  %v4620_v35 = vld [vmem:[%s6427_s1 + $0x158] sm:$0xff]  ;;  %v3022_v36 = vld [vmem:[%s6428_s0 + $0x70] sm:$0xf] }
  0x15   :  { %856 = vmatpush.bf16.msra.mxu3 %v4423_v19  ;;  %v4610_v33 = vld [vmem:[%s6427_s1 + $0x180] sm:$0xff]  ;;  %v4087_v37 = vld [vmem:[%s6428_s0 + $0x88] sm:$0xf0]  ;;  %v4084_v38 = vld [vmem:[%s6428_s0 + $0x74] sm:$0xf] }
  0x16   :  { %728 = vmatpush.bf16.msra.mxu0 %v4430_v20  ;;  %v3024_v39 = vld [vmem:[%s6428_s0 + $0x8c] sm:$0xf0]  ;;  %v3023_v52 = vor.u32 %v4087_v37, %v3022_v36  ;;  %v3050_v58 = vld [vmem:[%s6428_s0 + $0xa8] sm:$0xf]  ;;  %v4094_v59 = vld [vmem:[%s6428_s0 + $0xc0] sm:$0xf0] }
  0x17   :  { %771 = vmatpush.bf16.msra.mxu1 %v4435_v21  ;;  %v3027_v53 = vor.u32 %v4084_v38, %v3024_v39  ;;  %v4660_v56 = vld [vmem:[%s6427_s1 + $0x110] sm:$0xff]  ;;  %v3051_v38 = vor.u32 %v4094_v59, %v3050_v58  ;;  %v4102_v58 = vld [vmem:[%s6428_s0 + $0x100] sm:$0xf0]  ;;  %v4099_v59 = vld [vmem:[%s6428_s0 + $0xec] sm:$0xf] }
  0x18   :  { %814 = vmatpush.bf16.msra.mxu2 %v4442_v22  ;;  %v4665_v57 = vld [vmem:[%s6427_s1 + $0x150] sm:$0xff] }
  0x19   :  { %857 = vmatpush.bf16.msra.mxu3 %v4447_v23  ;;  %v4092_v36 = vld [vmem:[%s6428_s0 + $0xb4] sm:$0xf]  ;;  %v3060_v37 = vld [vmem:[%s6428_s0 + $0xcc] sm:$0xf0] }
  0x1a   :  { %729 = vmatpush.bf16.msra.mxu0 %v4454_v24 }
  0x1b   :  { %772 = vmatpush.bf16.msra.mxu1 %v4459_v25 }
  0x1c   :  { %815 = vmatpush.bf16.msra.mxu2 %v4466_v26 }
  0x1d   :  { %858 = vmatpush.bf16.msra.mxu3 %v4471_v27 }
  0x1e   :  { %730 = vmatpush.bf16.msra.mxu0 %v4476_v28 }
  0x1f   :  { %773 = vmatpush.bf16.msra.mxu1 %v4481_v29 }
  0x20   :  { %816 = vmatpush.bf16.msra.mxu2 %v4486_v30 }
  0x21   :  { %859 = vmatpush.bf16.msra.mxu3 %v4491_v31  ;;  %731 = vmatmul.bf16.vlgmr.msra.gmra.mxu0 %v2967_v42  ;;  %v3030_v42 = vld [vmem:[%s6428_s0 + $0x78] sm:$0xf] }
  0x22   :  { %895 = vmatpush.bf16.msrb.mxu0 %v4529_v41  ;;  %774 = vmatmul.bf16.vlgmr.msra.gmra.mxu1 %v2971_v43  ;;  %v4088_v43 = vld [vmem:[%s6428_s0 + $0x90] sm:$0xf0] }
  0x23   :  { %817 = vmatmul.bf16.vlgmr.msra.gmra.mxu2 %v2975_v44  ;;  %938 = vmatpush.bf16.msrb.mxu1 %v4538_v46  ;;  %v4085_v44 = vld [vmem:[%s6428_s0 + $0x7c] sm:$0xf]  ;;  %v3031_v54 = vor.u32 %v4088_v43, %v3030_v42  ;;  %v3063_v43 = vor.u32 %v4092_v36, %v3060_v37  ;;  %v4743_v37 = vld [vmem:[%s6427_s1 + $0x100] sm:$0xff] }
  0x24   :  { %987 = vmatpush.bf16.msrb.mxu2 %v4524_v40  ;;  %860 = vmatmul.bf16.vlgmr.msra.gmra.mxu3 %v2979_v45  ;;  %v3032_v45 = vld [vmem:[%s6428_s0 + $0x94] sm:$0xf0] }
  0x25   :  { %1332 = vmatpush.bf16.msrb.mxu3 %v4312_v0  ;;  %v3035_v55 = vor.u32 %v4085_v44, %v3032_v45  ;;  %v4703_v44 = vld [vmem:[%s6427_s1 + $0x108] sm:$0xff] }
  0x26   :  { %896 = vmatpush.bf16.msrb.mxu0 %v4545_v47  ;;  %v4708_v45 = vld [vmem:[%s6427_s1 + $0x148] sm:$0xff] }
  0x27   :  { %939 = vmatpush.bf16.msrb.mxu1 %v4552_v48 }
  0x28   :  { %988 = vmatpush.bf16.msrb.mxu2 %v4610_v33 }
  0x29   :  { %1333 = vmatpush.bf16.msrb.mxu3 %v4334_v4 }
  0x2a   :  { %897 = vmatpush.bf16.msrb.mxu0 %v4558_v49 }
  0x2b   :  { %940 = vmatpush.bf16.msrb.mxu1 %v4565_v50 }
  0x2c   :  { %1461 = vmatpush.bf16.msra.mxu2 %v4327_v3 }
  0x2d   :  { %1334 = vmatpush.bf16.msrb.mxu3 %v4358_v8 }
  0x2e   :  { %898 = vmatpush.bf16.msrb.mxu0 %v4571_v51 }
  0x2f   :  { %941 = vmatpush.bf16.msrb.mxu1 %v4602_v60 }
  0x30   :  { %1462 = vmatpush.bf16.msra.mxu2 %v4351_v7 }
  0x31   :  { %1335 = vmatpush.bf16.msrb.mxu3 %v4382_v12  ;;  %736 = vmatmul.bf16.gmra.mxu0 %v2995_v61  ;;  %v4091_v61 = vld [vmem:[%s6428_s0 + $0xac] sm:$0xf] }
  0x32   :  { %779 = vmatmul.bf16.gmra.mxu1 %v2999_v62  ;;  %899 = vmatpush.bf16.msrb.mxu0 %v4615_v34  ;;  %v3052_v62 = vld [vmem:[%s6428_s0 + $0xc4] sm:$0xf0] }
  0x33   :  { %822 = vmatmul.bf16.gmra.mxu2 %v3003_v63  ;;  %942 = vmatpush.bf16.msrb.mxu1 %v4620_v35  ;;  %v3058_v63 = vld [vmem:[%s6428_s0 + $0xb0] sm:$0xf]  ;;  %v3055_v39 = vor.u32 %v4091_v61, %v3052_v62  ;;  %v3088_v61 = vld [vmem:[%s6428_s0 + $0x104] sm:$0xf0] }
  0x34   :  { %865 = vmatmul.bf16.gmra.mxu3 %v3007_v32  ;;  %1463 = vmatpush.bf16.msra.mxu2 %v4375_v11  ;;  %v4095_v32 = vld [vmem:[%s6428_s0 + $0xc8] sm:$0xf0]  ;;  %v3091_v36 = vor.u32 %v4099_v59, %v3088_v61 }
  0x35   :  { %1336 = vmatpush.bf16.msrb.mxu3 %v4406_v16  ;;  %v3059_v42 = vor.u32 %v4095_v32, %v3058_v63 }
  0x36   :  { %900 = vmatpush.bf16.msrb.mxu0 %v4660_v56 }
  0x37   :  { %943 = vmatpush.bf16.msrb.mxu1 %v4665_v57 }
  0x38   :  { %1464 = vmatpush.bf16.msra.mxu2 %v4399_v15 }
  0x39   :  { %1337 = vmatpush.bf16.msrb.mxu3 %v4430_v20 }
  0x3a   :  { %901 = vmatpush.bf16.msrb.mxu0 %v4703_v44 }
  0x3b   :  { %944 = vmatpush.bf16.msrb.mxu1 %v4708_v45 }
  0x3c   :  { %1465 = vmatpush.bf16.msra.mxu2 %v4423_v19 }
  0x3d   :  { %1338 = vmatpush.bf16.msrb.mxu3 %v4454_v24 }
  0x3e   :  { %902 = vmatpush.bf16.msrb.mxu0 %v4743_v37 }
  0x40   :  { %1466 = vmatpush.bf16.msra.mxu2 %v4447_v23 }
  0x41   :  { %1339 = vmatpush.bf16.msrb.mxu3 %v4476_v28  ;;  %741 = vmatmul.bf16.gmra.mxu0 %v3023_v52  ;;  %v3078_v52 = vld [vmem:[%s6428_s0 + $0xe0] sm:$0xf] }
  0x42   :  { %784 = vmatmul.bf16.gmra.mxu1 %v3027_v53  ;;  %v4101_v53 = vld [vmem:[%s6428_s0 + $0xf8] sm:$0xf0]  ;;  %1375 = vmatpush.bf16.msra.mxu0 %v4317_v1 }
  0x43   :  { %827 = vmatmul.bf16.gmra.mxu2 %v3031_v54  ;;  %v4098_v54 = vld [vmem:[%s6428_s0 + $0xe4] sm:$0xf]  ;;  %v3079_v62 = vor.u32 %v4101_v53, %v3078_v52  ;;  %v3108_v52 = vld [vmem:[%s6428_s0 + $0x134] sm:$0xf0]  ;;  %v3114_v53 = vld [vmem:[%s6428_s0 + $0x120] sm:$0xf] }
  0x44   :  { %870 = vmatmul.bf16.gmra.mxu3 %v3035_v55  ;;  %1467 = vmatpush.bf16.msra.mxu2 %v4471_v27  ;;  %v3086_v55 = vld [vmem:[%s6428_s0 + $0xe8] sm:$0xf] }
  0x45   :  { %1504 = vmatpush.bf16.msra.mxu3 %v4529_v41  ;;  %v3087_v32 = vor.u32 %v4102_v58, %v3086_v55  ;;  %v3116_v55 = vld [vmem:[%s6428_s0 + $0x13c] sm:$0xf0] }
  0x46   :  { %1376 = vmatpush.bf16.msra.mxu0 %v4339_v5 }
  0x48   :  { %1468 = vmatpush.bf16.msra.mxu2 %v4491_v31  ;;  %v3080_v31 = vld [vmem:[%s6428_s0 + $0xfc] sm:$0xf0] }
  0x49   :  { %1505 = vmatpush.bf16.msra.mxu3 %v4545_v47  ;;  %v3083_v63 = vor.u32 %v4098_v54, %v3080_v31  ;;  %v4109_v54 = vld [vmem:[%s6428_s0 + $0x138] sm:$0xf0]  ;;  %v4106_v31 = vld [vmem:[%s6428_s0 + $0x124] sm:$0xf] }
  0x4a   :  { %1377 = vmatpush.bf16.msra.mxu0 %v4363_v9  ;;  %v3115_v61 = vor.u32 %v4109_v54, %v3114_v53 }
  0x4d   :  { %1506 = vmatpush.bf16.msra.mxu3 %v4558_v49 }
  0x4e   :  { %1378 = vmatpush.bf16.msra.mxu0 %v4387_v13 }
  0x51   :  { %1507 = vmatpush.bf16.msra.mxu3 %v4571_v51  ;;  %746 = vmatmul.bf16.gmra.mxu0 %v3051_v38  ;;  %v4748_v38 = vld [vmem:[%s6427_s1 + $0x140] sm:$0xff] }
  0x52   :  { %789 = vmatmul.bf16.gmra.mxu1 %v3055_v39  ;;  %v3106_v39 = vld [vmem:[%s6428_s0 + $0x118] sm:$0xf]  ;;  %1379 = vmatpush.bf16.msra.mxu0 %v4411_v17 }
  0x53   :  { %832 = vmatmul.bf16.gmra.mxu2 %v3059_v42  ;;  %945 = vmatpush.bf16.msrb.mxu1 %v4748_v38  ;;  %v4108_v42 = vld [vmem:[%s6428_s0 + $0x130] sm:$0xf0] }
  0x54   :  { %875 = vmatmul.bf16.gmra.mxu3 %v3063_v43  ;;  %v4105_v43 = vld [vmem:[%s6428_s0 + $0x11c] sm:$0xf]  ;;  %v3107_v58 = vor.u32 %v4108_v42, %v3106_v39 }
  0x55   :  { %1508 = vmatpush.bf16.msra.mxu3 %v4615_v34  ;;  %v3111_v59 = vor.u32 %v4105_v43, %v3108_v52 }
  0x56   :  { %1380 = vmatpush.bf16.msra.mxu0 %v4435_v21 }
  0x57   :  { %1418 = vmatpush.bf16.msra.mxu1 %v4322_v2 }
  0x59   :  { %1509 = vmatpush.bf16.msra.mxu3 %v4660_v56 }
  0x5a   :  { %1381 = vmatpush.bf16.msra.mxu0 %v4459_v25 }
  0x5b   :  { %1419 = vmatpush.bf16.msra.mxu1 %v4346_v6 }
  0x5d   :  { %1510 = vmatpush.bf16.msra.mxu3 %v4703_v44 }
  0x5e   :  { %1382 = vmatpush.bf16.msra.mxu0 %v4481_v29 }
  0x5f   :  { %1420 = vmatpush.bf16.msra.mxu1 %v4370_v10 }
  0x61   :  { %751 = vmatmul.bf16.gmra.mxu0 %v3079_v62  ;;  %1511 = vmatpush.bf16.msra.mxu3 %v4743_v37  ;;  %v3119_v62 = vor.u32 %v4106_v31, %v3116_v55  ;;  %v2982_v55 = vld [vmem:[%s6428_s0 + $0x10] sm:$0xf] }
  0x62   :  { %794 = vmatmul.bf16.gmra.mxu1 %v3083_v63  ;;  %v163_v63 = vld [vmem:[%s6428_s0 + $0x150] sm:$0xff] }
  0x63   :  { %837 = vmatmul.bf16.gmra.mxu2 %v3087_v32  ;;  %1421 = vmatpush.bf16.msra.mxu1 %v4394_v14  ;;  %v164_v32 = vld [vmem:[%s6428_s0 + $0x158] sm:$0xff]  ;;  %v304_v39 = vunpack.c.h.b16 %v163_v63 }
  0x64   :  { %880 = vmatmul.bf16.gmra.mxu3 %v3091_v36  ;;  %v303_v36 = vunpack.c.l.b16 %v163_v63  ;;  %v305_v42 = vunpack.c.l.b16 %v164_v32  ;;  %v306_v43 = vunpack.c.h.b16 %v164_v32  ;;  %v3393_v63 = vld [vmem:[%s6428_s0 + $0x16c] sm:$0xf]  ;;  %v4115_v32 = vld [vmem:[%s6428_s0 + $0x184] sm:$0xf0] }
  0x65   :  { %v353_v53 = vpack.c.b16 %v304_v39, %v304_v39 }
  0x66   :  { %v352_v52 = vpack.c.b16 %v303_v36, %v303_v36  ;;  %v354_v54 = vpack.c.b16 %v305_v42, %v305_v42  ;;  %v355_v31 = vpack.c.b16 %v306_v43, %v306_v43  ;;  %v3394_v43 = vor.u32 %v4115_v32, %v3393_v63 }
  0x67   :  { %1422 = vmatpush.bf16.msra.mxu1 %v4418_v18 }
  0x6b   :  { %1423 = vmatpush.bf16.msra.mxu1 %v4442_v22 }
  0x6f   :  { %1424 = vmatpush.bf16.msra.mxu1 %v4466_v26 }
  0x71   :  { %756 = vmatmul.bf16.gmra.mxu0 %v3107_v58  ;;  %v4075_v58 = vld [vmem:[%s6428_s0 + $0x28] sm:$0xf0] }
  0x72   :  { %799 = vmatmul.bf16.gmra.mxu1 %v3111_v59  ;;  %v4072_v59 = vld [vmem:[%s6428_s0 + $0x14] sm:$0xf]  ;;  %v2983_v36 = vor.u32 %v4075_v58, %v2982_v55 }
  0x73   :  { %842 = vmatmul.bf16.gmra.mxu2 %v3115_v61  ;;  %1425 = vmatpush.bf16.msra.mxu1 %v4486_v30  ;;  %v2984_v61 = vld [vmem:[%s6428_s0 + $0x2c] sm:$0xf0]  ;;  %v2990_v30 = vld [vmem:[%s6428_s0 + $0x18] sm:$0xf] }
  0x74   :  { %885 = vmatmul.bf16.gmra.mxu3 %v3119_v62  ;;  %v4076_v62 = vld [vmem:[%s6428_s0 + $0x30] sm:$0xf0]  ;;  %v2987_v39 = vor.u32 %v4072_v59, %v2984_v61 }
  0x75   :  { %v2991_v42 = vor.u32 %v4076_v62, %v2990_v30 }
  0x81   :  { %761 = vmatmul.bf16.gmra.mxu0 %v352_v52  ;;  %v3010_v52 = vld [vmem:[%s6428_s0 + $0x48] sm:$0xf] }
  0x82   :  { %804 = vmatmul.bf16.gmra.mxu1 %v353_v53  ;;  %v4122_v53 = vld [vmem:[%s6428_s0 + $0x1bc] sm:$0xf0] }
  0x83   :  { %847 = vmatmul.bf16.gmra.mxu2 %v354_v54 }
  0x84   :  { %890 = vmatmul.bf16.gmra.mxu3 %v355_v31 }
  0x91   :  { %903 = vmatmul.bf16.vlgmr.msrb.gmra.mxu0 %v2983_v36  ;;  %v4086_v36 = vld [vmem:[%s6428_s0 + $0x84] sm:$0xf] }
  0x92   :  { %946 = vmatmul.bf16.vlgmr.msrb.gmra.mxu1 %v2987_v39  ;;  %1547 = vmatpush.bf16.msrb.mxu0 %v4538_v46  ;;  %v4090_v39 = vld [vmem:[%s6428_s0 + $0xa0] sm:$0xf0] }
  0x93   :  { %3332 = vmatmul.msk.bf16.vlgmr.msrb.gmra.mxu2 %vm701_vm0, %v2991_v42  ;;  %1596 = vmatpush.bf16.msrb.mxu1 %v4524_v40  ;;  %v4083_v40 = vld [vmem:[%s6428_s0 + $0x68] sm:$0xf0]  ;;  %v3449_v42 = vld [vmem:[%s6428_s0 + $0x1dc] sm:$0xf] }
  0x94   :  { %1340 = vmatmul.bf16.vlgmr.msrb.gmra.mxu3 %v3394_v43  ;;  %1954 = vmatpush.bf16.msrb.mxu2 %v4312_v0  ;;  %v4082_v0 = vld [vmem:[%s6428_s0 + $0x60] sm:$0xf0]  ;;  %v4129_v43 = vld [vmem:[%s6428_s0 + $0x1f4] sm:$0xf0] }
  0x95   :  { %1997 = vmatpush.bf16.msrb.mxu3 %v4317_v1  ;;  %v4079_v1 = vld [vmem:[%s6428_s0 + $0x4c] sm:$0xf]  ;;  %v3011_v54 = vor.u32 %v4082_v0, %v3010_v52 }
  0x96   :  { %1548 = vmatpush.bf16.msrb.mxu0 %v4552_v48 }
  0x97   :  { %1597 = vmatpush.bf16.msrb.mxu1 %v4610_v33  ;;  %v3421_v33 = vld [vmem:[%s6428_s0 + $0x1a4] sm:$0xf] }
  0x98   :  { %1955 = vmatpush.bf16.msrb.mxu2 %v4334_v4  ;;  %v3012_v4 = vld [vmem:[%s6428_s0 + $0x64] sm:$0xf0]  ;;  %v3422_v61 = vor.u32 %v4122_v53, %v3421_v33 }
  0x99   :  { %1998 = vmatpush.bf16.msrb.mxu3 %v4339_v5  ;;  %v3018_v5 = vld [vmem:[%s6428_s0 + $0x50] sm:$0xf]  ;;  %v3015_v31 = vor.u32 %v4079_v1, %v3012_v4 }
  0x9a   :  { %1549 = vmatpush.bf16.msrb.mxu0 %v4565_v50  ;;  %v3019_v59 = vor.u32 %v4083_v40, %v3018_v5 }
  0x9c   :  { %1956 = vmatpush.bf16.msrb.mxu2 %v4358_v8 }
  0x9d   :  { %1999 = vmatpush.bf16.msrb.mxu3 %v4363_v9 }
  0x9e   :  { %v732_v55 = vpop.f32.mrf.mxu0  ;;  %1550 = vmatpush.bf16.msrb.mxu0 %v4602_v60 }
  0x9f   :  { %v775_v58 = vpop.f32.mrf.mxu1 }
  0xa0   :  { %v776_v30 = vadd.f32 %v775_v58, %v732_v55  ;;  %1957 = vmatpush.bf16.msrb.mxu2 %v4382_v12 }
  0xa1   :  { %2000 = vmatpush.bf16.msrb.mxu3 %v4387_v13  ;;  %908 = vmatmul.bf16.gmra.mxu0 %v3011_v54  ;;  %v3450_v54 = vor.u32 %v4129_v43, %v3449_v42 }
  0xa2   :  { %951 = vmatmul.bf16.gmra.mxu1 %v3015_v31  ;;  %1551 = vmatpush.bf16.msrb.mxu0 %v4620_v35 }
  0xa3   :  { %3333 = vmatmul.msk.bf16.gmra.mxu2 %vm701_vm0, %v3019_v59 }
  0xa4   :  { %1345 = vmatmul.bf16.gmra.mxu3 %v3422_v61  ;;  %1958 = vmatpush.bf16.msrb.mxu2 %v4406_v16  ;;  %v3038_v16 = vld [vmem:[%s6428_s0 + $0x80] sm:$0xf] }
  0xa5   :  { %2001 = vmatpush.bf16.msrb.mxu3 %v4411_v17  ;;  %v4089_v17 = vld [vmem:[%s6428_s0 + $0x98] sm:$0xf0] }
  0xa6   :  { %v818_v8 = vpop.f32.mrf.mxu2  ;;  %v734_v63 = vpop.f32.mrf.mxu0  ;;  %1552 = vmatpush.bf16.msrb.mxu0 %v4665_v57  ;;  %v3039_v1 = vor.u32 %v4089_v17, %v3038_v16  ;;  %v4136_v16 = vld [vmem:[%s6428_s0 + $0x22c] sm:$0xf0] }
  0xa7   :  { %v861_v9 = vpop.f32.mrf.mxu3  ;;  %v819_v62 = vadd.f32 %v818_v8, %v776_v30  ;;  %v777_v12 = vpop.f32.mrf.mxu1 }
  0xa8   :  { %v778_v32 = vadd.f32 %v777_v12, %v734_v63  ;;  %1959 = vmatpush.bf16.msrb.mxu2 %v4430_v20  ;;  %v3040_v20 = vld [vmem:[%s6428_s0 + $0x9c] sm:$0xf0]  ;;  %v4097_v12 = vld [vmem:[%s6428_s0 + $0xd8] sm:$0xf0] }
  0xa9   :  { %v4868_v13 = vadd.f32 %v861_v9, %v819_v62  ;;  %2002 = vmatpush.bf16.msrb.mxu3 %v4435_v21  ;;  %v3046_v21 = vld [vmem:[%s6428_s0 + $0x88] sm:$0xf]  ;;  %v3043_v4 = vor.u32 %v4086_v36, %v3040_v20  ;;  %v4093_v9 = vld [vmem:[%s6428_s0 + $0xbc] sm:$0xf]  ;;  %v3068_v62 = vld [vmem:[%s6428_s0 + $0xd4] sm:$0xf0] }
  0xaa   :  { %1553 = vmatpush.bf16.msrb.mxu0 %v4708_v45  ;;  %v3047_v53 = vor.u32 %v4090_v39, %v3046_v21  ;;  %v3074_v63 = vld [vmem:[%s6428_s0 + $0xc0] sm:$0xf]  ;;  %v3071_v21 = vor.u32 %v4093_v9, %v3068_v62  ;;  %v4143_v9 = vld [vmem:[%s6428_s0 + $0x264] sm:$0xf0] }
  0xac   :  { %1960 = vmatpush.bf16.msrb.mxu2 %v4454_v24 }
  0xad   :  { %2003 = vmatpush.bf16.msrb.mxu3 %v4459_v25 }
  0xae   :  { %v820_v52 = vpop.f32.mrf.mxu2  ;;  %v737_v40 = vpop.f32.mrf.mxu0  ;;  %1554 = vmatpush.bf16.msrb.mxu0 %v4748_v38 }
  0xaf   :  { %v863_v0 = vpop.f32.mrf.mxu3  ;;  %v821_v5 = vadd.f32 %v820_v52, %v778_v32  ;;  %v780_v33 = vpop.f32.mrf.mxu1  ;;  %v3477_v32 = vld [vmem:[%s6428_s0 + $0x214] sm:$0xf]  ;;  %v3075_v52 = vor.u32 %v4097_v12, %v3074_v63 }
  0xb0   :  { %v781_v31 = vadd.f32 %v780_v33, %v737_v40  ;;  %1961 = vmatpush.bf16.msrb.mxu2 %v4476_v28  ;;  %v3066_v28 = vld [vmem:[%s6428_s0 + $0xb8] sm:$0xf] }
  0xb1   :  { %v4900_v55 = vadd.f32 %v863_v0, %v821_v5  ;;  %2004 = vmatpush.bf16.msrb.mxu3 %v4481_v29  ;;  %913 = vmatmul.bf16.gmra.mxu0 %v3039_v1  ;;  %v4096_v29 = vld [vmem:[%s6428_s0 + $0xd0] sm:$0xf0]  ;;  %v3478_v0 = vor.u32 %v4136_v16, %v3477_v32 }
  0xb2   :  { %956 = vmatmul.bf16.gmra.mxu1 %v3043_v4  ;;  %v3067_v20 = vor.u32 %v4096_v29, %v3066_v28  ;;  %v4104_v28 = vld [vmem:[%s6428_s0 + $0x110] sm:$0xf0]  ;;  %v3505_v29 = vld [vmem:[%s6428_s0 + $0x24c] sm:$0xf] }
  0xb3   :  { %3334 = vmatmul.msk.bf16.gmra.mxu2 %vm701_vm0, %v3047_v53 }
  0xb4   :  { %1350 = vmatmul.bf16.gmra.mxu3 %v3450_v54 }
  0xb6   :  { %v823_v24 = vpop.f32.mrf.mxu2  ;;  %v739_v59 = vpop.f32.mrf.mxu0 }
  0xb7   :  { %v866_v25 = vpop.f32.mrf.mxu3  ;;  %v824_v58 = vadd.f32 %v823_v24, %v781_v31  ;;  %v782_v61 = vpop.f32.mrf.mxu1 }
  0xb8   :  { %v783_v30 = vadd.f32 %v782_v61, %v739_v59  ;;  %v4100_v59 = vld [vmem:[%s6428_s0 + $0xf4] sm:$0xf]  ;;  %v3096_v61 = vld [vmem:[%s6428_s0 + $0x10c] sm:$0xf0] }
  0xb9   :  { %v4904_v8 = vadd.f32 %v866_v25, %v824_v58  ;;  %v3094_v25 = vld [vmem:[%s6428_s0 + $0xf0] sm:$0xf]  ;;  %v4103_v58 = vld [vmem:[%s6428_s0 + $0x108] sm:$0xf0]  ;;  %v3099_v32 = vor.u32 %v4100_v59, %v3096_v61  ;;  %v3533_v61 = vld [vmem:[%s6428_s0 + $0x284] sm:$0xf] }
  0xba   :  { %v3095_v12 = vor.u32 %v4103_v58, %v3094_v25  ;;  %v3124_v25 = vld [vmem:[%s6428_s0 + $0x144] sm:$0xf0]  ;;  %v3130_v58 = vld [vmem:[%s6428_s0 + $0x130] sm:$0xf]  ;;  %v4111_v59 = vld [vmem:[%s6428_s0 + $0x148] sm:$0xf0] }
  0xbe   :  { %v825_v17 = vpop.f32.mrf.mxu2  ;;  %v742_v42 = vpop.f32.mrf.mxu0 }
  0xbf   :  { %v868_v36 = vpop.f32.mrf.mxu3  ;;  %v826_v39 = vadd.f32 %v825_v17, %v783_v30  ;;  %v785_v43 = vpop.f32.mrf.mxu1  ;;  %v3102_v30 = vld [vmem:[%s6428_s0 + $0xf8] sm:$0xf] }
  0xc0   :  { %v786_v1 = vadd.f32 %v785_v43, %v742_v42 }
  0xc1   :  { %v4930_v4 = vadd.f32 %v868_v36, %v826_v39  ;;  %918 = vmatmul.bf16.gmra.mxu0 %v3067_v20  ;;  %v3103_v20 = vor.u32 %v4104_v28, %v3102_v30  ;;  %v4150_v30 = vld [vmem:[%s6428_s0 + $0x29c] sm:$0xf0] }
  0xc2   :  { %961 = vmatmul.bf16.gmra.mxu1 %v3071_v21  ;;  %v3506_v21 = vor.u32 %v4143_v9, %v3505_v29 }
  0xc3   :  { %3335 = vmatmul.msk.bf16.gmra.mxu2 %vm701_vm0, %v3075_v52 }
  0xc4   :  { %1355 = vmatmul.bf16.gmra.mxu3 %v3478_v0 }
  0xc6   :  { %v828_v5 = vpop.f32.mrf.mxu2  ;;  %v744_v53 = vpop.f32.mrf.mxu0 }
  0xc7   :  { %v871_v40 = vpop.f32.mrf.mxu3  ;;  %v829_v33 = vadd.f32 %v828_v5, %v786_v1  ;;  %v787_v54 = vpop.f32.mrf.mxu1 }
  0xc8   :  { %v788_v31 = vadd.f32 %v787_v54, %v744_v53  ;;  %v3122_v53 = vld [vmem:[%s6428_s0 + $0x128] sm:$0xf]  ;;  %v4110_v54 = vld [vmem:[%s6428_s0 + $0x140] sm:$0xf0] }
  0xc9   :  { %v4933_v24 = vadd.f32 %v871_v40, %v829_v33  ;;  %v3123_v9 = vor.u32 %v4110_v54, %v3122_v53  ;;  %v5000_v53 = vld [vmem:[%s6428_s0 + $0x2bc] sm:$0xff] }
  0xce   :  { %v830_v62 = vpop.f32.mrf.mxu2  ;;  %v747_v17 = vpop.f32.mrf.mxu0 }
  0xcf   :  { %v873_v63 = vpop.f32.mrf.mxu3  ;;  %v831_v16 = vadd.f32 %v830_v62, %v788_v31  ;;  %v790_v36 = vpop.f32.mrf.mxu1  ;;  %v4107_v31 = vld [vmem:[%s6428_s0 + $0x12c] sm:$0xf] }
  0xd0   :  { %v791_v39 = vadd.f32 %v790_v36, %v747_v17  ;;  %v3127_v62 = vor.u32 %v4107_v31, %v3124_v25  ;;  %v3534_v17 = vor.u32 %v4150_v30, %v3533_v61 }
  0xd1   :  { %v4959_v42 = vadd.f32 %v873_v63, %v831_v16  ;;  %923 = vmatmul.bf16.gmra.mxu0 %v3095_v12  ;;  %v3131_v16 = vor.u32 %v4111_v59, %v3130_v58  ;;  %v1213_v59 = vunpack.c.l.b16 %v5000_v53 }
  0xd2   :  { %966 = vmatmul.bf16.gmra.mxu1 %v3099_v32 }
  0xd3   :  { %3336 = vmatmul.msk.bf16.gmra.mxu2 %vm701_vm0, %v3103_v20 }
  0xd4   :  { %1360 = vmatmul.bf16.gmra.mxu3 %v3506_v21 }
  0xd6   :  { %v833_v43 = vpop.f32.mrf.mxu2  ;;  %v749_v1 = vpop.f32.mrf.mxu0 }
  0xd7   :  { %v876_v52 = vpop.f32.mrf.mxu3  ;;  %v834_v0 = vadd.f32 %v833_v43, %v791_v39  ;;  %v792_v5 = vpop.f32.mrf.mxu1 }
  0xd8   :  { %v793_v40 = vadd.f32 %v792_v5, %v749_v1  ;;  %v165_v1 = vld [vmem:[%s6428_s0 + $0x160] sm:$0xff] }
  0xd9   :  { %v4962_v33 = vadd.f32 %v876_v52, %v834_v0  ;;  %v307_v31 = vunpack.c.l.b16 %v165_v1  ;;  %v308_v25 = vunpack.c.h.b16 %v165_v1 }
  0xde   :  { %v835_v28 = vpop.f32.mrf.mxu2  ;;  %v752_v12 = vpop.f32.mrf.mxu0 }
  0xdf   :  { %v878_v29 = vpop.f32.mrf.mxu3  ;;  %v836_v63 = vadd.f32 %v835_v28, %v793_v40  ;;  %v795_v32 = vpop.f32.mrf.mxu1  ;;  %v166_v40 = vld [vmem:[%s6428_s0 + $0x168] sm:$0xf]  ;;  %v356_v28 = vpack.c.b16 %v307_v31, %v307_v31  ;;  %v3401_v31 = vld [vmem:[%s6428_s0 + $0x174] sm:$0xf] }
  0xe0   :  { %v796_v36 = vadd.f32 %v795_v32, %v752_v12  ;;  %v309_v58 = vunpack.c.l.b16 %v166_v40  ;;  %v1262_v32 = vpack.c.b16 %v1213_v59, %v1213_v59  ;;  %v3395_v40 = vld [vmem:[%s6428_s0 + $0x188] sm:$0xf0]  ;;  %v3403_v59 = vld [vmem:[%s6428_s0 + $0x190] sm:$0xf0] }
  0xe1   :  { %v4988_v20 = vadd.f32 %v878_v29, %v836_v63  ;;  %928 = vmatmul.bf16.gmra.mxu0 %v3123_v9  ;;  %v357_v29 = vpack.c.b16 %v308_v25, %v308_v25  ;;  %v4116_v25 = vld [vmem:[%s6428_s0 + $0x18c] sm:$0xf0] }
  0xe2   :  { %971 = vmatmul.bf16.gmra.mxu1 %v3127_v62  ;;  %v358_v12 = vpack.c.b16 %v309_v58, %v309_v58  ;;  %v4113_v58 = vld [vmem:[%s6428_s0 + $0x178] sm:$0xf] }
  0xe3   :  { %3337 = vmatmul.msk.bf16.gmra.mxu2 %vm701_vm0, %v3131_v16 }
  0xe4   :  { %1365 = vmatmul.bf16.gmra.mxu3 %v3534_v17 }
  0xe6   :  { %v838_v21 = vpop.f32.mrf.mxu2  ;;  %v754_v52 = vpop.f32.mrf.mxu0 }
  0xe7   :  { %v881_v39 = vpop.f32.mrf.mxu3  ;;  %v839_v43 = vadd.f32 %v838_v21, %v796_v36  ;;  %v797_v0 = vpop.f32.mrf.mxu1 }
  0xe8   :  { %v798_v5 = vadd.f32 %v797_v0, %v754_v52 }
  0xe9   :  { %v5002_v54 = vadd.f32 %v881_v39, %v839_v43 }
  0xee   :  { %v840_v61 = vpop.f32.mrf.mxu2  ;;  %v757_v62 = vpop.f32.mrf.mxu0 }
  0xef   :  { %v883_v30 = vpop.f32.mrf.mxu3  ;;  %v841_v9 = vadd.f32 %v840_v61, %v798_v5  ;;  %v800_v63 = vpop.f32.mrf.mxu1  ;;  %v4112_v5 = vld [vmem:[%s6428_s0 + $0x170] sm:$0xf]  ;;  %v3409_v61 = vld [vmem:[%s6428_s0 + $0x17c] sm:$0xf] }
  0xf0   :  { %v801_v16 = vadd.f32 %v800_v63, %v757_v62  ;;  %v3402_v62 = vor.u32 %v4116_v25, %v3401_v31 }
  0xf1   :  { %v5005_v17 = vadd.f32 %v883_v30, %v841_v9  ;;  %933 = vmatmul.bf16.gmra.mxu0 %v356_v28  ;;  %v4117_v30 = vld [vmem:[%s6428_s0 + $0x194] sm:$0xf0]  ;;  %v3398_v9 = vor.u32 %v4112_v5, %v3395_v40 }
  0xf2   :  { %976 = vmatmul.bf16.gmra.mxu1 %v357_v29 }
  0xf3   :  { %3338 = vmatmul.msk.bf16.gmra.mxu2 %vm701_vm0, %v358_v12 }
  0xf4   :  { %1370 = vmatmul.bf16.gmra.mxu3 %v1262_v32 }
  0xf6   :  { %v843_v36 = vpop.f32.mrf.mxu2  ;;  %v759_v43 = vpop.f32.mrf.mxu0 }
  0xf7   :  { %v886_v21 = vpop.f32.mrf.mxu3  ;;  %v844_v39 = vadd.f32 %v843_v36, %v801_v16  ;;  %v802_v52 = vpop.f32.mrf.mxu1  ;;  %v3406_v16 = vor.u32 %v4113_v58, %v3403_v59  ;;  %v3410_v36 = vor.u32 %v4117_v30, %v3409_v61 }
  0xf8   :  { %v803_v0 = vadd.f32 %v802_v52, %v759_v43 }
  0xf9   :  { %v5008_v1 = vadd.f32 %v886_v21, %v844_v39 }
  0xfe   :  { %v845_v28 = vpop.f32.mrf.mxu2  ;;  %v762_v12 = vpop.f32.mrf.mxu0 }
  0xff   :  { %v888_v29 = vpop.f32.mrf.mxu3  ;;  %v846_v63 = vadd.f32 %v845_v28, %v803_v0  ;;  %v805_v32 = vpop.f32.mrf.mxu1 }
 0x100   :  { %v806_v21 = vadd.f32 %v805_v32, %v762_v12 }
 0x101   :  { %v5034_v39 = vadd.f32 %v888_v29, %v846_v63  ;;  %1383 = vmatmul.bf16.vlgmr.msra.gmra.mxu0 %v3398_v9 }
 0x102   :  { %1426 = vmatmul.bf16.vlgmr.msra.gmra.mxu1 %v3402_v62  ;;  %2040 = vmatpush.bf16.msra.mxu0 %v4322_v2  ;;  %v4119_v2 = vld [vmem:[%s6428_s0 + $0x1a8] sm:$0xf] }
 0x103   :  { %1469 = vmatmul.bf16.vlgmr.msra.gmra.mxu2 %v3406_v16  ;;  %2083 = vmatpush.bf16.msra.mxu1 %v4327_v3  ;;  %v3423_v3 = vld [vmem:[%s6428_s0 + $0x1c0] sm:$0xf0] }
 0x104   :  { %1512 = vmatmul.bf16.vlgmr.msra.gmra.mxu3 %v3410_v36  ;;  %2126 = vmatpush.bf16.msra.mxu2 %v4529_v41  ;;  %v3429_v41 = vld [vmem:[%s6428_s0 + $0x1ac] sm:$0xf]  ;;  %v3426_v59 = vor.u32 %v4119_v2, %v3423_v3  ;;  %v4133_v2 = vld [vmem:[%s6428_s0 + $0x218] sm:$0xf]  ;;  %v3479_v3 = vld [vmem:[%s6428_s0 + $0x230] sm:$0xf0] }
 0x105   :  { %2169 = vmatpush.bf16.msra.mxu3 %v4538_v46  ;;  %v3431_v46 = vld [vmem:[%s6428_s0 + $0x1c8] sm:$0xf0] }
 0x106   :  { %v848_v43 = vpop.f32.mrf.mxu2  ;;  %v764_v5 = vpop.f32.mrf.mxu0  ;;  %2041 = vmatpush.bf16.msra.mxu0 %v4346_v6  ;;  %v4123_v6 = vld [vmem:[%s6428_s0 + $0x1c4] sm:$0xf0] }
 0x107   :  { %v891_v52 = vpop.f32.mrf.mxu3  ;;  %v849_v0 = vadd.f32 %v848_v43, %v806_v21  ;;  %v807_v40 = vpop.f32.mrf.mxu1  ;;  %2084 = vmatpush.bf16.msra.mxu1 %v4351_v7  ;;  %v4120_v7 = vld [vmem:[%s6428_s0 + $0x1b0] sm:$0xf]  ;;  %v3430_v61 = vor.u32 %v4123_v6, %v3429_v41  ;;  %v3485_v41 = vld [vmem:[%s6428_s0 + $0x21c] sm:$0xf]  ;;  %v4137_v6 = vld [vmem:[%s6428_s0 + $0x234] sm:$0xf0] }
 0x108   :  { %2127 = vmatpush.bf16.msra.mxu2 %v4545_v47  ;;  %v3437_v47 = vld [vmem:[%s6428_s0 + $0x1b4] sm:$0xf]  ;;  %v3434_v29 = vor.u32 %v4120_v7, %v3431_v46  ;;  %v3487_v7 = vld [vmem:[%s6428_s0 + $0x238] sm:$0xf0]  ;;  %v3493_v46 = vld [vmem:[%s6428_s0 + $0x224] sm:$0xf] }
 0x109   :  { %v5042_v31 = vadd.f32 %v891_v52, %v849_v0  ;;  %2170 = vmatpush.bf16.msra.mxu3 %v4552_v48  ;;  %v4124_v48 = vld [vmem:[%s6428_s0 + $0x1cc] sm:$0xf0] }
 0x10a   :  { %2042 = vmatpush.bf16.msra.mxu0 %v4370_v10  ;;  %v3438_v9 = vor.u32 %v4124_v48, %v3437_v47  ;;  %v4138_v47 = vld [vmem:[%s6428_s0 + $0x23c] sm:$0xf0] }
 0x10b   :  { %2085 = vmatpush.bf16.msra.mxu1 %v4375_v11 }
 0x10c   :  { %2128 = vmatpush.bf16.msra.mxu2 %v4558_v49 }
 0x10d   :  { %2171 = vmatpush.bf16.msra.mxu3 %v4565_v50 }
 0x10e   :  { %v850_v25 = vpop.f32.mrf.mxu2  ;;  %v904_v30 = vpop.f32.mrf.mxu0  ;;  %2043 = vmatpush.bf16.msra.mxu0 %v4394_v14 }
 0x10f   :  { %v893_v58 = vpop.f32.mrf.mxu3  ;;  %v947_v28 = vpop.f32.mrf.mxu1  ;;  %v905_v62 = vadd.f32 %v904_v30, %v4868_v13  ;;  %2086 = vmatpush.bf16.msra.mxu1 %v4399_v15 }
 0x110   :  { %2129 = vmatpush.bf16.msra.mxu2 %v4571_v51  ;;  %v3482_v58 = vor.u32 %v4133_v2, %v3479_v3 }
 0x111   :  { %2172 = vmatpush.bf16.msra.mxu3 %v4602_v60  ;;  %v948_v10 = vadd.f32 %v947_v28, %v905_v62  ;;  %1388 = vmatmul.bf16.gmra.mxu0 %v3426_v59  ;;  %v3451_v60 = vld [vmem:[%s6428_s0 + $0x1f8] sm:$0xf0]  ;;  %v3486_v59 = vor.u32 %v4137_v6, %v3485_v41 }
 0x112   :  { %1431 = vmatmul.bf16.gmra.mxu1 %v3430_v61  ;;  %2044 = vmatpush.bf16.msra.mxu0 %v4418_v18 }
 0x113   :  { %1474 = vmatmul.bf16.gmra.mxu2 %v3434_v29  ;;  %2087 = vmatpush.bf16.msra.mxu1 %v4423_v19  ;;  %v4126_v19 = vld [vmem:[%s6428_s0 + $0x1e0] sm:$0xf] }
 0x114   :  { %1517 = vmatmul.bf16.gmra.mxu3 %v3438_v9  ;;  %2130 = vmatpush.bf16.msra.mxu2 %v4615_v34  ;;  %v3457_v34 = vld [vmem:[%s6428_s0 + $0x1e4] sm:$0xf]  ;;  %v3454_v63 = vor.u32 %v4126_v19, %v3451_v60  ;;  %v3494_v9 = vor.u32 %v4138_v47, %v3493_v46  ;;  %v4151_v46 = vld [vmem:[%s6428_s0 + $0x2a4] sm:$0xf0]  ;;  %v3543_v47 = vld [vmem:[%s6428_s0 + $0x2a8] sm:$0xf0] }
 0x115   :  { %2173 = vmatpush.bf16.msra.mxu3 %v4620_v35  ;;  %v3459_v35 = vld [vmem:[%s6428_s0 + $0x200] sm:$0xf0] }
 0x116   :  { %v990_v11 = vpop.f32.mrf.mxu2  ;;  %v906_v50 = vpop.f32.mrf.mxu0  ;;  %2045 = vmatpush.bf16.msra.mxu0 %v4442_v22  ;;  %v4130_v22 = vld [vmem:[%s6428_s0 + $0x1fc] sm:$0xf0] }
 0x117   :  { %v5083_v49 = vpop.f32.mrf.mxu3  ;;  %v5085_v14 = vadd.f32 %v990_v11, %v948_v10  ;;  %v949_v15 = vpop.f32.mrf.mxu1  ;;  %v907_v51 = vadd.f32 %v906_v50, %v4900_v55  ;;  %2088 = vmatpush.bf16.msra.mxu1 %v4447_v23  ;;  %v4127_v23 = vld [vmem:[%s6428_s0 + $0x1e8] sm:$0xf]  ;;  %v3458_v12 = vor.u32 %v4130_v22, %v3457_v34  ;;  %v4140_v34 = vld [vmem:[%s6428_s0 + $0x250] sm:$0xf]  ;;  %v3513_v22 = vld [vmem:[%s6428_s0 + $0x254] sm:$0xf] }
 0x118   :  { %2131 = vmatpush.bf16.msra.mxu2 %v4660_v56  ;;  %v3465_v56 = vld [vmem:[%s6428_s0 + $0x1ec] sm:$0xf]  ;;  %v3462_v21 = vor.u32 %v4127_v23, %v3459_v35  ;;  %v4144_v23 = vld [vmem:[%s6428_s0 + $0x26c] sm:$0xf0]  ;;  %v3515_v35 = vld [vmem:[%s6428_s0 + $0x270] sm:$0xf0] }
 0x119   :  { %2174 = vmatpush.bf16.msra.mxu3 %v4665_v57  ;;  %v950_v18 = vadd.f32 %v949_v15, %v907_v51  ;;  %v4131_v57 = vld [vmem:[%s6428_s0 + $0x204] sm:$0xf0] }
 0x11a   :  { %2046 = vmatpush.bf16.msra.mxu0 %v4466_v26  ;;  %v3466_v43 = vor.u32 %v4131_v57, %v3465_v56  ;;  %v5129_v26 = vld [vmem:[%s6427_s1 + $0x80] sm:$0xff]  ;;  %v3521_v56 = vld [vmem:[%s6428_s0 + $0x25c] sm:$0xf]  ;;  %v4145_v57 = vld [vmem:[%s6428_s0 + $0x274] sm:$0xf0] }
 0x11b   :  { %2089 = vmatpush.bf16.msra.mxu1 %v4471_v27  ;;  %v5136_v27 = vld [vmem:[%s6427_s1 + $0xc0] sm:$0xff] }
 0x11c   :  { %2132 = vmatpush.bf16.msra.mxu2 %v4703_v44 }
 0x11d   :  { %2175 = vmatpush.bf16.msra.mxu3 %v4708_v45 }
 0x11e   :  { %v992_v13 = vpop.f32.mrf.mxu2  ;;  %v909_v16 = vpop.f32.mrf.mxu0  ;;  %2047 = vmatpush.bf16.msra.mxu0 %v5129_v26 }
 0x11f   :  { %v5120_v55 = vpop.f32.mrf.mxu3  ;;  %v5122_v32 = vadd.f32 %v992_v13, %v950_v18  ;;  %v952_v36 = vpop.f32.mrf.mxu1  ;;  %v910_v52 = vadd.f32 %v909_v16, %v4904_v8  ;;  %2090 = vmatpush.bf16.msra.mxu1 %v5136_v27  ;;  %v3514_v16 = vor.u32 %v4144_v23, %v3513_v22 }
 0x120   :  { %2133 = vmatpush.bf16.msra.mxu2 %v4743_v37 }
 0x121   :  { %2176 = vmatpush.bf16.msra.mxu3 %v4748_v38  ;;  %v953_v44 = vadd.f32 %v952_v36, %v910_v52  ;;  %1393 = vmatmul.bf16.gmra.mxu0 %v3454_v63 }
 0x122   :  { %1436 = vmatmul.bf16.gmra.mxu1 %v3458_v12 }
 0x123   :  { %1479 = vmatmul.bf16.gmra.mxu2 %v3462_v21 }
 0x124   :  { %1522 = vmatmul.bf16.gmra.mxu3 %v3466_v43 }
 0x126   :  { %v995_v45 = vpop.f32.mrf.mxu2  ;;  %v911_v0 = vpop.f32.mrf.mxu0 }
 0x127   :  { %v5139_v37 = vpop.f32.mrf.mxu3  ;;  %v5141_v8 = vadd.f32 %v995_v45, %v953_v44  ;;  %v954_v5 = vpop.f32.mrf.mxu1  ;;  %v912_v38 = vadd.f32 %v911_v0, %v4930_v4  ;;  %v4134_v4 = vld [vmem:[%s6428_s0 + $0x220] sm:$0xf]  ;;  %v3522_v44 = vor.u32 %v4145_v57, %v3521_v56  ;;  %v1214_v57 = vunpack.c.h.b16 %v5000_v53 }
 0x128   :  { %v3490_v29 = vor.u32 %v4134_v4, %v3487_v7  ;;  %v4147_v4 = vld [vmem:[%s6428_s0 + $0x288] sm:$0xf]  ;;  %v3541_v7 = vld [vmem:[%s6428_s0 + $0x28c] sm:$0xf] }
 0x129   :  { %v955_v40 = vadd.f32 %v954_v5, %v912_v38 }
 0x12e   :  { %v997_v48 = vpop.f32.mrf.mxu2  ;;  %v914_v30 = vpop.f32.mrf.mxu0 }
 0x12f   :  { %v5168_v25 = vpop.f32.mrf.mxu3  ;;  %v5170_v61 = vadd.f32 %v997_v48, %v955_v40  ;;  %v957_v28 = vpop.f32.mrf.mxu1  ;;  %v915_v62 = vadd.f32 %v914_v30, %v4933_v24  ;;  %v3507_v24 = vld [vmem:[%s6428_s0 + $0x268] sm:$0xf0]  ;;  %v3549_v48 = vld [vmem:[%s6428_s0 + $0x294] sm:$0xf] }
 0x130   :  { %v3510_v12 = vor.u32 %v4140_v34, %v3507_v24 }
 0x131   :  { %v958_v10 = vadd.f32 %v957_v28, %v915_v62  ;;  %1398 = vmatmul.bf16.gmra.mxu0 %v3482_v58  ;;  %v4152_v58 = vld [vmem:[%s6428_s0 + $0x2ac] sm:$0xf0] }
 0x132   :  { %1441 = vmatmul.bf16.gmra.mxu1 %v3486_v59 }
 0x133   :  { %1484 = vmatmul.bf16.gmra.mxu2 %v3490_v29  ;;  %v3542_v29 = vor.u32 %v4151_v46, %v3541_v7 }
 0x134   :  { %1527 = vmatmul.bf16.gmra.mxu3 %v3494_v9 }
 0x136   :  { %v1000_v11 = vpop.f32.mrf.mxu2  ;;  %v916_v51 = vpop.f32.mrf.mxu0 }
 0x137   :  { %v5173_v50 = vpop.f32.mrf.mxu3  ;;  %v5175_v15 = vadd.f32 %v1000_v11, %v958_v10  ;;  %v959_v18 = vpop.f32.mrf.mxu1  ;;  %v917_v19 = vadd.f32 %v916_v51, %v4959_v42  ;;  %v4141_v42 = vld [vmem:[%s6428_s0 + $0x258] sm:$0xf]  ;;  %v3550_v51 = vor.u32 %v4152_v58, %v3549_v48  ;;  %v3417_v48 = vld [vmem:[%s6428_s0 + $0x184] sm:$0xf]  ;;  %v4118_v58 = vld [vmem:[%s6428_s0 + $0x19c] sm:$0xf0] }
 0x138   :  { %v3518_v52 = vor.u32 %v4141_v42, %v3515_v35  ;;  %v3388_v42 = vld [vmem:[%s6428_s0 + $0x2c4] sm:$0xff] }
 0x139   :  { %v960_v60 = vadd.f32 %v959_v18, %v917_v19 }
 0x13e   :  { %v1002_v13 = vpop.f32.mrf.mxu2  ;;  %v919_v21 = vpop.f32.mrf.mxu0 }
 0x13f   :  { %v5202_v63 = vpop.f32.mrf.mxu3  ;;  %v5204_v36 = vadd.f32 %v1002_v13, %v960_v60  ;;  %v962_v43 = vpop.f32.mrf.mxu1  ;;  %v920_v45 = vadd.f32 %v919_v21, %v4962_v33  ;;  %v3535_v33 = vld [vmem:[%s6428_s0 + $0x2a0] sm:$0xf0]  ;;  %v1215_v13 = vunpack.c.l.b16 %v3388_v42 }
 0x140   :  { %v3538_v28 = vor.u32 %v4147_v4, %v3535_v33 }
 0x141   :  { %v963_v0 = vadd.f32 %v962_v43, %v920_v45  ;;  %1403 = vmatmul.bf16.gmra.mxu0 %v3510_v12  ;;  %v1216_v12 = vunpack.c.h.b16 %v3388_v42 }
 0x142   :  { %1446 = vmatmul.bf16.gmra.mxu1 %v3514_v16 }
 0x143   :  { %1489 = vmatmul.bf16.gmra.mxu2 %v3518_v52  ;;  %v1263_v52 = vpack.c.b16 %v1214_v57, %v1214_v57  ;;  %v5302_v57 = vld [vmem:[%s6427_s1 + $0x188] sm:$0xff] }
 0x144   :  { %1532 = vmatmul.bf16.gmra.mxu3 %v3522_v44  ;;  %v1264_v44 = vpack.c.b16 %v1215_v13, %v1215_v13  ;;  %v4244_v13 = vld [vmem:[%s6427_s1 + $0x38] sm:$0xff] }
 0x146   :  { %v1005_v5 = vpop.f32.mrf.mxu2  ;;  %v921_v2 = vpop.f32.mrf.mxu0 }
 0x147   :  { %v5207_v38 = vpop.f32.mrf.mxu3  ;;  %v5209_v40 = vadd.f32 %v1005_v5, %v963_v0  ;;  %v964_v3 = vpop.f32.mrf.mxu1  ;;  %v922_v41 = vadd.f32 %v921_v2, %v4988_v20  ;;  %v4148_v20 = vld [vmem:[%s6428_s0 + $0x290] sm:$0xf]  ;;  %v1265_v5 = vpack.c.b16 %v1216_v12, %v1216_v12 }
 0x148   :  { %v3546_v11 = vor.u32 %v4148_v20, %v3543_v47  ;;  %v4114_v47 = vld [vmem:[%s6428_s0 + $0x180] sm:$0xf] }
 0x149   :  { %v965_v6 = vadd.f32 %v964_v3, %v922_v41 }
 0x14e   :  { %v1007_v59 = vpop.f32.mrf.mxu2  ;;  %v924_v62 = vpop.f32.mrf.mxu0 }
 0x14f   :  { %v5236_v30 = vpop.f32.mrf.mxu3  ;;  %v5238_v9 = vadd.f32 %v1007_v59, %v965_v6  ;;  %v967_v10 = vpop.f32.mrf.mxu1  ;;  %v925_v18 = vadd.f32 %v924_v62, %v5002_v54  ;;  %v5252_v54 = vld [vmem:[%s6428_s0 + $0x2cc] sm:$0xff]  ;;  %v4157_v59 = vld [vmem:[%s6428_s0 + $0x2f0] sm:$0xf0] }
 0x150   :  { %v1217_v16 = vunpack.c.l.b16 %v5252_v54 }
 0x151   :  { %v968_v19 = vadd.f32 %v967_v10, %v925_v18  ;;  %1408 = vmatmul.bf16.gmra.mxu0 %v3538_v28  ;;  %v4154_v28 = vld [vmem:[%s6428_s0 + $0x2dc] sm:$0xf] }
 0x152   :  { %1451 = vmatmul.bf16.gmra.mxu1 %v3542_v29  ;;  %v1266_v2 = vpack.c.b16 %v1217_v16, %v1217_v16  ;;  %v3622_v29 = vld [vmem:[%s6428_s0 + $0x2f4] sm:$0xf0] }
 0x153   :  { %1494 = vmatmul.bf16.gmra.mxu2 %v3546_v11 }
 0x154   :  { %1537 = vmatmul.bf16.gmra.mxu3 %v3550_v51  ;;  %v3418_v51 = vor.u32 %v4118_v58, %v3417_v48  ;;  %v4250_v48 = vld [vmem:[%s6427_s1 + $0xa8] sm:$0xff] }
 0x155   :  { %v4251_v58 = vld [vmem:[%s6427_s1 + $0x28] sm:$0xff] }
 0x156   :  { %v1010_v60 = vpop.f32.mrf.mxu2  ;;  %v926_v22 = vpop.f32.mrf.mxu0 }
 0x157   :  { %v5241_v34 = vpop.f32.mrf.mxu3  ;;  %v5243_v24 = vadd.f32 %v1010_v60, %v968_v19  ;;  %v969_v23 = vpop.f32.mrf.mxu1  ;;  %v927_v35 = vadd.f32 %v926_v22, %v5005_v17 }
 0x159   :  { %v970_v56 = vadd.f32 %v969_v23, %v927_v35  ;;  %v3625_v23 = vor.u32 %v4154_v28, %v3622_v29 }
 0x15e   :  { %v1012_v21 = vpop.f32.mrf.mxu2  ;;  %v929_v17 = vpop.f32.mrf.mxu0 }
 0x15f   :  { %v5256_v43 = vpop.f32.mrf.mxu3  ;;  %v5258_v45 = vadd.f32 %v1012_v21, %v970_v56  ;;  %v972_v0 = vpop.f32.mrf.mxu1  ;;  %v930_v3 = vadd.f32 %v929_v17, %v5008_v1  ;;  %v3411_v1 = vld [vmem:[%s6428_s0 + $0x198] sm:$0xf0]  ;;  %v4245_v17 = vld [vmem:[%s6427_s1 + $0x70] sm:$0xff] }
 0x160   :  { %v3414_v11 = vor.u32 %v4114_v47, %v3411_v1  ;;  %v4241_v56 = vld [vmem:[%s6427_s1 + $0x78] sm:$0xff]  ;;  %v3650_v47 = vld [vmem:[%s6428_s0 + $0x32c] sm:$0xf0]  ;;  %v4249_v1 = vld [vmem:[%s6427_s1 + $0x68] sm:$0xff] }
 0x161   :  { %v973_v41 = vadd.f32 %v972_v0, %v930_v3  ;;  %1413 = vmatmul.bf16.gmra.mxu0 %v1263_v52  ;;  %v5321_v0 = vld [vmem:[%s6427_s1 + $0x180] sm:$0xff]  ;;  %v4121_v3 = vld [vmem:[%s6428_s0 + $0x1b8] sm:$0xf] }
 0x162   :  { %1456 = vmatmul.bf16.gmra.mxu1 %v1264_v44 }
 0x163   :  { %1499 = vmatmul.bf16.gmra.mxu2 %v1265_v5  ;;  %v4247_v5 = vld [vmem:[%s6427_s1 + $0xb0] sm:$0xff] }
 0x164   :  { %1542 = vmatmul.bf16.gmra.mxu3 %v1266_v2  ;;  %v4248_v2 = vld [vmem:[%s6427_s1 + $0x30] sm:$0xff] }
 0x166   :  { %v1015_v53 = vpop.f32.mrf.mxu2  ;;  %v931_v33 = vpop.f32.mrf.mxu0 }
 0x167   :  { %v5261_v6 = vpop.f32.mrf.mxu3  ;;  %v5263_v4 = vadd.f32 %v1015_v53, %v973_v41  ;;  %v974_v7 = vpop.f32.mrf.mxu1  ;;  %v932_v46 = vadd.f32 %v931_v33, %v5034_v39  ;;  %v3620_v39 = vld [vmem:[%s6428_s0 + $0x2d8] sm:$0xf]  ;;  %v3439_v41 = vld [vmem:[%s6428_s0 + $0x1d0] sm:$0xf0]  ;;  %v3445_v53 = vld [vmem:[%s6428_s0 + $0x1bc] sm:$0xf] }
 0x168   :  { %v3621_v22 = vor.u32 %v4157_v59, %v3620_v39  ;;  %v4125_v33 = vld [vmem:[%s6428_s0 + $0x1d4] sm:$0xf0]  ;;  %v3442_v28 = vor.u32 %v4121_v3, %v3439_v41  ;;  %v4259_v41 = vld [vmem:[%s6427_s1 + $0x90] sm:$0xff] }
 0x169   :  { %v975_v20 = vadd.f32 %v974_v7, %v932_v46  ;;  %v3648_v7 = vld [vmem:[%s6428_s0 + $0x310] sm:$0xf]  ;;  %v4164_v46 = vld [vmem:[%s6428_s0 + $0x328] sm:$0xf0]  ;;  %v3446_v29 = vor.u32 %v4125_v33, %v3445_v53 }
 0x16a   :  { %v4260_v53 = vld [vmem:[%s6427_s1 + $0x10] sm:$0xff] }
 0x16e   :  { %v1017_v62 = vpop.f32.mrf.mxu2  ;;  %v934_v19 = vpop.f32.mrf.mxu0 }
 0x16f   :  { %v5290_v10 = vpop.f32.mrf.mxu3  ;;  %v5292_v18 = vadd.f32 %v1017_v62, %v975_v20  ;;  %v977_v60 = vpop.f32.mrf.mxu1  ;;  %v935_v42 = vadd.f32 %v934_v19, %v5042_v31  ;;  %v4243_v31 = vld [vmem:[%s6427_s1 + $0xb8] sm:$0xff]  ;;  %v4161_v20 = vld [vmem:[%s6428_s0 + $0x314] sm:$0xf] }
 0x170   :  { %v3653_v19 = vor.u32 %v4161_v20, %v3650_v47  ;;  %v4132_v20 = vld [vmem:[%s6428_s0 + $0x20c] sm:$0xf0]  ;;  %v3676_v47 = vld [vmem:[%s6428_s0 + $0x348] sm:$0xf] }
 0x171   :  { %v978_v35 = vadd.f32 %v977_v60, %v935_v42  ;;  %1555 = vmatmul.bf16.vlgmr.msrb.gmra.mxu0 %v3414_v11  ;;  %v4254_v42 = vld [vmem:[%s6427_s1 + $0x20] sm:$0xff] }
 0x172   :  { %3559 = vmatmul.msk.bf16.vlgmr.msrb.gmra.mxu1 %vm701_vm0, %v3418_v51  ;;  %2218 = vmatpush.bf16.msrb.mxu0 %v5302_v57  ;;  %v3649_v51 = vor.u32 %v4164_v46, %v3648_v7  ;;  %v3467_v7 = vld [vmem:[%s6428_s0 + $0x208] sm:$0xf0]  ;;  %v3473_v46 = vld [vmem:[%s6428_s0 + $0x1f4] sm:$0xf] }
 0x173   :  { %1962 = vmatmul.bf16.vlgmr.msrb.gmra.mxu2 %v3621_v22  ;;  %2576 = vmatpush.bf16.msrb.mxu1 %v4244_v13  ;;  %v4252_v22 = vld [vmem:[%s6427_s1 + $0x60] sm:$0xff] }
 0x174   :  { %2005 = vmatmul.bf16.vlgmr.msrb.gmra.mxu3 %v3625_v23  ;;  %2619 = vmatpush.bf16.msrb.mxu2 %v4241_v56  ;;  %v4253_v23 = vld [vmem:[%s6427_s1 + $0xa0] sm:$0xff]  ;;  %v4256_v56 = vld [vmem:[%s6427_s1 + $0x98] sm:$0xff] }
 0x175   :  { %2662 = vmatpush.bf16.msrb.mxu3 %v4243_v31  ;;  %v4257_v31 = vld [vmem:[%s6427_s1 + $0x18] sm:$0xff] }
 0x176   :  { %v1020_v12 = vpop.f32.mrf.mxu2  ;;  %v936_v52 = vpop.f32.mrf.mxu0  ;;  %2219 = vmatpush.bf16.msrb.mxu0 %v5321_v0 }
 0x177   :  { %v5311_v16 = vpop.f32.mrf.mxu3  ;;  %v5313_v21 = vadd.f32 %v1020_v12, %v978_v35  ;;  %v979_v44 = vpop.f32.mrf.mxu1  ;;  %2577 = vmatpush.bf16.msrb.mxu1 %v4248_v2  ;;  %v4258_v2 = vld [vmem:[%s6427_s1 + $0x50] sm:$0xff] }
 0x178   :  { %2620 = vmatpush.bf16.msrb.mxu2 %v4245_v17 }
 0x179   :  { %2663 = vmatpush.bf16.msrb.mxu3 %v4247_v5 }
 0x17b   :  { %2578 = vmatpush.bf16.msrb.mxu1 %v4251_v58  ;;  %v3678_v58 = vld [vmem:[%s6428_s0 + $0x364] sm:$0xf0] }
 0x17c   :  { %2621 = vmatpush.bf16.msrb.mxu2 %v4249_v1  ;;  %v4171_v1 = vld [vmem:[%s6428_s0 + $0x360] sm:$0xf0] }
 0x17d   :  { %2664 = vmatpush.bf16.msrb.mxu3 %v4250_v48  ;;  %v4168_v48 = vld [vmem:[%s6428_s0 + $0x34c] sm:$0xf] }
 0x17e   :  { %v1022_v39 = vpop.f32.mrf.mxu2  ;;  %v1384_v62 = vpop.f32.mrf.mxu0 }
 0x17f   :  { %v1373_v59 = vpop.f32.mrf.mxu3  ;;  %v1427_v11 = vpop.f32.mrf.mxu1  ;;  %v1385_v60 = vadd.f32 %v1384_v62, %v5083_v49  ;;  %2579 = vmatpush.bf16.msrb.mxu1 %v4254_v42  ;;  %v4255_v49 = vld [vmem:[%s6427_s1 + $0x58] sm:$0xff]  ;;  %v4261_v39 = vld [vmem:[%s6427_s1 + $0x48] sm:$0xff]  ;;  %v3681_v42 = vor.u32 %v4168_v48, %v3678_v58 }
 0x180   :  { %2622 = vmatpush.bf16.msrb.mxu2 %v4252_v22  ;;  %v4262_v59 = vld [vmem:[%s6427_s1 + $0x88] sm:$0xff] }
 0x181   :  { %2665 = vmatpush.bf16.msrb.mxu3 %v4253_v23  ;;  %v1428_v35 = vadd.f32 %v1427_v11, %v1385_v60  ;;  %1560 = vmatmul.bf16.gmra.mxu0 %v3442_v28  ;;  %v4263_v28 = vld [vmem:[%s6427_s1 + $0x8] sm:$0xff]  ;;  %v3677_v23 = vor.u32 %v4171_v1, %v3676_v47 }
 0x182   :  { %3560 = vmatmul.msk.bf16.gmra.mxu1 %vm701_vm0, %v3446_v29 }
 0x183   :  { %1967 = vmatmul.bf16.gmra.mxu2 %v3649_v51  ;;  %2580 = vmatpush.bf16.msrb.mxu1 %v4257_v31  ;;  %v3474_v51 = vor.u32 %v4132_v20, %v3473_v46  ;;  %v4265_v31 = vld [vmem:[%s6427_s1] sm:$0xff] }
 0x184   :  { %2010 = vmatmul.bf16.gmra.mxu3 %v3653_v19  ;;  %2623 = vmatpush.bf16.msrb.mxu2 %v4255_v49  ;;  %v4264_v49 = vld [vmem:[%s6427_s1 + $0x40] sm:$0xff] }
 0x185   :  { %2666 = vmatpush.bf16.msrb.mxu3 %v4256_v56  ;;  %v4175_v46 = vld [vmem:[%s6428_s0 + $0x384] sm:$0xf]  ;;  %v3706_v20 = vld [vmem:[%s6428_s0 + $0x39c] sm:$0xf0] }
 0x186   :  { %v1470_v13 = vpop.f32.mrf.mxu2  ;;  %v1386_v44 = vpop.f32.mrf.mxu0 }
 0x187   :  { %v1513_v12 = vpop.f32.mrf.mxu3  ;;  %v1471_v52 = vadd.f32 %v1470_v13, %v1428_v35  ;;  %v1429_v17 = vpop.f32.mrf.mxu1  ;;  %v1387_v5 = vadd.f32 %v1386_v44, %v5120_v55  ;;  %2581 = vmatpush.bf16.msrb.mxu1 %v4260_v53  ;;  %v4128_v55 = vld [vmem:[%s6428_s0 + $0x1f0] sm:$0xf]  ;;  %v3495_v53 = vld [vmem:[%s6428_s0 + $0x240] sm:$0xf0] }
 0x188   :  { %2624 = vmatpush.bf16.msrb.mxu2 %v4258_v2  ;;  %v3470_v11 = vor.u32 %v4128_v55, %v3467_v7  ;;  %v4139_v55 = vld [vmem:[%s6428_s0 + $0x244] sm:$0xf0]  ;;  %v4178_v7 = vld [vmem:[%s6428_s0 + $0x398] sm:$0xf0] }
 0x189   :  { %v5387_v3 = vadd.f32 %v1513_v12, %v1471_v52  ;;  %2667 = vmatpush.bf16.msrb.mxu3 %v4259_v41  ;;  %v1430_v33 = vadd.f32 %v1429_v17, %v1387_v5  ;;  %v4135_v41 = vld [vmem:[%s6428_s0 + $0x228] sm:$0xf] }
 0x18a   :  { %v3498_v48 = vor.u32 %v4135_v41, %v3495_v53 }
 0x18b   :  { %2582 = vmatpush.bf16.msrb.mxu1 %v4263_v28 }
 0x18c   :  { %2625 = vmatpush.bf16.msrb.mxu2 %v4261_v39 }
 0x18d   :  { %2668 = vmatpush.bf16.msrb.mxu3 %v4262_v59 }
 0x18e   :  { %v1472_v29 = vpop.f32.mrf.mxu2  ;;  %v1389_v60 = vpop.f32.mrf.mxu0 }
 0x18f   :  { %v1515_v62 = vpop.f32.mrf.mxu3  ;;  %v1473_v19 = vadd.f32 %v1472_v29, %v1430_v33  ;;  %v1432_v22 = vpop.f32.mrf.mxu1  ;;  %v1390_v35 = vadd.f32 %v1389_v60, %v5139_v37  ;;  %2583 = vmatpush.bf16.msrb.mxu1 %v4265_v31  ;;  %v3501_v33 = vld [vmem:[%s6428_s0 + $0x22c] sm:$0xf] }
 0x190   :  { %2626 = vmatpush.bf16.msrb.mxu2 %v4264_v49  ;;  %v3502_v58 = vor.u32 %v4139_v55, %v3501_v33 }
 0x191   :  { %v5432_v56 = vadd.f32 %v1515_v62, %v1473_v19  ;;  %2669 = vmatpush.bf16.msrb.mxu3 %v5129_v26  ;;  %v1433_v13 = vadd.f32 %v1432_v22, %v1390_v35  ;;  %1565 = vmatmul.bf16.gmra.mxu0 %v3470_v11  ;;  %v3709_v62 = vor.u32 %v4175_v46, %v3706_v20 }
 0x192   :  { %3561 = vmatmul.msk.bf16.gmra.mxu1 %vm701_vm0, %v3474_v51 }
 0x193   :  { %1972 = vmatmul.bf16.gmra.mxu2 %v3677_v23 }
 0x194   :  { %2015 = vmatmul.bf16.gmra.mxu3 %v3681_v42 }
 0x196   :  { %v1475_v37 = vpop.f32.mrf.mxu2  ;;  %v1391_v44 = vpop.f32.mrf.mxu0 }
 0x197   :  { %v1518_v12 = vpop.f32.mrf.mxu3  ;;  %v1476_v52 = vadd.f32 %v1475_v37, %v1433_v13  ;;  %v1434_v17 = vpop.f32.mrf.mxu1  ;;  %v1392_v5 = vadd.f32 %v1391_v44, %v5168_v25  ;;  %v3704_v25 = vld [vmem:[%s6428_s0 + $0x380] sm:$0xf]  ;;  %v3523_v37 = vld [vmem:[%s6428_s0 + $0x278] sm:$0xf0]  ;;  %v4185_v44 = vld [vmem:[%s6428_s0 + $0x3d0] sm:$0xf0] }
 0x198   :  { %v3705_v29 = vor.u32 %v4178_v7, %v3704_v25 }
 0x199   :  { %v5440_v2 = vadd.f32 %v1518_v12, %v1476_v52  ;;  %v1435_v26 = vadd.f32 %v1434_v17, %v1392_v5  ;;  %v3529_v12 = vld [vmem:[%s6428_s0 + $0x264] sm:$0xf]  ;;  %v4146_v52 = vld [vmem:[%s6428_s0 + $0x27c] sm:$0xf0]  ;;  %v4182_v17 = vld [vmem:[%s6428_s0 + $0x3bc] sm:$0xf] }
 0x19a   :  { %v3734_v5 = vld [vmem:[%s6428_s0 + $0x3d4] sm:$0xf0]  ;;  %v3530_v33 = vor.u32 %v4146_v52, %v3529_v12 }
 0x19b   :  { %v3737_v20 = vor.u32 %v4182_v17, %v3734_v5 }
 0x19e   :  { %v1477_v47 = vpop.f32.mrf.mxu2  ;;  %v1394_v59 = vpop.f32.mrf.mxu0 }
 0x19f   :  { %v1520_v1 = vpop.f32.mrf.mxu3  ;;  %v1478_v39 = vadd.f32 %v1477_v47, %v1435_v26  ;;  %v1437_v28 = vpop.f32.mrf.mxu1  ;;  %v1395_v11 = vadd.f32 %v1394_v59, %v5173_v50  ;;  %v4142_v50 = vld [vmem:[%s6428_s0 + $0x260] sm:$0xf] }
 0x1a0   :  { %v3526_v53 = vor.u32 %v4142_v50, %v3523_v37 }
 0x1a1   :  { %v5467_v51 = vadd.f32 %v1520_v1, %v1478_v39  ;;  %v1438_v19 = vadd.f32 %v1437_v28, %v1395_v11  ;;  %1570 = vmatmul.bf16.gmra.mxu0 %v3498_v48 }
 0x1a2   :  { %3562 = vmatmul.msk.bf16.gmra.mxu1 %vm701_vm0, %v3502_v58 }
 0x1a3   :  { %1977 = vmatmul.bf16.gmra.mxu2 %v3705_v29 }
 0x1a4   :  { %2020 = vmatmul.bf16.gmra.mxu3 %v3709_v62 }
 0x1a6   :  { %v1480_v60 = vpop.f32.mrf.mxu2  ;;  %v1396_v42 = vpop.f32.mrf.mxu0 }
 0x1a7   :  { %v1523_v22 = vpop.f32.mrf.mxu3  ;;  %v1481_v23 = vadd.f32 %v1480_v60, %v1438_v19  ;;  %v1439_v35 = vpop.f32.mrf.mxu1  ;;  %v1397_v49 = vadd.f32 %v1396_v42, %v5202_v63  ;;  %v3732_v63 = vld [vmem:[%s6428_s0 + $0x3b8] sm:$0xf]  ;;  %v3551_v60 = vld [vmem:[%s6428_s0 + $0x2b0] sm:$0xf0]  ;;  %v4192_v42 = vld [vmem:[%s6428_s0 + $0x408] sm:$0xf0] }
 0x1a8   :  { %v3733_v46 = vor.u32 %v4185_v44, %v3732_v63 }
 0x1a9   :  { %v5471_v31 = vadd.f32 %v1523_v22, %v1481_v23  ;;  %v1440_v13 = vadd.f32 %v1439_v35, %v1397_v49  ;;  %v3557_v22 = vld [vmem:[%s6428_s0 + $0x29c] sm:$0xf]  ;;  %v4153_v23 = vld [vmem:[%s6428_s0 + $0x2b4] sm:$0xf0]  ;;  %v4189_v35 = vld [vmem:[%s6428_s0 + $0x3f4] sm:$0xf] }
 0x1aa   :  { %v3762_v49 = vld [vmem:[%s6428_s0 + $0x40c] sm:$0xf0]  ;;  %v3558_v12 = vor.u32 %v4153_v23, %v3557_v22 }
 0x1ab   :  { %v3765_v5 = vor.u32 %v4189_v35, %v3762_v49 }
 0x1ae   :  { %v1482_v26 = vpop.f32.mrf.mxu2  ;;  %v1399_v25 = vpop.f32.mrf.mxu0 }
 0x1af   :  { %v1525_v41 = vpop.f32.mrf.mxu3  ;;  %v1483_v55 = vadd.f32 %v1482_v26, %v1440_v13  ;;  %v1442_v7 = vpop.f32.mrf.mxu1  ;;  %v1400_v47 = vadd.f32 %v1399_v25, %v5207_v38  ;;  %v4149_v38 = vld [vmem:[%s6428_s0 + $0x298] sm:$0xf] }
 0x1b0   :  { %v3554_v37 = vor.u32 %v4149_v38, %v3551_v60 }
 0x1b1   :  { %v5498_v1 = vadd.f32 %v1525_v41, %v1483_v55  ;;  %v1443_v48 = vadd.f32 %v1442_v7, %v1400_v47  ;;  %1575 = vmatmul.bf16.gmra.mxu0 %v3526_v53 }
 0x1b2   :  { %3563 = vmatmul.msk.bf16.gmra.mxu1 %vm701_vm0, %v3530_v33 }
 0x1b3   :  { %1982 = vmatmul.bf16.gmra.mxu2 %v3733_v46 }
 0x1b4   :  { %2025 = vmatmul.bf16.gmra.mxu3 %v3737_v20  ;;  %v3390_v20 = vld [vmem:[%s6428_s0 + $0x2d4] sm:$0xf] }
 0x1b6   :  { %v1485_v58 = vpop.f32.mrf.mxu2  ;;  %v1401_v28 = vpop.f32.mrf.mxu0 }
 0x1b7   :  { %v1528_v39 = vpop.f32.mrf.mxu3  ;;  %v1486_v59 = vadd.f32 %v1485_v58, %v1443_v48  ;;  %v1444_v29 = vpop.f32.mrf.mxu1  ;;  %v1402_v62 = vadd.f32 %v1401_v28, %v5236_v30  ;;  %v3760_v30 = vld [vmem:[%s6428_s0 + $0x3f0] sm:$0xf] }
 0x1b8   :  { %v3761_v17 = vor.u32 %v4192_v42, %v3760_v30 }
 0x1b9   :  { %v5502_v11 = vadd.f32 %v1528_v39, %v1486_v59  ;;  %v1445_v19 = vadd.f32 %v1444_v29, %v1402_v62  ;;  %v1218_v39 = vunpack.c.h.b16 %v5252_v54  ;;  %v1219_v59 = vunpack.c.l.b16 %v3390_v20 }
 0x1bb   :  { %v1267_v38 = vpack.c.b16 %v1218_v39, %v1218_v39  ;;  %v1268_v60 = vpack.c.b16 %v1219_v59, %v1219_v59 }
 0x1be   :  { %v1487_v13 = vpop.f32.mrf.mxu2  ;;  %v1404_v63 = vpop.f32.mrf.mxu0 }
 0x1bf   :  { %v1530_v50 = vpop.f32.mrf.mxu3  ;;  %v1488_v52 = vadd.f32 %v1487_v13, %v1445_v19  ;;  %v1447_v44 = vpop.f32.mrf.mxu1  ;;  %v1405_v26 = vadd.f32 %v1404_v63, %v5241_v34  ;;  %v3614_v34 = vld [vmem:[%s6428_s0 + $0x428] sm:$0xff] }
 0x1c0   :  { %v1835_v28 = vunpack.c.l.b16 %v3614_v34  ;;  %v1836_v29 = vunpack.c.h.b16 %v3614_v34 }
 0x1c1   :  { %v5529_v41 = vadd.f32 %v1530_v50, %v1488_v52  ;;  %v1448_v53 = vadd.f32 %v1447_v44, %v1405_v26  ;;  %1580 = vmatmul.bf16.gmra.mxu0 %v3554_v37  ;;  %v4155_v26 = vld [vmem:[%s6428_s0 + $0x2e4] sm:$0xf] }
 0x1c2   :  { %3564 = vmatmul.msk.bf16.gmra.mxu1 %vm701_vm0, %v3558_v12  ;;  %v1885_v42 = vpack.c.b16 %v1836_v29, %v1836_v29 }
 0x1c3   :  { %1987 = vmatmul.bf16.gmra.mxu2 %v3761_v17 }
 0x1c4   :  { %2030 = vmatmul.bf16.gmra.mxu3 %v3765_v5  ;;  %v4158_v5 = vld [vmem:[%s6428_s0 + $0x2f8] sm:$0xf0] }
 0x1c6   :  { %v1490_v33 = vpop.f32.mrf.mxu2  ;;  %v1406_v7 = vpop.f32.mrf.mxu0 }
 0x1c7   :  { %v1533_v55 = vpop.f32.mrf.mxu3  ;;  %v1491_v25 = vadd.f32 %v1490_v33, %v1448_v53  ;;  %v1449_v46 = vpop.f32.mrf.mxu1  ;;  %v1407_v47 = vadd.f32 %v1406_v7, %v5256_v43  ;;  %v1884_v43 = vpack.c.b16 %v1835_v28, %v1835_v28  ;;  %v3630_v53 = vld [vmem:[%s6428_s0 + $0x2fc] sm:$0xf0]  ;;  %v4159_v33 = vld [vmem:[%s6428_s0 + $0x300] sm:$0xf0] }
 0x1c9   :  { %v5539_v48 = vadd.f32 %v1533_v55, %v1491_v25  ;;  %v1450_v58 = vadd.f32 %v1449_v46, %v1407_v47  ;;  %v4156_v55 = vld [vmem:[%s6428_s0 + $0x2ec] sm:$0xf]  ;;  %v3638_v25 = vld [vmem:[%s6428_s0 + $0x304] sm:$0xf0]  ;;  %v3633_v47 = vor.u32 %v4155_v26, %v3630_v53 }
 0x1ca   :  { %v3641_v28 = vor.u32 %v4156_v55, %v3638_v25  ;;  %v4273_v26 = vld [vmem:[%s6427_s1 + $0xe8] sm:$0xff] }
 0x1cb   :  { %v4274_v53 = vld [vmem:[%s6427_s1 + $0x128] sm:$0xff] }
 0x1ce   :  { %v1492_v62 = vpop.f32.mrf.mxu2  ;;  %v1409_v23 = vpop.f32.mrf.mxu0 }
 0x1cf   :  { %v1535_v19 = vpop.f32.mrf.mxu3  ;;  %v1493_v22 = vadd.f32 %v1492_v62, %v1450_v58  ;;  %v1452_v30 = vpop.f32.mrf.mxu1  ;;  %v1410_v35 = vadd.f32 %v1409_v23, %v5261_v6  ;;  %v3628_v6 = vld [vmem:[%s6428_s0 + $0x2e0] sm:$0xf] }
 0x1d0   :  { %v3629_v20 = vor.u32 %v4158_v5, %v3628_v6  ;;  %v3666_v6 = vld [vmem:[%s6428_s0 + $0x33c] sm:$0xf0]  ;;  %v4272_v5 = vld [vmem:[%s6427_s1 + $0x168] sm:$0xff] }
 0x1d1   :  { %v5543_v49 = vadd.f32 %v1535_v19, %v1493_v22  ;;  %v1453_v13 = vadd.f32 %v1452_v30, %v1410_v35  ;;  %1585 = vmatmul.bf16.gmra.mxu0 %v1267_v38  ;;  %v4266_v38 = vld [vmem:[%s6427_s1 + $0x178] sm:$0xff]  ;;  %v4269_v35 = vld [vmem:[%s6427_s1 + $0x170] sm:$0xff] }
 0x1d2   :  { %3565 = vmatmul.msk.bf16.gmra.mxu1 %vm701_vm0, %v1268_v60  ;;  %v4267_v60 = vld [vmem:[%s6427_s1 + $0xf8] sm:$0xff] }
 0x1d3   :  { %1992 = vmatmul.bf16.gmra.mxu2 %v1884_v43 }
 0x1d4   :  { %2035 = vmatmul.bf16.gmra.mxu3 %v1885_v42 }
 0x1d6   :  { %v1495_v54 = vpop.f32.mrf.mxu2  ;;  %v1411_v12 = vpop.f32.mrf.mxu0 }
 0x1d7   :  { %v1538_v50 = vpop.f32.mrf.mxu3  ;;  %v1496_v37 = vadd.f32 %v1495_v54, %v1453_v13  ;;  %v1454_v52 = vpop.f32.mrf.mxu1  ;;  %v1412_v63 = vadd.f32 %v1411_v12, %v5290_v10  ;;  %v3636_v10 = vld [vmem:[%s6428_s0 + $0x2e8] sm:$0xf]  ;;  %v4270_v13 = vld [vmem:[%s6427_s1 + $0xf0] sm:$0xff]  ;;  %v4162_v12 = vld [vmem:[%s6428_s0 + $0x31c] sm:$0xf] }
 0x1d8   :  { %v3637_v59 = vor.u32 %v4159_v33, %v3636_v10  ;;  %v4271_v54 = vld [vmem:[%s6427_s1 + $0x130] sm:$0xff] }
 0x1d9   :  { %v5547_v44 = vadd.f32 %v1538_v50, %v1496_v37  ;;  %v1455_v17 = vadd.f32 %v1454_v52, %v1412_v63  ;;  %v3656_v50 = vld [vmem:[%s6428_s0 + $0x318] sm:$0xf]  ;;  %v4165_v37 = vld [vmem:[%s6428_s0 + $0x330] sm:$0xf0]  ;;  %v4166_v63 = vld [vmem:[%s6428_s0 + $0x338] sm:$0xf0] }
 0x1da   :  { %v3658_v52 = vld [vmem:[%s6428_s0 + $0x334] sm:$0xf0]  ;;  %v3657_v55 = vor.u32 %v4165_v37, %v3656_v50  ;;  %v4172_v50 = vld [vmem:[%s6428_s0 + $0x368] sm:$0xf0]  ;;  %v4169_v37 = vld [vmem:[%s6428_s0 + $0x354] sm:$0xf] }
 0x1db   :  { %v3661_v25 = vor.u32 %v4162_v12, %v3658_v52  ;;  %v3686_v12 = vld [vmem:[%s6428_s0 + $0x36c] sm:$0xf0]  ;;  %v3692_v52 = vld [vmem:[%s6428_s0 + $0x358] sm:$0xf] }
 0x1de   :  { %v1497_v7 = vpop.f32.mrf.mxu2  ;;  %v1414_v58 = vpop.f32.mrf.mxu0 }
 0x1df   :  { %v1540_v46 = vpop.f32.mrf.mxu3  ;;  %v1498_v34 = vadd.f32 %v1497_v7, %v1455_v17  ;;  %v1457_v39 = vpop.f32.mrf.mxu1  ;;  %v1415_v29 = vadd.f32 %v1414_v58, %v5311_v16  ;;  %v4268_v16 = vld [vmem:[%s6427_s1 + $0x138] sm:$0xff]  ;;  %v4163_v17 = vld [vmem:[%s6428_s0 + $0x324] sm:$0xf] }
 0x1e0   :  { %v4275_v58 = vld [vmem:[%s6427_s1 + $0x160] sm:$0xff] }
 0x1e1   :  { %v5574_v62 = vadd.f32 %v1540_v46, %v1498_v34  ;;  %v1458_v19 = vadd.f32 %v1457_v39, %v1415_v29  ;;  %2048 = vmatmul.bf16.vlgmr.msra.gmra.mxu0 %v3629_v20  ;;  %v4276_v39 = vld [vmem:[%s6427_s1 + $0xe0] sm:$0xff]  ;;  %v4278_v29 = vld [vmem:[%s6427_s1 + $0x158] sm:$0xff] }
 0x1e2   :  { %2091 = vmatmul.bf16.vlgmr.msra.gmra.mxu1 %v3633_v47  ;;  %2705 = vmatpush.bf16.msra.mxu0 %v4267_v60  ;;  %v3669_v47 = vor.u32 %v4163_v17, %v3666_v6  ;;  %v4170_v17 = vld [vmem:[%s6428_s0 + $0x35c] sm:$0xf]  ;;  %v3694_v6 = vld [vmem:[%s6428_s0 + $0x374] sm:$0xf0] }
 0x1e3   :  { %2134 = vmatmul.bf16.vlgmr.msra.gmra.mxu2 %v3637_v59  ;;  %2748 = vmatpush.bf16.msra.mxu1 %v4268_v16  ;;  %v4277_v59 = vld [vmem:[%s6427_s1 + $0x120] sm:$0xff] }
 0x1e4   :  { %2177 = vmatmul.bf16.vlgmr.msra.gmra.mxu3 %v3641_v28  ;;  %2791 = vmatpush.bf16.msra.mxu2 %v4266_v38  ;;  %v4280_v38 = vld [vmem:[%s6427_s1 + $0x118] sm:$0xff] }
 0x1e5   :  { %2840 = vmatpush.bf16.msra.mxu3 %v5302_v57 }
 0x1e6   :  { %v1500_v22 = vpop.f32.mrf.mxu2  ;;  %v1416_v43 = vpop.f32.mrf.mxu0  ;;  %2706 = vmatpush.bf16.msra.mxu0 %v4270_v13  ;;  %v4283_v13 = vld [vmem:[%s6427_s1 + $0x110] sm:$0xff] }
 0x1e7   :  { %v1543_v23 = vpop.f32.mrf.mxu3  ;;  %v1501_v30 = vadd.f32 %v1500_v22, %v1458_v19  ;;  %v1459_v42 = vpop.f32.mrf.mxu1  ;;  %2749 = vmatpush.bf16.msra.mxu1 %v4271_v54  ;;  %v4279_v19 = vld [vmem:[%s6427_s1 + $0xd8] sm:$0xff] }
 0x1e8   :  { %2792 = vmatpush.bf16.msra.mxu2 %v4269_v35  ;;  %v4281_v42 = vld [vmem:[%s6427_s1 + $0x150] sm:$0xff] }
 0x1e9   :  { %v5592_v57 = vadd.f32 %v1543_v23, %v1501_v30  ;;  %2841 = vmatpush.bf16.msra.mxu3 %v5321_v0  ;;  %v3664_v0 = vld [vmem:[%s6428_s0 + $0x320] sm:$0xf]  ;;  %v4282_v35 = vld [vmem:[%s6427_s1 + $0xd0] sm:$0xff] }
 0x1ea   :  { %2707 = vmatpush.bf16.msra.mxu0 %v4273_v26  ;;  %v3665_v20 = vor.u32 %v4166_v63, %v3664_v0  ;;  %v4173_v63 = vld [vmem:[%s6428_s0 + $0x370] sm:$0xf0]  ;;  %v4285_v26 = vld [vmem:[%s6427_s1 + $0xc8] sm:$0xff] }
 0x1eb   :  { %2750 = vmatpush.bf16.msra.mxu1 %v4274_v53  ;;  %v4286_v53 = vld [vmem:[%s6427_s1 + $0x108] sm:$0xff] }
 0x1ec   :  { %2793 = vmatpush.bf16.msra.mxu2 %v4272_v5  ;;  %v4284_v5 = vld [vmem:[%s6427_s1 + $0x148] sm:$0xff] }
 0x1ee   :  { %v1502_v10 = vpop.f32.mrf.mxu2  ;;  %v1556_v7 = vpop.f32.mrf.mxu0  ;;  %2708 = vmatpush.bf16.msra.mxu0 %v4276_v39  ;;  %v4287_v39 = vld [vmem:[%s6427_s1 + $0x140] sm:$0xff] }
 0x1ef   :  { %v1545_v33 = vpop.f32.mrf.mxu3  ;;  %v1599_v46 = vpop.f32.mrf.mxu1  ;;  %v1557_v34 = vadd.f32 %v1556_v7, %v5387_v3  ;;  %2751 = vmatpush.bf16.msra.mxu1 %v4277_v59  ;;  %v4288_v59 = vld [vmem:[%s6427_s1 + $0x100] sm:$0xff] }
 0x1f0   :  { %2794 = vmatpush.bf16.msra.mxu2 %v4275_v58 }
 0x1f1   :  { %v5641_v28 = vadd.f32 %v1599_v46, %v1557_v34  ;;  %2053 = vmatmul.bf16.gmra.mxu0 %v3657_v55  ;;  %v3697_v34 = vor.u32 %v4170_v17, %v3694_v6 }
 0x1f2   :  { %2096 = vmatmul.bf16.gmra.mxu1 %v3661_v25  ;;  %2709 = vmatpush.bf16.msra.mxu0 %v4279_v19  ;;  %v3689_v25 = vor.u32 %v4169_v37, %v3686_v12  ;;  %v4177_v37 = vld [vmem:[%s6428_s0 + $0x394] sm:$0xf]  ;;  %v3722_v12 = vld [vmem:[%s6428_s0 + $0x3ac] sm:$0xf0] }
 0x1f3   :  { %2139 = vmatmul.bf16.gmra.mxu2 %v3665_v20  ;;  %v1633_v3 = vmax.f32 %v5085_v14, %v5641_v28  ;;  %2752 = vmatpush.bf16.msra.mxu1 %v4280_v38  ;;  %v4211_v28 = vld [vmem:[%s6428_s0 + $0x4c0] sm:$0xf] }
 0x1f4   :  { %2182 = vmatmul.bf16.gmra.mxu3 %v3669_v47  ;;  %2795 = vmatpush.bf16.msra.mxu2 %v4278_v29  ;;  %v3693_v47 = vor.u32 %v4173_v63, %v3692_v52 }
 0x1f6   :  { %v1963_v60 = vpop.f32.mrf.mxu2  ;;  %v1558_v23 = vpop.f32.mrf.mxu0  ;;  %2710 = vmatpush.bf16.msra.mxu0 %v4282_v35  ;;  %v4176_v35 = vld [vmem:[%s6428_s0 + $0x38c] sm:$0xf] }
 0x1f7   :  { %v2006_v16 = vpop.f32.mrf.mxu3  ;;  %v1601_v30 = vpop.f32.mrf.mxu1  ;;  %v1559_v43 = vadd.f32 %v1558_v23, %v5432_v56  ;;  %2753 = vmatpush.bf16.msra.mxu1 %v4283_v13  ;;  %v3684_v56 = vld [vmem:[%s6428_s0 + $0x350] sm:$0xf]  ;;  %v3714_v13 = vld [vmem:[%s6428_s0 + $0x3a4] sm:$0xf0] }
 0x1f8   :  { %v5654_v22 = vadd.f32 %v2006_v16, %v1963_v60  ;;  %2796 = vmatpush.bf16.msra.mxu2 %v4281_v42  ;;  %v3685_v55 = vor.u32 %v4172_v50, %v3684_v56  ;;  %v4179_v42 = vld [vmem:[%s6428_s0 + $0x3a0] sm:$0xf0]  ;;  %v4180_v50 = vld [vmem:[%s6428_s0 + $0x3a8] sm:$0xf0]  ;;  %v3717_v6 = vor.u32 %v4176_v35, %v3714_v13  ;;  %v3750_v35 = vld [vmem:[%s6428_s0 + $0x3e4] sm:$0xf0] }
 0x1f9   :  { %v5666_v54 = vadd.f32 %v1601_v30, %v1559_v43  ;;  %v3712_v43 = vld [vmem:[%s6428_s0 + $0x388] sm:$0xf] }
 0x1fa   :  { %2711 = vmatpush.bf16.msra.mxu0 %v4285_v26  ;;  %v3713_v17 = vor.u32 %v4179_v42, %v3712_v43  ;;  %v4187_v43 = vld [vmem:[%s6428_s0 + $0x3e0] sm:$0xf0]  ;;  %v4184_v42 = vld [vmem:[%s6428_s0 + $0x3cc] sm:$0xf] }
 0x1fb   :  { %2754 = vmatpush.bf16.msra.mxu1 %v4286_v53 }
 0x1fc   :  { %2797 = vmatpush.bf16.msra.mxu2 %v4284_v5 }
 0x1fe   :  { %v1965_v10 = vpop.f32.mrf.mxu2  ;;  %v1561_v46 = vpop.f32.mrf.mxu0  ;;  %2712 = vmatpush.bf16.msra.mxu0 %v5136_v27 }
 0x1ff   :  { %v2008_v33 = vpop.f32.mrf.mxu3  ;;  %v1604_v20 = vpop.f32.mrf.mxu1  ;;  %v1562_v58 = vadd.f32 %v1561_v46, %v5440_v2  ;;  %2755 = vmatpush.bf16.msra.mxu1 %v4288_v59 }
 0x200   :  { %v5703_v7 = vadd.f32 %v2008_v33, %v1965_v10  ;;  %2798 = vmatpush.bf16.msra.mxu2 %v4287_v39  ;;  %v3725_v33 = vor.u32 %v4177_v37, %v3722_v12 }
 0x201   :  { %v5713_v29 = vadd.f32 %v1604_v20, %v1562_v58  ;;  %2058 = vmatmul.bf16.gmra.mxu0 %v3685_v55 }
 0x202   :  { %2101 = vmatmul.bf16.gmra.mxu1 %v3689_v25 }
 0x203   :  { %2144 = vmatmul.bf16.gmra.mxu2 %v3693_v47 }
 0x204   :  { %2187 = vmatmul.bf16.gmra.mxu3 %v3697_v34 }
 0x206   :  { %v1968_v19 = vpop.f32.mrf.mxu2  ;;  %v1563_v16 = vpop.f32.mrf.mxu0 }
 0x207   :  { %v2011_v38 = vpop.f32.mrf.mxu3  ;;  %v1606_v27 = vpop.f32.mrf.mxu1  ;;  %v1564_v23 = vadd.f32 %v1563_v16, %v5467_v51  ;;  %v3720_v51 = vld [vmem:[%s6428_s0 + $0x390] sm:$0xf]  ;;  %v4183_v16 = vld [vmem:[%s6428_s0 + $0x3c4] sm:$0xf] }
 0x208   :  { %v5717_v60 = vadd.f32 %v2011_v38, %v1968_v19  ;;  %v3721_v10 = vor.u32 %v4180_v50, %v3720_v51  ;;  %v4186_v38 = vld [vmem:[%s6428_s0 + $0x3d8] sm:$0xf0] }
 0x209   :  { %v5720_v30 = vadd.f32 %v1606_v27, %v1564_v23  ;;  %v3742_v27 = vld [vmem:[%s6428_s0 + $0x3dc] sm:$0xf0] }
 0x20a   :  { %v3745_v37 = vor.u32 %v4183_v16, %v3742_v27  ;;  %v3770_v16 = vld [vmem:[%s6428_s0 + $0x414] sm:$0xf0] }
 0x20e   :  { %v1970_v52 = vpop.f32.mrf.mxu2  ;;  %v1566_v26 = vpop.f32.mrf.mxu0 }
 0x20f   :  { %v2013_v63 = vpop.f32.mrf.mxu3  ;;  %v1609_v53 = vpop.f32.mrf.mxu1  ;;  %v1567_v55 = vadd.f32 %v1566_v26, %v5471_v31  ;;  %v3740_v31 = vld [vmem:[%s6428_s0 + $0x3c0] sm:$0xf] }
 0x210   :  { %v5748_v5 = vadd.f32 %v2013_v63, %v1970_v52  ;;  %v3741_v50 = vor.u32 %v4186_v38, %v3740_v31  ;;  %v4193_v31 = vld [vmem:[%s6428_s0 + $0x410] sm:$0xf0]  ;;  %v4190_v38 = vld [vmem:[%s6428_s0 + $0x3fc] sm:$0xf] }
 0x211   :  { %v5751_v25 = vadd.f32 %v1609_v53, %v1567_v55  ;;  %2063 = vmatmul.bf16.gmra.mxu0 %v3713_v17 }
 0x212   :  { %2106 = vmatmul.bf16.gmra.mxu1 %v3717_v6  ;;  %v3753_v6 = vor.u32 %v4184_v42, %v3750_v35  ;;  %v3778_v42 = vld [vmem:[%s6428_s0 + $0x41c] sm:$0xf0] }
 0x213   :  { %2149 = vmatmul.bf16.gmra.mxu2 %v3721_v10 }
 0x214   :  { %2192 = vmatmul.bf16.gmra.mxu3 %v3725_v33 }
 0x216   :  { %v1973_v20 = vpop.f32.mrf.mxu2  ;;  %v1568_v58 = vpop.f32.mrf.mxu0 }
 0x217   :  { %v2016_v47 = vpop.f32.mrf.mxu3  ;;  %v1611_v39 = vpop.f32.mrf.mxu1  ;;  %v1569_v59 = vadd.f32 %v1568_v58, %v5498_v1  ;;  %v3748_v1 = vld [vmem:[%s6428_s0 + $0x3c8] sm:$0xf] }
 0x218   :  { %v5755_v34 = vadd.f32 %v2016_v47, %v1973_v20  ;;  %v3749_v17 = vor.u32 %v4187_v43, %v3748_v1  ;;  %v4194_v1 = vld [vmem:[%s6428_s0 + $0x418] sm:$0xf0]  ;;  %v4191_v43 = vld [vmem:[%s6428_s0 + $0x404] sm:$0xf] }
 0x219   :  { %v5758_v19 = vadd.f32 %v1611_v39, %v1569_v59 }
 0x21e   :  { %v1975_v13 = vpop.f32.mrf.mxu2  ;;  %v1571_v52 = vpop.f32.mrf.mxu0 }
 0x21f   :  { %v2018_v51 = vpop.f32.mrf.mxu3  ;;  %v1614_v63 = vpop.f32.mrf.mxu1  ;;  %v1572_v26 = vadd.f32 %v1571_v52, %v5502_v11  ;;  %v3768_v11 = vld [vmem:[%s6428_s0 + $0x3f8] sm:$0xf] }
 0x220   :  { %v5786_v12 = vadd.f32 %v2018_v51, %v1975_v13  ;;  %v3769_v51 = vor.u32 %v4193_v31, %v3768_v11 }
 0x221   :  { %v5789_v53 = vadd.f32 %v1614_v63, %v1572_v26  ;;  %2068 = vmatmul.bf16.gmra.mxu0 %v3741_v50  ;;  %v3773_v50 = vor.u32 %v4190_v38, %v3770_v16  ;;  %v3615_v38 = vld [vmem:[%s6428_s0 + $0x430] sm:$0xff]  ;;  %v3616_v16 = vld [vmem:[%s6428_s0 + $0x438] sm:$0xff] }
 0x222   :  { %2111 = vmatmul.bf16.gmra.mxu1 %v3745_v37 }
 0x223   :  { %2154 = vmatmul.bf16.gmra.mxu2 %v3749_v17 }
 0x224   :  { %2197 = vmatmul.bf16.gmra.mxu3 %v3753_v6  ;;  %v3781_v6 = vor.u32 %v4191_v43, %v3778_v42  ;;  %v1838_v43 = vunpack.c.h.b16 %v3615_v38  ;;  %v1839_v42 = vunpack.c.l.b16 %v3616_v16 }
 0x226   :  { %v1978_v33 = vpop.f32.mrf.mxu2  ;;  %v1573_v47 = vpop.f32.mrf.mxu0 }
 0x227   :  { %v2021_v55 = vpop.f32.mrf.mxu3  ;;  %v1616_v58 = vpop.f32.mrf.mxu1  ;;  %v1574_v39 = vadd.f32 %v1573_v47, %v5529_v41  ;;  %v3776_v41 = vld [vmem:[%s6428_s0 + $0x400] sm:$0xf] }
 0x228   :  { %v5793_v20 = vadd.f32 %v2021_v55, %v1978_v33  ;;  %v3777_v17 = vor.u32 %v4194_v1, %v3776_v41  ;;  %v1837_v1 = vunpack.c.l.b16 %v3615_v38 }
 0x229   :  { %v5796_v59 = vadd.f32 %v1616_v58, %v1574_v39 }
 0x22e   :  { %v1980_v35 = vpop.f32.mrf.mxu2  ;;  %v1576_v52 = vpop.f32.mrf.mxu0 }
 0x22f   :  { %v2023_v13 = vpop.f32.mrf.mxu3  ;;  %v1619_v63 = vpop.f32.mrf.mxu1  ;;  %v1577_v26 = vadd.f32 %v1576_v52, %v5539_v48  ;;  %v1886_v52 = vpack.c.b16 %v1837_v1, %v1837_v1 }
 0x230   :  { %v5824_v37 = vadd.f32 %v2023_v13, %v1980_v35  ;;  %v1840_v35 = vunpack.c.h.b16 %v3616_v16 }
 0x231   :  { %v5827_v33 = vadd.f32 %v1619_v63, %v1577_v26  ;;  %2073 = vmatmul.bf16.gmra.mxu0 %v3769_v51  ;;  %v1887_v63 = vpack.c.b16 %v1838_v43, %v1838_v43  ;;  %v1888_v26 = vpack.c.b16 %v1839_v42, %v1839_v42 }
 0x232   :  { %2116 = vmatmul.bf16.gmra.mxu1 %v3773_v50 }
 0x233   :  { %2159 = vmatmul.bf16.gmra.mxu2 %v3777_v17 }
 0x234   :  { %2202 = vmatmul.bf16.gmra.mxu3 %v3781_v6 }
 0x236   :  { %v1983_v47 = vpop.f32.mrf.mxu2  ;;  %v1578_v11 = vpop.f32.mrf.mxu0 }
 0x237   :  { %v2026_v58 = vpop.f32.mrf.mxu3  ;;  %v1621_v31 = vpop.f32.mrf.mxu1  ;;  %v1579_v48 = vadd.f32 %v1578_v11, %v5543_v49 }
 0x238   :  { %v5831_v39 = vadd.f32 %v2026_v58, %v1983_v47  ;;  %v1889_v47 = vpack.c.b16 %v1840_v35, %v1840_v35 }
 0x239   :  { %v5840_v41 = vadd.f32 %v1621_v31, %v1579_v48 }
 0x23e   :  { %v1985_v51 = vpop.f32.mrf.mxu2  ;;  %v1581_v49 = vpop.f32.mrf.mxu0 }
 0x23f   :  { %v2028_v50 = vpop.f32.mrf.mxu3  ;;  %v1624_v6 = vpop.f32.mrf.mxu1  ;;  %v1582_v58 = vadd.f32 %v1581_v49, %v5547_v44  ;;  %v3644_v44 = vld [vmem:[%s6428_s0 + $0x2f0] sm:$0xf]  ;;  %v3849_v49 = vld [vmem:[%s6428_s0 + $0x460] sm:$0xf0] }
 0x240   :  { %v5844_v17 = vadd.f32 %v2028_v50, %v1985_v51  ;;  %v4160_v51 = vld [vmem:[%s6428_s0 + $0x308] sm:$0xf0]  ;;  %v3847_v50 = vld [vmem:[%s6428_s0 + $0x444] sm:$0xf] }
 0x241   :  { %v5847_v11 = vadd.f32 %v1624_v6, %v1582_v58  ;;  %2078 = vmatmul.bf16.gmra.mxu0 %v1886_v52  ;;  %v4199_v52 = vld [vmem:[%s6428_s0 + $0x45c] sm:$0xf0]  ;;  %v3855_v6 = vld [vmem:[%s6428_s0 + $0x44c] sm:$0xf] }
 0x242   :  { %2121 = vmatmul.bf16.gmra.mxu1 %v1887_v63 }
 0x243   :  { %2164 = vmatmul.bf16.gmra.mxu2 %v1888_v26  ;;  %v4200_v26 = vld [vmem:[%s6428_s0 + $0x464] sm:$0xf0] }
 0x244   :  { %2207 = vmatmul.bf16.gmra.mxu3 %v1889_v47  ;;  %v3856_v31 = vor.u32 %v4200_v26, %v3855_v6  ;;  %v3883_v6 = vld [vmem:[%s6428_s0 + $0x484] sm:$0xf]  ;;  %v4207_v26 = vld [vmem:[%s6428_s0 + $0x49c] sm:$0xf0] }
 0x246   :  { %v1988_v38 = vpop.f32.mrf.mxu2  ;;  %v1583_v1 = vpop.f32.mrf.mxu0 }
 0x247   :  { %v2031_v48 = vpop.f32.mrf.mxu3  ;;  %v1626_v43 = vpop.f32.mrf.mxu1  ;;  %v1584_v42 = vadd.f32 %v1583_v1, %v5574_v62  ;;  %v4196_v62 = vld [vmem:[%s6428_s0 + $0x448] sm:$0xf] }
 0x248   :  { %v5851_v16 = vadd.f32 %v2031_v48, %v1988_v38  ;;  %v3645_v38 = vor.u32 %v4160_v51, %v3644_v44  ;;  %v3848_v48 = vor.u32 %v4199_v52, %v3847_v50  ;;  %v3852_v63 = vor.u32 %v4196_v62, %v3849_v49  ;;  %v4206_v62 = vld [vmem:[%s6428_s0 + $0x494] sm:$0xf0]  ;;  %v3877_v49 = vld [vmem:[%s6428_s0 + $0x498] sm:$0xf0] }
 0x249   :  { %v5854_v35 = vadd.f32 %v1626_v43, %v1584_v42 }
 0x24e   :  { %v1990_v47 = vpop.f32.mrf.mxu2  ;;  %v1586_v43 = vpop.f32.mrf.mxu0 }
 0x24f   :  { %v2033_v58 = vpop.f32.mrf.mxu3  ;;  %v1629_v42 = vpop.f32.mrf.mxu1  ;;  %v1587_v13 = vadd.f32 %v1586_v43, %v5592_v57  ;;  %v3672_v57 = vld [vmem:[%s6428_s0 + $0x328] sm:$0xf] }
 0x250   :  { %v5882_v1 = vadd.f32 %v2033_v58, %v1990_v47 }
 0x251   :  { %v5885_v55 = vadd.f32 %v1629_v42, %v1587_v13  ;;  %3786 = vmatmul.msk.bf16.vlgmr.msrb.gmra.mxu0 %vm701_vm0, %v3645_v38  ;;  %v4167_v13 = vld [vmem:[%s6428_s0 + $0x340] sm:$0xf0] }
 0x252   :  { %2584 = vmatmul.bf16.vlgmr.msrb.gmra.mxu1 %v3848_v48  ;;  %v3673_v48 = vor.u32 %v4167_v13, %v3672_v57 }
 0x253   :  { %2627 = vmatmul.bf16.vlgmr.msrb.gmra.mxu2 %v3852_v63  ;;  %v4203_v63 = vld [vmem:[%s6428_s0 + $0x480] sm:$0xf] }
 0x254   :  { %2670 = vmatmul.bf16.vlgmr.msrb.gmra.mxu3 %v3856_v31  ;;  %v3875_v31 = vld [vmem:[%s6428_s0 + $0x47c] sm:$0xf] }
 0x255   :  { %v3876_v43 = vor.u32 %v4206_v62, %v3875_v31  ;;  %v4174_v62 = vld [vmem:[%s6428_s0 + $0x378] sm:$0xf0] }
 0x256   :  { %v1993_v44 = vpop.f32.mrf.mxu2  ;;  %v1588_v52 = vpop.f32.mrf.mxu0 }
 0x257   :  { %v2036_v51 = vpop.f32.mrf.mxu3  ;;  %v1631_v47 = vpop.f32.mrf.mxu1  ;;  %v3884_v52 = vor.u32 %v4207_v26, %v3883_v6 }
 0x258   :  { %v5890_v50 = vadd.f32 %v2036_v51, %v1993_v44  ;;  %v3880_v51 = vor.u32 %v4203_v63, %v3877_v49  ;;  %v3903_v63 = vld [vmem:[%s6428_s0 + $0x4b4] sm:$0xf] }
 0x25e   :  { %v1995_v58 = vpop.f32.mrf.mxu2  ;;  %v2049_v42 = vpop.f32.mrf.mxu0 }
 0x25f   :  { %v2038_v38 = vpop.f32.mrf.mxu3  ;;  %v2092_v44 = vpop.f32.mrf.mxu1  ;;  %v2050_v47 = vadd.f32 %v2049_v42, %v5654_v22  ;;  %v3700_v22 = vld [vmem:[%s6428_s0 + $0x360] sm:$0xf] }
 0x260   :  { %v3701_v6 = vor.u32 %v4174_v62, %v3700_v22 }
 0x261   :  { %v2093_v27 = vadd.f32 %v2092_v44, %v2050_v47  ;;  %3787 = vmatmul.msk.bf16.gmra.mxu0 %vm701_vm0, %v3673_v48 }
 0x262   :  { %2589 = vmatmul.bf16.gmra.mxu1 %v3876_v43 }
 0x263   :  { %2632 = vmatmul.bf16.gmra.mxu2 %v3880_v51 }
 0x264   :  { %2675 = vmatmul.bf16.gmra.mxu3 %v3884_v52 }
 0x266   :  { %v2135_v10 = vpop.f32.mrf.mxu2  ;;  %v2051_v56 = vpop.f32.mrf.mxu0 }
 0x267   :  { %v2178_v23 = vpop.f32.mrf.mxu3  ;;  %v2136_v46 = vadd.f32 %v2135_v10, %v2093_v27  ;;  %v2094_v58 = vpop.f32.mrf.mxu1  ;;  %v2052_v57 = vadd.f32 %v2051_v56, %v5703_v7  ;;  %v4213_v10 = vld [vmem:[%s6428_s0 + $0x4cc] sm:$0xf0]  ;;  %v4210_v7 = vld [vmem:[%s6428_s0 + $0x4b8] sm:$0xf]  ;;  %v3905_v56 = vld [vmem:[%s6428_s0 + $0x4d0] sm:$0xf0] }
 0x268   :  { %v3904_v26 = vor.u32 %v4213_v10, %v3903_v63  ;;  %v3908_v42 = vor.u32 %v4210_v7, %v3905_v56  ;;  %v4181_v7 = vld [vmem:[%s6428_s0 + $0x3b0] sm:$0xf0]  ;;  %v3931_v56 = vld [vmem:[%s6428_s0 + $0x4ec] sm:$0xf] }
 0x269   :  { %v5919_v13 = vadd.f32 %v2178_v23, %v2136_v46  ;;  %v2095_v31 = vadd.f32 %v2094_v58, %v2052_v57  ;;  %v3911_v46 = vld [vmem:[%s6428_s0 + $0x4bc] sm:$0xf]  ;;  %v4214_v23 = vld [vmem:[%s6428_s0 + $0x4d4] sm:$0xf0] }
 0x26a   :  { %v3912_v44 = vor.u32 %v4214_v23, %v3911_v46  ;;  %v4220_v46 = vld [vmem:[%s6428_s0 + $0x504] sm:$0xf0]  ;;  %v3939_v23 = vld [vmem:[%s6428_s0 + $0x4f4] sm:$0xf] }
 0x26e   :  { %v2137_v27 = vpop.f32.mrf.mxu2  ;;  %v2054_v48 = vpop.f32.mrf.mxu0 }
 0x26f   :  { %v2180_v49 = vpop.f32.mrf.mxu3  ;;  %v2138_v38 = vadd.f32 %v2137_v27, %v2095_v31  ;;  %v2097_v43 = vpop.f32.mrf.mxu1  ;;  %v2055_v51 = vadd.f32 %v2054_v48, %v5717_v60  ;;  %v3728_v60 = vld [vmem:[%s6428_s0 + $0x398] sm:$0xf]  ;;  %v4221_v27 = vld [vmem:[%s6428_s0 + $0x50c] sm:$0xf0] }
 0x271   :  { %v5946_v52 = vadd.f32 %v2180_v49, %v2138_v38  ;;  %v2098_v47 = vadd.f32 %v2097_v43, %v2055_v51  ;;  %3788 = vmatmul.msk.bf16.gmra.mxu0 %vm701_vm0, %v3701_v6  ;;  %v3932_v38 = vor.u32 %v4220_v46, %v3931_v56  ;;  %v3940_v51 = vor.u32 %v4221_v27, %v3939_v23  ;;  %v4227_v23 = vld [vmem:[%s6428_s0 + $0x53c] sm:$0xf0]  ;;  %v3961_v27 = vld [vmem:[%s6428_s0 + $0x540] sm:$0xf0] }
 0x272   :  { %2594 = vmatmul.bf16.gmra.mxu1 %v3904_v26  ;;  %v3729_v26 = vor.u32 %v4181_v7, %v3728_v60 }
 0x273   :  { %2637 = vmatmul.bf16.gmra.mxu2 %v3908_v42 }
 0x274   :  { %2680 = vmatmul.bf16.gmra.mxu3 %v3912_v44 }
 0x276   :  { %v2140_v58 = vpop.f32.mrf.mxu2  ;;  %v2056_v22 = vpop.f32.mrf.mxu0 }
 0x277   :  { %v2183_v57 = vpop.f32.mrf.mxu3  ;;  %v2141_v2 = vadd.f32 %v2140_v58, %v2098_v47  ;;  %v2099_v62 = vpop.f32.mrf.mxu1  ;;  %v2057_v31 = vadd.f32 %v2056_v22, %v5748_v5  ;;  %v3933_v5 = vld [vmem:[%s6428_s0 + $0x508] sm:$0xf0] }
 0x279   :  { %v5950_v63 = vadd.f32 %v2183_v57, %v2141_v2  ;;  %v2100_v10 = vadd.f32 %v2099_v62, %v2057_v31  ;;  %v4217_v2 = vld [vmem:[%s6428_s0 + $0x4f0] sm:$0xf] }
 0x27a   :  { %v3936_v44 = vor.u32 %v4217_v2, %v3933_v5  ;;  %v4188_v2 = vld [vmem:[%s6428_s0 + $0x3e8] sm:$0xf0]  ;;  %v3959_v5 = vld [vmem:[%s6428_s0 + $0x524] sm:$0xf] }
 0x27e   :  { %v2142_v49 = vpop.f32.mrf.mxu2  ;;  %v2059_v43 = vpop.f32.mrf.mxu0 }
 0x27f   :  { %v2185_v6 = vpop.f32.mrf.mxu3  ;;  %v2143_v48 = vadd.f32 %v2142_v49, %v2100_v10  ;;  %v2102_v42 = vpop.f32.mrf.mxu1  ;;  %v2060_v47 = vadd.f32 %v2059_v43, %v5755_v34  ;;  %v3756_v34 = vld [vmem:[%s6428_s0 + $0x3d0] sm:$0xf]  ;;  %v3967_v49 = vld [vmem:[%s6428_s0 + $0x52c] sm:$0xf]  ;;  %v3960_v43 = vor.u32 %v4227_v23, %v3959_v5 }
 0x281   :  { %v5977_v58 = vadd.f32 %v2185_v6, %v2143_v48  ;;  %v2103_v57 = vadd.f32 %v2102_v42, %v2060_v47  ;;  %3789 = vmatmul.msk.bf16.gmra.mxu0 %vm701_vm0, %v3729_v26  ;;  %v4228_v6 = vld [vmem:[%s6428_s0 + $0x544] sm:$0xf0]  ;;  %v3757_v48 = vor.u32 %v4188_v2, %v3756_v34 }
 0x282   :  { %2599 = vmatmul.bf16.gmra.mxu1 %v3932_v38 }
 0x283   :  { %2642 = vmatmul.bf16.gmra.mxu2 %v3936_v44 }
 0x284   :  { %2685 = vmatmul.bf16.gmra.mxu3 %v3940_v51 }
 0x286   :  { %v2145_v22 = vpop.f32.mrf.mxu2  ;;  %v2061_v60 = vpop.f32.mrf.mxu0 }
 0x287   :  { %v2188_v62 = vpop.f32.mrf.mxu3  ;;  %v2146_v31 = vadd.f32 %v2145_v22, %v2103_v57  ;;  %v2104_v7 = vpop.f32.mrf.mxu1  ;;  %v2062_v10 = vadd.f32 %v2061_v60, %v5786_v12  ;;  %v4224_v12 = vld [vmem:[%s6428_s0 + $0x528] sm:$0xf]  ;;  %v3968_v57 = vor.u32 %v4228_v6, %v3967_v49  ;;  %v4234_v49 = vld [vmem:[%s6428_s0 + $0x574] sm:$0xf0]  ;;  %v3989_v6 = vld [vmem:[%s6428_s0 + $0x578] sm:$0xf0] }
 0x288   :  { %v3964_v47 = vor.u32 %v4224_v12, %v3961_v27  ;;  %v4195_v12 = vld [vmem:[%s6428_s0 + $0x420] sm:$0xf0]  ;;  %v3987_v27 = vld [vmem:[%s6428_s0 + $0x55c] sm:$0xf] }
 0x289   :  { %v5981_v56 = vadd.f32 %v2188_v62, %v2146_v31  ;;  %v2105_v46 = vadd.f32 %v2104_v7, %v2062_v10 }
 0x28e   :  { %v2147_v26 = vpop.f32.mrf.mxu2  ;;  %v2064_v44 = vpop.f32.mrf.mxu0 }
 0x28f   :  { %v2190_v38 = vpop.f32.mrf.mxu3  ;;  %v2148_v42 = vadd.f32 %v2147_v26, %v2105_v46  ;;  %v2107_v51 = vpop.f32.mrf.mxu1  ;;  %v2065_v22 = vadd.f32 %v2064_v44, %v5793_v20  ;;  %v3784_v20 = vld [vmem:[%s6428_s0 + $0x408] sm:$0xf]  ;;  %v3995_v26 = vld [vmem:[%s6428_s0 + $0x564] sm:$0xf]  ;;  %v3988_v44 = vor.u32 %v4234_v49, %v3987_v27  ;;  %v6052_v49 = vld [vmem:[%s6428_s0 + $0x59c] sm:$0xff] }
 0x291   :  { %v6008_v62 = vadd.f32 %v2190_v38, %v2148_v42  ;;  %v2108_v31 = vadd.f32 %v2107_v51, %v2065_v22  ;;  %3790 = vmatmul.msk.bf16.gmra.mxu0 %vm701_vm0, %v3757_v48  ;;  %v4235_v38 = vld [vmem:[%s6428_s0 + $0x57c] sm:$0xf0]  ;;  %v3785_v42 = vor.u32 %v4195_v12, %v3784_v20 }
 0x292   :  { %2604 = vmatmul.bf16.gmra.mxu1 %v3960_v43 }
 0x293   :  { %2647 = vmatmul.bf16.gmra.mxu2 %v3964_v47 }
 0x294   :  { %2690 = vmatmul.bf16.gmra.mxu3 %v3968_v57 }
 0x296   :  { %v2150_v60 = vpop.f32.mrf.mxu2  ;;  %v2066_v34 = vpop.f32.mrf.mxu0 }
 0x297   :  { %v2193_v7 = vpop.f32.mrf.mxu3  ;;  %v2151_v10 = vadd.f32 %v2150_v60, %v2108_v31  ;;  %v2109_v2 = vpop.f32.mrf.mxu1  ;;  %v2067_v46 = vadd.f32 %v2066_v34, %v5824_v37  ;;  %v4231_v37 = vld [vmem:[%s6428_s0 + $0x560] sm:$0xf]  ;;  %v3996_v31 = vor.u32 %v4235_v38, %v3995_v26 }
 0x298   :  { %v3992_v22 = vor.u32 %v4231_v37, %v3989_v6 }
 0x299   :  { %v6012_v5 = vadd.f32 %v2193_v7, %v2151_v10  ;;  %v2110_v23 = vadd.f32 %v2109_v2, %v2067_v46 }
 0x29e   :  { %v2152_v48 = vpop.f32.mrf.mxu2  ;;  %v2069_v47 = vpop.f32.mrf.mxu0 }
 0x29f   :  { %v2195_v43 = vpop.f32.mrf.mxu3  ;;  %v2153_v51 = vadd.f32 %v2152_v48, %v2110_v23  ;;  %v2112_v57 = vpop.f32.mrf.mxu1  ;;  %v2070_v60 = vadd.f32 %v2069_v47, %v5831_v39  ;;  %v3617_v23 = vld [vmem:[%s6428_s0 + $0x440] sm:$0xf]  ;;  %v3841_v39 = vld [vmem:[%s6428_s0 + $0x594] sm:$0xff] }
 0x2a0   :  { %v1841_v26 = vunpack.c.l.b16 %v3617_v23  ;;  %v2457_v38 = vunpack.c.l.b16 %v3841_v39  ;;  %v2458_v48 = vunpack.c.h.b16 %v3841_v39 }
 0x2a1   :  { %v6039_v7 = vadd.f32 %v2195_v43, %v2153_v51  ;;  %v2113_v10 = vadd.f32 %v2112_v57, %v2070_v60  ;;  %3791 = vmatmul.msk.bf16.gmra.mxu0 %vm701_vm0, %v3785_v42  ;;  %v2459_v43 = vunpack.c.l.b16 %v6052_v49 }
 0x2a2   :  { %2609 = vmatmul.bf16.gmra.mxu1 %v3988_v44  ;;  %v1890_v51 = vpack.c.b16 %v1841_v26, %v1841_v26  ;;  %v2506_v47 = vpack.c.b16 %v2457_v38, %v2457_v38  ;;  %v3857_v38 = vld [vmem:[%s6428_s0 + $0x468] sm:$0xf0] }
 0x2a3   :  { %2652 = vmatmul.bf16.gmra.mxu2 %v3992_v22  ;;  %v2508_v60 = vpack.c.b16 %v2459_v43, %v2459_v43  ;;  %v4201_v43 = vld [vmem:[%s6428_s0 + $0x46c] sm:$0xf0] }
 0x2a4   :  { %2695 = vmatmul.bf16.gmra.mxu3 %v3996_v31  ;;  %v2507_v31 = vpack.c.b16 %v2458_v48, %v2458_v48  ;;  %v3863_v48 = vld [vmem:[%s6428_s0 + $0x454] sm:$0xf] }
 0x2a6   :  { %v2155_v34 = vpop.f32.mrf.mxu2  ;;  %v2071_v20 = vpop.f32.mrf.mxu0 }
 0x2a7   :  { %v2198_v2 = vpop.f32.mrf.mxu3  ;;  %v2156_v46 = vadd.f32 %v2155_v34, %v2113_v10  ;;  %v2114_v12 = vpop.f32.mrf.mxu1  ;;  %v2072_v27 = vadd.f32 %v2071_v20, %v5844_v17 }
 0x2a9   :  { %v6054_v37 = vadd.f32 %v2198_v2, %v2156_v46  ;;  %v2115_v6 = vadd.f32 %v2114_v12, %v2072_v27 }
 0x2ae   :  { %v2157_v42 = vpop.f32.mrf.mxu2  ;;  %v2074_v22 = vpop.f32.mrf.mxu0 }
 0x2af   :  { %v2200_v44 = vpop.f32.mrf.mxu3  ;;  %v2158_v57 = vadd.f32 %v2157_v42, %v2115_v6  ;;  %v2117_v17 = vpop.f32.mrf.mxu1  ;;  %v2075_v10 = vadd.f32 %v2074_v22, %v5851_v16  ;;  %v4197_v16 = vld [vmem:[%s6428_s0 + $0x450] sm:$0xf]  ;;  %v3865_v42 = vld [vmem:[%s6428_s0 + $0x470] sm:$0xf0] }
 0x2b0   :  { %v3860_v22 = vor.u32 %v4197_v16, %v3857_v38 }
 0x2b1   :  { %v6058_v34 = vadd.f32 %v2200_v44, %v2158_v57  ;;  %v2118_v2 = vadd.f32 %v2117_v17, %v2075_v10  ;;  %3792 = vmatmul.msk.bf16.gmra.mxu0 %vm701_vm0, %v1890_v51  ;;  %v3871_v44 = vld [vmem:[%s6428_s0 + $0x45c] sm:$0xf]  ;;  %v4202_v51 = vld [vmem:[%s6428_s0 + $0x474] sm:$0xf0]  ;;  %v3864_v17 = vor.u32 %v4201_v43, %v3863_v48  ;;  %v4204_v48 = vld [vmem:[%s6428_s0 + $0x488] sm:$0xf] }
 0x2b2   :  { %2614 = vmatmul.bf16.gmra.mxu1 %v2506_v47  ;;  %v3891_v43 = vld [vmem:[%s6428_s0 + $0x48c] sm:$0xf] }
 0x2b3   :  { %2657 = vmatmul.bf16.gmra.mxu2 %v2507_v31 }
 0x2b4   :  { %2700 = vmatmul.bf16.gmra.mxu3 %v2508_v60 }
 0x2b6   :  { %v2160_v46 = vpop.f32.mrf.mxu2  ;;  %v2076_v23 = vpop.f32.mrf.mxu0 }
 0x2b7   :  { %v2203_v20 = vpop.f32.mrf.mxu3  ;;  %v2161_v12 = vadd.f32 %v2160_v46, %v2118_v2  ;;  %v2119_v39 = vpop.f32.mrf.mxu1  ;;  %v2077_v27 = vadd.f32 %v2076_v23, %v5882_v1  ;;  %v4198_v1 = vld [vmem:[%s6428_s0 + $0x458] sm:$0xf]  ;;  %v3872_v46 = vor.u32 %v4202_v51, %v3871_v44  ;;  %v3899_v44 = vld [vmem:[%s6428_s0 + $0x494] sm:$0xf]  ;;  %v4209_v51 = vld [vmem:[%s6428_s0 + $0x4ac] sm:$0xf0] }
 0x2b8   :  { %v3868_v2 = vor.u32 %v4198_v1, %v3865_v42  ;;  %v4208_v1 = vld [vmem:[%s6428_s0 + $0x4a4] sm:$0xf0]  ;;  %v3893_v42 = vld [vmem:[%s6428_s0 + $0x4a8] sm:$0xf0] }
 0x2b9   :  { %v6062_v6 = vadd.f32 %v2203_v20, %v2161_v12  ;;  %v2120_v26 = vadd.f32 %v2119_v39, %v2077_v27 }
 0x2be   :  { %v2162_v47 = vpop.f32.mrf.mxu2  ;;  %v2079_v60 = vpop.f32.mrf.mxu0 }
 0x2bf   :  { %v2205_v57 = vpop.f32.mrf.mxu3  ;;  %v2163_v31 = vadd.f32 %v2162_v47, %v2120_v26  ;;  %v2122_v10 = vpop.f32.mrf.mxu1  ;;  %v2080_v20 = vadd.f32 %v2079_v60, %v5890_v50  ;;  %v3885_v50 = vld [vmem:[%s6428_s0 + $0x4a0] sm:$0xf0] }
 0x2c1   :  { %v6089_v12 = vadd.f32 %v2205_v57, %v2163_v31  ;;  %v2123_v23 = vadd.f32 %v2122_v10, %v2080_v20  ;;  %2713 = vmatmul.bf16.vlgmr.msra.gmra.mxu0 %v3860_v22  ;;  %v3888_v22 = vor.u32 %v4204_v48, %v3885_v50 }
 0x2c2   :  { %2756 = vmatmul.bf16.vlgmr.msra.gmra.mxu1 %v3864_v17  ;;  %v3892_v17 = vor.u32 %v4208_v1, %v3891_v43  ;;  %v3919_v43 = vld [vmem:[%s6428_s0 + $0x4c4] sm:$0xf]  ;;  %v3927_v1 = vld [vmem:[%s6428_s0 + $0x4cc] sm:$0xf] }
 0x2c3   :  { %2799 = vmatmul.bf16.vlgmr.msra.gmra.mxu2 %v3868_v2  ;;  %v3900_v2 = vor.u32 %v4209_v51, %v3899_v44 }
 0x2c4   :  { %4013 = vmatmul.msk.bf16.vlgmr.msra.gmra.mxu3 %vm701_vm0, %v3872_v46 }
 0x2c6   :  { %v2165_v39 = vpop.f32.mrf.mxu2  ;;  %v2081_v16 = vpop.f32.mrf.mxu0 }
 0x2c7   :  { %v2208_v27 = vpop.f32.mrf.mxu3  ;;  %v2166_v0 = vadd.f32 %v2165_v39, %v2123_v23  ;;  %v2124_v38 = vpop.f32.mrf.mxu1 }
 0x2c9   :  { %v6092_v26 = vadd.f32 %v2208_v27, %v2166_v0  ;;  %v4205_v0 = vld [vmem:[%s6428_s0 + $0x490] sm:$0xf] }
 0x2ca   :  { %v3896_v10 = vor.u32 %v4205_v0, %v3893_v42  ;;  %v4216_v0 = vld [vmem:[%s6428_s0 + $0x4e4] sm:$0xf0] }
 0x2ce   :  { %v2167_v47 = vpop.f32.mrf.mxu2  ;;  %v2221_v31 = vpop.f32.mrf.mxu0 }
 0x2cf   :  { %v2210_v57 = vpop.f32.mrf.mxu3  ;;  %v2585_v60 = vpop.f32.mrf.mxu1  ;;  %v2222_v46 = vadd.f32 %v2221_v31, %v5919_v13  ;;  %v6431_v13 = vmax.f32 %v5122_v32, %v5666_v54  ;;  %v4212_v32 = vld [vmem:[%s6428_s0 + $0x4c8] sm:$0xf]  ;;  %v3921_v54 = vld [vmem:[%s6428_s0 + $0x4e0] sm:$0xf0] }
 0x2d0   :  { %v3924_v31 = vor.u32 %v4212_v32, %v3921_v54  ;;  %v4223_v32 = vld [vmem:[%s6428_s0 + $0x51c] sm:$0xf0] }
 0x2d1   :  { %v6122_v20 = vmax.f32 %v1633_v3, %v2222_v46  ;;  %2718 = vmatmul.bf16.gmra.mxu0 %v3888_v22  ;;  %v3913_v3 = vld [vmem:[%s6428_s0 + $0x4d8] sm:$0xf0]  ;;  %v6432_v46 = vmax.f32 %v5141_v8, %v5713_v29  ;;  %v4218_v29 = vld [vmem:[%s6428_s0 + $0x4f8] sm:$0xf] }
 0x2d2   :  { %2761 = vmatmul.bf16.gmra.mxu1 %v3892_v17  ;;  %v3916_v51 = vor.u32 %v4211_v28, %v3913_v3  ;;  %v6433_v28 = vmax.f32 %v5170_v61, %v5720_v30  ;;  %v3941_v3 = vld [vmem:[%s6428_s0 + $0x510] sm:$0xf0]  ;;  %v4219_v61 = vld [vmem:[%s6428_s0 + $0x500] sm:$0xf]  ;;  %v3949_v30 = vld [vmem:[%s6428_s0 + $0x518] sm:$0xf0] }
 0x2d3   :  { %2804 = vmatmul.bf16.gmra.mxu2 %v3896_v10 }
 0x2d4   :  { %4014 = vmatmul.msk.bf16.gmra.mxu3 %vm701_vm0, %v3900_v2 }
 0x2d6   :  { %v2628_v23 = vpop.f32.mrf.mxu2  ;;  %v2223_v16 = vpop.f32.mrf.mxu0 }
 0x2d7   :  { %v2671_v39 = vpop.f32.mrf.mxu3  ;;  %v2629_v27 = vadd.f32 %v2628_v23, %v2585_v60  ;;  %v2587_v38 = vpop.f32.mrf.mxu1  ;;  %v2224_v48 = vadd.f32 %v2223_v16, %v5946_v52  ;;  %v4215_v52 = vld [vmem:[%s6428_s0 + $0x4dc] sm:$0xf0]  ;;  %v3928_v60 = vor.u32 %v4216_v0, %v3927_v1  ;;  %v3944_v0 = vor.u32 %v4218_v29, %v3941_v3  ;;  %v3975_v29 = vld [vmem:[%s6428_s0 + $0x534] sm:$0xf]  ;;  %v3983_v3 = vld [vmem:[%s6428_s0 + $0x53c] sm:$0xf] }
 0x2d8   :  { %v3920_v47 = vor.u32 %v4215_v52, %v3919_v43  ;;  %v3947_v43 = vld [vmem:[%s6428_s0 + $0x4fc] sm:$0xf]  ;;  %v3955_v52 = vld [vmem:[%s6428_s0 + $0x504] sm:$0xf] }
 0x2d9   :  { %v6126_v50 = vadd.f32 %v2671_v39, %v2629_v27  ;;  %v6131_v14 = vmax.f32 %v6431_v13, %v2224_v48 }
 0x2de   :  { %v2630_v42 = vpop.f32.mrf.mxu2  ;;  %v2226_v22 = vpop.f32.mrf.mxu0 }
 0x2df   :  { %v2673_v44 = vpop.f32.mrf.mxu3  ;;  %v2631_v57 = vadd.f32 %v2630_v42, %v2587_v38  ;;  %v2590_v17 = vpop.f32.mrf.mxu1  ;;  %v2227_v10 = vadd.f32 %v2226_v22, %v5950_v63  ;;  %v3956_v22 = vor.u32 %v4223_v32, %v3955_v52 }
 0x2e1   :  { %v6158_v2 = vadd.f32 %v2673_v44, %v2631_v57  ;;  %v6163_v23 = vmax.f32 %v6432_v46, %v2227_v10  ;;  %2723 = vmatmul.bf16.gmra.mxu0 %v3916_v51  ;;  %v3952_v57 = vor.u32 %v4219_v61, %v3949_v30 }
 0x2e2   :  { %2766 = vmatmul.bf16.gmra.mxu1 %v3920_v47 }
 0x2e3   :  { %2809 = vmatmul.bf16.gmra.mxu2 %v3924_v31 }
 0x2e4   :  { %4015 = vmatmul.msk.bf16.gmra.mxu3 %vm701_vm0, %v3928_v60  ;;  %v6434_v60 = vmax.f32 %v5175_v15, %v5751_v25  ;;  %v4225_v25 = vld [vmem:[%s6428_s0 + $0x530] sm:$0xf] }
 0x2e6   :  { %v2633_v39 = vpop.f32.mrf.mxu2  ;;  %v2228_v38 = vpop.f32.mrf.mxu0 }
 0x2e7   :  { %v2676_v27 = vpop.f32.mrf.mxu3  ;;  %v2634_v16 = vadd.f32 %v2633_v39, %v2590_v17  ;;  %v2592_v48 = vpop.f32.mrf.mxu1  ;;  %v2229_v13 = vadd.f32 %v2228_v38, %v5977_v58  ;;  %v4222_v58 = vld [vmem:[%s6428_s0 + $0x514] sm:$0xf0] }
 0x2e8   :  { %v3948_v42 = vor.u32 %v4222_v58, %v3947_v43  ;;  %v4230_v43 = vld [vmem:[%s6428_s0 + $0x554] sm:$0xf0] }
 0x2e9   :  { %v6167_v63 = vadd.f32 %v2676_v27, %v2634_v16  ;;  %v6172_v8 = vmax.f32 %v6433_v28, %v2229_v13  ;;  %v6435_v13 = vmax.f32 %v5204_v36, %v5758_v19  ;;  %v3969_v28 = vld [vmem:[%s6428_s0 + $0x548] sm:$0xf0]  ;;  %v4226_v36 = vld [vmem:[%s6428_s0 + $0x538] sm:$0xf]  ;;  %v3977_v19 = vld [vmem:[%s6428_s0 + $0x550] sm:$0xf0] }
 0x2ea   :  { %v3972_v30 = vor.u32 %v4225_v25, %v3969_v28  ;;  %v4237_v25 = vld [vmem:[%s6428_s0 + $0x58c] sm:$0xf0] }
 0x2ee   :  { %v2635_v54 = vpop.f32.mrf.mxu2  ;;  %v2231_v51 = vpop.f32.mrf.mxu0 }
 0x2ef   :  { %v2678_v1 = vpop.f32.mrf.mxu3  ;;  %v2636_v44 = vadd.f32 %v2635_v54, %v2592_v48  ;;  %v2595_v47 = vpop.f32.mrf.mxu1  ;;  %v2232_v17 = vadd.f32 %v2231_v51, %v5981_v56 }
 0x2f1   :  { %v6199_v31 = vadd.f32 %v2678_v1, %v2636_v44  ;;  %v6204_v10 = vmax.f32 %v6434_v60, %v2232_v17  ;;  %2728 = vmatmul.bf16.gmra.mxu0 %v3944_v0  ;;  %v3980_v0 = vor.u32 %v4226_v36, %v3977_v19 }
 0x2f2   :  { %2771 = vmatmul.bf16.gmra.mxu1 %v3948_v42  ;;  %v3984_v42 = vor.u32 %v4230_v43, %v3983_v3 }
 0x2f3   :  { %2814 = vmatmul.bf16.gmra.mxu2 %v3952_v57 }
 0x2f4   :  { %4016 = vmatmul.msk.bf16.gmra.mxu3 %vm701_vm0, %v3956_v22 }
 0x2f6   :  { %v2638_v46 = vpop.f32.mrf.mxu2  ;;  %v2233_v16 = vpop.f32.mrf.mxu0 }
 0x2f7   :  { %v2681_v39 = vpop.f32.mrf.mxu3  ;;  %v2639_v27 = vadd.f32 %v2638_v46, %v2595_v47  ;;  %v2597_v38 = vpop.f32.mrf.mxu1  ;;  %v2234_v48 = vadd.f32 %v2233_v16, %v6008_v62  ;;  %v4229_v62 = vld [vmem:[%s6428_s0 + $0x54c] sm:$0xf0]  ;;  %v6436_v47 = vmax.f32 %v5209_v40, %v5789_v53  ;;  %v6437_v16 = vmax.f32 %v5238_v9, %v5796_v59  ;;  %v4232_v53 = vld [vmem:[%s6428_s0 + $0x568] sm:$0xf]  ;;  %v4005_v59 = vld [vmem:[%s6428_s0 + $0x588] sm:$0xf0] }
 0x2f8   :  { %v3976_v52 = vor.u32 %v4229_v62, %v3975_v29  ;;  %v4233_v9 = vld [vmem:[%s6428_s0 + $0x570] sm:$0xf] }
 0x2f9   :  { %v6208_v56 = vadd.f32 %v2681_v39, %v2639_v27  ;;  %v6213_v15 = vmax.f32 %v6435_v13, %v2234_v48  ;;  %v4003_v48 = vld [vmem:[%s6428_s0 + $0x56c] sm:$0xf]  ;;  %v4011_v13 = vld [vmem:[%s6428_s0 + $0x574] sm:$0xf] }
 0x2fe   :  { %v2640_v58 = vpop.f32.mrf.mxu2  ;;  %v2236_v54 = vpop.f32.mrf.mxu0 }
 0x2ff   :  { %v2683_v61 = vpop.f32.mrf.mxu3  ;;  %v2641_v32 = vadd.f32 %v2640_v58, %v2597_v38  ;;  %v2600_v1 = vpop.f32.mrf.mxu1  ;;  %v2237_v44 = vadd.f32 %v2236_v54, %v6012_v5  ;;  %v3997_v38 = vld [vmem:[%s6428_s0 + $0x580] sm:$0xf0]  ;;  %v4008_v58 = vor.u32 %v4233_v9, %v4005_v59 }
 0x300   :  { %v4000_v62 = vor.u32 %v4232_v53, %v3997_v38 }
 0x301   :  { %v6240_v51 = vadd.f32 %v2683_v61, %v2641_v32  ;;  %v6245_v57 = vmax.f32 %v6436_v47, %v2237_v44  ;;  %2733 = vmatmul.bf16.gmra.mxu0 %v3972_v30  ;;  %v4012_v61 = vor.u32 %v4237_v25, %v4011_v13  ;;  %v6438_v32 = vmax.f32 %v5243_v24, %v5827_v33  ;;  %v3844_v24 = vld [vmem:[%s6428_s0 + $0x5ac] sm:$0xf] }
 0x302   :  { %2776 = vmatmul.bf16.gmra.mxu1 %v3976_v52 }
 0x303   :  { %2819 = vmatmul.bf16.gmra.mxu2 %v3980_v0 }
 0x304   :  { %4017 = vmatmul.msk.bf16.gmra.mxu3 %vm701_vm0, %v3984_v42 }
 0x306   :  { %v2643_v22 = vpop.f32.mrf.mxu2  ;;  %v2238_v46 = vpop.f32.mrf.mxu0 }
 0x307   :  { %v2686_v17 = vpop.f32.mrf.mxu3  ;;  %v2644_v60 = vadd.f32 %v2643_v22, %v2600_v1  ;;  %v2602_v39 = vpop.f32.mrf.mxu1  ;;  %v2239_v27 = vadd.f32 %v2238_v46, %v6039_v7  ;;  %v4236_v7 = vld [vmem:[%s6428_s0 + $0x584] sm:$0xf0]  ;;  %v2460_v46 = vunpack.c.h.b16 %v6052_v49 }
 0x308   :  { %v4004_v36 = vor.u32 %v4236_v7, %v4003_v48 }
 0x309   :  { %v6249_v5 = vadd.f32 %v2686_v17, %v2644_v60  ;;  %v6254_v40 = vmax.f32 %v6437_v16, %v2239_v27  ;;  %v6439_v17 = vmax.f32 %v5258_v45, %v5840_v41  ;;  %v2463_v16 = vunpack.c.l.b16 %v3844_v24 }
 0x30a   :  { %v2509_v48 = vpack.c.b16 %v2460_v46, %v2460_v46  ;;  %v6440_v45 = vmax.f32 %v5263_v4, %v5847_v11 }
 0x30b   :  { %v2512_v25 = vpack.c.b16 %v2463_v16, %v2463_v16 }
 0x30e   :  { %v2645_v28 = vpop.f32.mrf.mxu2  ;;  %v2241_v3 = vpop.f32.mrf.mxu0 }
 0x30f   :  { %v2688_v29 = vpop.f32.mrf.mxu3  ;;  %v2646_v19 = vadd.f32 %v2645_v28, %v2602_v39  ;;  %v2605_v43 = vpop.f32.mrf.mxu1  ;;  %v2242_v30 = vadd.f32 %v2241_v3, %v6054_v37  ;;  %v3843_v37 = vld [vmem:[%s6428_s0 + $0x5a4] sm:$0xff] }
 0x310   :  { %v2461_v39 = vunpack.c.l.b16 %v3843_v37  ;;  %v2462_v27 = vunpack.c.h.b16 %v3843_v37 }
 0x311   :  { %v6281_v52 = vadd.f32 %v2688_v29, %v2646_v19  ;;  %v6286_v54 = vmax.f32 %v6438_v32, %v2242_v30  ;;  %2738 = vmatmul.bf16.gmra.mxu0 %v4000_v62 }
 0x312   :  { %2781 = vmatmul.bf16.gmra.mxu1 %v4004_v36  ;;  %v2511_v13 = vpack.c.b16 %v2462_v27, %v2462_v27 }
 0x313   :  { %2824 = vmatmul.bf16.gmra.mxu2 %v4008_v58  ;;  %v6441_v58 = vmax.f32 %v5292_v18, %v5854_v35 }
 0x314   :  { %4018 = vmatmul.msk.bf16.gmra.mxu3 %vm701_vm0, %v4012_v61 }
 0x316   :  { %v2648_v1 = vpop.f32.mrf.mxu2  ;;  %v2243_v44 = vpop.f32.mrf.mxu0 }
 0x317   :  { %v2691_v0 = vpop.f32.mrf.mxu3  ;;  %v2649_v42 = vadd.f32 %v2648_v1, %v2605_v43  ;;  %v2607_v47 = vpop.f32.mrf.mxu1  ;;  %v2244_v22 = vadd.f32 %v2243_v44, %v6058_v34  ;;  %v2510_v34 = vpack.c.b16 %v2461_v39, %v2461_v39  ;;  %v6442_v44 = vmax.f32 %v5313_v21, %v5885_v55 }
 0x319   :  { %v6296_v33 = vadd.f32 %v2691_v0, %v2649_v42  ;;  %v6301_v60 = vmax.f32 %v6439_v17, %v2244_v22 }
 0x31e   :  { %v2650_v53 = vpop.f32.mrf.mxu2  ;;  %v2246_v9 = vpop.f32.mrf.mxu0 }
 0x31f   :  { %v2693_v38 = vpop.f32.mrf.mxu3  ;;  %v2651_v7 = vadd.f32 %v2650_v53, %v2607_v47  ;;  %v2610_v59 = vpop.f32.mrf.mxu1  ;;  %v2247_v28 = vadd.f32 %v2246_v9, %v6062_v6 }
 0x321   :  { %v6305_v29 = vadd.f32 %v2693_v38, %v2651_v7  ;;  %v6310_v41 = vmax.f32 %v6440_v45, %v2247_v28  ;;  %2743 = vmatmul.bf16.gmra.mxu0 %v2509_v48  ;;  %v6335_v7 = vld [vmem:[%s6429_s2] ss:$0 sm:$0xff] }
 0x322   :  { %2786 = vmatmul.bf16.gmra.mxu1 %v2510_v34 }
 0x323   :  { %2829 = vmatmul.bf16.gmra.mxu2 %v2511_v13 }
 0x324   :  { %4019 = vmatmul.msk.bf16.gmra.mxu3 %vm701_vm0, %v2512_v25 }
 0x326   :  { %v2653_v49 = vpop.f32.mrf.mxu2  ;;  %v2248_v19 = vpop.f32.mrf.mxu0 }
 0x327   :  { %v2696_v62 = vpop.f32.mrf.mxu3  ;;  %v2654_v36 = vadd.f32 %v2653_v49, %v2610_v59  ;;  %v2612_v3 = vpop.f32.mrf.mxu1  ;;  %v2249_v43 = vadd.f32 %v2248_v19, %v6089_v12 }
 0x329   :  { %v6314_v6 = vadd.f32 %v2696_v62, %v2654_v36  ;;  %v6319_v4 = vmax.f32 %v6441_v58, %v2249_v43 }
 0x32e   :  { %v2655_v11 = vpop.f32.mrf.mxu2  ;;  %v2251_v32 = vpop.f32.mrf.mxu0 }
 0x32f   :  { %v2698_v61 = vpop.f32.mrf.mxu3  ;;  %v2656_v30 = vadd.f32 %v2655_v11, %v2612_v3  ;;  %v2615_v1 = vpop.f32.mrf.mxu1  ;;  %v2252_v0 = vadd.f32 %v2251_v32, %v6092_v26 }
 0x331   :  { %v6322_v42 = vadd.f32 %v2698_v61, %v2656_v30  ;;  %v6327_v12 = vmax.f32 %v6442_v44, %v2252_v0 }
 0x336   :  { %v2658_v47 = vpop.f32.mrf.mxu2  ;;  %v2253_v18 = vpop.f32.mrf.mxu0 }
 0x337   :  { %v2701_v37 = vpop.f32.mrf.mxu3  ;;  %v2659_v22 = vadd.f32 %v2658_v47, %v2615_v1  ;;  %v2617_v35 = vpop.f32.mrf.mxu1 }
 0x339   :  { %v6329_v24 = vadd.f32 %v2701_v37, %v2659_v22 }
 0x33e   :  { %v2660_v17 = vpop.f32.mrf.mxu2  ;;  %v2714_v39 = vpop.f32.mrf.mxu0 }
 0x33f   :  { %v2703_v46 = vpop.f32.mrf.mxu3  ;;  %v2757_v27 = vpop.f32.mrf.mxu1  ;;  %v2715_v26 = vadd.f32 %v2714_v39, %v6126_v50 }
 0x341   :  { %v2758_v16 = vadd.f32 %v2757_v27, %v2715_v26 }
 0x346   :  { %v2800_v53 = vpop.f32.mrf.mxu2  ;;  %v2716_v21 = vpop.f32.mrf.mxu0 }
 0x347   :  { %v2843_v38 = vpop.f32.mrf.mxu3  ;;  %v2801_v48 = vadd.f32 %v2800_v53, %v2758_v16  ;;  %v2759_v55 = vpop.f32.mrf.mxu1  ;;  %v2717_v9 = vadd.f32 %v2716_v21, %v6158_v2 }
 0x349   :  { %v2844_v34 = vadd.f32 %v2843_v38, %v2801_v48  ;;  %v2760_v25 = vadd.f32 %v2759_v55, %v2717_v9 }
 0x34b   :  { %v2877_v59 = vmax.f32 %v6122_v20, %v2844_v34 }
 0x34d   :  { %v2894_v13 = vadd.f32 %v6335_v7, %v2877_v59 }
 0x34e   :  { %v2802_v50 = vpop.f32.mrf.mxu2  ;;  %v2719_v62 = vpop.f32.mrf.mxu0 }
 0x34f   :  { %v2845_v28 = vpop.f32.mrf.mxu3  ;;  %v2907_v45 = vmul.f32 0.2, %v2894_v13  ;;  %v2803_v49 = vadd.f32 %v2802_v50, %v2760_v25  ;;  %v2762_v36 = vpop.f32.mrf.mxu1  ;;  %v2720_v43 = vadd.f32 %v2719_v62, %v6167_v63 }
 0x351   :  { %v2920_v19 = vmax.f32 %v2894_v13, %v2907_v45  ;;  %v2846_v3 = vadd.f32 %v2845_v28, %v2803_v49  ;;  %v2763_v2 = vadd.f32 %v2762_v36, %v2720_v43 }
 0x353   :  { %v2933_v58 = vpack.c.bf16 %v2920_v19, %v2920_v19  ;;  %v2878_v11 = vmax.f32 %v6131_v14, %v2846_v3 }
 0x355   :  { %2947 = vst.msk [vmem:[%s6430_s3] sm:$0xf] %vm2946_vm1, %v2933_v58  ;;  %v2895_v20 = vadd.f32 %v6335_v7, %v2878_v11 }
 0x356   :  { %v2805_v61 = vpop.f32.mrf.mxu2  ;;  %v2721_v0 = vpop.f32.mrf.mxu0 }
 0x357   :  { %v2848_v30 = vpop.f32.mrf.mxu3  ;;  %v2908_v32 = vmul.f32 0.2, %v2895_v20  ;;  %v2806_v1 = vadd.f32 %v2805_v61, %v2763_v2  ;;  %v2764_v44 = vpop.f32.mrf.mxu1  ;;  %v2722_v37 = vadd.f32 %v2721_v0, %v6199_v31 }
 0x359   :  { %v2921_v47 = vmax.f32 %v2895_v20, %v2908_v32  ;;  %v2849_v63 = vadd.f32 %v2848_v30, %v2806_v1  ;;  %v2765_v35 = vadd.f32 %v2764_v44, %v2722_v37 }
 0x35b   :  { %v2934_v22 = vpack.c.bf16 %v2921_v47, %v2921_v47  ;;  %v2879_v14 = vmax.f32 %v6163_v23, %v2849_v63 }
 0x35d   :  { %2948 = vst.msk [vmem:[%s6430_s3 + $0x4] sm:$0xf] %vm2946_vm1, %v2934_v22  ;;  %v2896_v18 = vadd.f32 %v6335_v7, %v2879_v14 }
 0x35e   :  { %v2807_v17 = vpop.f32.mrf.mxu2  ;;  %v2724_v26 = vpop.f32.mrf.mxu0 }
 0x35f   :  { %v2850_v46 = vpop.f32.mrf.mxu3  ;;  %v2909_v39 = vmul.f32 0.2, %v2896_v18  ;;  %v2808_v27 = vadd.f32 %v2807_v17, %v2765_v35  ;;  %v2767_v16 = vpop.f32.mrf.mxu1  ;;  %v2725_v31 = vadd.f32 %v2724_v26, %v6208_v56 }
 0x361   :  { %v2922_v53 = vmax.f32 %v2896_v18, %v2909_v39  ;;  %v2851_v38 = vadd.f32 %v2850_v46, %v2808_v27  ;;  %v2768_v55 = vadd.f32 %v2767_v16, %v2725_v31 }
 0x363   :  { %v2935_v48 = vpack.c.bf16 %v2922_v53, %v2922_v53  ;;  %v2880_v23 = vmax.f32 %v6172_v8, %v2851_v38 }
 0x365   :  { %2949 = vst.msk [vmem:[%s6430_s3 + $0x8] sm:$0xf] %vm2946_vm1, %v2935_v48  ;;  %v2897_v21 = vadd.f32 %v6335_v7, %v2880_v23 }
 0x366   :  { %v2810_v34 = vpop.f32.mrf.mxu2  ;;  %v2726_v25 = vpop.f32.mrf.mxu0 }
 0x367   :  { %v2853_v9 = vpop.f32.mrf.mxu3  ;;  %v2910_v59 = vmul.f32 0.2, %v2897_v21  ;;  %v2811_v13 = vadd.f32 %v2810_v34, %v2768_v55  ;;  %v2769_v50 = vpop.f32.mrf.mxu1  ;;  %v2727_v56 = vadd.f32 %v2726_v25, %v6240_v51 }
 0x369   :  { %v2923_v28 = vmax.f32 %v2897_v21, %v2910_v59  ;;  %v2854_v45 = vadd.f32 %v2853_v9, %v2811_v13  ;;  %v2770_v36 = vadd.f32 %v2769_v50, %v2727_v56 }
 0x36b   :  { %v2936_v49 = vpack.c.bf16 %v2923_v28, %v2923_v28  ;;  %v2881_v8 = vmax.f32 %v6204_v10, %v2854_v45 }
 0x36d   :  { %2950 = vst.msk [vmem:[%s6430_s3 + $0xc] sm:$0xf] %vm2946_vm1, %v2936_v49  ;;  %v2898_v62 = vadd.f32 %v6335_v7, %v2881_v8 }
 0x36e   :  { %v2812_v19 = vpop.f32.mrf.mxu2  ;;  %v2729_v11 = vpop.f32.mrf.mxu0 }
 0x36f   :  { %v2855_v3 = vpop.f32.mrf.mxu3  ;;  %v2911_v43 = vmul.f32 0.2, %v2898_v62  ;;  %v2813_v58 = vadd.f32 %v2812_v19, %v2770_v36  ;;  %v2772_v20 = vpop.f32.mrf.mxu1  ;;  %v2730_v51 = vadd.f32 %v2729_v11, %v6249_v5 }
 0x371   :  { %v2924_v2 = vmax.f32 %v2898_v62, %v2911_v43  ;;  %v2856_v61 = vadd.f32 %v2855_v3, %v2813_v58  ;;  %v2773_v1 = vadd.f32 %v2772_v20, %v2730_v51 }
 0x373   :  { %v2937_v30 = vpack.c.bf16 %v2924_v2, %v2924_v2  ;;  %v2882_v10 = vmax.f32 %v6213_v15, %v2856_v61 }
 0x375   :  { %2951 = vst.msk [vmem:[%s6430_s3 + $0x10] sm:$0xf] %vm2946_vm1, %v2937_v30  ;;  %v2899_v32 = vadd.f32 %v6335_v7, %v2882_v10 }
 0x376   :  { %v2815_v0 = vpop.f32.mrf.mxu2  ;;  %v2731_v37 = vpop.f32.mrf.mxu0 }
 0x377   :  { %v2858_v44 = vpop.f32.mrf.mxu3  ;;  %v2912_v47 = vmul.f32 0.2, %v2899_v32  ;;  %v2816_v63 = vadd.f32 %v2815_v0, %v2773_v1  ;;  %v2774_v22 = vpop.f32.mrf.mxu1  ;;  %v2732_v5 = vadd.f32 %v2731_v37, %v6281_v52 }
 0x379   :  { %v2925_v14 = vmax.f32 %v2899_v32, %v2912_v47  ;;  %v2859_v18 = vadd.f32 %v2858_v44, %v2816_v63  ;;  %v2775_v46 = vadd.f32 %v2774_v22, %v2732_v5 }
 0x37b   :  { %v2938_v35 = vpack.c.bf16 %v2925_v14, %v2925_v14  ;;  %v2883_v15 = vmax.f32 %v6245_v57, %v2859_v18 }
 0x37d   :  { %2952 = vst.msk [vmem:[%s6430_s3 + $0x14] sm:$0xf] %vm2946_vm1, %v2938_v35  ;;  %v2900_v17 = vadd.f32 %v6335_v7, %v2883_v15 }
 0x37e   :  { %v2817_v39 = vpop.f32.mrf.mxu2  ;;  %v2734_v53 = vpop.f32.mrf.mxu0 }
 0x37f   :  { %v2860_v27 = vpop.f32.mrf.mxu3  ;;  %v2913_v26 = vmul.f32 0.2, %v2900_v17  ;;  %v2818_v16 = vadd.f32 %v2817_v39, %v2775_v46  ;;  %v2777_v38 = vpop.f32.mrf.mxu1  ;;  %v2735_v52 = vadd.f32 %v2734_v53, %v6296_v33 }
 0x381   :  { %v2926_v31 = vmax.f32 %v2900_v17, %v2913_v26  ;;  %v2861_v48 = vadd.f32 %v2860_v27, %v2818_v16  ;;  %v2778_v55 = vadd.f32 %v2777_v38, %v2735_v52 }
 0x383   :  { %v2939_v23 = vpack.c.bf16 %v2926_v31, %v2926_v31  ;;  %v2884_v57 = vmax.f32 %v6254_v40, %v2861_v48 }
 0x385   :  { %2953 = vst.msk [vmem:[%s6430_s3 + $0x18] sm:$0xf] %vm2946_vm1, %v2939_v23  ;;  %v2901_v21 = vadd.f32 %v6335_v7, %v2884_v57 }
 0x386   :  { %v2820_v34 = vpop.f32.mrf.mxu2  ;;  %v2736_v25 = vpop.f32.mrf.mxu0 }
 0x387   :  { %v2863_v9 = vpop.f32.mrf.mxu3  ;;  %v2914_v59 = vmul.f32 0.2, %v2901_v21  ;;  %v2821_v13 = vadd.f32 %v2820_v34, %v2778_v55  ;;  %v2779_v50 = vpop.f32.mrf.mxu1  ;;  %v2737_v33 = vadd.f32 %v2736_v25, %v6305_v29 }
 0x389   :  { %v2927_v28 = vmax.f32 %v2901_v21, %v2914_v59  ;;  %v2864_v45 = vadd.f32 %v2863_v9, %v2821_v13  ;;  %v2780_v8 = vadd.f32 %v2779_v50, %v2737_v33 }
 0x38b   :  { %v2940_v56 = vpack.c.bf16 %v2927_v28, %v2927_v28  ;;  %v2885_v40 = vmax.f32 %v6286_v54, %v2864_v45 }
 0x38d   :  { %2954 = vst.msk [vmem:[%s6430_s3 + $0x1c] sm:$0xf] %vm2946_vm1, %v2940_v56  ;;  %v2902_v49 = vadd.f32 %v6335_v7, %v2885_v40 }
 0x38e   :  { %v2822_v62 = vpop.f32.mrf.mxu2  ;;  %v2739_v43 = vpop.f32.mrf.mxu0 }
 0x38f   :  { %v2865_v36 = vpop.f32.mrf.mxu3  ;;  %v2915_v19 = vmul.f32 0.2, %v2902_v49  ;;  %v2823_v3 = vadd.f32 %v2822_v62, %v2780_v8  ;;  %v2782_v58 = vpop.f32.mrf.mxu1  ;;  %v2740_v29 = vadd.f32 %v2739_v43, %v6314_v6 }
 0x391   :  { %v2928_v11 = vmax.f32 %v2902_v49, %v2915_v19  ;;  %v2866_v20 = vadd.f32 %v2865_v36, %v2823_v3  ;;  %v2783_v51 = vadd.f32 %v2782_v58, %v2740_v29 }
 0x393   :  { %v2941_v2 = vpack.c.bf16 %v2928_v11, %v2928_v11  ;;  %v2886_v54 = vmax.f32 %v6301_v60, %v2866_v20 }
 0x395   :  { %2955 = vst.msk [vmem:[%s6430_s3 + $0x20] sm:$0xf] %vm2946_vm1, %v2941_v2  ;;  %v2903_v61 = vadd.f32 %v6335_v7, %v2886_v54 }
 0x396   :  { %v2825_v30 = vpop.f32.mrf.mxu2  ;;  %v2741_v0 = vpop.f32.mrf.mxu0 }
 0x397   :  { %v2868_v10 = vpop.f32.mrf.mxu3  ;;  %v2916_v32 = vmul.f32 0.2, %v2903_v61  ;;  %v2826_v1 = vadd.f32 %v2825_v30, %v2783_v51  ;;  %v2784_v44 = vpop.f32.mrf.mxu1  ;;  %v2742_v6 = vadd.f32 %v2741_v0, %v6322_v42 }
 0x399   :  { %v2929_v47 = vmax.f32 %v2903_v61, %v2916_v32  ;;  %v2869_v63 = vadd.f32 %v2868_v10, %v2826_v1  ;;  %v2785_v14 = vadd.f32 %v2784_v44, %v2742_v6 }
 0x39b   :  { %v2942_v37 = vpack.c.bf16 %v2929_v47, %v2929_v47  ;;  %v2887_v60 = vmax.f32 %v6310_v41, %v2869_v63 }
 0x39d   :  { %2956 = vst.msk [vmem:[%s6430_s3 + $0x24] sm:$0xf] %vm2946_vm1, %v2942_v37  ;;  %v2904_v22 = vadd.f32 %v6335_v7, %v2887_v60 }
 0x39e   :  { %v2827_v18 = vpop.f32.mrf.mxu2  ;;  %v2744_v17 = vpop.f32.mrf.mxu0 }
 0x39f   :  { %v2870_v5 = vpop.f32.mrf.mxu3  ;;  %v2917_v35 = vmul.f32 0.2, %v2904_v22  ;;  %v2828_v15 = vadd.f32 %v2827_v18, %v2785_v14  ;;  %v2787_v46 = vpop.f32.mrf.mxu1  ;;  %v2745_v42 = vadd.f32 %v2744_v17, %v6329_v24 }
 0x3a1   :  { %v2930_v39 = vmax.f32 %v2904_v22, %v2917_v35  ;;  %v2871_v27 = vadd.f32 %v2870_v5, %v2828_v15  ;;  %v2788_v53 = vadd.f32 %v2787_v46, %v2745_v42 }
 0x3a3   :  { %v2943_v26 = vpack.c.bf16 %v2930_v39, %v2930_v39  ;;  %v2888_v41 = vmax.f32 %v6319_v4, %v2871_v27 }
 0x3a5   :  { %2957 = vst.msk [vmem:[%s6430_s3 + $0x28] sm:$0xf] %vm2946_vm1, %v2943_v26  ;;  %v2905_v16 = vadd.f32 %v6335_v7, %v2888_v41 }
 0x3a6   :  { %v2830_v38 = vpop.f32.mrf.mxu2  ;;  %v2746_v23 = vpop.f32.mrf.mxu0 }
 0x3a7   :  { %v2873_v31 = vpop.f32.mrf.mxu3  ;;  %v2918_v48 = vmul.f32 0.2, %v2905_v16  ;;  %v2831_v52 = vadd.f32 %v2830_v38, %v2788_v53  ;;  %v2789_v57 = vpop.f32.mrf.mxu1 }
 0x3a9   :  { %v2931_v21 = vmax.f32 %v2905_v16, %v2918_v48  ;;  %v2874_v55 = vadd.f32 %v2873_v31, %v2831_v52 }
 0x3ab   :  { %v2944_v24 = vpack.c.bf16 %v2931_v21, %v2931_v21  ;;  %v2889_v34 = vmax.f32 %v6327_v12, %v2874_v55 }
 0x3ad   :  { %2958 = vst.msk [vmem:[%s6430_s3 + $0x2c] sm:$0xf] %vm2946_vm1, %v2944_v24  ;;  %v2906_v4 = vadd.f32 %v6335_v7, %v2889_v34 }
 0x3ae   :  { %v2832_v9 = vpop.f32.mrf.mxu2 }
 0x3af   :  { %v2875_v59 = vpop.f32.mrf.mxu3  ;;  %v2919_v13 = vmul.f32 0.2, %v2906_v4 }
 0x3b1   :  { %v2932_v25 = vmax.f32 %v2906_v4, %v2919_v13 }
 0x3b3   :  { %v2945_v50 = vpack.c.bf16 %v2932_v25, %v2932_v25 }
 0x3b5   :  { %2959 = vst.msk [vmem:[%s6430_s3 + $0x30] sm:$0xf] %vm2946_vm1, %v2945_v50 }

// kernel: discriminator_forward.5
= control target key start
LH: loop header
LB: loop body
LE: loop exit
PB: predicated region body
PF: predicated region fallthrough
CT: control target
= control target key end

     0   :  { %s13536_s15 = smov 0   ;;  %s13538_s16 = smov 0   ;;  %s16301_s0 = inlined_call_operand.vmem [shape: bf16[2,3136], index: 0, kind: input, shape index: {}]   ;;  %s16302_s1 = inlined_call_operand.vmem [shape: bf16[3136,1024], index: 1, kind: input, shape index: {}]   ;;  %s16303_s2 = inlined_call_operand.vmem [shape: f32[1,1024], index: 2, kind: input, shape index: {}]   ;;  %s16304_s3 = inlined_call_operand.vmem [shape: bf16[1024,10], index: 3, kind: input, shape index: {}]   ;;  %s16305_s4 = inlined_call_operand.vmem [shape: f32[2,2,10], index: 4, kind: output, shape index: {}]  }
   0x1   :  { %s13540_s17 = smov 0   ;;  %s13542_s18 = smov 0  }
   0x2   :  { %s13544_s19 = smov 0  }
   0x3 LB: > { %s29_s20 = sadd.s32 1, %s13488_s18  ;;  %p75_p1 = scmp.ne.s32.totalorder %s13480_s16, %s13476_s15  ;;  %s13492_s19 = sphi %s13544_s19, %s14_s19   ;;  %s13488_s18 = sphi %s13542_s18, %s16316_s18   ;;  %s13484_s17 = sphi %s13540_s17, %s16315_s17   ;;  %s13480_s16 = sphi %s13538_s16, %s16314_s16   ;;  %s13476_s15 = sphi %s13536_s15, %s16313_s15  }
   0x4   : > { %p31_p0 = scmp.ge.s32.totalorder %s29_s20, 2  ;;  %p76_p2 = scmp.eq.s32.totalorder %s13492_s19, 0 }
   0x5   : > { %s68_s22 = sadd.s32 1, %s13480_s16  ;;  %p9260_p5 = scmp.ge.s32.totalorder %s13492_s19, 2 }
   0x6   : > { %s16318_s20 = smov (%p31_p0, %s29_s20), 0  ;;  %p77_p3 = por %p76_p2, %p75_p1 }
   0x7   : > { %s65_s21 = ssub.s32 %s13488_s18, %s16318_s20  ;;  %192 = sbr.rel (%p9260_p5) target bundleno = 410 (0x19a), region = 20 }
   0x8   : > { %p66_p4 = scmp.eq.s32.totalorder %s65_s21, 0 }
   0xa   : > { %s13571_s23 = scalar_select %p66_p4, %s13480_s16, %s68_s22  }
   0xc   : > { %195 = sbr.rel (!%p77_p3) target bundleno = 410 (0x19a), region = 24  ;;  %s197_s24 = sand.u32 (%p77_p3), 1, %s13480_s16  }
   0xd   : > { %s12540_s25 = sshll.u32 (%p77_p3), %s13488_s18, 4  ;;  %s13576_s26 = smul.u32 (%p77_p3), 6272, %s197_s24 }
   0xe   : > { %s13581_s29 = scalar_lea.vmem (%p77_p3), %s16302_s1, %s12540_s25   ;;  %s13591_s7 = smov (%p77_p3), 0  }
   0xf   : > { %s199_s30 = scalar_lea.vmem (%p77_p3), [#allocation3], %s13576_s26   ;;  %s16307_s6 = smov (%p77_p3), %s13581_s29 }
  0x10   : > { %s16306_s5 = smov (%p77_p3), %s199_s30  ;;  %s13593_s8 = smov (%p77_p3), 0  }
  0x11 LB: >> { %v217_v0 = vld [vmem:[%s13500_s6] sm:$0xff]  ;;  %s1001_s9 = sadd.s32 1, %s13504_s7  ;;  %s213_s8 = sadd.s32 1, %s13508_s8   ;;  %s13508_s8 = sphi %s13593_s8, %s213_s8   ;;  %s13504_s7 = sphi %s13591_s7, %s16310_s7   ;;  %s13500_s6 = sphi %s16307_s6, %s16309_s6   ;;  %s13496_s5 = sphi %s16306_s5, %s16308_s5  }
  0x12   : >> { %v219_v1 = vld [vmem:[%s13500_s6 + $0x20] sm:$0xff]  ;;  %218 = vst [vmem:[%s13496_s5] sm:$0xff] %v217_v0  ;;  %p1002_p6 = scmp.ge.s32.totalorder %s1001_s9, 2  ;;  %p210_p7 = scmp.ge.s32.totalorder %s213_s8, 2  }
  0x13   : >> { %v221_v2 = vld [vmem:[%s13500_s6 + $0x40] sm:$0xff]  ;;  %220 = vst [vmem:[%s13496_s5 + $0x10] sm:$0xff] %v219_v1 }
  0x14   : >> { %v223_v3 = vld [vmem:[%s13500_s6 + $0x60] sm:$0xff]  ;;  %222 = vst [vmem:[%s13496_s5 + $0x20] sm:$0xff] %v221_v2  ;;  %s16320_s9 = smov (%p1002_p6, %s1001_s9), 0 }
  0x15   : >> { %v225_v4 = vld [vmem:[%s13500_s6 + $0x80] sm:$0xff]  ;;  %224 = vst [vmem:[%s13496_s5 + $0x30] sm:$0xff] %v223_v3  ;;  %s9263_s10 = sshll.u32 %s16320_s9, 3  ;;  %s16310_s7 = smov %s16320_s9 }
  0x16   : >> { %v227_v5 = vld [vmem:[%s13500_s6 + $0xa0] sm:$0xff]  ;;  %226 = vst [vmem:[%s13496_s5 + $0x40] sm:$0xff] %v225_v4  ;;  %s14143_s11 = scalar_lea.vmem %s13581_s29, %s9263_s10   ;;  %s14147_s12 = scalar_lea.vmem %s199_s30, %s9263_s10 [#allocation3]  }
  0x17   : >> { %v229_v6 = vld [vmem:[%s13500_s6 + $0xc0] sm:$0xff]  ;;  %228 = vst [vmem:[%s13496_s5 + $0x50] sm:$0xff] %v227_v5 }
  0x18   : >> { %v231_v7 = vld [vmem:[%s13500_s6 + $0xe0] sm:$0xff]  ;;  %230 = vst [vmem:[%s13496_s5 + $0x60] sm:$0xff] %v229_v6 }
  0x19   : >> { %v233_v8 = vld [vmem:[%s13500_s6 + $0x100] sm:$0xff]  ;;  %232 = vst [vmem:[%s13496_s5 + $0x70] sm:$0xff] %v231_v7 }
  0x1a   : >> { %v235_v9 = vld [vmem:[%s13500_s6 + $0x120] sm:$0xff]  ;;  %234 = vst [vmem:[%s13496_s5 + $0x80] sm:$0xff] %v233_v8 }
  0x1b   : >> { %v237_v10 = vld [vmem:[%s13500_s6 + $0x140] sm:$0xff]  ;;  %236 = vst [vmem:[%s13496_s5 + $0x90] sm:$0xff] %v235_v9 }
  0x1c   : >> { %v239_v11 = vld [vmem:[%s13500_s6 + $0x160] sm:$0xff]  ;;  %238 = vst [vmem:[%s13496_s5 + $0xa0] sm:$0xff] %v237_v10 }
  0x1d   : >> { %v241_v12 = vld [vmem:[%s13500_s6 + $0x180] sm:$0xff]  ;;  %240 = vst [vmem:[%s13496_s5 + $0xb0] sm:$0xff] %v239_v11 }
  0x1e   : >> { %v243_v13 = vld [vmem:[%s13500_s6 + $0x1a0] sm:$0xff]  ;;  %242 = vst [vmem:[%s13496_s5 + $0xc0] sm:$0xff] %v241_v12 }
  0x1f   : >> { %v245_v14 = vld [vmem:[%s13500_s6 + $0x1c0] sm:$0xff]  ;;  %244 = vst [vmem:[%s13496_s5 + $0xd0] sm:$0xff] %v243_v13 }
  0x20   : >> { %v247_v15 = vld [vmem:[%s13500_s6 + $0x1e0] sm:$0xff]  ;;  %246 = vst [vmem:[%s13496_s5 + $0xe0] sm:$0xff] %v245_v14 }
  0x21   : >> { %v249_v16 = vld [vmem:[%s13500_s6 + $0x200] sm:$0xff]  ;;  %248 = vst [vmem:[%s13496_s5 + $0xf0] sm:$0xff] %v247_v15 }
  0x22   : >> { %v251_v17 = vld [vmem:[%s13500_s6 + $0x220] sm:$0xff]  ;;  %250 = vst [vmem:[%s13496_s5 + $0x100] sm:$0xff] %v249_v16 }
  0x23   : >> { %v253_v18 = vld [vmem:[%s13500_s6 + $0x240] sm:$0xff]  ;;  %252 = vst [vmem:[%s13496_s5 + $0x110] sm:$0xff] %v251_v17 }
  0x24   : >> { %v255_v19 = vld [vmem:[%s13500_s6 + $0x260] sm:$0xff]  ;;  %254 = vst [vmem:[%s13496_s5 + $0x120] sm:$0xff] %v253_v18 }
  0x25   : >> { %v257_v20 = vld [vmem:[%s13500_s6 + $0x280] sm:$0xff]  ;;  %256 = vst [vmem:[%s13496_s5 + $0x130] sm:$0xff] %v255_v19 }
  0x26   : >> { %v259_v21 = vld [vmem:[%s13500_s6 + $0x2a0] sm:$0xff]  ;;  %258 = vst [vmem:[%s13496_s5 + $0x140] sm:$0xff] %v257_v20 }
  0x27   : >> { %v261_v22 = vld [vmem:[%s13500_s6 + $0x2c0] sm:$0xff]  ;;  %260 = vst [vmem:[%s13496_s5 + $0x150] sm:$0xff] %v259_v21 }
  0x28   : >> { %v263_v23 = vld [vmem:[%s13500_s6 + $0x2e0] sm:$0xff]  ;;  %262 = vst [vmem:[%s13496_s5 + $0x160] sm:$0xff] %v261_v22 }
  0x29   : >> { %v265_v24 = vld [vmem:[%s13500_s6 + $0x300] sm:$0xff]  ;;  %264 = vst [vmem:[%s13496_s5 + $0x170] sm:$0xff] %v263_v23 }
  0x2a   : >> { %v267_v25 = vld [vmem:[%s13500_s6 + $0x320] sm:$0xff]  ;;  %266 = vst [vmem:[%s13496_s5 + $0x180] sm:$0xff] %v265_v24 }
  0x2b   : >> { %v269_v26 = vld [vmem:[%s13500_s6 + $0x340] sm:$0xff]  ;;  %268 = vst [vmem:[%s13496_s5 + $0x190] sm:$0xff] %v267_v25 }
  0x2c   : >> { %v271_v27 = vld [vmem:[%s13500_s6 + $0x360] sm:$0xff]  ;;  %270 = vst [vmem:[%s13496_s5 + $0x1a0] sm:$0xff] %v269_v26 }
  0x2d   : >> { %v273_v28 = vld [vmem:[%s13500_s6 + $0x380] sm:$0xff]  ;;  %272 = vst [vmem:[%s13496_s5 + $0x1b0] sm:$0xff] %v271_v27 }
  0x2e   : >> { %v275_v29 = vld [vmem:[%s13500_s6 + $0x3a0] sm:$0xff]  ;;  %274 = vst [vmem:[%s13496_s5 + $0x1c0] sm:$0xff] %v273_v28 }
  0x2f   : >> { %v277_v30 = vld [vmem:[%s13500_s6 + $0x3c0] sm:$0xff]  ;;  %276 = vst [vmem:[%s13496_s5 + $0x1d0] sm:$0xff] %v275_v29 }
  0x30   : >> { %v279_v31 = vld [vmem:[%s13500_s6 + $0x3e0] sm:$0xff]  ;;  %278 = vst [vmem:[%s13496_s5 + $0x1e0] sm:$0xff] %v277_v30 }
  0x31   : >> { %v281_v32 = vld [vmem:[%s13500_s6 + $0x400] sm:$0xff]  ;;  %280 = vst [vmem:[%s13496_s5 + $0x1f0] sm:$0xff] %v279_v31 }
  0x32   : >> { %v283_v33 = vld [vmem:[%s13500_s6 + $0x420] sm:$0xff]  ;;  %282 = vst [vmem:[%s13496_s5 + $0x200] sm:$0xff] %v281_v32 }
  0x33   : >> { %v285_v34 = vld [vmem:[%s13500_s6 + $0x440] sm:$0xff]  ;;  %284 = vst [vmem:[%s13496_s5 + $0x210] sm:$0xff] %v283_v33 }
  0x34   : >> { %v287_v35 = vld [vmem:[%s13500_s6 + $0x460] sm:$0xff]  ;;  %286 = vst [vmem:[%s13496_s5 + $0x220] sm:$0xff] %v285_v34 }
  0x35   : >> { %v289_v36 = vld [vmem:[%s13500_s6 + $0x480] sm:$0xff]  ;;  %288 = vst [vmem:[%s13496_s5 + $0x230] sm:$0xff] %v287_v35 }
  0x36   : >> { %v291_v37 = vld [vmem:[%s13500_s6 + $0x4a0] sm:$0xff]  ;;  %290 = vst [vmem:[%s13496_s5 + $0x240] sm:$0xff] %v289_v36 }
  0x37   : >> { %v293_v38 = vld [vmem:[%s13500_s6 + $0x4c0] sm:$0xff]  ;;  %292 = vst [vmem:[%s13496_s5 + $0x250] sm:$0xff] %v291_v37 }
  0x38   : >> { %v295_v39 = vld [vmem:[%s13500_s6 + $0x4e0] sm:$0xff]  ;;  %294 = vst [vmem:[%s13496_s5 + $0x260] sm:$0xff] %v293_v38 }
  0x39   : >> { %v297_v40 = vld [vmem:[%s13500_s6 + $0x500] sm:$0xff]  ;;  %296 = vst [vmem:[%s13496_s5 + $0x270] sm:$0xff] %v295_v39 }
  0x3a   : >> { %v299_v41 = vld [vmem:[%s13500_s6 + $0x520] sm:$0xff]  ;;  %298 = vst [vmem:[%s13496_s5 + $0x280] sm:$0xff] %v297_v40 }
  0x3b   : >> { %v301_v42 = vld [vmem:[%s13500_s6 + $0x540] sm:$0xff]  ;;  %300 = vst [vmem:[%s13496_s5 + $0x290] sm:$0xff] %v299_v41 }
  0x3c   : >> { %v303_v43 = vld [vmem:[%s13500_s6 + $0x560] sm:$0xff]  ;;  %302 = vst [vmem:[%s13496_s5 + $0x2a0] sm:$0xff] %v301_v42 }
  0x3d   : >> { %v305_v44 = vld [vmem:[%s13500_s6 + $0x580] sm:$0xff]  ;;  %304 = vst [vmem:[%s13496_s5 + $0x2b0] sm:$0xff] %v303_v43 }
  0x3e   : >> { %v307_v45 = vld [vmem:[%s13500_s6 + $0x5a0] sm:$0xff]  ;;  %306 = vst [vmem:[%s13496_s5 + $0x2c0] sm:$0xff] %v305_v44 }
  0x3f   : >> { %v309_v46 = vld [vmem:[%s13500_s6 + $0x5c0] sm:$0xff]  ;;  %308 = vst [vmem:[%s13496_s5 + $0x2d0] sm:$0xff] %v307_v45 }
  0x40   : >> { %v311_v47 = vld [vmem:[%s13500_s6 + $0x5e0] sm:$0xff]  ;;  %310 = vst [vmem:[%s13496_s5 + $0x2e0] sm:$0xff] %v309_v46 }
  0x41   : >> { %v313_v48 = vld [vmem:[%s13500_s6 + $0x600] sm:$0xff]  ;;  %312 = vst [vmem:[%s13496_s5 + $0x2f0] sm:$0xff] %v311_v47 }
  0x42   : >> { %v315_v49 = vld [vmem:[%s13500_s6 + $0x620] sm:$0xff]  ;;  %314 = vst [vmem:[%s13496_s5 + $0x300] sm:$0xff] %v313_v48 }
  0x43   : >> { %v317_v50 = vld [vmem:[%s13500_s6 + $0x640] sm:$0xff]  ;;  %316 = vst [vmem:[%s13496_s5 + $0x310] sm:$0xff] %v315_v49 }
  0x44   : >> { %v319_v51 = vld [vmem:[%s13500_s6 + $0x660] sm:$0xff]  ;;  %318 = vst [vmem:[%s13496_s5 + $0x320] sm:$0xff] %v317_v50 }
  0x45   : >> { %v321_v52 = vld [vmem:[%s13500_s6 + $0x680] sm:$0xff]  ;;  %320 = vst [vmem:[%s13496_s5 + $0x330] sm:$0xff] %v319_v51 }
  0x46   : >> { %v323_v53 = vld [vmem:[%s13500_s6 + $0x6a0] sm:$0xff]  ;;  %322 = vst [vmem:[%s13496_s5 + $0x340] sm:$0xff] %v321_v52 }
  0x47   : >> { %v325_v54 = vld [vmem:[%s13500_s6 + $0x6c0] sm:$0xff]  ;;  %324 = vst [vmem:[%s13496_s5 + $0x350] sm:$0xff] %v323_v53 }
  0x48   : >> { %v327_v55 = vld [vmem:[%s13500_s6 + $0x6e0] sm:$0xff]  ;;  %326 = vst [vmem:[%s13496_s5 + $0x360] sm:$0xff] %v325_v54 }
  0x49   : >> { %v329_v56 = vld [vmem:[%s13500_s6 + $0x700] sm:$0xff]  ;;  %328 = vst [vmem:[%s13496_s5 + $0x370] sm:$0xff] %v327_v55 }
  0x4a   : >> { %v331_v57 = vld [vmem:[%s13500_s6 + $0x720] sm:$0xff]  ;;  %330 = vst [vmem:[%s13496_s5 + $0x380] sm:$0xff] %v329_v56 }
  0x4b   : >> { %v333_v58 = vld [vmem:[%s13500_s6 + $0x740] sm:$0xff]  ;;  %332 = vst [vmem:[%s13496_s5 + $0x390] sm:$0xff] %v331_v57 }
  0x4c   : >> { %v335_v59 = vld [vmem:[%s13500_s6 + $0x760] sm:$0xff]  ;;  %334 = vst [vmem:[%s13496_s5 + $0x3a0] sm:$0xff] %v333_v58 }
  0x4d   : >> { %v337_v60 = vld [vmem:[%s13500_s6 + $0x780] sm:$0xff]  ;;  %336 = vst [vmem:[%s13496_s5 + $0x3b0] sm:$0xff] %v335_v59 }
  0x4e   : >> { %v339_v61 = vld [vmem:[%s13500_s6 + $0x7a0] sm:$0xff]  ;;  %338 = vst [vmem:[%s13496_s5 + $0x3c0] sm:$0xff] %v337_v60 }
  0x4f   : >> { %v341_v62 = vld [vmem:[%s13500_s6 + $0x7c0] sm:$0xff]  ;;  %340 = vst [vmem:[%s13496_s5 + $0x3d0] sm:$0xff] %v339_v61 }
  0x50   : >> { %v343_v63 = vld [vmem:[%s13500_s6 + $0x7e0] sm:$0xff]  ;;  %342 = vst [vmem:[%s13496_s5 + $0x3e0] sm:$0xff] %v341_v62 }
  0x51   : >> { %v345_v0 = vld [vmem:[%s13500_s6 + $0x800] sm:$0xff]  ;;  %344 = vst [vmem:[%s13496_s5 + $0x3f0] sm:$0xff] %v343_v63 }
  0x52   : >> { %v347_v1 = vld [vmem:[%s13500_s6 + $0x820] sm:$0xff]  ;;  %346 = vst [vmem:[%s13496_s5 + $0x400] sm:$0xff] %v345_v0 }
  0x53   : >> { %v349_v2 = vld [vmem:[%s13500_s6 + $0x840] sm:$0xff]  ;;  %348 = vst [vmem:[%s13496_s5 + $0x410] sm:$0xff] %v347_v1 }
  0x54   : >> { %v351_v3 = vld [vmem:[%s13500_s6 + $0x860] sm:$0xff]  ;;  %350 = vst [vmem:[%s13496_s5 + $0x420] sm:$0xff] %v349_v2 }
  0x55   : >> { %v353_v4 = vld [vmem:[%s13500_s6 + $0x880] sm:$0xff]  ;;  %352 = vst [vmem:[%s13496_s5 + $0x430] sm:$0xff] %v351_v3 }
  0x56   : >> { %v355_v5 = vld [vmem:[%s13500_s6 + $0x8a0] sm:$0xff]  ;;  %354 = vst [vmem:[%s13496_s5 + $0x440] sm:$0xff] %v353_v4 }
  0x57   : >> { %v357_v6 = vld [vmem:[%s13500_s6 + $0x8c0] sm:$0xff]  ;;  %356 = vst [vmem:[%s13496_s5 + $0x450] sm:$0xff] %v355_v5 }
  0x58   : >> { %v359_v7 = vld [vmem:[%s13500_s6 + $0x8e0] sm:$0xff]  ;;  %358 = vst [vmem:[%s13496_s5 + $0x460] sm:$0xff] %v357_v6 }
  0x59   : >> { %v361_v8 = vld [vmem:[%s13500_s6 + $0x900] sm:$0xff]  ;;  %360 = vst [vmem:[%s13496_s5 + $0x470] sm:$0xff] %v359_v7 }
  0x5a   : >> { %v363_v9 = vld [vmem:[%s13500_s6 + $0x920] sm:$0xff]  ;;  %362 = vst [vmem:[%s13496_s5 + $0x480] sm:$0xff] %v361_v8 }
  0x5b   : >> { %v365_v10 = vld [vmem:[%s13500_s6 + $0x940] sm:$0xff]  ;;  %364 = vst [vmem:[%s13496_s5 + $0x490] sm:$0xff] %v363_v9 }
  0x5c   : >> { %v367_v11 = vld [vmem:[%s13500_s6 + $0x960] sm:$0xff]  ;;  %366 = vst [vmem:[%s13496_s5 + $0x4a0] sm:$0xff] %v365_v10 }
  0x5d   : >> { %v369_v12 = vld [vmem:[%s13500_s6 + $0x980] sm:$0xff]  ;;  %368 = vst [vmem:[%s13496_s5 + $0x4b0] sm:$0xff] %v367_v11 }
  0x5e   : >> { %v371_v13 = vld [vmem:[%s13500_s6 + $0x9a0] sm:$0xff]  ;;  %370 = vst [vmem:[%s13496_s5 + $0x4c0] sm:$0xff] %v369_v12 }
  0x5f   : >> { %v373_v14 = vld [vmem:[%s13500_s6 + $0x9c0] sm:$0xff]  ;;  %372 = vst [vmem:[%s13496_s5 + $0x4d0] sm:$0xff] %v371_v13 }
  0x60   : >> { %v375_v15 = vld [vmem:[%s13500_s6 + $0x9e0] sm:$0xff]  ;;  %374 = vst [vmem:[%s13496_s5 + $0x4e0] sm:$0xff] %v373_v14 }
  0x61   : >> { %v377_v16 = vld [vmem:[%s13500_s6 + $0xa00] sm:$0xff]  ;;  %376 = vst [vmem:[%s13496_s5 + $0x4f0] sm:$0xff] %v375_v15 }
  0x62   : >> { %v379_v17 = vld [vmem:[%s13500_s6 + $0xa20] sm:$0xff]  ;;  %378 = vst [vmem:[%s13496_s5 + $0x500] sm:$0xff] %v377_v16 }
  0x63   : >> { %v381_v18 = vld [vmem:[%s13500_s6 + $0xa40] sm:$0xff]  ;;  %380 = vst [vmem:[%s13496_s5 + $0x510] sm:$0xff] %v379_v17 }
  0x64   : >> { %v383_v19 = vld [vmem:[%s13500_s6 + $0xa60] sm:$0xff]  ;;  %382 = vst [vmem:[%s13496_s5 + $0x520] sm:$0xff] %v381_v18 }
  0x65   : >> { %v385_v20 = vld [vmem:[%s13500_s6 + $0xa80] sm:$0xff]  ;;  %384 = vst [vmem:[%s13496_s5 + $0x530] sm:$0xff] %v383_v19 }
  0x66   : >> { %v387_v21 = vld [vmem:[%s13500_s6 + $0xaa0] sm:$0xff]  ;;  %386 = vst [vmem:[%s13496_s5 + $0x540] sm:$0xff] %v385_v20 }
  0x67   : >> { %v389_v22 = vld [vmem:[%s13500_s6 + $0xac0] sm:$0xff]  ;;  %388 = vst [vmem:[%s13496_s5 + $0x550] sm:$0xff] %v387_v21 }
  0x68   : >> { %v391_v23 = vld [vmem:[%s13500_s6 + $0xae0] sm:$0xff]  ;;  %390 = vst [vmem:[%s13496_s5 + $0x560] sm:$0xff] %v389_v22 }
  0x69   : >> { %v393_v24 = vld [vmem:[%s13500_s6 + $0xb00] sm:$0xff]  ;;  %392 = vst [vmem:[%s13496_s5 + $0x570] sm:$0xff] %v391_v23 }
  0x6a   : >> { %v395_v25 = vld [vmem:[%s13500_s6 + $0xb20] sm:$0xff]  ;;  %394 = vst [vmem:[%s13496_s5 + $0x580] sm:$0xff] %v393_v24 }
  0x6b   : >> { %v397_v26 = vld [vmem:[%s13500_s6 + $0xb40] sm:$0xff]  ;;  %396 = vst [vmem:[%s13496_s5 + $0x590] sm:$0xff] %v395_v25 }
  0x6c   : >> { %v399_v27 = vld [vmem:[%s13500_s6 + $0xb60] sm:$0xff]  ;;  %398 = vst [vmem:[%s13496_s5 + $0x5a0] sm:$0xff] %v397_v26 }
  0x6d   : >> { %v401_v28 = vld [vmem:[%s13500_s6 + $0xb80] sm:$0xff]  ;;  %400 = vst [vmem:[%s13496_s5 + $0x5b0] sm:$0xff] %v399_v27 }
  0x6e   : >> { %v403_v29 = vld [vmem:[%s13500_s6 + $0xba0] sm:$0xff]  ;;  %402 = vst [vmem:[%s13496_s5 + $0x5c0] sm:$0xff] %v401_v28 }
  0x6f   : >> { %v405_v30 = vld [vmem:[%s13500_s6 + $0xbc0] sm:$0xff]  ;;  %404 = vst [vmem:[%s13496_s5 + $0x5d0] sm:$0xff] %v403_v29 }
  0x70   : >> { %v407_v31 = vld [vmem:[%s13500_s6 + $0xbe0] sm:$0xff]  ;;  %406 = vst [vmem:[%s13496_s5 + $0x5e0] sm:$0xff] %v405_v30 }
  0x71   : >> { %v409_v32 = vld [vmem:[%s13500_s6 + $0xc00] sm:$0xff]  ;;  %408 = vst [vmem:[%s13496_s5 + $0x5f0] sm:$0xff] %v407_v31 }
  0x72   : >> { %v411_v33 = vld [vmem:[%s13500_s6 + $0xc20] sm:$0xff]  ;;  %410 = vst [vmem:[%s13496_s5 + $0x600] sm:$0xff] %v409_v32 }
  0x73   : >> { %v413_v34 = vld [vmem:[%s13500_s6 + $0xc40] sm:$0xff]  ;;  %412 = vst [vmem:[%s13496_s5 + $0x610] sm:$0xff] %v411_v33 }
  0x74   : >> { %v415_v35 = vld [vmem:[%s13500_s6 + $0xc60] sm:$0xff]  ;;  %414 = vst [vmem:[%s13496_s5 + $0x620] sm:$0xff] %v413_v34 }
  0x75   : >> { %v417_v36 = vld [vmem:[%s13500_s6 + $0xc80] sm:$0xff]  ;;  %416 = vst [vmem:[%s13496_s5 + $0x630] sm:$0xff] %v415_v35 }
  0x76   : >> { %v419_v37 = vld [vmem:[%s13500_s6 + $0xca0] sm:$0xff]  ;;  %418 = vst [vmem:[%s13496_s5 + $0x640] sm:$0xff] %v417_v36 }
  0x77   : >> { %v421_v38 = vld [vmem:[%s13500_s6 + $0xcc0] sm:$0xff]  ;;  %420 = vst [vmem:[%s13496_s5 + $0x650] sm:$0xff] %v419_v37 }
  0x78   : >> { %v423_v39 = vld [vmem:[%s13500_s6 + $0xce0] sm:$0xff]  ;;  %422 = vst [vmem:[%s13496_s5 + $0x660] sm:$0xff] %v421_v38 }
  0x79   : >> { %v425_v40 = vld [vmem:[%s13500_s6 + $0xd00] sm:$0xff]  ;;  %424 = vst [vmem:[%s13496_s5 + $0x670] sm:$0xff] %v423_v39 }
  0x7a   : >> { %v427_v41 = vld [vmem:[%s13500_s6 + $0xd20] sm:$0xff]  ;;  %426 = vst [vmem:[%s13496_s5 + $0x680] sm:$0xff] %v425_v40 }
  0x7b   : >> { %v429_v42 = vld [vmem:[%s13500_s6 + $0xd40] sm:$0xff]  ;;  %428 = vst [vmem:[%s13496_s5 + $0x690] sm:$0xff] %v427_v41 }
  0x7c   : >> { %v431_v43 = vld [vmem:[%s13500_s6 + $0xd60] sm:$0xff]  ;;  %430 = vst [vmem:[%s13496_s5 + $0x6a0] sm:$0xff] %v429_v42 }
  0x7d   : >> { %v433_v44 = vld [vmem:[%s13500_s6 + $0xd80] sm:$0xff]  ;;  %432 = vst [vmem:[%s13496_s5 + $0x6b0] sm:$0xff] %v431_v43 }
  0x7e   : >> { %v435_v45 = vld [vmem:[%s13500_s6 + $0xda0] sm:$0xff]  ;;  %434 = vst [vmem:[%s13496_s5 + $0x6c0] sm:$0xff] %v433_v44 }
  0x7f   : >> { %v437_v46 = vld [vmem:[%s13500_s6 + $0xdc0] sm:$0xff]  ;;  %436 = vst [vmem:[%s13496_s5 + $0x6d0] sm:$0xff] %v435_v45 }
  0x80   : >> { %v439_v47 = vld [vmem:[%s13500_s6 + $0xde0] sm:$0xff]  ;;  %438 = vst [vmem:[%s13496_s5 + $0x6e0] sm:$0xff] %v437_v46 }
  0x81   : >> { %v441_v48 = vld [vmem:[%s13500_s6 + $0xe00] sm:$0xff]  ;;  %440 = vst [vmem:[%s13496_s5 + $0x6f0] sm:$0xff] %v439_v47 }
  0x82   : >> { %v443_v49 = vld [vmem:[%s13500_s6 + $0xe20] sm:$0xff]  ;;  %442 = vst [vmem:[%s13496_s5 + $0x700] sm:$0xff] %v441_v48 }
  0x83   : >> { %v445_v50 = vld [vmem:[%s13500_s6 + $0xe40] sm:$0xff]  ;;  %444 = vst [vmem:[%s13496_s5 + $0x710] sm:$0xff] %v443_v49 }
  0x84   : >> { %v447_v51 = vld [vmem:[%s13500_s6 + $0xe60] sm:$0xff]  ;;  %446 = vst [vmem:[%s13496_s5 + $0x720] sm:$0xff] %v445_v50 }
  0x85   : >> { %v449_v52 = vld [vmem:[%s13500_s6 + $0xe80] sm:$0xff]  ;;  %448 = vst [vmem:[%s13496_s5 + $0x730] sm:$0xff] %v447_v51 }
  0x86   : >> { %v451_v53 = vld [vmem:[%s13500_s6 + $0xea0] sm:$0xff]  ;;  %450 = vst [vmem:[%s13496_s5 + $0x740] sm:$0xff] %v449_v52 }
  0x87   : >> { %v453_v54 = vld [vmem:[%s13500_s6 + $0xec0] sm:$0xff]  ;;  %452 = vst [vmem:[%s13496_s5 + $0x750] sm:$0xff] %v451_v53 }
  0x88   : >> { %v455_v55 = vld [vmem:[%s13500_s6 + $0xee0] sm:$0xff]  ;;  %454 = vst [vmem:[%s13496_s5 + $0x760] sm:$0xff] %v453_v54 }
  0x89   : >> { %v457_v56 = vld [vmem:[%s13500_s6 + $0xf00] sm:$0xff]  ;;  %456 = vst [vmem:[%s13496_s5 + $0x770] sm:$0xff] %v455_v55 }
  0x8a   : >> { %v459_v57 = vld [vmem:[%s13500_s6 + $0xf20] sm:$0xff]  ;;  %458 = vst [vmem:[%s13496_s5 + $0x780] sm:$0xff] %v457_v56 }
  0x8b   : >> { %v461_v58 = vld [vmem:[%s13500_s6 + $0xf40] sm:$0xff]  ;;  %460 = vst [vmem:[%s13496_s5 + $0x790] sm:$0xff] %v459_v57 }
  0x8c   : >> { %v463_v59 = vld [vmem:[%s13500_s6 + $0xf60] sm:$0xff]  ;;  %462 = vst [vmem:[%s13496_s5 + $0x7a0] sm:$0xff] %v461_v58 }
  0x8d   : >> { %v465_v60 = vld [vmem:[%s13500_s6 + $0xf80] sm:$0xff]  ;;  %464 = vst [vmem:[%s13496_s5 + $0x7b0] sm:$0xff] %v463_v59 }
  0x8e   : >> { %v467_v61 = vld [vmem:[%s13500_s6 + $0xfa0] sm:$0xff]  ;;  %466 = vst [vmem:[%s13496_s5 + $0x7c0] sm:$0xff] %v465_v60 }
  0x8f   : >> { %v469_v62 = vld [vmem:[%s13500_s6 + $0xfc0] sm:$0xff]  ;;  %468 = vst [vmem:[%s13496_s5 + $0x7d0] sm:$0xff] %v467_v61 }
  0x90   : >> { %v471_v63 = vld [vmem:[%s13500_s6 + $0xfe0] sm:$0xff]  ;;  %470 = vst [vmem:[%s13496_s5 + $0x7e0] sm:$0xff] %v469_v62 }
  0x91   : >> { %v473_v0 = vld [vmem:[%s13500_s6 + $0x1000] sm:$0xff]  ;;  %472 = vst [vmem:[%s13496_s5 + $0x7f0] sm:$0xff] %v471_v63 }
  0x92   : >> { %v475_v1 = vld [vmem:[%s13500_s6 + $0x1020] sm:$0xff]  ;;  %474 = vst [vmem:[%s13496_s5 + $0x800] sm:$0xff] %v473_v0 }
  0x93   : >> { %v477_v2 = vld [vmem:[%s13500_s6 + $0x1040] sm:$0xff]  ;;  %476 = vst [vmem:[%s13496_s5 + $0x810] sm:$0xff] %v475_v1 }
  0x94   : >> { %v479_v3 = vld [vmem:[%s13500_s6 + $0x1060] sm:$0xff]  ;;  %478 = vst [vmem:[%s13496_s5 + $0x820] sm:$0xff] %v477_v2 }
  0x95   : >> { %v481_v4 = vld [vmem:[%s13500_s6 + $0x1080] sm:$0xff]  ;;  %480 = vst [vmem:[%s13496_s5 + $0x830] sm:$0xff] %v479_v3 }
  0x96   : >> { %v483_v5 = vld [vmem:[%s13500_s6 + $0x10a0] sm:$0xff]  ;;  %482 = vst [vmem:[%s13496_s5 + $0x840] sm:$0xff] %v481_v4 }
  0x97   : >> { %v485_v6 = vld [vmem:[%s13500_s6 + $0x10c0] sm:$0xff]  ;;  %484 = vst [vmem:[%s13496_s5 + $0x850] sm:$0xff] %v483_v5 }
  0x98   : >> { %v487_v7 = vld [vmem:[%s13500_s6 + $0x10e0] sm:$0xff]  ;;  %486 = vst [vmem:[%s13496_s5 + $0x860] sm:$0xff] %v485_v6 }
  0x99   : >> { %v489_v8 = vld [vmem:[%s13500_s6 + $0x1100] sm:$0xff]  ;;  %488 = vst [vmem:[%s13496_s5 + $0x870] sm:$0xff] %v487_v7 }
  0x9a   : >> { %v491_v9 = vld [vmem:[%s13500_s6 + $0x1120] sm:$0xff]  ;;  %490 = vst [vmem:[%s13496_s5 + $0x880] sm:$0xff] %v489_v8 }
  0x9b   : >> { %v493_v10 = vld [vmem:[%s13500_s6 + $0x1140] sm:$0xff]  ;;  %492 = vst [vmem:[%s13496_s5 + $0x890] sm:$0xff] %v491_v9 }
  0x9c   : >> { %v495_v11 = vld [vmem:[%s13500_s6 + $0x1160] sm:$0xff]  ;;  %494 = vst [vmem:[%s13496_s5 + $0x8a0] sm:$0xff] %v493_v10 }
  0x9d   : >> { %v497_v12 = vld [vmem:[%s13500_s6 + $0x1180] sm:$0xff]  ;;  %496 = vst [vmem:[%s13496_s5 + $0x8b0] sm:$0xff] %v495_v11 }
  0x9e   : >> { %v499_v13 = vld [vmem:[%s13500_s6 + $0x11a0] sm:$0xff]  ;;  %498 = vst [vmem:[%s13496_s5 + $0x8c0] sm:$0xff] %v497_v12 }
  0x9f   : >> { %v501_v14 = vld [vmem:[%s13500_s6 + $0x11c0] sm:$0xff]  ;;  %500 = vst [vmem:[%s13496_s5 + $0x8d0] sm:$0xff] %v499_v13 }
  0xa0   : >> { %v503_v15 = vld [vmem:[%s13500_s6 + $0x11e0] sm:$0xff]  ;;  %502 = vst [vmem:[%s13496_s5 + $0x8e0] sm:$0xff] %v501_v14 }
  0xa1   : >> { %v505_v16 = vld [vmem:[%s13500_s6 + $0x1200] sm:$0xff]  ;;  %504 = vst [vmem:[%s13496_s5 + $0x8f0] sm:$0xff] %v503_v15 }
  0xa2   : >> { %v507_v17 = vld [vmem:[%s13500_s6 + $0x1220] sm:$0xff]  ;;  %506 = vst [vmem:[%s13496_s5 + $0x900] sm:$0xff] %v505_v16 }
  0xa3   : >> { %v509_v18 = vld [vmem:[%s13500_s6 + $0x1240] sm:$0xff]  ;;  %508 = vst [vmem:[%s13496_s5 + $0x910] sm:$0xff] %v507_v17 }
  0xa4   : >> { %v511_v19 = vld [vmem:[%s13500_s6 + $0x1260] sm:$0xff]  ;;  %510 = vst [vmem:[%s13496_s5 + $0x920] sm:$0xff] %v509_v18 }
  0xa5   : >> { %v513_v20 = vld [vmem:[%s13500_s6 + $0x1280] sm:$0xff]  ;;  %512 = vst [vmem:[%s13496_s5 + $0x930] sm:$0xff] %v511_v19 }
  0xa6   : >> { %v515_v21 = vld [vmem:[%s13500_s6 + $0x12a0] sm:$0xff]  ;;  %514 = vst [vmem:[%s13496_s5 + $0x940] sm:$0xff] %v513_v20 }
  0xa7   : >> { %v517_v22 = vld [vmem:[%s13500_s6 + $0x12c0] sm:$0xff]  ;;  %516 = vst [vmem:[%s13496_s5 + $0x950] sm:$0xff] %v515_v21 }
  0xa8   : >> { %v519_v23 = vld [vmem:[%s13500_s6 + $0x12e0] sm:$0xff]  ;;  %518 = vst [vmem:[%s13496_s5 + $0x960] sm:$0xff] %v517_v22 }
  0xa9   : >> { %v521_v24 = vld [vmem:[%s13500_s6 + $0x1300] sm:$0xff]  ;;  %520 = vst [vmem:[%s13496_s5 + $0x970] sm:$0xff] %v519_v23 }
  0xaa   : >> { %v523_v25 = vld [vmem:[%s13500_s6 + $0x1320] sm:$0xff]  ;;  %522 = vst [vmem:[%s13496_s5 + $0x980] sm:$0xff] %v521_v24 }
  0xab   : >> { %v525_v26 = vld [vmem:[%s13500_s6 + $0x1340] sm:$0xff]  ;;  %524 = vst [vmem:[%s13496_s5 + $0x990] sm:$0xff] %v523_v25 }
  0xac   : >> { %v527_v27 = vld [vmem:[%s13500_s6 + $0x1360] sm:$0xff]  ;;  %526 = vst [vmem:[%s13496_s5 + $0x9a0] sm:$0xff] %v525_v26 }
  0xad   : >> { %v529_v28 = vld [vmem:[%s13500_s6 + $0x1380] sm:$0xff]  ;;  %528 = vst [vmem:[%s13496_s5 + $0x9b0] sm:$0xff] %v527_v27 }
  0xae   : >> { %v531_v29 = vld [vmem:[%s13500_s6 + $0x13a0] sm:$0xff]  ;;  %530 = vst [vmem:[%s13496_s5 + $0x9c0] sm:$0xff] %v529_v28 }
  0xaf   : >> { %v533_v30 = vld [vmem:[%s13500_s6 + $0x13c0] sm:$0xff]  ;;  %532 = vst [vmem:[%s13496_s5 + $0x9d0] sm:$0xff] %v531_v29 }
  0xb0   : >> { %v535_v31 = vld [vmem:[%s13500_s6 + $0x13e0] sm:$0xff]  ;;  %534 = vst [vmem:[%s13496_s5 + $0x9e0] sm:$0xff] %v533_v30 }
  0xb1   : >> { %v537_v32 = vld [vmem:[%s13500_s6 + $0x1400] sm:$0xff]  ;;  %536 = vst [vmem:[%s13496_s5 + $0x9f0] sm:$0xff] %v535_v31 }
  0xb2   : >> { %v539_v33 = vld [vmem:[%s13500_s6 + $0x1420] sm:$0xff]  ;;  %538 = vst [vmem:[%s13496_s5 + $0xa00] sm:$0xff] %v537_v32 }
  0xb3   : >> { %v541_v34 = vld [vmem:[%s13500_s6 + $0x1440] sm:$0xff]  ;;  %540 = vst [vmem:[%s13496_s5 + $0xa10] sm:$0xff] %v539_v33 }
  0xb4   : >> { %v543_v35 = vld [vmem:[%s13500_s6 + $0x1460] sm:$0xff]  ;;  %542 = vst [vmem:[%s13496_s5 + $0xa20] sm:$0xff] %v541_v34 }
  0xb5   : >> { %v545_v36 = vld [vmem:[%s13500_s6 + $0x1480] sm:$0xff]  ;;  %544 = vst [vmem:[%s13496_s5 + $0xa30] sm:$0xff] %v543_v35 }
  0xb6   : >> { %v547_v37 = vld [vmem:[%s13500_s6 + $0x14a0] sm:$0xff]  ;;  %546 = vst [vmem:[%s13496_s5 + $0xa40] sm:$0xff] %v545_v36 }
  0xb7   : >> { %v549_v38 = vld [vmem:[%s13500_s6 + $0x14c0] sm:$0xff]  ;;  %548 = vst [vmem:[%s13496_s5 + $0xa50] sm:$0xff] %v547_v37 }
  0xb8   : >> { %v551_v39 = vld [vmem:[%s13500_s6 + $0x14e0] sm:$0xff]  ;;  %550 = vst [vmem:[%s13496_s5 + $0xa60] sm:$0xff] %v549_v38 }
  0xb9   : >> { %v553_v40 = vld [vmem:[%s13500_s6 + $0x1500] sm:$0xff]  ;;  %552 = vst [vmem:[%s13496_s5 + $0xa70] sm:$0xff] %v551_v39 }
  0xba   : >> { %v555_v41 = vld [vmem:[%s13500_s6 + $0x1520] sm:$0xff]  ;;  %554 = vst [vmem:[%s13496_s5 + $0xa80] sm:$0xff] %v553_v40 }
  0xbb   : >> { %v557_v42 = vld [vmem:[%s13500_s6 + $0x1540] sm:$0xff]  ;;  %556 = vst [vmem:[%s13496_s5 + $0xa90] sm:$0xff] %v555_v41 }
  0xbc   : >> { %v559_v43 = vld [vmem:[%s13500_s6 + $0x1560] sm:$0xff]  ;;  %558 = vst [vmem:[%s13496_s5 + $0xaa0] sm:$0xff] %v557_v42 }
  0xbd   : >> { %v561_v44 = vld [vmem:[%s13500_s6 + $0x1580] sm:$0xff]  ;;  %560 = vst [vmem:[%s13496_s5 + $0xab0] sm:$0xff] %v559_v43 }
  0xbe   : >> { %v563_v45 = vld [vmem:[%s13500_s6 + $0x15a0] sm:$0xff]  ;;  %562 = vst [vmem:[%s13496_s5 + $0xac0] sm:$0xff] %v561_v44 }
  0xbf   : >> { %v565_v46 = vld [vmem:[%s13500_s6 + $0x15c0] sm:$0xff]  ;;  %564 = vst [vmem:[%s13496_s5 + $0xad0] sm:$0xff] %v563_v45 }
  0xc0   : >> { %v567_v47 = vld [vmem:[%s13500_s6 + $0x15e0] sm:$0xff]  ;;  %566 = vst [vmem:[%s13496_s5 + $0xae0] sm:$0xff] %v565_v46 }
  0xc1   : >> { %v569_v48 = vld [vmem:[%s13500_s6 + $0x1600] sm:$0xff]  ;;  %568 = vst [vmem:[%s13496_s5 + $0xaf0] sm:$0xff] %v567_v47 }
  0xc2   : >> { %v571_v49 = vld [vmem:[%s13500_s6 + $0x1620] sm:$0xff]  ;;  %570 = vst [vmem:[%s13496_s5 + $0xb00] sm:$0xff] %v569_v48 }
  0xc3   : >> { %v573_v50 = vld [vmem:[%s13500_s6 + $0x1640] sm:$0xff]  ;;  %572 = vst [vmem:[%s13496_s5 + $0xb10] sm:$0xff] %v571_v49 }
  0xc4   : >> { %v575_v51 = vld [vmem:[%s13500_s6 + $0x1660] sm:$0xff]  ;;  %574 = vst [vmem:[%s13496_s5 + $0xb20] sm:$0xff] %v573_v50 }
  0xc5   : >> { %v577_v52 = vld [vmem:[%s13500_s6 + $0x1680] sm:$0xff]  ;;  %576 = vst [vmem:[%s13496_s5 + $0xb30] sm:$0xff] %v575_v51 }
  0xc6   : >> { %v579_v53 = vld [vmem:[%s13500_s6 + $0x16a0] sm:$0xff]  ;;  %578 = vst [vmem:[%s13496_s5 + $0xb40] sm:$0xff] %v577_v52 }
  0xc7   : >> { %v581_v54 = vld [vmem:[%s13500_s6 + $0x16c0] sm:$0xff]  ;;  %580 = vst [vmem:[%s13496_s5 + $0xb50] sm:$0xff] %v579_v53 }
  0xc8   : >> { %v583_v55 = vld [vmem:[%s13500_s6 + $0x16e0] sm:$0xff]  ;;  %582 = vst [vmem:[%s13496_s5 + $0xb60] sm:$0xff] %v581_v54 }
  0xc9   : >> { %v585_v56 = vld [vmem:[%s13500_s6 + $0x1700] sm:$0xff]  ;;  %584 = vst [vmem:[%s13496_s5 + $0xb70] sm:$0xff] %v583_v55 }
  0xca   : >> { %v587_v57 = vld [vmem:[%s13500_s6 + $0x1720] sm:$0xff]  ;;  %586 = vst [vmem:[%s13496_s5 + $0xb80] sm:$0xff] %v585_v56 }
  0xcb   : >> { %v589_v58 = vld [vmem:[%s13500_s6 + $0x1740] sm:$0xff]  ;;  %588 = vst [vmem:[%s13496_s5 + $0xb90] sm:$0xff] %v587_v57 }
  0xcc   : >> { %v591_v59 = vld [vmem:[%s13500_s6 + $0x1760] sm:$0xff]  ;;  %590 = vst [vmem:[%s13496_s5 + $0xba0] sm:$0xff] %v589_v58 }
  0xcd   : >> { %v593_v60 = vld [vmem:[%s13500_s6 + $0x1780] sm:$0xff]  ;;  %592 = vst [vmem:[%s13496_s5 + $0xbb0] sm:$0xff] %v591_v59 }
  0xce   : >> { %v595_v61 = vld [vmem:[%s13500_s6 + $0x17a0] sm:$0xff]  ;;  %594 = vst [vmem:[%s13496_s5 + $0xbc0] sm:$0xff] %v593_v60 }
  0xcf   : >> { %v597_v62 = vld [vmem:[%s13500_s6 + $0x17c0] sm:$0xff]  ;;  %596 = vst [vmem:[%s13496_s5 + $0xbd0] sm:$0xff] %v595_v61 }
  0xd0   : >> { %v599_v63 = vld [vmem:[%s13500_s6 + $0x17e0] sm:$0xff]  ;;  %598 = vst [vmem:[%s13496_s5 + $0xbe0] sm:$0xff] %v597_v62 }
  0xd1   : >> { %v601_v0 = vld [vmem:[%s13500_s6 + $0x1800] sm:$0xff]  ;;  %600 = vst [vmem:[%s13496_s5 + $0xbf0] sm:$0xff] %v599_v63 }
  0xd2   : >> { %v603_v1 = vld [vmem:[%s13500_s6 + $0x1820] sm:$0xff]  ;;  %602 = vst [vmem:[%s13496_s5 + $0xc00] sm:$0xff] %v601_v0 }
  0xd3   : >> { %v605_v2 = vld [vmem:[%s13500_s6 + $0x1840] sm:$0xff]  ;;  %604 = vst [vmem:[%s13496_s5 + $0xc10] sm:$0xff] %v603_v1 }
  0xd4   : >> { %v607_v3 = vld [vmem:[%s13500_s6 + $0x1860] sm:$0xff]  ;;  %606 = vst [vmem:[%s13496_s5 + $0xc20] sm:$0xff] %v605_v2 }
  0xd5   : >> { %v609_v4 = vld [vmem:[%s13500_s6 + $0x1880] sm:$0xff]  ;;  %608 = vst [vmem:[%s13496_s5 + $0xc30] sm:$0xff] %v607_v3 }
  0xd6   : >> { %v611_v5 = vld [vmem:[%s13500_s6 + $0x18a0] sm:$0xff]  ;;  %610 = vst [vmem:[%s13496_s5 + $0xc40] sm:$0xff] %v609_v4 }
  0xd7   : >> { %v613_v6 = vld [vmem:[%s13500_s6 + $0x18c0] sm:$0xff]  ;;  %612 = vst [vmem:[%s13496_s5 + $0xc50] sm:$0xff] %v611_v5 }
  0xd8   : >> { %v615_v7 = vld [vmem:[%s13500_s6 + $0x18e0] sm:$0xff]  ;;  %614 = vst [vmem:[%s13496_s5 + $0xc60] sm:$0xff] %v613_v6 }
  0xd9   : >> { %v617_v8 = vld [vmem:[%s13500_s6 + $0x1900] sm:$0xff]  ;;  %616 = vst [vmem:[%s13496_s5 + $0xc70] sm:$0xff] %v615_v7 }
  0xda   : >> { %v619_v9 = vld [vmem:[%s13500_s6 + $0x1920] sm:$0xff]  ;;  %618 = vst [vmem:[%s13496_s5 + $0xc80] sm:$0xff] %v617_v8 }
  0xdb   : >> { %v621_v10 = vld [vmem:[%s13500_s6 + $0x1940] sm:$0xff]  ;;  %620 = vst [vmem:[%s13496_s5 + $0xc90] sm:$0xff] %v619_v9 }
  0xdc   : >> { %v623_v11 = vld [vmem:[%s13500_s6 + $0x1960] sm:$0xff]  ;;  %622 = vst [vmem:[%s13496_s5 + $0xca0] sm:$0xff] %v621_v10 }
  0xdd   : >> { %v625_v12 = vld [vmem:[%s13500_s6 + $0x1980] sm:$0xff]  ;;  %624 = vst [vmem:[%s13496_s5 + $0xcb0] sm:$0xff] %v623_v11 }
  0xde   : >> { %v627_v13 = vld [vmem:[%s13500_s6 + $0x19a0] sm:$0xff]  ;;  %626 = vst [vmem:[%s13496_s5 + $0xcc0] sm:$0xff] %v625_v12 }
  0xdf   : >> { %v629_v14 = vld [vmem:[%s13500_s6 + $0x19c0] sm:$0xff]  ;;  %628 = vst [vmem:[%s13496_s5 + $0xcd0] sm:$0xff] %v627_v13 }
  0xe0   : >> { %v631_v15 = vld [vmem:[%s13500_s6 + $0x19e0] sm:$0xff]  ;;  %630 = vst [vmem:[%s13496_s5 + $0xce0] sm:$0xff] %v629_v14 }
  0xe1   : >> { %v633_v16 = vld [vmem:[%s13500_s6 + $0x1a00] sm:$0xff]  ;;  %632 = vst [vmem:[%s13496_s5 + $0xcf0] sm:$0xff] %v631_v15 }
  0xe2   : >> { %v635_v17 = vld [vmem:[%s13500_s6 + $0x1a20] sm:$0xff]  ;;  %634 = vst [vmem:[%s13496_s5 + $0xd00] sm:$0xff] %v633_v16 }
  0xe3   : >> { %v637_v18 = vld [vmem:[%s13500_s6 + $0x1a40] sm:$0xff]  ;;  %636 = vst [vmem:[%s13496_s5 + $0xd10] sm:$0xff] %v635_v17 }
  0xe4   : >> { %v639_v19 = vld [vmem:[%s13500_s6 + $0x1a60] sm:$0xff]  ;;  %638 = vst [vmem:[%s13496_s5 + $0xd20] sm:$0xff] %v637_v18 }
  0xe5   : >> { %v641_v20 = vld [vmem:[%s13500_s6 + $0x1a80] sm:$0xff]  ;;  %640 = vst [vmem:[%s13496_s5 + $0xd30] sm:$0xff] %v639_v19 }
  0xe6   : >> { %v643_v21 = vld [vmem:[%s13500_s6 + $0x1aa0] sm:$0xff]  ;;  %642 = vst [vmem:[%s13496_s5 + $0xd40] sm:$0xff] %v641_v20 }
  0xe7   : >> { %v645_v22 = vld [vmem:[%s13500_s6 + $0x1ac0] sm:$0xff]  ;;  %644 = vst [vmem:[%s13496_s5 + $0xd50] sm:$0xff] %v643_v21 }
  0xe8   : >> { %v647_v23 = vld [vmem:[%s13500_s6 + $0x1ae0] sm:$0xff]  ;;  %646 = vst [vmem:[%s13496_s5 + $0xd60] sm:$0xff] %v645_v22 }
  0xe9   : >> { %v649_v24 = vld [vmem:[%s13500_s6 + $0x1b00] sm:$0xff]  ;;  %648 = vst [vmem:[%s13496_s5 + $0xd70] sm:$0xff] %v647_v23 }
  0xea   : >> { %v651_v25 = vld [vmem:[%s13500_s6 + $0x1b20] sm:$0xff]  ;;  %650 = vst [vmem:[%s13496_s5 + $0xd80] sm:$0xff] %v649_v24 }
  0xeb   : >> { %v653_v26 = vld [vmem:[%s13500_s6 + $0x1b40] sm:$0xff]  ;;  %652 = vst [vmem:[%s13496_s5 + $0xd90] sm:$0xff] %v651_v25 }
  0xec   : >> { %v655_v27 = vld [vmem:[%s13500_s6 + $0x1b60] sm:$0xff]  ;;  %654 = vst [vmem:[%s13496_s5 + $0xda0] sm:$0xff] %v653_v26 }
  0xed   : >> { %v657_v28 = vld [vmem:[%s13500_s6 + $0x1b80] sm:$0xff]  ;;  %656 = vst [vmem:[%s13496_s5 + $0xdb0] sm:$0xff] %v655_v27 }
  0xee   : >> { %v659_v29 = vld [vmem:[%s13500_s6 + $0x1ba0] sm:$0xff]  ;;  %658 = vst [vmem:[%s13496_s5 + $0xdc0] sm:$0xff] %v657_v28 }
  0xef   : >> { %v661_v30 = vld [vmem:[%s13500_s6 + $0x1bc0] sm:$0xff]  ;;  %660 = vst [vmem:[%s13496_s5 + $0xdd0] sm:$0xff] %v659_v29 }
  0xf0   : >> { %v663_v31 = vld [vmem:[%s13500_s6 + $0x1be0] sm:$0xff]  ;;  %662 = vst [vmem:[%s13496_s5 + $0xde0] sm:$0xff] %v661_v30 }
  0xf1   : >> { %v665_v32 = vld [vmem:[%s13500_s6 + $0x1c00] sm:$0xff]  ;;  %664 = vst [vmem:[%s13496_s5 + $0xdf0] sm:$0xff] %v663_v31 }
  0xf2   : >> { %v667_v33 = vld [vmem:[%s13500_s6 + $0x1c20] sm:$0xff]  ;;  %666 = vst [vmem:[%s13496_s5 + $0xe00] sm:$0xff] %v665_v32 }
  0xf3   : >> { %v669_v34 = vld [vmem:[%s13500_s6 + $0x1c40] sm:$0xff]  ;;  %668 = vst [vmem:[%s13496_s5 + $0xe10] sm:$0xff] %v667_v33 }
  0xf4   : >> { %v671_v35 = vld [vmem:[%s13500_s6 + $0x1c60] sm:$0xff]  ;;  %670 = vst [vmem:[%s13496_s5 + $0xe20] sm:$0xff] %v669_v34 }
  0xf5   : >> { %v673_v36 = vld [vmem:[%s13500_s6 + $0x1c80] sm:$0xff]  ;;  %672 = vst [vmem:[%s13496_s5 + $0xe30] sm:$0xff] %v671_v35 }
  0xf6   : >> { %v675_v37 = vld [vmem:[%s13500_s6 + $0x1ca0] sm:$0xff]  ;;  %674 = vst [vmem:[%s13496_s5 + $0xe40] sm:$0xff] %v673_v36 }
  0xf7   : >> { %v677_v38 = vld [vmem:[%s13500_s6 + $0x1cc0] sm:$0xff]  ;;  %676 = vst [vmem:[%s13496_s5 + $0xe50] sm:$0xff] %v675_v37 }
  0xf8   : >> { %v679_v39 = vld [vmem:[%s13500_s6 + $0x1ce0] sm:$0xff]  ;;  %678 = vst [vmem:[%s13496_s5 + $0xe60] sm:$0xff] %v677_v38 }
  0xf9   : >> { %v681_v40 = vld [vmem:[%s13500_s6 + $0x1d00] sm:$0xff]  ;;  %680 = vst [vmem:[%s13496_s5 + $0xe70] sm:$0xff] %v679_v39 }
  0xfa   : >> { %v683_v41 = vld [vmem:[%s13500_s6 + $0x1d20] sm:$0xff]  ;;  %682 = vst [vmem:[%s13496_s5 + $0xe80] sm:$0xff] %v681_v40 }
  0xfb   : >> { %v685_v42 = vld [vmem:[%s13500_s6 + $0x1d40] sm:$0xff]  ;;  %684 = vst [vmem:[%s13496_s5 + $0xe90] sm:$0xff] %v683_v41 }
  0xfc   : >> { %v687_v43 = vld [vmem:[%s13500_s6 + $0x1d60] sm:$0xff]  ;;  %686 = vst [vmem:[%s13496_s5 + $0xea0] sm:$0xff] %v685_v42 }
  0xfd   : >> { %v689_v44 = vld [vmem:[%s13500_s6 + $0x1d80] sm:$0xff]  ;;  %688 = vst [vmem:[%s13496_s5 + $0xeb0] sm:$0xff] %v687_v43 }
  0xfe   : >> { %v691_v45 = vld [vmem:[%s13500_s6 + $0x1da0] sm:$0xff]  ;;  %690 = vst [vmem:[%s13496_s5 + $0xec0] sm:$0xff] %v689_v44 }
  0xff   : >> { %v693_v46 = vld [vmem:[%s13500_s6 + $0x1dc0] sm:$0xff]  ;;  %692 = vst [vmem:[%s13496_s5 + $0xed0] sm:$0xff] %v691_v45 }
 0x100   : >> { %v695_v47 = vld [vmem:[%s13500_s6 + $0x1de0] sm:$0xff]  ;;  %694 = vst [vmem:[%s13496_s5 + $0xee0] sm:$0xff] %v693_v46 }
 0x101   : >> { %v697_v48 = vld [vmem:[%s13500_s6 + $0x1e00] sm:$0xff]  ;;  %696 = vst [vmem:[%s13496_s5 + $0xef0] sm:$0xff] %v695_v47 }
 0x102   : >> { %v699_v49 = vld [vmem:[%s13500_s6 + $0x1e20] sm:$0xff]  ;;  %698 = vst [vmem:[%s13496_s5 + $0xf00] sm:$0xff] %v697_v48 }
 0x103   : >> { %v701_v50 = vld [vmem:[%s13500_s6 + $0x1e40] sm:$0xff]  ;;  %700 = vst [vmem:[%s13496_s5 + $0xf10] sm:$0xff] %v699_v49 }
 0x104   : >> { %v703_v51 = vld [vmem:[%s13500_s6 + $0x1e60] sm:$0xff]  ;;  %702 = vst [vmem:[%s13496_s5 + $0xf20] sm:$0xff] %v701_v50 }
 0x105   : >> { %v705_v52 = vld [vmem:[%s13500_s6 + $0x1e80] sm:$0xff]  ;;  %704 = vst [vmem:[%s13496_s5 + $0xf30] sm:$0xff] %v703_v51 }
 0x106   : >> { %v707_v53 = vld [vmem:[%s13500_s6 + $0x1ea0] sm:$0xff]  ;;  %706 = vst [vmem:[%s13496_s5 + $0xf40] sm:$0xff] %v705_v52 }
 0x107   : >> { %v709_v54 = vld [vmem:[%s13500_s6 + $0x1ec0] sm:$0xff]  ;;  %708 = vst [vmem:[%s13496_s5 + $0xf50] sm:$0xff] %v707_v53 }
 0x108   : >> { %v711_v55 = vld [vmem:[%s13500_s6 + $0x1ee0] sm:$0xff]  ;;  %710 = vst [vmem:[%s13496_s5 + $0xf60] sm:$0xff] %v709_v54 }
 0x109   : >> { %v713_v56 = vld [vmem:[%s13500_s6 + $0x1f00] sm:$0xff]  ;;  %712 = vst [vmem:[%s13496_s5 + $0xf70] sm:$0xff] %v711_v55 }
 0x10a   : >> { %v715_v57 = vld [vmem:[%s13500_s6 + $0x1f20] sm:$0xff]  ;;  %714 = vst [vmem:[%s13496_s5 + $0xf80] sm:$0xff] %v713_v56 }
 0x10b   : >> { %v717_v58 = vld [vmem:[%s13500_s6 + $0x1f40] sm:$0xff]  ;;  %716 = vst [vmem:[%s13496_s5 + $0xf90] sm:$0xff] %v715_v57 }
 0x10c   : >> { %v719_v59 = vld [vmem:[%s13500_s6 + $0x1f60] sm:$0xff]  ;;  %718 = vst [vmem:[%s13496_s5 + $0xfa0] sm:$0xff] %v717_v58 }
 0x10d   : >> { %v721_v60 = vld [vmem:[%s13500_s6 + $0x1f80] sm:$0xff]  ;;  %720 = vst [vmem:[%s13496_s5 + $0xfb0] sm:$0xff] %v719_v59 }
 0x10e   : >> { %v723_v61 = vld [vmem:[%s13500_s6 + $0x1fa0] sm:$0xff]  ;;  %722 = vst [vmem:[%s13496_s5 + $0xfc0] sm:$0xff] %v721_v60 }
 0x10f   : >> { %v725_v62 = vld [vmem:[%s13500_s6 + $0x1fc0] sm:$0xff]  ;;  %724 = vst [vmem:[%s13496_s5 + $0xfd0] sm:$0xff] %v723_v61 }
 0x110   : >> { %v727_v63 = vld [vmem:[%s13500_s6 + $0x1fe0] sm:$0xff]  ;;  %726 = vst [vmem:[%s13496_s5 + $0xfe0] sm:$0xff] %v725_v62 }
 0x111   : >> { %v729_v0 = vld [vmem:[%s13500_s6 + $0x2000] sm:$0xff]  ;;  %728 = vst [vmem:[%s13496_s5 + $0xff0] sm:$0xff] %v727_v63 }
 0x112   : >> { %v731_v1 = vld [vmem:[%s13500_s6 + $0x2020] sm:$0xff]  ;;  %730 = vst [vmem:[%s13496_s5 + $0x1000] sm:$0xff] %v729_v0 }
 0x113   : >> { %v733_v2 = vld [vmem:[%s13500_s6 + $0x2040] sm:$0xff]  ;;  %732 = vst [vmem:[%s13496_s5 + $0x1010] sm:$0xff] %v731_v1 }
 0x114   : >> { %v735_v3 = vld [vmem:[%s13500_s6 + $0x2060] sm:$0xff]  ;;  %734 = vst [vmem:[%s13496_s5 + $0x1020] sm:$0xff] %v733_v2 }
 0x115   : >> { %v737_v4 = vld [vmem:[%s13500_s6 + $0x2080] sm:$0xff]  ;;  %736 = vst [vmem:[%s13496_s5 + $0x1030] sm:$0xff] %v735_v3 }
 0x116   : >> { %v739_v5 = vld [vmem:[%s13500_s6 + $0x20a0] sm:$0xff]  ;;  %738 = vst [vmem:[%s13496_s5 + $0x1040] sm:$0xff] %v737_v4 }
 0x117   : >> { %v741_v6 = vld [vmem:[%s13500_s6 + $0x20c0] sm:$0xff]  ;;  %740 = vst [vmem:[%s13496_s5 + $0x1050] sm:$0xff] %v739_v5 }
 0x118   : >> { %v743_v7 = vld [vmem:[%s13500_s6 + $0x20e0] sm:$0xff]  ;;  %742 = vst [vmem:[%s13496_s5 + $0x1060] sm:$0xff] %v741_v6 }
 0x119   : >> { %v745_v8 = vld [vmem:[%s13500_s6 + $0x2100] sm:$0xff]  ;;  %744 = vst [vmem:[%s13496_s5 + $0x1070] sm:$0xff] %v743_v7 }
 0x11a   : >> { %v747_v9 = vld [vmem:[%s13500_s6 + $0x2120] sm:$0xff]  ;;  %746 = vst [vmem:[%s13496_s5 + $0x1080] sm:$0xff] %v745_v8 }
 0x11b   : >> { %v749_v10 = vld [vmem:[%s13500_s6 + $0x2140] sm:$0xff]  ;;  %748 = vst [vmem:[%s13496_s5 + $0x1090] sm:$0xff] %v747_v9 }
 0x11c   : >> { %v751_v11 = vld [vmem:[%s13500_s6 + $0x2160] sm:$0xff]  ;;  %750 = vst [vmem:[%s13496_s5 + $0x10a0] sm:$0xff] %v749_v10 }
 0x11d   : >> { %v753_v12 = vld [vmem:[%s13500_s6 + $0x2180] sm:$0xff]  ;;  %752 = vst [vmem:[%s13496_s5 + $0x10b0] sm:$0xff] %v751_v11 }
 0x11e   : >> { %v755_v13 = vld [vmem:[%s13500_s6 + $0x21a0] sm:$0xff]  ;;  %754 = vst [vmem:[%s13496_s5 + $0x10c0] sm:$0xff] %v753_v12 }
 0x11f   : >> { %v757_v14 = vld [vmem:[%s13500_s6 + $0x21c0] sm:$0xff]  ;;  %756 = vst [vmem:[%s13496_s5 + $0x10d0] sm:$0xff] %v755_v13 }
 0x120   : >> { %v759_v15 = vld [vmem:[%s13500_s6 + $0x21e0] sm:$0xff]  ;;  %758 = vst [vmem:[%s13496_s5 + $0x10e0] sm:$0xff] %v757_v14 }
 0x121   : >> { %v761_v16 = vld [vmem:[%s13500_s6 + $0x2200] sm:$0xff]  ;;  %760 = vst [vmem:[%s13496_s5 + $0x10f0] sm:$0xff] %v759_v15 }
 0x122   : >> { %v763_v17 = vld [vmem:[%s13500_s6 + $0x2220] sm:$0xff]  ;;  %762 = vst [vmem:[%s13496_s5 + $0x1100] sm:$0xff] %v761_v16 }
 0x123   : >> { %v765_v18 = vld [vmem:[%s13500_s6 + $0x2240] sm:$0xff]  ;;  %764 = vst [vmem:[%s13496_s5 + $0x1110] sm:$0xff] %v763_v17 }
 0x124   : >> { %v767_v19 = vld [vmem:[%s13500_s6 + $0x2260] sm:$0xff]  ;;  %766 = vst [vmem:[%s13496_s5 + $0x1120] sm:$0xff] %v765_v18 }
 0x125   : >> { %v769_v20 = vld [vmem:[%s13500_s6 + $0x2280] sm:$0xff]  ;;  %768 = vst [vmem:[%s13496_s5 + $0x1130] sm:$0xff] %v767_v19 }
 0x126   : >> { %v771_v21 = vld [vmem:[%s13500_s6 + $0x22a0] sm:$0xff]  ;;  %770 = vst [vmem:[%s13496_s5 + $0x1140] sm:$0xff] %v769_v20 }
 0x127   : >> { %v773_v22 = vld [vmem:[%s13500_s6 + $0x22c0] sm:$0xff]  ;;  %772 = vst [vmem:[%s13496_s5 + $0x1150] sm:$0xff] %v771_v21 }
 0x128   : >> { %v775_v23 = vld [vmem:[%s13500_s6 + $0x22e0] sm:$0xff]  ;;  %774 = vst [vmem:[%s13496_s5 + $0x1160] sm:$0xff] %v773_v22 }
 0x129   : >> { %v777_v24 = vld [vmem:[%s13500_s6 + $0x2300] sm:$0xff]  ;;  %776 = vst [vmem:[%s13496_s5 + $0x1170] sm:$0xff] %v775_v23 }
 0x12a   : >> { %v779_v25 = vld [vmem:[%s13500_s6 + $0x2320] sm:$0xff]  ;;  %778 = vst [vmem:[%s13496_s5 + $0x1180] sm:$0xff] %v777_v24 }
 0x12b   : >> { %v781_v26 = vld [vmem:[%s13500_s6 + $0x2340] sm:$0xff]  ;;  %780 = vst [vmem:[%s13496_s5 + $0x1190] sm:$0xff] %v779_v25 }
 0x12c   : >> { %v783_v27 = vld [vmem:[%s13500_s6 + $0x2360] sm:$0xff]  ;;  %782 = vst [vmem:[%s13496_s5 + $0x11a0] sm:$0xff] %v781_v26 }
 0x12d   : >> { %v785_v28 = vld [vmem:[%s13500_s6 + $0x2380] sm:$0xff]  ;;  %784 = vst [vmem:[%s13496_s5 + $0x11b0] sm:$0xff] %v783_v27 }
 0x12e   : >> { %v787_v29 = vld [vmem:[%s13500_s6 + $0x23a0] sm:$0xff]  ;;  %786 = vst [vmem:[%s13496_s5 + $0x11c0] sm:$0xff] %v785_v28 }
 0x12f   : >> { %v789_v30 = vld [vmem:[%s13500_s6 + $0x23c0] sm:$0xff]  ;;  %788 = vst [vmem:[%s13496_s5 + $0x11d0] sm:$0xff] %v787_v29 }
 0x130   : >> { %v791_v31 = vld [vmem:[%s13500_s6 + $0x23e0] sm:$0xff]  ;;  %790 = vst [vmem:[%s13496_s5 + $0x11e0] sm:$0xff] %v789_v30 }
 0x131   : >> { %v793_v32 = vld [vmem:[%s13500_s6 + $0x2400] sm:$0xff]  ;;  %792 = vst [vmem:[%s13496_s5 + $0x11f0] sm:$0xff] %v791_v31 }
 0x132   : >> { %v795_v33 = vld [vmem:[%s13500_s6 + $0x2420] sm:$0xff]  ;;  %794 = vst [vmem:[%s13496_s5 + $0x1200] sm:$0xff] %v793_v32 }
 0x133   : >> { %v797_v34 = vld [vmem:[%s13500_s6 + $0x2440] sm:$0xff]  ;;  %796 = vst [vmem:[%s13496_s5 + $0x1210] sm:$0xff] %v795_v33 }
 0x134   : >> { %v799_v35 = vld [vmem:[%s13500_s6 + $0x2460] sm:$0xff]  ;;  %798 = vst [vmem:[%s13496_s5 + $0x1220] sm:$0xff] %v797_v34 }
 0x135   : >> { %v801_v36 = vld [vmem:[%s13500_s6 + $0x2480] sm:$0xff]  ;;  %800 = vst [vmem:[%s13496_s5 + $0x1230] sm:$0xff] %v799_v35 }
 0x136   : >> { %v803_v37 = vld [vmem:[%s13500_s6 + $0x24a0] sm:$0xff]  ;;  %802 = vst [vmem:[%s13496_s5 + $0x1240] sm:$0xff] %v801_v36 }
 0x137   : >> { %v805_v38 = vld [vmem:[%s13500_s6 + $0x24c0] sm:$0xff]  ;;  %804 = vst [vmem:[%s13496_s5 + $0x1250] sm:$0xff] %v803_v37 }
 0x138   : >> { %v807_v39 = vld [vmem:[%s13500_s6 + $0x24e0] sm:$0xff]  ;;  %806 = vst [vmem:[%s13496_s5 + $0x1260] sm:$0xff] %v805_v38 }
 0x139   : >> { %v809_v40 = vld [vmem:[%s13500_s6 + $0x2500] sm:$0xff]  ;;  %808 = vst [vmem:[%s13496_s5 + $0x1270] sm:$0xff] %v807_v39 }
 0x13a   : >> { %v811_v41 = vld [vmem:[%s13500_s6 + $0x2520] sm:$0xff]  ;;  %810 = vst [vmem:[%s13496_s5 + $0x1280] sm:$0xff] %v809_v40 }
 0x13b   : >> { %v813_v42 = vld [vmem:[%s13500_s6 + $0x2540] sm:$0xff]  ;;  %812 = vst [vmem:[%s13496_s5 + $0x1290] sm:$0xff] %v811_v41 }
 0x13c   : >> { %v815_v43 = vld [vmem:[%s13500_s6 + $0x2560] sm:$0xff]  ;;  %814 = vst [vmem:[%s13496_s5 + $0x12a0] sm:$0xff] %v813_v42 }
 0x13d   : >> { %v817_v44 = vld [vmem:[%s13500_s6 + $0x2580] sm:$0xff]  ;;  %816 = vst [vmem:[%s13496_s5 + $0x12b0] sm:$0xff] %v815_v43 }
 0x13e   : >> { %v819_v45 = vld [vmem:[%s13500_s6 + $0x25a0] sm:$0xff]  ;;  %818 = vst [vmem:[%s13496_s5 + $0x12c0] sm:$0xff] %v817_v44 }
 0x13f   : >> { %v821_v46 = vld [vmem:[%s13500_s6 + $0x25c0] sm:$0xff]  ;;  %820 = vst [vmem:[%s13496_s5 + $0x12d0] sm:$0xff] %v819_v45 }
 0x140   : >> { %v823_v47 = vld [vmem:[%s13500_s6 + $0x25e0] sm:$0xff]  ;;  %822 = vst [vmem:[%s13496_s5 + $0x12e0] sm:$0xff] %v821_v46 }
 0x141   : >> { %v825_v48 = vld [vmem:[%s13500_s6 + $0x2600] sm:$0xff]  ;;  %824 = vst [vmem:[%s13496_s5 + $0x12f0] sm:$0xff] %v823_v47 }
 0x142   : >> { %v827_v49 = vld [vmem:[%s13500_s6 + $0x2620] sm:$0xff]  ;;  %826 = vst [vmem:[%s13496_s5 + $0x1300] sm:$0xff] %v825_v48 }
 0x143   : >> { %v829_v50 = vld [vmem:[%s13500_s6 + $0x2640] sm:$0xff]  ;;  %828 = vst [vmem:[%s13496_s5 + $0x1310] sm:$0xff] %v827_v49 }
 0x144   : >> { %v831_v51 = vld [vmem:[%s13500_s6 + $0x2660] sm:$0xff]  ;;  %830 = vst [vmem:[%s13496_s5 + $0x1320] sm:$0xff] %v829_v50 }
 0x145   : >> { %v833_v52 = vld [vmem:[%s13500_s6 + $0x2680] sm:$0xff]  ;;  %832 = vst [vmem:[%s13496_s5 + $0x1330] sm:$0xff] %v831_v51 }
 0x146   : >> { %v835_v53 = vld [vmem:[%s13500_s6 + $0x26a0] sm:$0xff]  ;;  %834 = vst [vmem:[%s13496_s5 + $0x1340] sm:$0xff] %v833_v52 }
 0x147   : >> { %v837_v54 = vld [vmem:[%s13500_s6 + $0x26c0] sm:$0xff]  ;;  %836 = vst [vmem:[%s13496_s5 + $0x1350] sm:$0xff] %v835_v53 }
 0x148   : >> { %v839_v55 = vld [vmem:[%s13500_s6 + $0x26e0] sm:$0xff]  ;;  %838 = vst [vmem:[%s13496_s5 + $0x1360] sm:$0xff] %v837_v54 }
 0x149   : >> { %v841_v56 = vld [vmem:[%s13500_s6 + $0x2700] sm:$0xff]  ;;  %840 = vst [vmem:[%s13496_s5 + $0x1370] sm:$0xff] %v839_v55 }
 0x14a   : >> { %v843_v57 = vld [vmem:[%s13500_s6 + $0x2720] sm:$0xff]  ;;  %842 = vst [vmem:[%s13496_s5 + $0x1380] sm:$0xff] %v841_v56 }
 0x14b   : >> { %v845_v58 = vld [vmem:[%s13500_s6 + $0x2740] sm:$0xff]  ;;  %844 = vst [vmem:[%s13496_s5 + $0x1390] sm:$0xff] %v843_v57 }
 0x14c   : >> { %v847_v59 = vld [vmem:[%s13500_s6 + $0x2760] sm:$0xff]  ;;  %846 = vst [vmem:[%s13496_s5 + $0x13a0] sm:$0xff] %v845_v58 }
 0x14d   : >> { %v849_v60 = vld [vmem:[%s13500_s6 + $0x2780] sm:$0xff]  ;;  %848 = vst [vmem:[%s13496_s5 + $0x13b0] sm:$0xff] %v847_v59 }
 0x14e   : >> { %v851_v61 = vld [vmem:[%s13500_s6 + $0x27a0] sm:$0xff]  ;;  %850 = vst [vmem:[%s13496_s5 + $0x13c0] sm:$0xff] %v849_v60 }
 0x14f   : >> { %v853_v62 = vld [vmem:[%s13500_s6 + $0x27c0] sm:$0xff]  ;;  %852 = vst [vmem:[%s13496_s5 + $0x13d0] sm:$0xff] %v851_v61 }
 0x150   : >> { %v855_v63 = vld [vmem:[%s13500_s6 + $0x27e0] sm:$0xff]  ;;  %854 = vst [vmem:[%s13496_s5 + $0x13e0] sm:$0xff] %v853_v62 }
 0x151   : >> { %v857_v0 = vld [vmem:[%s13500_s6 + $0x2800] sm:$0xff]  ;;  %856 = vst [vmem:[%s13496_s5 + $0x13f0] sm:$0xff] %v855_v63 }
 0x152   : >> { %v859_v1 = vld [vmem:[%s13500_s6 + $0x2820] sm:$0xff]  ;;  %858 = vst [vmem:[%s13496_s5 + $0x1400] sm:$0xff] %v857_v0 }
 0x153   : >> { %v861_v2 = vld [vmem:[%s13500_s6 + $0x2840] sm:$0xff]  ;;  %860 = vst [vmem:[%s13496_s5 + $0x1410] sm:$0xff] %v859_v1 }
 0x154   : >> { %v863_v3 = vld [vmem:[%s13500_s6 + $0x2860] sm:$0xff]  ;;  %862 = vst [vmem:[%s13496_s5 + $0x1420] sm:$0xff] %v861_v2 }
 0x155   : >> { %v865_v4 = vld [vmem:[%s13500_s6 + $0x2880] sm:$0xff]  ;;  %864 = vst [vmem:[%s13496_s5 + $0x1430] sm:$0xff] %v863_v3 }
 0x156   : >> { %v867_v5 = vld [vmem:[%s13500_s6 + $0x28a0] sm:$0xff]  ;;  %866 = vst [vmem:[%s13496_s5 + $0x1440] sm:$0xff] %v865_v4 }
 0x157   : >> { %v869_v6 = vld [vmem:[%s13500_s6 + $0x28c0] sm:$0xff]  ;;  %868 = vst [vmem:[%s13496_s5 + $0x1450] sm:$0xff] %v867_v5 }
 0x158   : >> { %v871_v7 = vld [vmem:[%s13500_s6 + $0x28e0] sm:$0xff]  ;;  %870 = vst [vmem:[%s13496_s5 + $0x1460] sm:$0xff] %v869_v6 }
 0x159   : >> { %v873_v8 = vld [vmem:[%s13500_s6 + $0x2900] sm:$0xff]  ;;  %872 = vst [vmem:[%s13496_s5 + $0x1470] sm:$0xff] %v871_v7 }
 0x15a   : >> { %v875_v9 = vld [vmem:[%s13500_s6 + $0x2920] sm:$0xff]  ;;  %874 = vst [vmem:[%s13496_s5 + $0x1480] sm:$0xff] %v873_v8 }
 0x15b   : >> { %v877_v10 = vld [vmem:[%s13500_s6 + $0x2940] sm:$0xff]  ;;  %876 = vst [vmem:[%s13496_s5 + $0x1490] sm:$0xff] %v875_v9 }
 0x15c   : >> { %v879_v11 = vld [vmem:[%s13500_s6 + $0x2960] sm:$0xff]  ;;  %878 = vst [vmem:[%s13496_s5 + $0x14a0] sm:$0xff] %v877_v10 }
 0x15d   : >> { %v881_v12 = vld [vmem:[%s13500_s6 + $0x2980] sm:$0xff]  ;;  %880 = vst [vmem:[%s13496_s5 + $0x14b0] sm:$0xff] %v879_v11 }
 0x15e   : >> { %v883_v13 = vld [vmem:[%s13500_s6 + $0x29a0] sm:$0xff]  ;;  %882 = vst [vmem:[%s13496_s5 + $0x14c0] sm:$0xff] %v881_v12 }
 0x15f   : >> { %v885_v14 = vld [vmem:[%s13500_s6 + $0x29c0] sm:$0xff]  ;;  %884 = vst [vmem:[%s13496_s5 + $0x14d0] sm:$0xff] %v883_v13 }
 0x160   : >> { %v887_v15 = vld [vmem:[%s13500_s6 + $0x29e0] sm:$0xff]  ;;  %886 = vst [vmem:[%s13496_s5 + $0x14e0] sm:$0xff] %v885_v14 }
 0x161   : >> { %v889_v16 = vld [vmem:[%s13500_s6 + $0x2a00] sm:$0xff]  ;;  %888 = vst [vmem:[%s13496_s5 + $0x14f0] sm:$0xff] %v887_v15 }
 0x162   : >> { %v891_v17 = vld [vmem:[%s13500_s6 + $0x2a20] sm:$0xff]  ;;  %890 = vst [vmem:[%s13496_s5 + $0x1500] sm:$0xff] %v889_v16 }
 0x163   : >> { %v893_v18 = vld [vmem:[%s13500_s6 + $0x2a40] sm:$0xff]  ;;  %892 = vst [vmem:[%s13496_s5 + $0x1510] sm:$0xff] %v891_v17 }
 0x164   : >> { %v895_v19 = vld [vmem:[%s13500_s6 + $0x2a60] sm:$0xff]  ;;  %894 = vst [vmem:[%s13496_s5 + $0x1520] sm:$0xff] %v893_v18 }
 0x165   : >> { %v897_v20 = vld [vmem:[%s13500_s6 + $0x2a80] sm:$0xff]  ;;  %896 = vst [vmem:[%s13496_s5 + $0x1530] sm:$0xff] %v895_v19 }
 0x166   : >> { %v899_v21 = vld [vmem:[%s13500_s6 + $0x2aa0] sm:$0xff]  ;;  %898 = vst [vmem:[%s13496_s5 + $0x1540] sm:$0xff] %v897_v20 }
 0x167   : >> { %v901_v22 = vld [vmem:[%s13500_s6 + $0x2ac0] sm:$0xff]  ;;  %900 = vst [vmem:[%s13496_s5 + $0x1550] sm:$0xff] %v899_v21 }
 0x168   : >> { %v903_v23 = vld [vmem:[%s13500_s6 + $0x2ae0] sm:$0xff]  ;;  %902 = vst [vmem:[%s13496_s5 + $0x1560] sm:$0xff] %v901_v22 }
 0x169   : >> { %v905_v24 = vld [vmem:[%s13500_s6 + $0x2b00] sm:$0xff]  ;;  %904 = vst [vmem:[%s13496_s5 + $0x1570] sm:$0xff] %v903_v23 }
 0x16a   : >> { %v907_v25 = vld [vmem:[%s13500_s6 + $0x2b20] sm:$0xff]  ;;  %906 = vst [vmem:[%s13496_s5 + $0x1580] sm:$0xff] %v905_v24 }
 0x16b   : >> { %v909_v26 = vld [vmem:[%s13500_s6 + $0x2b40] sm:$0xff]  ;;  %908 = vst [vmem:[%s13496_s5 + $0x1590] sm:$0xff] %v907_v25 }
 0x16c   : >> { %v911_v27 = vld [vmem:[%s13500_s6 + $0x2b60] sm:$0xff]  ;;  %910 = vst [vmem:[%s13496_s5 + $0x15a0] sm:$0xff] %v909_v26 }
 0x16d   : >> { %v913_v28 = vld [vmem:[%s13500_s6 + $0x2b80] sm:$0xff]  ;;  %912 = vst [vmem:[%s13496_s5 + $0x15b0] sm:$0xff] %v911_v27 }
 0x16e   : >> { %v915_v29 = vld [vmem:[%s13500_s6 + $0x2ba0] sm:$0xff]  ;;  %914 = vst [vmem:[%s13496_s5 + $0x15c0] sm:$0xff] %v913_v28 }
 0x16f   : >> { %v917_v30 = vld [vmem:[%s13500_s6 + $0x2bc0] sm:$0xff]  ;;  %916 = vst [vmem:[%s13496_s5 + $0x15d0] sm:$0xff] %v915_v29 }
 0x170   : >> { %v919_v31 = vld [vmem:[%s13500_s6 + $0x2be0] sm:$0xff]  ;;  %918 = vst [vmem:[%s13496_s5 + $0x15e0] sm:$0xff] %v917_v30 }
 0x171   : >> { %v921_v32 = vld [vmem:[%s13500_s6 + $0x2c00] sm:$0xff]  ;;  %920 = vst [vmem:[%s13496_s5 + $0x15f0] sm:$0xff] %v919_v31 }
 0x172   : >> { %v923_v33 = vld [vmem:[%s13500_s6 + $0x2c20] sm:$0xff]  ;;  %922 = vst [vmem:[%s13496_s5 + $0x1600] sm:$0xff] %v921_v32 }
 0x173   : >> { %v925_v34 = vld [vmem:[%s13500_s6 + $0x2c40] sm:$0xff]  ;;  %924 = vst [vmem:[%s13496_s5 + $0x1610] sm:$0xff] %v923_v33 }
 0x174   : >> { %v927_v35 = vld [vmem:[%s13500_s6 + $0x2c60] sm:$0xff]  ;;  %926 = vst [vmem:[%s13496_s5 + $0x1620] sm:$0xff] %v925_v34 }
 0x175   : >> { %v929_v36 = vld [vmem:[%s13500_s6 + $0x2c80] sm:$0xff]  ;;  %928 = vst [vmem:[%s13496_s5 + $0x1630] sm:$0xff] %v927_v35 }
 0x176   : >> { %v931_v37 = vld [vmem:[%s13500_s6 + $0x2ca0] sm:$0xff]  ;;  %930 = vst [vmem:[%s13496_s5 + $0x1640] sm:$0xff] %v929_v36 }
 0x177   : >> { %v933_v38 = vld [vmem:[%s13500_s6 + $0x2cc0] sm:$0xff]  ;;  %932 = vst [vmem:[%s13496_s5 + $0x1650] sm:$0xff] %v931_v37 }
 0x178   : >> { %v935_v39 = vld [vmem:[%s13500_s6 + $0x2ce0] sm:$0xff]  ;;  %934 = vst [vmem:[%s13496_s5 + $0x1660] sm:$0xff] %v933_v38 }
 0x179   : >> { %v937_v40 = vld [vmem:[%s13500_s6 + $0x2d00] sm:$0xff]  ;;  %936 = vst [vmem:[%s13496_s5 + $0x1670] sm:$0xff] %v935_v39 }
 0x17a   : >> { %v939_v41 = vld [vmem:[%s13500_s6 + $0x2d20] sm:$0xff]  ;;  %938 = vst [vmem:[%s13496_s5 + $0x1680] sm:$0xff] %v937_v40 }
 0x17b   : >> { %v941_v42 = vld [vmem:[%s13500_s6 + $0x2d40] sm:$0xff]  ;;  %940 = vst [vmem:[%s13496_s5 + $0x1690] sm:$0xff] %v939_v41 }
 0x17c   : >> { %v943_v43 = vld [vmem:[%s13500_s6 + $0x2d60] sm:$0xff]  ;;  %942 = vst [vmem:[%s13496_s5 + $0x16a0] sm:$0xff] %v941_v42 }
 0x17d   : >> { %v945_v44 = vld [vmem:[%s13500_s6 + $0x2d80] sm:$0xff]  ;;  %944 = vst [vmem:[%s13496_s5 + $0x16b0] sm:$0xff] %v943_v43 }
 0x17e   : >> { %v947_v45 = vld [vmem:[%s13500_s6 + $0x2da0] sm:$0xff]  ;;  %946 = vst [vmem:[%s13496_s5 + $0x16c0] sm:$0xff] %v945_v44 }
 0x17f   : >> { %v949_v46 = vld [vmem:[%s13500_s6 + $0x2dc0] sm:$0xff]  ;;  %948 = vst [vmem:[%s13496_s5 + $0x16d0] sm:$0xff] %v947_v45 }
 0x180   : >> { %v951_v47 = vld [vmem:[%s13500_s6 + $0x2de0] sm:$0xff]  ;;  %950 = vst [vmem:[%s13496_s5 + $0x16e0] sm:$0xff] %v949_v46 }
 0x181   : >> { %v953_v48 = vld [vmem:[%s13500_s6 + $0x2e00] sm:$0xff]  ;;  %952 = vst [vmem:[%s13496_s5 + $0x16f0] sm:$0xff] %v951_v47 }
 0x182   : >> { %v955_v49 = vld [vmem:[%s13500_s6 + $0x2e20] sm:$0xff]  ;;  %954 = vst [vmem:[%s13496_s5 + $0x1700] sm:$0xff] %v953_v48 }
 0x183   : >> { %v957_v50 = vld [vmem:[%s13500_s6 + $0x2e40] sm:$0xff]  ;;  %956 = vst [vmem:[%s13496_s5 + $0x1710] sm:$0xff] %v955_v49 }
 0x184   : >> { %v959_v51 = vld [vmem:[%s13500_s6 + $0x2e60] sm:$0xff]  ;;  %958 = vst [vmem:[%s13496_s5 + $0x1720] sm:$0xff] %v957_v50 }
 0x185   : >> { %v961_v52 = vld [vmem:[%s13500_s6 + $0x2e80] sm:$0xff]  ;;  %960 = vst [vmem:[%s13496_s5 + $0x1730] sm:$0xff] %v959_v51 }
 0x186   : >> { %v963_v53 = vld [vmem:[%s13500_s6 + $0x2ea0] sm:$0xff]  ;;  %962 = vst [vmem:[%s13496_s5 + $0x1740] sm:$0xff] %v961_v52 }
 0x187   : >> { %v965_v54 = vld [vmem:[%s13500_s6 + $0x2ec0] sm:$0xff]  ;;  %964 = vst [vmem:[%s13496_s5 + $0x1750] sm:$0xff] %v963_v53 }
 0x188   : >> { %v967_v55 = vld [vmem:[%s13500_s6 + $0x2ee0] sm:$0xff]  ;;  %966 = vst [vmem:[%s13496_s5 + $0x1760] sm:$0xff] %v965_v54 }
 0x189   : >> { %v969_v56 = vld [vmem:[%s13500_s6 + $0x2f00] sm:$0xff]  ;;  %968 = vst [vmem:[%s13496_s5 + $0x1770] sm:$0xff] %v967_v55 }
 0x18a   : >> { %v971_v57 = vld [vmem:[%s13500_s6 + $0x2f20] sm:$0xff]  ;;  %970 = vst [vmem:[%s13496_s5 + $0x1780] sm:$0xff] %v969_v56 }
 0x18b   : >> { %v973_v58 = vld [vmem:[%s13500_s6 + $0x2f40] sm:$0xff]  ;;  %972 = vst [vmem:[%s13496_s5 + $0x1790] sm:$0xff] %v971_v57 }
 0x18c   : >> { %v975_v59 = vld [vmem:[%s13500_s6 + $0x2f60] sm:$0xff]  ;;  %974 = vst [vmem:[%s13496_s5 + $0x17a0] sm:$0xff] %v973_v58 }
 0x18d   : >> { %v977_v60 = vld [vmem:[%s13500_s6 + $0x2f80] sm:$0xff]  ;;  %976 = vst [vmem:[%s13496_s5 + $0x17b0] sm:$0xff] %v975_v59 }
 0x18e   : >> { %v979_v61 = vld [vmem:[%s13500_s6 + $0x2fa0] sm:$0xff]  ;;  %978 = vst [vmem:[%s13496_s5 + $0x17c0] sm:$0xff] %v977_v60 }
 0x18f   : >> { %v981_v62 = vld [vmem:[%s13500_s6 + $0x2fc0] sm:$0xff]  ;;  %980 = vst [vmem:[%s13496_s5 + $0x17d0] sm:$0xff] %v979_v61 }
 0x190   : >> { %v983_v63 = vld [vmem:[%s13500_s6 + $0x2fe0] sm:$0xff]  ;;  %982 = vst [vmem:[%s13496_s5 + $0x17e0] sm:$0xff] %v981_v62 }
 0x191   : >> { %v985_v0 = vld [vmem:[%s13500_s6 + $0x3000] sm:$0xff]  ;;  %984 = vst [vmem:[%s13496_s5 + $0x17f0] sm:$0xff] %v983_v63 }
 0x192   : >> { %v987_v1 = vld [vmem:[%s13500_s6 + $0x3020] sm:$0xff]  ;;  %986 = vst [vmem:[%s13496_s5 + $0x1800] sm:$0xff] %v985_v0 }
 0x193   : >> { %v989_v2 = vld [vmem:[%s13500_s6 + $0x3040] sm:$0xff]  ;;  %988 = vst [vmem:[%s13496_s5 + $0x1810] sm:$0xff] %v987_v1 }
 0x194   : >> { %v991_v3 = vld [vmem:[%s13500_s6 + $0x3060] sm:$0xff]  ;;  %990 = vst [vmem:[%s13496_s5 + $0x1820] sm:$0xff] %v989_v2 }
 0x195   : >> { %v993_v4 = vld [vmem:[%s13500_s6 + $0x3080] sm:$0xff]  ;;  %992 = vst [vmem:[%s13496_s5 + $0x1830] sm:$0xff] %v991_v3  ;;  %212 = sbr.rel (!%p210_p7) target bundleno = 17 (0x11), region = 127 }
 0x196   : >> { %v995_v5 = vld [vmem:[%s13500_s6 + $0x30a0] sm:$0xff]  ;;  %994 = vst [vmem:[%s13496_s5 + $0x1840] sm:$0xff] %v993_v4 }
 0x197   : >> { %v997_v6 = vld [vmem:[%s13500_s6 + $0x30c0] sm:$0xff]  ;;  %996 = vst [vmem:[%s13496_s5 + $0x1850] sm:$0xff] %v995_v5 }
 0x198   : >> { %v999_v7 = vld [vmem:[%s13500_s6 + $0x30e0] sm:$0xff]  ;;  %998 = vst [vmem:[%s13496_s5 + $0x1860] sm:$0xff] %v997_v6  ;;  %s16309_s6 = smov %s14143_s11 }
 0x199   : >> { %1000 = vst [vmem:[%s13496_s5 + $0x1870] sm:$0xff] %v999_v7  ;;  %s16308_s5 = smov %s14147_s12 }
 0x19a PF: > { %p9265_p8 = scmp.ge.s32.totalorder %s13492_s19, 1  ;;  %p2629_p9 = scmp.lt.s32.totalorder %s13492_s19, 3 }
 0x19c   : > { %p2630_p10 = pnand %p9265_p8, %p2629_p9 }
 0x19d   : > { %s2636_s13 = sand.u32 (!%p2630_p10), 1, %s13476_s15   ;;  %s9266_s28 = sshll.u32 (!%p2630_p10), %s13484_s17, 2 }
 0x19e   : > { %2633 = sbr.rel (%p2630_p10) target bundleno = 1501 (0x5dd), region = 69  ;;  %p14817_p11 = scmp.lt.s32.totalorder (!%p2630_p10), %s9266_s28, 7 }
 0x19f   : > { %s13358_s14 = smul.u32 (!%p2630_p10), 6272, %s2636_s13  ;;  %s9267_s9 = sshll.u32 (!%p2630_p10), %s13484_s17, 6 }
 0x1a0   : > { %p16192_p12 = scmp.lt.s32.totalorder (!%p2630_p10), %s9267_s9, 127  ;;  %p2699_p13 = scmp.lt.s32.totalorder (!%p2630_p10), %s13484_s17, 1 }
 0x1a1   : > { %s14417_s21 = scalar_lea.vmem (!%p2630_p10), [#allocation3], %s13358_s14 }
 0x1a3   : > { %v9384_v8 = vld [vmem:[%s14417_s21 + $0xe0] sm:$0xf]  ;;  %v12571_v9 = vld [vmem:[%s14417_s21 + $0xec] sm:$0xf0]  ;;  %s16322_s28 = smov (!%p14817_p11, %s9266_s28), 7  ;;  %vm7488_vm0 = vcmask 523264  }
 0x1a4   : > { %v9512_v10 = vld [vmem:[%s14417_s21 + $0x1e0] sm:$0xf]  ;;  %v9385_v11 = vor.u32 %v12571_v9, %v9384_v8  ;;  %v12603_v12 = vld [vmem:[%s14417_s21 + $0x1ec] sm:$0xf0]  ;;  %s14856_s6 = scalar_lea.vmem %s16303_s2, %s16322_s28  ;;  %s16324_s9 = smov (!%p16192_p12, %s9267_s9), 127  ;;  %vm2711_vm1 = vcmask 74752  }
 0x1a5   : > { %v9640_v13 = vld [vmem:[%s14417_s21 + $0x2e0] sm:$0xf]  ;;  %v12635_v14 = vld [vmem:[%s14417_s21 + $0x2ec] sm:$0xf0]  ;;  %v9513_v15 = vor.u32 %v12603_v12, %v9512_v10  ;;  %s9268_s11 = sshll.u32 %s16324_s9, 2  ;;  %s16326_s17 = smov (!%p2699_p13, %s13484_s17), 1 }
 0x1a6   : > { %v9641_v16 = vor.u32 %v12635_v14, %v9640_v13  ;;  %v9768_v17 = vld [vmem:[%s14417_s21 + $0x3e0] sm:$0xf]  ;;  %v12667_v18 = vld [vmem:[%s14417_s21 + $0x3ec] sm:$0xf0]  ;;  %7491 = vmatpush.bf16.msra.mxu0 %v9385_v11  ;;  %s16231_s14 = scalar_lea.vmem %s16304_s3, %s9268_s11 }
 0x1a7   : > { %v9368_v19 = vld [vmem:[%s14417_s21 + $0xc0] sm:$0xf]  ;;  %v9769_v20 = vor.u32 %v12667_v18, %v9768_v17  ;;  %v12567_v21 = vld [vmem:[%s14417_s21 + $0xcc] sm:$0xf0]  ;;  %7504 = vmatpush.bf16.msra.mxu1 %v9513_v15 }
 0x1a8   : > { %v9496_v22 = vld [vmem:[%s14417_s21 + $0x1c0] sm:$0xf]  ;;  %v12599_v23 = vld [vmem:[%s14417_s21 + $0x1cc] sm:$0xf0]  ;;  %7517 = vmatpush.bf16.msra.mxu2 %v9641_v16  ;;  %v9369_v24 = vor.u32 %v12567_v21, %v9368_v19 }
 0x1a9   : > { %v9497_v25 = vor.u32 %v12599_v23, %v9496_v22  ;;  %v9624_v26 = vld [vmem:[%s14417_s21 + $0x2c0] sm:$0xf]  ;;  %v12631_v27 = vld [vmem:[%s14417_s21 + $0x2cc] sm:$0xf0]  ;;  %7530 = vmatpush.bf16.msra.mxu3 %v9769_v20 }
 0x1aa   : > { %v9752_v28 = vld [vmem:[%s14417_s21 + $0x3c0] sm:$0xf]  ;;  %v9625_v29 = vor.u32 %v12631_v27, %v9624_v26  ;;  %v12663_v30 = vld [vmem:[%s14417_s21 + $0x3cc] sm:$0xf0]  ;;  %7492 = vmatpush.bf16.msra.mxu0 %v9369_v24 }
 0x1ab   : > { %v9352_v31 = vld [vmem:[%s14417_s21 + $0xa0] sm:$0xf]  ;;  %v12563_v32 = vld [vmem:[%s14417_s21 + $0xac] sm:$0xf0]  ;;  %v9753_v33 = vor.u32 %v12663_v30, %v9752_v28  ;;  %7505 = vmatpush.bf16.msra.mxu1 %v9497_v25 }
 0x1ac   : > { %v9480_v34 = vld [vmem:[%s14417_s21 + $0x1a0] sm:$0xf]  ;;  %v12595_v35 = vld [vmem:[%s14417_s21 + $0x1ac] sm:$0xf0]  ;;  %v9353_v37 = vor.u32 %v12563_v32, %v9352_v31  ;;  %7518 = vmatpush.bf16.msra.mxu2 %v9625_v29 }
 0x1ad   : > { %v9608_v36 = vld [vmem:[%s14417_s21 + $0x2a0] sm:$0xf]  ;;  %v12627_v38 = vld [vmem:[%s14417_s21 + $0x2ac] sm:$0xf0]  ;;  %v9481_v41 = vor.u32 %v12595_v35, %v9480_v34  ;;  %7531 = vmatpush.bf16.msra.mxu3 %v9753_v33 }
 0x1ae   : > { %v9736_v39 = vld [vmem:[%s14417_s21 + $0x3a0] sm:$0xf]  ;;  %v12659_v40 = vld [vmem:[%s14417_s21 + $0x3ac] sm:$0xf0]  ;;  %v9609_v42 = vor.u32 %v12627_v38, %v9608_v36  ;;  %7493 = vmatpush.bf16.msra.mxu0 %v9353_v37 }
 0x1af   : > { %v9336_v43 = vld [vmem:[%s14417_s21 + $0x80] sm:$0xf]  ;;  %v12559_v44 = vld [vmem:[%s14417_s21 + $0x8c] sm:$0xf0]  ;;  %v9737_v46 = vor.u32 %v12659_v40, %v9736_v39  ;;  %7506 = vmatpush.bf16.msra.mxu1 %v9481_v41 }
 0x1b0   : > { %v9464_v45 = vld [vmem:[%s14417_s21 + $0x180] sm:$0xf]  ;;  %v12591_v47 = vld [vmem:[%s14417_s21 + $0x18c] sm:$0xf0]  ;;  %v9337_v52 = vor.u32 %v12559_v44, %v9336_v43  ;;  %7519 = vmatpush.bf16.msra.mxu2 %v9609_v42 }
 0x1b1   : > { %v9592_v48 = vld [vmem:[%s14417_s21 + $0x280] sm:$0xf]  ;;  %v12623_v49 = vld [vmem:[%s14417_s21 + $0x28c] sm:$0xf0]  ;;  %v9465_v53 = vor.u32 %v12591_v47, %v9464_v45  ;;  %7532 = vmatpush.bf16.msra.mxu3 %v9737_v46 }
 0x1b2   : > { %v9720_v50 = vld [vmem:[%s14417_s21 + $0x380] sm:$0xf]  ;;  %v12655_v51 = vld [vmem:[%s14417_s21 + $0x38c] sm:$0xf0]  ;;  %v9593_v54 = vor.u32 %v12623_v49, %v9592_v48  ;;  %7494 = vmatpush.bf16.msra.mxu0 %v9337_v52 }
 0x1b3   : > { %v9320_v55 = vld [vmem:[%s14417_s21 + $0x60] sm:$0xf]  ;;  %v12555_v56 = vld [vmem:[%s14417_s21 + $0x6c] sm:$0xf0]  ;;  %v9721_v58 = vor.u32 %v12655_v51, %v9720_v50  ;;  %7507 = vmatpush.bf16.msra.mxu1 %v9465_v53 }
 0x1b4   : > { %v9448_v57 = vld [vmem:[%s14417_s21 + $0x160] sm:$0xf]  ;;  %v12587_v59 = vld [vmem:[%s14417_s21 + $0x16c] sm:$0xf0]  ;;  %v9321_v0 = vor.u32 %v12555_v56, %v9320_v55  ;;  %7520 = vmatpush.bf16.msra.mxu2 %v9593_v54 }
 0x1b5   : > { %v9576_v60 = vld [vmem:[%s14417_s21 + $0x260] sm:$0xf]  ;;  %v12619_v61 = vld [vmem:[%s14417_s21 + $0x26c] sm:$0xf0]  ;;  %v9449_v1 = vor.u32 %v12587_v59, %v9448_v57  ;;  %7533 = vmatpush.bf16.msra.mxu3 %v9721_v58 }
 0x1b6   : > { %v9704_v62 = vld [vmem:[%s14417_s21 + $0x360] sm:$0xf]  ;;  %v12651_v63 = vld [vmem:[%s14417_s21 + $0x36c] sm:$0xf0]  ;;  %v9577_v2 = vor.u32 %v12619_v61, %v9576_v60  ;;  %7495 = vmatpush.bf16.msra.mxu0 %v9321_v0 }
 0x1b7   : > { %v9304_v3 = vld [vmem:[%s14417_s21 + $0x40] sm:$0xf]  ;;  %v12551_v4 = vld [vmem:[%s14417_s21 + $0x4c] sm:$0xf0]  ;;  %v9705_v6 = vor.u32 %v12651_v63, %v9704_v62  ;;  %7508 = vmatpush.bf16.msra.mxu1 %v9449_v1 }
 0x1b8   : > { %v9432_v5 = vld [vmem:[%s14417_s21 + $0x140] sm:$0xf]  ;;  %v12583_v7 = vld [vmem:[%s14417_s21 + $0x14c] sm:$0xf0]  ;;  %v9305_v12 = vor.u32 %v12551_v4, %v9304_v3  ;;  %7521 = vmatpush.bf16.msra.mxu2 %v9577_v2  ;;  %v2713_v3 = vld [vmem:[%s16301_s0] sm:$0xff] }
 0x1b9   : > { %v9560_v8 = vld [vmem:[%s14417_s21 + $0x240] sm:$0xf]  ;;  %v12615_v9 = vld [vmem:[%s14417_s21 + $0x24c] sm:$0xf0]  ;;  %v9433_v13 = vor.u32 %v12583_v7, %v9432_v5  ;;  %7534 = vmatpush.bf16.msra.mxu3 %v9705_v6  ;;  %3512 = vst [vmem:[#allocation1] ss:$9 sm:$0xff] %v2713_v3 }
 0x1ba   : > { %v9688_v10 = vld [vmem:[%s14417_s21 + $0x340] sm:$0xf]  ;;  %v12647_v11 = vld [vmem:[%s14417_s21 + $0x34c] sm:$0xf0]  ;;  %v9561_v14 = vor.u32 %v12615_v9, %v9560_v8  ;;  %7496 = vmatpush.bf16.msra.mxu0 %v9305_v12 }
 0x1bb   : > { %v9288_v15 = vld [vmem:[%s14417_s21 + $0x20] sm:$0xf]  ;;  %v12547_v16 = vld [vmem:[%s14417_s21 + $0x2c] sm:$0xf0]  ;;  %v9689_v18 = vor.u32 %v12647_v11, %v9688_v10  ;;  %7509 = vmatpush.bf16.msra.mxu1 %v9433_v13 }
 0x1bc   : > { %v9416_v17 = vld [vmem:[%s14417_s21 + $0x120] sm:$0xf]  ;;  %v12579_v19 = vld [vmem:[%s14417_s21 + $0x12c] sm:$0xf0]  ;;  %v9289_v24 = vor.u32 %v12547_v16, %v9288_v15  ;;  %7522 = vmatpush.bf16.msra.mxu2 %v9561_v14 }
 0x1bd   : > { %v9544_v20 = vld [vmem:[%s14417_s21 + $0x220] sm:$0xf]  ;;  %v12611_v21 = vld [vmem:[%s14417_s21 + $0x22c] sm:$0xf0]  ;;  %v9417_v27 = vor.u32 %v12579_v19, %v9416_v17  ;;  %7535 = vmatpush.bf16.msra.mxu3 %v9689_v18 }
 0x1be   : > { %v9672_v22 = vld [vmem:[%s14417_s21 + $0x320] sm:$0xf]  ;;  %v12643_v23 = vld [vmem:[%s14417_s21 + $0x32c] sm:$0xf0]  ;;  %v9545_v28 = vor.u32 %v12611_v21, %v9544_v20  ;;  %7497 = vmatpush.bf16.msra.mxu0 %v9289_v24 }
 0x1bf   : > { %v9272_v25 = vld [vmem:[%s14417_s21] sm:$0xf]  ;;  %v12543_v26 = vld [vmem:[%s14417_s21 + $0xc] sm:$0xf0]  ;;  %v9673_v32 = vor.u32 %v12643_v23, %v9672_v22  ;;  %7510 = vmatpush.bf16.msra.mxu1 %v9417_v27 }
 0x1c0   : > { %v9400_v29 = vld [vmem:[%s14417_s21 + $0x100] sm:$0xf]  ;;  %v12575_v30 = vld [vmem:[%s14417_s21 + $0x10c] sm:$0xf0]  ;;  %v9273_v39 = vor.u32 %v12543_v26, %v9272_v25  ;;  %7523 = vmatpush.bf16.msra.mxu2 %v9545_v28  ;;  %v14522_v28 = vld [vmem:[#allocation1 + $0x12] sm:$0xff] }
 0x1c1   : > { %v9528_v31 = vld [vmem:[%s14417_s21 + $0x200] sm:$0xf]  ;;  %v12607_v33 = vld [vmem:[%s14417_s21 + $0x20c] sm:$0xf0]  ;;  %v9401_v43 = vor.u32 %v12575_v30, %v9400_v29  ;;  %7536 = vmatpush.bf16.msra.mxu3 %v9673_v32  ;;  %v14524_v29 = vld [vmem:[#allocation1] sm:$0xff] }
 0x1c2   : > { %v9656_v34 = vld [vmem:[%s14417_s21 + $0x300] sm:$0xf]  ;;  %v12639_v35 = vld [vmem:[%s14417_s21 + $0x30c] sm:$0xf0]  ;;  %v9529_v44 = vor.u32 %v12607_v33, %v9528_v31  ;;  %7498 = vmatpush.bf16.msra.mxu0 %v9273_v39 }
 0x1c3   : > { %v9896_v36 = vld [vmem:[%s14417_s21 + $0x4e0] sm:$0xf]  ;;  %v12699_v37 = vld [vmem:[%s14417_s21 + $0x4ec] sm:$0xf0]  ;;  %v9657_v47 = vor.u32 %v12639_v35, %v9656_v34  ;;  %7511 = vmatpush.bf16.msra.mxu1 %v9401_v43 }
 0x1c4   : > { %v10024_v38 = vld [vmem:[%s14417_s21 + $0x5e0] sm:$0xf]  ;;  %v12731_v40 = vld [vmem:[%s14417_s21 + $0x5ec] sm:$0xf0]  ;;  %v9897_v48 = vor.u32 %v12699_v37, %v9896_v36  ;;  %7524 = vmatpush.bf16.msra.mxu2 %v9529_v44 }
 0x1c5   : > { %v10152_v41 = vld [vmem:[%s14417_s21 + $0x6e0] sm:$0xf]  ;;  %v12763_v42 = vld [vmem:[%s14417_s21 + $0x6ec] sm:$0xf0]  ;;  %v10025_v49 = vor.u32 %v12731_v40, %v10024_v38  ;;  %7537 = vmatpush.bf16.msra.mxu3 %v9657_v47  ;;  %7499 = vmatmul.bf16.vlgmr.msra.gmra.mxu0 %v14524_v29 }
 0x1c6   : > { %v10280_v45 = vld [vmem:[%s14417_s21 + $0x7e0] sm:$0xf]  ;;  %v12795_v46 = vld [vmem:[%s14417_s21 + $0x7ec] sm:$0xf0]  ;;  %v10153_v50 = vor.u32 %v12763_v42, %v10152_v41  ;;  %7543 = vmatpush.bf16.msrb.mxu0 %v9897_v48 }
 0x1c7   : > { %v9880_v51 = vld [vmem:[%s14417_s21 + $0x4c0] sm:$0xf]  ;;  %v12695_v52 = vld [vmem:[%s14417_s21 + $0x4cc] sm:$0xf0]  ;;  %v10281_v54 = vor.u32 %v12795_v46, %v10280_v45  ;;  %7556 = vmatpush.bf16.msrb.mxu1 %v10025_v49  ;;  %7525 = vmatmul.bf16.vlgmr.msra.gmra.mxu2 %v14522_v28 }
 0x1c8   : > { %v10008_v53 = vld [vmem:[%s14417_s21 + $0x5c0] sm:$0xf]  ;;  %v12727_v55 = vld [vmem:[%s14417_s21 + $0x5cc] sm:$0xf0]  ;;  %v9881_v60 = vor.u32 %v12695_v52, %v9880_v51  ;;  %7569 = vmatpush.bf16.msrb.mxu2 %v10153_v50 }
 0x1c9   : > { %v10136_v56 = vld [vmem:[%s14417_s21 + $0x6c0] sm:$0xf]  ;;  %v12759_v57 = vld [vmem:[%s14417_s21 + $0x6cc] sm:$0xf0]  ;;  %v10009_v63 = vor.u32 %v12727_v55, %v10008_v53  ;;  %7582 = vmatpush.bf16.msrb.mxu3 %v10281_v54 }
 0x1ca   : > { %v10264_v58 = vld [vmem:[%s14417_s21 + $0x7c0] sm:$0xf]  ;;  %v12791_v59 = vld [vmem:[%s14417_s21 + $0x7cc] sm:$0xf0]  ;;  %v10137_v0 = vor.u32 %v12759_v57, %v10136_v56  ;;  %7544 = vmatpush.bf16.msrb.mxu0 %v9881_v60 }
 0x1cb   : > { %v9864_v61 = vld [vmem:[%s14417_s21 + $0x4a0] sm:$0xf]  ;;  %v12691_v62 = vld [vmem:[%s14417_s21 + $0x4ac] sm:$0xf0]  ;;  %v10265_v4 = vor.u32 %v12791_v59, %v10264_v58  ;;  %7557 = vmatpush.bf16.msrb.mxu1 %v10009_v63 }
 0x1cc   : > { %v9992_v1 = vld [vmem:[%s14417_s21 + $0x5a0] sm:$0xf]  ;;  %v12723_v2 = vld [vmem:[%s14417_s21 + $0x5ac] sm:$0xf0]  ;;  %v9865_v9 = vor.u32 %v12691_v62, %v9864_v61  ;;  %7570 = vmatpush.bf16.msrb.mxu2 %v10137_v0 }
 0x1cd   : > { %v10120_v5 = vld [vmem:[%s14417_s21 + $0x6a0] sm:$0xf]  ;;  %v12755_v6 = vld [vmem:[%s14417_s21 + $0x6ac] sm:$0xf0]  ;;  %v9993_v10 = vor.u32 %v12723_v2, %v9992_v1  ;;  %7583 = vmatpush.bf16.msrb.mxu3 %v10265_v4 }
 0x1ce   : > { %v10248_v7 = vld [vmem:[%s14417_s21 + $0x7a0] sm:$0xf]  ;;  %v12787_v8 = vld [vmem:[%s14417_s21 + $0x7ac] sm:$0xf0]  ;;  %v10121_v11 = vor.u32 %v12755_v6, %v10120_v5  ;;  %7545 = vmatpush.bf16.msrb.mxu0 %v9865_v9  ;;  %v14567_v9 = vld [vmem:[#allocation1 + $0x3f] sm:$0xff] }
 0x1cf   : > { %v9848_v12 = vld [vmem:[%s14417_s21 + $0x480] sm:$0xf]  ;;  %v12687_v13 = vld [vmem:[%s14417_s21 + $0x48c] sm:$0xf0]  ;;  %v10249_v15 = vor.u32 %v12787_v8, %v10248_v7  ;;  %7558 = vmatpush.bf16.msrb.mxu1 %v9993_v10 }
 0x1d0   : > { %v9976_v14 = vld [vmem:[%s14417_s21 + $0x580] sm:$0xf]  ;;  %v12719_v16 = vld [vmem:[%s14417_s21 + $0x58c] sm:$0xf0]  ;;  %v9849_v22 = vor.u32 %v12687_v13, %v9848_v12  ;;  %7571 = vmatpush.bf16.msrb.mxu2 %v10121_v11 }
 0x1d1   : > { %v10104_v17 = vld [vmem:[%s14417_s21 + $0x680] sm:$0xf]  ;;  %v12751_v18 = vld [vmem:[%s14417_s21 + $0x68c] sm:$0xf0]  ;;  %v9977_v26 = vor.u32 %v12719_v16, %v9976_v14  ;;  %7584 = vmatpush.bf16.msrb.mxu3 %v10249_v15 }
 0x1d2   : > { %v10232_v19 = vld [vmem:[%s14417_s21 + $0x780] sm:$0xf]  ;;  %v12783_v20 = vld [vmem:[%s14417_s21 + $0x78c] sm:$0xf0]  ;;  %v10105_v27 = vor.u32 %v12751_v18, %v10104_v17  ;;  %7546 = vmatpush.bf16.msrb.mxu0 %v9849_v22 }
 0x1d3   : > { %v9832_v21 = vld [vmem:[%s14417_s21 + $0x460] sm:$0xf]  ;;  %v12683_v23 = vld [vmem:[%s14417_s21 + $0x46c] sm:$0xf0]  ;;  %v10233_v31 = vor.u32 %v12783_v20, %v10232_v19  ;;  %7559 = vmatpush.bf16.msrb.mxu1 %v9977_v26 }
 0x1d4   : > { %v9960_v24 = vld [vmem:[%s14417_s21 + $0x560] sm:$0xf]  ;;  %v12715_v25 = vld [vmem:[%s14417_s21 + $0x56c] sm:$0xf0]  ;;  %v9833_v37 = vor.u32 %v12683_v23, %v9832_v21  ;;  %7572 = vmatpush.bf16.msrb.mxu2 %v10105_v27 }
 0x1d5   : > { %v14526_v30 = vld [vmem:[#allocation1 + $0x1b] sm:$0xff]  ;;  %v10088_v32 = vld [vmem:[%s14417_s21 + $0x660] sm:$0xf]  ;;  %v9961_v38 = vor.u32 %v12715_v25, %v9960_v24  ;;  %7585 = vmatpush.bf16.msrb.mxu3 %v10233_v31 }
 0x1d6   : > { %v12747_v33 = vld [vmem:[%s14417_s21 + $0x66c] sm:$0xf0]  ;;  %v14531_v34 = vld [vmem:[#allocation1 + $0x9] sm:$0xff]  ;;  %7538 = vmatmul.bf16.vlgmr.msra.gmra.mxu3 %v14526_v30  ;;  %7547 = vmatpush.bf16.msrb.mxu0 %v9833_v37 }
 0x1d7   : > { %v10216_v35 = vld [vmem:[%s14417_s21 + $0x760] sm:$0xf]  ;;  %v12779_v36 = vld [vmem:[%s14417_s21 + $0x76c] sm:$0xf0]  ;;  %7512 = vmatmul.bf16.vlgmr.msra.gmra.mxu1 %v14531_v34  ;;  %v10089_v39 = vor.u32 %v12747_v33, %v10088_v32 }
 0x1d8   : > { %v9816_v40 = vld [vmem:[%s14417_s21 + $0x440] sm:$0xf]  ;;  %v12679_v41 = vld [vmem:[%s14417_s21 + $0x44c] sm:$0xf0]  ;;  %v10217_v43 = vor.u32 %v12779_v36, %v10216_v35  ;;  %7560 = vmatpush.bf16.msrb.mxu1 %v9961_v38 }
 0x1d9   : > { %v9944_v42 = vld [vmem:[%s14417_s21 + $0x540] sm:$0xf]  ;;  %v12711_v44 = vld [vmem:[%s14417_s21 + $0x54c] sm:$0xf0]  ;;  %v9817_v49 = vor.u32 %v12679_v41, %v9816_v40  ;;  %7573 = vmatpush.bf16.msrb.mxu2 %v10089_v39 }
 0x1da   : > { %v10072_v45 = vld [vmem:[%s14417_s21 + $0x640] sm:$0xf]  ;;  %v12743_v46 = vld [vmem:[%s14417_s21 + $0x64c] sm:$0xf0]  ;;  %v9945_v51 = vor.u32 %v12711_v44, %v9944_v42  ;;  %7586 = vmatpush.bf16.msrb.mxu3 %v10217_v43 }
 0x1db   : > { %v10200_v47 = vld [vmem:[%s14417_s21 + $0x740] sm:$0xf]  ;;  %v12775_v48 = vld [vmem:[%s14417_s21 + $0x74c] sm:$0xf0]  ;;  %v10073_v52 = vor.u32 %v12743_v46, %v10072_v45  ;;  %7548 = vmatpush.bf16.msrb.mxu0 %v9817_v49 }
 0x1dc   : > { %v9800_v50 = vld [vmem:[%s14417_s21 + $0x420] sm:$0xf]  ;;  %v12675_v53 = vld [vmem:[%s14417_s21 + $0x42c] sm:$0xf0]  ;;  %v10201_v56 = vor.u32 %v12775_v48, %v10200_v47  ;;  %7561 = vmatpush.bf16.msrb.mxu1 %v9945_v51 }
 0x1dd   : > { %v9928_v54 = vld [vmem:[%s14417_s21 + $0x520] sm:$0xf]  ;;  %v12707_v55 = vld [vmem:[%s14417_s21 + $0x52c] sm:$0xf0]  ;;  %v9801_v63 = vor.u32 %v12675_v53, %v9800_v50  ;;  %7574 = vmatpush.bf16.msrb.mxu2 %v10073_v52 }
 0x1de   : > { %v10056_v57 = vld [vmem:[%s14417_s21 + $0x620] sm:$0xf]  ;;  %v12739_v58 = vld [vmem:[%s14417_s21 + $0x62c] sm:$0xf0]  ;;  %v9929_v6 = vor.u32 %v12707_v55, %v9928_v54  ;;  %7587 = vmatpush.bf16.msrb.mxu3 %v10201_v56 }
 0x1df   : > { %v10184_v59 = vld [vmem:[%s14417_s21 + $0x720] sm:$0xf]  ;;  %v12771_v60 = vld [vmem:[%s14417_s21 + $0x72c] sm:$0xf0]  ;;  %v10057_v7 = vor.u32 %v12739_v58, %v10056_v57  ;;  %7549 = vmatpush.bf16.msrb.mxu0 %v9801_v63 }
 0x1e0   : > { %v9784_v61 = vld [vmem:[%s14417_s21 + $0x400] sm:$0xf]  ;;  %v12671_v62 = vld [vmem:[%s14417_s21 + $0x40c] sm:$0xf0]  ;;  %v10185_v11 = vor.u32 %v12771_v60, %v10184_v59  ;;  %7562 = vmatpush.bf16.msrb.mxu1 %v9929_v6 }
 0x1e1   : > { %v9912_v0 = vld [vmem:[%s14417_s21 + $0x500] sm:$0xf]  ;;  %v12703_v1 = vld [vmem:[%s14417_s21 + $0x50c] sm:$0xf0]  ;;  %v9785_v17 = vor.u32 %v12671_v62, %v9784_v61  ;;  %7575 = vmatpush.bf16.msrb.mxu2 %v10057_v7 }
 0x1e2   : > { %v10040_v2 = vld [vmem:[%s14417_s21 + $0x600] sm:$0xf]  ;;  %v12735_v3 = vld [vmem:[%s14417_s21 + $0x60c] sm:$0xf0]  ;;  %v9913_v21 = vor.u32 %v12703_v1, %v9912_v0  ;;  %7588 = vmatpush.bf16.msrb.mxu3 %v10185_v11 }
 0x1e3   : > { %v14560_v4 = vld [vmem:[#allocation1 + $0x36] sm:$0xff]  ;;  %v2714_v5 = vld [vmem:[%s16301_s0 + $0x8] sm:$0xff]  ;;  %v10041_v22 = vor.u32 %v12735_v3, %v10040_v2  ;;  %7550 = vmatpush.bf16.msrb.mxu0 %v9785_v17 }
 0x1e4   : > { %v14565_v8 = vld [vmem:[#allocation1 + $0x24] sm:$0xff]  ;;  %v14569_v10 = vld [vmem:[#allocation1 + $0x2d] sm:$0xff]  ;;  %v12767_v13 = vld [vmem:[%s14417_s21 + $0x70c] sm:$0xf0]  ;;  %7563 = vmatpush.bf16.msrb.mxu1 %v9913_v21 }
 0x1e5   : > { %v10168_v12 = vld [vmem:[%s14417_s21 + $0x700] sm:$0xf]  ;;  %3522 = vst [vmem:[#allocation1] ss:$9 sm:$0xff] %v2714_v5  ;;  %v12827_v15 = vld [vmem:[%s14417_s21 + $0x8ec] sm:$0xf0]  ;;  %7576 = vmatpush.bf16.msrb.mxu2 %v10041_v22 }
 0x1e6   : > { %v10408_v14 = vld [vmem:[%s14417_s21 + $0x8e0] sm:$0xf]  ;;  %v12859_v18 = vld [vmem:[%s14417_s21 + $0x9ec] sm:$0xf0]  ;;  %v10169_v25 = vor.u32 %v12767_v13, %v10168_v12  ;;  %7551 = vmatmul.bf16.vlgmr.msrb.gmra.mxu0 %v14565_v8 }
 0x1e7   : > { %v10536_v16 = vld [vmem:[%s14417_s21 + $0x9e0] sm:$0xf]  ;;  %v12891_v20 = vld [vmem:[%s14417_s21 + $0xaec] sm:$0xf0]  ;;  %v10409_v26 = vor.u32 %v12827_v15, %v10408_v14  ;;  %7564 = vmatmul.bf16.vlgmr.msrb.gmra.mxu1 %v14569_v10 }
 0x1e8   : > { %v10664_v19 = vld [vmem:[%s14417_s21 + $0xae0] sm:$0xf]  ;;  %v12923_v24 = vld [vmem:[%s14417_s21 + $0xbec] sm:$0xf0]  ;;  %v10537_v27 = vor.u32 %v12859_v18, %v10536_v16  ;;  %7589 = vmatpush.bf16.msrb.mxu3 %v10169_v25  ;;  %7577 = vmatmul.bf16.vlgmr.msrb.gmra.mxu2 %v14560_v4 }
 0x1e9   : > { %v10792_v23 = vld [vmem:[%s14417_s21 + $0xbe0] sm:$0xf]  ;;  %v10665_v31 = vor.u32 %v12891_v20, %v10664_v19  ;;  %v12823_v33 = vld [vmem:[%s14417_s21 + $0x8cc] sm:$0xf0]  ;;  %7595 = vmatpush.bf16.msra.mxu0 %v10409_v26 }
 0x1ea   : > { %v10392_v32 = vld [vmem:[%s14417_s21 + $0x8c0] sm:$0xf]  ;;  %v10793_v36 = vor.u32 %v12923_v24, %v10792_v23  ;;  %v12855_v37 = vld [vmem:[%s14417_s21 + $0x9cc] sm:$0xf0]  ;;  %7608 = vmatpush.bf16.msra.mxu1 %v10537_v27 }
 0x1eb   : > { %v10520_v35 = vld [vmem:[%s14417_s21 + $0x9c0] sm:$0xf]  ;;  %v12887_v39 = vld [vmem:[%s14417_s21 + $0xacc] sm:$0xf0]  ;;  %v10393_v42 = vor.u32 %v12823_v33, %v10392_v32  ;;  %7621 = vmatpush.bf16.msra.mxu2 %v10665_v31  ;;  %7590 = vmatmul.bf16.vlgmr.msrb.gmra.mxu3 %v14567_v9 }
 0x1ec   : > { %v10648_v38 = vld [vmem:[%s14417_s21 + $0xac0] sm:$0xf]  ;;  %v12919_v41 = vld [vmem:[%s14417_s21 + $0xbcc] sm:$0xf0]  ;;  %v10521_v43 = vor.u32 %v12855_v37, %v10520_v35  ;;  %7634 = vmatpush.bf16.msra.mxu3 %v10793_v36 }
 0x1ed   : > { %v10776_v40 = vld [vmem:[%s14417_s21 + $0xbc0] sm:$0xf]  ;;  %v10649_v44 = vor.u32 %v12887_v39, %v10648_v38  ;;  %v12819_v46 = vld [vmem:[%s14417_s21 + $0x8ac] sm:$0xf0]  ;;  %7596 = vmatpush.bf16.msra.mxu0 %v10393_v42 }
 0x1ee   : > { %v10376_v45 = vld [vmem:[%s14417_s21 + $0x8a0] sm:$0xf]  ;;  %v10777_v48 = vor.u32 %v12919_v41, %v10776_v40  ;;  %v12851_v49 = vld [vmem:[%s14417_s21 + $0x9ac] sm:$0xf0]  ;;  %7609 = vmatpush.bf16.msra.mxu1 %v10521_v43 }
 0x1ef   : > { %v10504_v47 = vld [vmem:[%s14417_s21 + $0x9a0] sm:$0xf]  ;;  %v12883_v51 = vld [vmem:[%s14417_s21 + $0xaac] sm:$0xf0]  ;;  %v10377_v54 = vor.u32 %v12819_v46, %v10376_v45  ;;  %7622 = vmatpush.bf16.msra.mxu2 %v10649_v44 }
 0x1f0   : > { %v10632_v50 = vld [vmem:[%s14417_s21 + $0xaa0] sm:$0xf]  ;;  %v12915_v53 = vld [vmem:[%s14417_s21 + $0xbac] sm:$0xf0]  ;;  %v10505_v55 = vor.u32 %v12851_v49, %v10504_v47  ;;  %7635 = vmatpush.bf16.msra.mxu3 %v10777_v48 }
 0x1f1   : > { %v10760_v52 = vld [vmem:[%s14417_s21 + $0xba0] sm:$0xf]  ;;  %v10633_v56 = vor.u32 %v12883_v51, %v10632_v50  ;;  %v12815_v58 = vld [vmem:[%s14417_s21 + $0x88c] sm:$0xf0]  ;;  %7597 = vmatpush.bf16.msra.mxu0 %v10377_v54 }
 0x1f2   : > { %v10360_v57 = vld [vmem:[%s14417_s21 + $0x880] sm:$0xf]  ;;  %v10761_v60 = vor.u32 %v12915_v53, %v10760_v52  ;;  %v12847_v61 = vld [vmem:[%s14417_s21 + $0x98c] sm:$0xf0]  ;;  %7610 = vmatpush.bf16.msra.mxu1 %v10505_v55 }
 0x1f3   : > { %v10488_v59 = vld [vmem:[%s14417_s21 + $0x980] sm:$0xf]  ;;  %v12879_v63 = vld [vmem:[%s14417_s21 + $0xa8c] sm:$0xf0]  ;;  %v10361_v2 = vor.u32 %v12815_v58, %v10360_v57  ;;  %7623 = vmatpush.bf16.msra.mxu2 %v10633_v56 }
 0x1f4   : > { %v10616_v62 = vld [vmem:[%s14417_s21 + $0xa80] sm:$0xf]  ;;  %v12911_v1 = vld [vmem:[%s14417_s21 + $0xb8c] sm:$0xf0]  ;;  %v10489_v3 = vor.u32 %v12847_v61, %v10488_v59  ;;  %7636 = vmatpush.bf16.msra.mxu3 %v10761_v60 }
 0x1f5   : > { %v10744_v0 = vld [vmem:[%s14417_s21 + $0xb80] sm:$0xf]  ;;  %v10617_v5 = vor.u32 %v12879_v63, %v10616_v62  ;;  %v12811_v7 = vld [vmem:[%s14417_s21 + $0x86c] sm:$0xf0]  ;;  %7598 = vmatpush.bf16.msra.mxu0 %v10361_v2 }
 0x1f6   : > { %v10344_v6 = vld [vmem:[%s14417_s21 + $0x860] sm:$0xf]  ;;  %v10745_v12 = vor.u32 %v12911_v1, %v10744_v0  ;;  %v12843_v13 = vld [vmem:[%s14417_s21 + $0x96c] sm:$0xf0]  ;;  %7611 = vmatpush.bf16.msra.mxu1 %v10489_v3 }
 0x1f7   : > { %v10472_v11 = vld [vmem:[%s14417_s21 + $0x960] sm:$0xf]  ;;  %v12875_v15 = vld [vmem:[%s14417_s21 + $0xa6c] sm:$0xf0]  ;;  %v10345_v18 = vor.u32 %v12811_v7, %v10344_v6  ;;  %7624 = vmatpush.bf16.msra.mxu2 %v10617_v5 }
 0x1f8   : > { %v10600_v14 = vld [vmem:[%s14417_s21 + $0xa60] sm:$0xf]  ;;  %v12907_v17 = vld [vmem:[%s14417_s21 + $0xb6c] sm:$0xf0]  ;;  %v10473_v19 = vor.u32 %v12843_v13, %v10472_v11  ;;  %7637 = vmatpush.bf16.msra.mxu3 %v10745_v12 }
 0x1f9   : > { %v10728_v16 = vld [vmem:[%s14417_s21 + $0xb60] sm:$0xf]  ;;  %v10601_v20 = vor.u32 %v12875_v15, %v10600_v14  ;;  %v12807_v22 = vld [vmem:[%s14417_s21 + $0x84c] sm:$0xf0]  ;;  %7599 = vmatpush.bf16.msra.mxu0 %v10345_v18 }
 0x1fa   : > { %v10328_v21 = vld [vmem:[%s14417_s21 + $0x840] sm:$0xf]  ;;  %v10729_v24 = vor.u32 %v12907_v17, %v10728_v16  ;;  %v12839_v25 = vld [vmem:[%s14417_s21 + $0x94c] sm:$0xf0]  ;;  %7612 = vmatpush.bf16.msra.mxu1 %v10473_v19 }
 0x1fb   : > { %v10456_v23 = vld [vmem:[%s14417_s21 + $0x940] sm:$0xf]  ;;  %v12871_v27 = vld [vmem:[%s14417_s21 + $0xa4c] sm:$0xf0]  ;;  %v10329_v33 = vor.u32 %v12807_v22, %v10328_v21  ;;  %7625 = vmatpush.bf16.msra.mxu2 %v10601_v20  ;;  %v14655_v20 = vld [vmem:[#allocation1] sm:$0xff] }
 0x1fc   : > { %v10584_v26 = vld [vmem:[%s14417_s21 + $0xa40] sm:$0xf]  ;;  %v12903_v32 = vld [vmem:[%s14417_s21 + $0xb4c] sm:$0xf0]  ;;  %v10457_v35 = vor.u32 %v12839_v25, %v10456_v23  ;;  %7638 = vmatpush.bf16.msra.mxu3 %v10729_v24  ;;  %v14659_v23 = vld [vmem:[#allocation1 + $0x12] sm:$0xff] }
 0x1fd   : > { %v10712_v31 = vld [vmem:[%s14417_s21 + $0xb40] sm:$0xf]  ;;  %v10585_v36 = vor.u32 %v12871_v27, %v10584_v26  ;;  %v12803_v38 = vld [vmem:[%s14417_s21 + $0x82c] sm:$0xf0]  ;;  %7600 = vmatpush.bf16.msra.mxu0 %v10329_v33 }
 0x1fe   : > { %v10312_v37 = vld [vmem:[%s14417_s21 + $0x820] sm:$0xf]  ;;  %v10713_v40 = vor.u32 %v12903_v32, %v10712_v31  ;;  %v12835_v41 = vld [vmem:[%s14417_s21 + $0x92c] sm:$0xf0]  ;;  %7613 = vmatpush.bf16.msra.mxu1 %v10457_v35 }
 0x1ff   : > { %v10440_v39 = vld [vmem:[%s14417_s21 + $0x920] sm:$0xf]  ;;  %v12867_v43 = vld [vmem:[%s14417_s21 + $0xa2c] sm:$0xf0]  ;;  %v10313_v46 = vor.u32 %v12803_v38, %v10312_v37  ;;  %7626 = vmatpush.bf16.msra.mxu2 %v10585_v36 }
 0x200   : > { %v10568_v42 = vld [vmem:[%s14417_s21 + $0xa20] sm:$0xf]  ;;  %v12899_v45 = vld [vmem:[%s14417_s21 + $0xb2c] sm:$0xf0]  ;;  %v10441_v49 = vor.u32 %v12835_v41, %v10440_v39  ;;  %7639 = vmatpush.bf16.msra.mxu3 %v10713_v40 }
 0x201   : > { %v10696_v44 = vld [vmem:[%s14417_s21 + $0xb20] sm:$0xf]  ;;  %v12799_v48 = vld [vmem:[%s14417_s21 + $0x80c] sm:$0xf0]  ;;  %v10569_v50 = vor.u32 %v12867_v43, %v10568_v42  ;;  %7601 = vmatpush.bf16.msra.mxu0 %v10313_v46 }
 0x202   : > { %v10296_v47 = vld [vmem:[%s14417_s21 + $0x800] sm:$0xf]  ;;  %v12831_v52 = vld [vmem:[%s14417_s21 + $0x90c] sm:$0xf0]  ;;  %v10697_v54 = vor.u32 %v12899_v45, %v10696_v44  ;;  %7614 = vmatpush.bf16.msra.mxu1 %v10441_v49 }
 0x203   : > { %v10424_v51 = vld [vmem:[%s14417_s21 + $0x900] sm:$0xf]  ;;  %v12863_v55 = vld [vmem:[%s14417_s21 + $0xa0c] sm:$0xf0]  ;;  %v10297_v61 = vor.u32 %v12799_v48, %v10296_v47  ;;  %7627 = vmatpush.bf16.msra.mxu2 %v10569_v50 }
 0x204   : > { %v10552_v53 = vld [vmem:[%s14417_s21 + $0xa00] sm:$0xf]  ;;  %v12895_v57 = vld [vmem:[%s14417_s21 + $0xb0c] sm:$0xf0]  ;;  %v10425_v1 = vor.u32 %v12831_v52, %v10424_v51  ;;  %7640 = vmatpush.bf16.msra.mxu3 %v10697_v54 }
 0x205   : > { %v10680_v56 = vld [vmem:[%s14417_s21 + $0xb00] sm:$0xf]  ;;  %v12955_v59 = vld [vmem:[%s14417_s21 + $0xcec] sm:$0xf0]  ;;  %v10553_v2 = vor.u32 %v12863_v55, %v10552_v53  ;;  %7602 = vmatpush.bf16.msra.mxu0 %v10297_v61 }
 0x206   : > { %v10920_v58 = vld [vmem:[%s14417_s21 + $0xce0] sm:$0xf]  ;;  %v12987_v62 = vld [vmem:[%s14417_s21 + $0xdec] sm:$0xf0]  ;;  %v10681_v6 = vor.u32 %v12895_v57, %v10680_v56  ;;  %7615 = vmatpush.bf16.msra.mxu1 %v10425_v1 }
 0x207   : > { %v11048_v60 = vld [vmem:[%s14417_s21 + $0xde0] sm:$0xf]  ;;  %v13019_v0 = vld [vmem:[%s14417_s21 + $0xeec] sm:$0xf0]  ;;  %v10921_v7 = vor.u32 %v12955_v59, %v10920_v58  ;;  %7628 = vmatpush.bf16.msra.mxu2 %v10553_v2 }
 0x208   : > { %v11176_v63 = vld [vmem:[%s14417_s21 + $0xee0] sm:$0xf]  ;;  %v13051_v5 = vld [vmem:[%s14417_s21 + $0xfec] sm:$0xf0]  ;;  %v11049_v11 = vor.u32 %v12987_v62, %v11048_v60  ;;  %7641 = vmatpush.bf16.msra.mxu3 %v10681_v6  ;;  %7603 = vmatmul.bf16.vlgmr.msra.gmra.mxu0 %v14655_v20 }
 0x209   : > { %v11304_v3 = vld [vmem:[%s14417_s21 + $0xfe0] sm:$0xf]  ;;  %v11177_v12 = vor.u32 %v13019_v0, %v11176_v63  ;;  %v12951_v14 = vld [vmem:[%s14417_s21 + $0xccc] sm:$0xf0]  ;;  %7647 = vmatpush.bf16.msrb.mxu0 %v10921_v7 }
 0x20a   : > { %v10904_v13 = vld [vmem:[%s14417_s21 + $0xcc0] sm:$0xf]  ;;  %v11305_v16 = vor.u32 %v13051_v5, %v11304_v3  ;;  %v12983_v17 = vld [vmem:[%s14417_s21 + $0xdcc] sm:$0xf0]  ;;  %7660 = vmatpush.bf16.msrb.mxu1 %v11049_v11  ;;  %7629 = vmatmul.bf16.vlgmr.msra.gmra.mxu2 %v14659_v23 }
 0x20b   : > { %v11032_v15 = vld [vmem:[%s14417_s21 + $0xdc0] sm:$0xf]  ;;  %v13015_v19 = vld [vmem:[%s14417_s21 + $0xecc] sm:$0xf0]  ;;  %v10905_v26 = vor.u32 %v12951_v14, %v10904_v13  ;;  %7673 = vmatpush.bf16.msrb.mxu2 %v11177_v12 }
 0x20c   : > { %v11160_v18 = vld [vmem:[%s14417_s21 + $0xec0] sm:$0xf]  ;;  %v13047_v22 = vld [vmem:[%s14417_s21 + $0xfcc] sm:$0xf0]  ;;  %v11033_v27 = vor.u32 %v12983_v17, %v11032_v15  ;;  %7686 = vmatpush.bf16.msrb.mxu3 %v11305_v16 }
 0x20d   : > { %v11288_v21 = vld [vmem:[%s14417_s21 + $0xfc0] sm:$0xf]  ;;  %v14663_v25 = vld [vmem:[#allocation1 + $0x1b] sm:$0xff]  ;;  %v11161_v31 = vor.u32 %v13015_v19, %v11160_v18  ;;  %7648 = vmatpush.bf16.msrb.mxu0 %v10905_v26 }
 0x20e   : > { %v14661_v24 = vld [vmem:[#allocation1 + $0x9] sm:$0xff]  ;;  %v12947_v33 = vld [vmem:[%s14417_s21 + $0xcac] sm:$0xf0]  ;;  %v11289_v36 = vor.u32 %v13047_v22, %v11288_v21  ;;  %7642 = vmatmul.bf16.vlgmr.msra.gmra.mxu3 %v14663_v25  ;;  %7661 = vmatpush.bf16.msrb.mxu1 %v11033_v27 }
 0x20f   : > { %v10888_v32 = vld [vmem:[%s14417_s21 + $0xca0] sm:$0xf]  ;;  %v12979_v37 = vld [vmem:[%s14417_s21 + $0xdac] sm:$0xf0]  ;;  %7616 = vmatmul.bf16.vlgmr.msra.gmra.mxu1 %v14661_v24  ;;  %7674 = vmatpush.bf16.msrb.mxu2 %v11161_v31 }
 0x210   : > { %v11016_v35 = vld [vmem:[%s14417_s21 + $0xda0] sm:$0xf]  ;;  %v13011_v39 = vld [vmem:[%s14417_s21 + $0xeac] sm:$0xf0]  ;;  %v10889_v42 = vor.u32 %v12947_v33, %v10888_v32  ;;  %7687 = vmatpush.bf16.msrb.mxu3 %v11289_v36 }
 0x211   : > { %v11144_v38 = vld [vmem:[%s14417_s21 + $0xea0] sm:$0xf]  ;;  %v13043_v41 = vld [vmem:[%s14417_s21 + $0xfac] sm:$0xf0]  ;;  %v11017_v43 = vor.u32 %v12979_v37, %v11016_v35 }
 0x212   : > { %v11272_v40 = vld [vmem:[%s14417_s21 + $0xfa0] sm:$0xf]  ;;  %v11145_v44 = vor.u32 %v13011_v39, %v11144_v38  ;;  %v12943_v46 = vld [vmem:[%s14417_s21 + $0xc8c] sm:$0xf0]  ;;  %7649 = vmatpush.bf16.msrb.mxu0 %v10889_v42 }
 0x213   : > { %v10872_v45 = vld [vmem:[%s14417_s21 + $0xc80] sm:$0xf]  ;;  %v11273_v48 = vor.u32 %v13043_v41, %v11272_v40  ;;  %v12975_v49 = vld [vmem:[%s14417_s21 + $0xd8c] sm:$0xf0]  ;;  %7662 = vmatpush.bf16.msrb.mxu1 %v11017_v43 }
 0x214   : > { %v11000_v47 = vld [vmem:[%s14417_s21 + $0xd80] sm:$0xf]  ;;  %v13007_v51 = vld [vmem:[%s14417_s21 + $0xe8c] sm:$0xf0]  ;;  %v10873_v54 = vor.u32 %v12943_v46, %v10872_v45  ;;  %7675 = vmatpush.bf16.msrb.mxu2 %v11145_v44 }
 0x215   : > { %v11128_v50 = vld [vmem:[%s14417_s21 + $0xe80] sm:$0xf]  ;;  %v13039_v53 = vld [vmem:[%s14417_s21 + $0xf8c] sm:$0xf0]  ;;  %v11001_v55 = vor.u32 %v12975_v49, %v11000_v47  ;;  %7688 = vmatpush.bf16.msrb.mxu3 %v11273_v48 }
 0x216   : > { %v11256_v52 = vld [vmem:[%s14417_s21 + $0xf80] sm:$0xf]  ;;  %v11129_v56 = vor.u32 %v13007_v51, %v11128_v50  ;;  %v12939_v58 = vld [vmem:[%s14417_s21 + $0xc6c] sm:$0xf0]  ;;  %7650 = vmatpush.bf16.msrb.mxu0 %v10873_v54 }
 0x217   : > { %v10856_v57 = vld [vmem:[%s14417_s21 + $0xc60] sm:$0xf]  ;;  %v11257_v60 = vor.u32 %v13039_v53, %v11256_v52  ;;  %v12971_v61 = vld [vmem:[%s14417_s21 + $0xd6c] sm:$0xf0]  ;;  %7663 = vmatpush.bf16.msrb.mxu1 %v11001_v55 }
 0x218   : > { %v10984_v59 = vld [vmem:[%s14417_s21 + $0xd60] sm:$0xf]  ;;  %v13003_v63 = vld [vmem:[%s14417_s21 + $0xe6c] sm:$0xf0]  ;;  %v10857_v2 = vor.u32 %v12939_v58, %v10856_v57  ;;  %7676 = vmatpush.bf16.msrb.mxu2 %v11129_v56  ;;  %v14727_v57 = vld [vmem:[#allocation1 + $0x3f] sm:$0xff] }
 0x219   : > { %v11112_v62 = vld [vmem:[%s14417_s21 + $0xe60] sm:$0xf]  ;;  %v13035_v1 = vld [vmem:[%s14417_s21 + $0xf6c] sm:$0xf0]  ;;  %v10985_v3 = vor.u32 %v12971_v61, %v10984_v59  ;;  %7689 = vmatpush.bf16.msrb.mxu3 %v11257_v60  ;;  %v2715_v58 = vld [vmem:[%s16301_s0 + $0x10] sm:$0xff] }
 0x21a   : > { %v11240_v0 = vld [vmem:[%s14417_s21 + $0xf60] sm:$0xf]  ;;  %v11113_v5 = vor.u32 %v13003_v63, %v11112_v62  ;;  %v12935_v7 = vld [vmem:[%s14417_s21 + $0xc4c] sm:$0xf0]  ;;  %7651 = vmatpush.bf16.msrb.mxu0 %v10857_v2 }
 0x21b   : > { %v10840_v6 = vld [vmem:[%s14417_s21 + $0xc40] sm:$0xf]  ;;  %v11241_v12 = vor.u32 %v13035_v1, %v11240_v0  ;;  %v12967_v13 = vld [vmem:[%s14417_s21 + $0xd4c] sm:$0xf0]  ;;  %7664 = vmatpush.bf16.msrb.mxu1 %v10985_v3 }
 0x21c   : > { %v10968_v11 = vld [vmem:[%s14417_s21 + $0xd40] sm:$0xf]  ;;  %v12999_v15 = vld [vmem:[%s14417_s21 + $0xe4c] sm:$0xf0]  ;;  %v10841_v18 = vor.u32 %v12935_v7, %v10840_v6  ;;  %7677 = vmatpush.bf16.msrb.mxu2 %v11113_v5 }
 0x21d   : > { %v11096_v14 = vld [vmem:[%s14417_s21 + $0xe40] sm:$0xf]  ;;  %v13031_v17 = vld [vmem:[%s14417_s21 + $0xf4c] sm:$0xf0]  ;;  %v10969_v21 = vor.u32 %v12967_v13, %v10968_v11  ;;  %7690 = vmatpush.bf16.msrb.mxu3 %v11241_v12 }
 0x21e   : > { %v11224_v16 = vld [vmem:[%s14417_s21 + $0xf40] sm:$0xf]  ;;  %v11097_v22 = vor.u32 %v12999_v15, %v11096_v14  ;;  %v12931_v26 = vld [vmem:[%s14417_s21 + $0xc2c] sm:$0xf0]  ;;  %7652 = vmatpush.bf16.msrb.mxu0 %v10841_v18 }
 0x21f   : > { %v10824_v19 = vld [vmem:[%s14417_s21 + $0xc20] sm:$0xf]  ;;  %v12963_v31 = vld [vmem:[%s14417_s21 + $0xd2c] sm:$0xf0]  ;;  %v11225_v32 = vor.u32 %v13031_v17, %v11224_v16  ;;  %7665 = vmatpush.bf16.msrb.mxu1 %v10969_v21 }
 0x220   : > { %v10952_v27 = vld [vmem:[%s14417_s21 + $0xd20] sm:$0xf]  ;;  %v12995_v35 = vld [vmem:[%s14417_s21 + $0xe2c] sm:$0xf0]  ;;  %v10825_v40 = vor.u32 %v12931_v26, %v10824_v19  ;;  %7678 = vmatpush.bf16.msrb.mxu2 %v11097_v22 }
 0x221   : > { %v11080_v33 = vld [vmem:[%s14417_s21 + $0xe20] sm:$0xf]  ;;  %v13027_v37 = vld [vmem:[%s14417_s21 + $0xf2c] sm:$0xf0]  ;;  %v10953_v45 = vor.u32 %v12963_v31, %v10952_v27  ;;  %7691 = vmatpush.bf16.msrb.mxu3 %v11225_v32 }
 0x222   : > { %v11208_v36 = vld [vmem:[%s14417_s21 + $0xf20] sm:$0xf]  ;;  %v12927_v39 = vld [vmem:[%s14417_s21 + $0xc0c] sm:$0xf0]  ;;  %v11081_v46 = vor.u32 %v12995_v35, %v11080_v33  ;;  %7653 = vmatpush.bf16.msrb.mxu0 %v10825_v40 }
 0x223   : > { %v10808_v38 = vld [vmem:[%s14417_s21 + $0xc00] sm:$0xf]  ;;  %v12959_v42 = vld [vmem:[%s14417_s21 + $0xd0c] sm:$0xf0]  ;;  %v11209_v51 = vor.u32 %v13027_v37, %v11208_v36  ;;  %7666 = vmatpush.bf16.msrb.mxu1 %v10953_v45 }
 0x224   : > { %v10936_v41 = vld [vmem:[%s14417_s21 + $0xd00] sm:$0xf]  ;;  %v12991_v44 = vld [vmem:[%s14417_s21 + $0xe0c] sm:$0xf0]  ;;  %v10809_v59 = vor.u32 %v12927_v39, %v10808_v38  ;;  %7679 = vmatpush.bf16.msrb.mxu2 %v11081_v46 }
 0x225   : > { %v11064_v43 = vld [vmem:[%s14417_s21 + $0xe00] sm:$0xf]  ;;  %v13023_v48 = vld [vmem:[%s14417_s21 + $0xf0c] sm:$0xf0]  ;;  %v10937_v62 = vor.u32 %v12959_v42, %v10936_v41  ;;  %7692 = vmatpush.bf16.msrb.mxu3 %v11209_v51 }
 0x226   : > { %v11192_v47 = vld [vmem:[%s14417_s21 + $0xf00] sm:$0xf]  ;;  %v13083_v50 = vld [vmem:[%s14417_s21 + $0x10ec] sm:$0xf0]  ;;  %v11065_v63 = vor.u32 %v12991_v44, %v11064_v43  ;;  %7654 = vmatpush.bf16.msrb.mxu0 %v10809_v59 }
 0x227   : > { %v11432_v49 = vld [vmem:[%s14417_s21 + $0x10e0] sm:$0xf]  ;;  %v13115_v53 = vld [vmem:[%s14417_s21 + $0x11ec] sm:$0xf0]  ;;  %v11193_v2 = vor.u32 %v13023_v48, %v11192_v47  ;;  %7667 = vmatpush.bf16.msrb.mxu1 %v10937_v62 }
 0x228   : > { %v11560_v52 = vld [vmem:[%s14417_s21 + $0x11e0] sm:$0xf]  ;;  %v14723_v55 = vld [vmem:[#allocation1 + $0x36] sm:$0xff]  ;;  %v11433_v3 = vor.u32 %v13083_v50, %v11432_v49  ;;  %7680 = vmatpush.bf16.msrb.mxu2 %v11065_v63 }
 0x229   : > { %v14721_v54 = vld [vmem:[#allocation1 + $0x24] sm:$0xff]  ;;  %v14725_v56 = vld [vmem:[#allocation1 + $0x2d] sm:$0xff]  ;;  %v13147_v61 = vld [vmem:[%s14417_s21 + $0x12ec] sm:$0xf0]  ;;  %v11561_v5 = vor.u32 %v13115_v53, %v11560_v52  ;;  %7693 = vmatpush.bf16.msrb.mxu3 %v11193_v2 }
 0x22a   : > { %v11688_v60 = vld [vmem:[%s14417_s21 + $0x12e0] sm:$0xf]  ;;  %3532 = vst [vmem:[#allocation1] ss:$9 sm:$0xff] %v2715_v58  ;;  %v13179_v1 = vld [vmem:[%s14417_s21 + $0x13ec] sm:$0xf0]  ;;  %7699 = vmatpush.bf16.msra.mxu0 %v11433_v3  ;;  %7668 = vmatmul.bf16.vlgmr.msrb.gmra.mxu1 %v14725_v56 }
 0x22b   : > { %v11816_v0 = vld [vmem:[%s14417_s21 + $0x13e0] sm:$0xf]  ;;  %v11689_v6 = vor.u32 %v13147_v61, %v11688_v60  ;;  %v13079_v11 = vld [vmem:[%s14417_s21 + $0x10cc] sm:$0xf0]  ;;  %7712 = vmatpush.bf16.msra.mxu1 %v11561_v5  ;;  %7655 = vmatmul.bf16.vlgmr.msrb.gmra.mxu0 %v14721_v54 }
 0x22c   : > { %v11416_v7 = vld [vmem:[%s14417_s21 + $0x10c0] sm:$0xf]  ;;  %v11817_v13 = vor.u32 %v13179_v1, %v11816_v0  ;;  %v13111_v14 = vld [vmem:[%s14417_s21 + $0x11cc] sm:$0xf0]  ;;  %7681 = vmatmul.bf16.vlgmr.msrb.gmra.mxu2 %v14723_v55  ;;  %7694 = vmatmul.bf16.vlgmr.msrb.gmra.mxu3 %v14727_v57 }
 0x22d   : > { %v11544_v12 = vld [vmem:[%s14417_s21 + $0x11c0] sm:$0xf]  ;;  %v13143_v16 = vld [vmem:[%s14417_s21 + $0x12cc] sm:$0xf0]  ;;  %v11417_v19 = vor.u32 %v13079_v11, %v11416_v7  ;;  %7725 = vmatpush.bf16.msra.mxu2 %v11689_v6 }
 0x22e   : > { %v11672_v15 = vld [vmem:[%s14417_s21 + $0x12c0] sm:$0xf]  ;;  %v13175_v18 = vld [vmem:[%s14417_s21 + $0x13cc] sm:$0xf0]  ;;  %v11545_v21 = vor.u32 %v13111_v14, %v11544_v12  ;;  %7738 = vmatpush.bf16.msra.mxu3 %v11817_v13 }
 0x22f   : > { %v11800_v17 = vld [vmem:[%s14417_s21 + $0x13c0] sm:$0xf]  ;;  %v11673_v22 = vor.u32 %v13143_v16, %v11672_v15  ;;  %v13075_v27 = vld [vmem:[%s14417_s21 + $0x10ac] sm:$0xf0]  ;;  %7700 = vmatpush.bf16.msra.mxu0 %v11417_v19 }
 0x230   : > { %v11400_v26 = vld [vmem:[%s14417_s21 + $0x10a0] sm:$0xf]  ;;  %v11801_v32 = vor.u32 %v13175_v18, %v11800_v17  ;;  %v13107_v33 = vld [vmem:[%s14417_s21 + $0x11ac] sm:$0xf0]  ;;  %7713 = vmatpush.bf16.msra.mxu1 %v11545_v21 }
 0x231   : > { %v11528_v31 = vld [vmem:[%s14417_s21 + $0x11a0] sm:$0xf]  ;;  %v13139_v36 = vld [vmem:[%s14417_s21 + $0x12ac] sm:$0xf0]  ;;  %v11401_v39 = vor.u32 %v13075_v27, %v11400_v26  ;;  %7726 = vmatpush.bf16.msra.mxu2 %v11673_v22 }
 0x232   : > { %v11656_v35 = vld [vmem:[%s14417_s21 + $0x12a0] sm:$0xf]  ;;  %v13171_v38 = vld [vmem:[%s14417_s21 + $0x13ac] sm:$0xf0]  ;;  %v11529_v40 = vor.u32 %v13107_v33, %v11528_v31  ;;  %7739 = vmatpush.bf16.msra.mxu3 %v11801_v32 }
 0x233   : > { %v11784_v37 = vld [vmem:[%s14417_s21 + $0x13a0] sm:$0xf]  ;;  %v11657_v41 = vor.u32 %v13139_v36, %v11656_v35  ;;  %v13071_v43 = vld [vmem:[%s14417_s21 + $0x108c] sm:$0xf0]  ;;  %7701 = vmatpush.bf16.msra.mxu0 %v11401_v39 }
 0x234   : > { %v11384_v42 = vld [vmem:[%s14417_s21 + $0x1080] sm:$0xf]  ;;  %v11785_v45 = vor.u32 %v13171_v38, %v11784_v37  ;;  %v13103_v46 = vld [vmem:[%s14417_s21 + $0x118c] sm:$0xf0]  ;;  %7714 = vmatpush.bf16.msra.mxu1 %v11529_v40 }
 0x235   : > { %v11512_v44 = vld [vmem:[%s14417_s21 + $0x1180] sm:$0xf]  ;;  %v13135_v48 = vld [vmem:[%s14417_s21 + $0x128c] sm:$0xf0]  ;;  %v11385_v51 = vor.u32 %v13071_v43, %v11384_v42  ;;  %7727 = vmatpush.bf16.msra.mxu2 %v11657_v41 }
 0x236   : > { %v11640_v47 = vld [vmem:[%s14417_s21 + $0x1280] sm:$0xf]  ;;  %v13167_v50 = vld [vmem:[%s14417_s21 + $0x138c] sm:$0xf0]  ;;  %v11513_v52 = vor.u32 %v13103_v46, %v11512_v44  ;;  %7740 = vmatpush.bf16.msra.mxu3 %v11785_v45 }
 0x237   : > { %v11768_v49 = vld [vmem:[%s14417_s21 + $0x1380] sm:$0xf]  ;;  %v11641_v53 = vor.u32 %v13135_v48, %v11640_v47  ;;  %v13067_v59 = vld [vmem:[%s14417_s21 + $0x106c] sm:$0xf0]  ;;  %7702 = vmatpush.bf16.msra.mxu0 %v11385_v51 }
 0x238   : > { %v11368_v58 = vld [vmem:[%s14417_s21 + $0x1060] sm:$0xf]  ;;  %v11769_v61 = vor.u32 %v13167_v50, %v11768_v49  ;;  %v13099_v62 = vld [vmem:[%s14417_s21 + $0x116c] sm:$0xf0]  ;;  %7715 = vmatpush.bf16.msra.mxu1 %v11513_v52 }
 0x239   : > { %v11496_v60 = vld [vmem:[%s14417_s21 + $0x1160] sm:$0xf]  ;;  %v13131_v0 = vld [vmem:[%s14417_s21 + $0x126c] sm:$0xf0]  ;;  %v11369_v3 = vor.u32 %v13067_v59, %v11368_v58  ;;  %7728 = vmatpush.bf16.msra.mxu2 %v11641_v53 }
 0x23a   : > { %v11624_v63 = vld [vmem:[%s14417_s21 + $0x1260] sm:$0xf]  ;;  %v13163_v2 = vld [vmem:[%s14417_s21 + $0x136c] sm:$0xf0]  ;;  %v11497_v5 = vor.u32 %v13099_v62, %v11496_v60  ;;  %7741 = vmatpush.bf16.msra.mxu3 %v11769_v61 }
 0x23b   : > { %v11752_v1 = vld [vmem:[%s14417_s21 + $0x1360] sm:$0xf]  ;;  %v11625_v6 = vor.u32 %v13131_v0, %v11624_v63  ;;  %v13063_v11 = vld [vmem:[%s14417_s21 + $0x104c] sm:$0xf0]  ;;  %7703 = vmatpush.bf16.msra.mxu0 %v11369_v3 }
 0x23c   : > { %v11352_v7 = vld [vmem:[%s14417_s21 + $0x1040] sm:$0xf]  ;;  %v11753_v13 = vor.u32 %v13163_v2, %v11752_v1  ;;  %v13095_v14 = vld [vmem:[%s14417_s21 + $0x114c] sm:$0xf0]  ;;  %7716 = vmatpush.bf16.msra.mxu1 %v11497_v5 }
 0x23d   : > { %v11480_v12 = vld [vmem:[%s14417_s21 + $0x1140] sm:$0xf]  ;;  %v13127_v16 = vld [vmem:[%s14417_s21 + $0x124c] sm:$0xf0]  ;;  %v11353_v19 = vor.u32 %v13063_v11, %v11352_v7  ;;  %7729 = vmatpush.bf16.msra.mxu2 %v11625_v6 }
 0x23e   : > { %v11608_v15 = vld [vmem:[%s14417_s21 + $0x1240] sm:$0xf]  ;;  %v13159_v18 = vld [vmem:[%s14417_s21 + $0x134c] sm:$0xf0]  ;;  %v11481_v21 = vor.u32 %v13095_v14, %v11480_v12  ;;  %7742 = vmatpush.bf16.msra.mxu3 %v11753_v13 }
 0x23f   : > { %v11736_v17 = vld [vmem:[%s14417_s21 + $0x1340] sm:$0xf]  ;;  %v11609_v22 = vor.u32 %v13127_v16, %v11608_v15  ;;  %v13059_v27 = vld [vmem:[%s14417_s21 + $0x102c] sm:$0xf0]  ;;  %7704 = vmatpush.bf16.msra.mxu0 %v11353_v19 }
 0x240   : > { %v11336_v26 = vld [vmem:[%s14417_s21 + $0x1020] sm:$0xf]  ;;  %v11737_v32 = vor.u32 %v13159_v18, %v11736_v17  ;;  %v13091_v33 = vld [vmem:[%s14417_s21 + $0x112c] sm:$0xf0]  ;;  %7717 = vmatpush.bf16.msra.mxu1 %v11481_v21  ;;  %v14811_v17 = vld [vmem:[#allocation1] sm:$0xff] }
 0x241   : > { %v11464_v31 = vld [vmem:[%s14417_s21 + $0x1120] sm:$0xf]  ;;  %v13123_v36 = vld [vmem:[%s14417_s21 + $0x122c] sm:$0xf0]  ;;  %v11337_v39 = vor.u32 %v13059_v27, %v11336_v26  ;;  %7730 = vmatpush.bf16.msra.mxu2 %v11609_v22  ;;  %v14821_v21 = vld [vmem:[#allocation1 + $0x12] sm:$0xff] }
 0x242   : > { %v11592_v35 = vld [vmem:[%s14417_s21 + $0x1220] sm:$0xf]  ;;  %v13155_v38 = vld [vmem:[%s14417_s21 + $0x132c] sm:$0xf0]  ;;  %v11465_v42 = vor.u32 %v13091_v33, %v11464_v31  ;;  %7743 = vmatpush.bf16.msra.mxu3 %v11737_v32 }
 0x243   : > { %v11720_v37 = vld [vmem:[%s14417_s21 + $0x1320] sm:$0xf]  ;;  %v13055_v41 = vld [vmem:[%s14417_s21 + $0x100c] sm:$0xf0]  ;;  %v11593_v43 = vor.u32 %v13123_v36, %v11592_v35  ;;  %7705 = vmatpush.bf16.msra.mxu0 %v11337_v39 }
 0x244   : > { %v11320_v40 = vld [vmem:[%s14417_s21 + $0x1000] sm:$0xf]  ;;  %v13087_v45 = vld [vmem:[%s14417_s21 + $0x110c] sm:$0xf0]  ;;  %v11721_v47 = vor.u32 %v13155_v38, %v11720_v37  ;;  %7718 = vmatpush.bf16.msra.mxu1 %v11465_v42 }
 0x245   : > { %v11448_v44 = vld [vmem:[%s14417_s21 + $0x1100] sm:$0xf]  ;;  %v13119_v48 = vld [vmem:[%s14417_s21 + $0x120c] sm:$0xf0]  ;;  %v11321_v58 = vor.u32 %v13055_v41, %v11320_v40  ;;  %7731 = vmatpush.bf16.msra.mxu2 %v11593_v43 }
 0x246   : > { %v11576_v46 = vld [vmem:[%s14417_s21 + $0x1200] sm:$0xf]  ;;  %v13151_v50 = vld [vmem:[%s14417_s21 + $0x130c] sm:$0xf0]  ;;  %v11449_v62 = vor.u32 %v13087_v45, %v11448_v44  ;;  %7744 = vmatpush.bf16.msra.mxu3 %v11721_v47 }
 0x247   : > { %v11704_v49 = vld [vmem:[%s14417_s21 + $0x1300] sm:$0xf]  ;;  %v13211_v52 = vld [vmem:[%s14417_s21 + $0x14ec] sm:$0xf0]  ;;  %v11577_v63 = vor.u32 %v13119_v48, %v11576_v46  ;;  %7706 = vmatpush.bf16.msra.mxu0 %v11321_v58 }
 0x248   : > { %v11944_v51 = vld [vmem:[%s14417_s21 + $0x14e0] sm:$0xf]  ;;  %v13243_v59 = vld [vmem:[%s14417_s21 + $0x15ec] sm:$0xf0]  ;;  %v11705_v2 = vor.u32 %v13151_v50, %v11704_v49  ;;  %7719 = vmatpush.bf16.msra.mxu1 %v11449_v62 }
 0x249   : > { %v12072_v53 = vld [vmem:[%s14417_s21 + $0x15e0] sm:$0xf]  ;;  %v13275_v61 = vld [vmem:[%s14417_s21 + $0x16ec] sm:$0xf0]  ;;  %v11945_v3 = vor.u32 %v13211_v52, %v11944_v51  ;;  %7732 = vmatpush.bf16.msra.mxu2 %v11577_v63 }
 0x24a   : > { %v12200_v60 = vld [vmem:[%s14417_s21 + $0x16e0] sm:$0xf]  ;;  %v13307_v1 = vld [vmem:[%s14417_s21 + $0x17ec] sm:$0xf0]  ;;  %v12073_v5 = vor.u32 %v13243_v59, %v12072_v53  ;;  %7745 = vmatpush.bf16.msra.mxu3 %v11705_v2  ;;  %7707 = vmatmul.bf16.vlgmr.msra.gmra.mxu0 %v14811_v17 }
 0x24b   : > { %v12328_v0 = vld [vmem:[%s14417_s21 + $0x17e0] sm:$0xf]  ;;  %v12201_v6 = vor.u32 %v13275_v61, %v12200_v60  ;;  %v13207_v11 = vld [vmem:[%s14417_s21 + $0x14cc] sm:$0xf0]  ;;  %7751 = vmatpush.bf16.msrb.mxu0 %v11945_v3 }
 0x24c   : > { %v11928_v7 = vld [vmem:[%s14417_s21 + $0x14c0] sm:$0xf]  ;;  %v12329_v13 = vor.u32 %v13307_v1, %v12328_v0  ;;  %v13239_v14 = vld [vmem:[%s14417_s21 + $0x15cc] sm:$0xf0]  ;;  %7764 = vmatpush.bf16.msrb.mxu1 %v12073_v5  ;;  %7733 = vmatmul.bf16.vlgmr.msra.gmra.mxu2 %v14821_v21 }
 0x24d   : > { %v12056_v12 = vld [vmem:[%s14417_s21 + $0x15c0] sm:$0xf]  ;;  %v13271_v16 = vld [vmem:[%s14417_s21 + $0x16cc] sm:$0xf0]  ;;  %v11929_v27 = vor.u32 %v13207_v11, %v11928_v7  ;;  %7777 = vmatpush.bf16.msrb.mxu2 %v12201_v6  ;;  %v3501_v11 = vld [vmem:[%s14856_s6] sm:$0xf] }
 0x24e   : > { %v12184_v15 = vld [vmem:[%s14417_s21 + $0x16c0] sm:$0xf]  ;;  %v13303_v19 = vld [vmem:[%s14417_s21 + $0x17cc] sm:$0xf0]  ;;  %v12057_v31 = vor.u32 %v13239_v14, %v12056_v12  ;;  %7790 = vmatpush.bf16.msrb.mxu3 %v12329_v13 }
 0x24f   : > { %v12312_v18 = vld [vmem:[%s14417_s21 + $0x17c0] sm:$0xf]  ;;  %v14825_v26 = vld [vmem:[#allocation1 + $0x1b] sm:$0xff]  ;;  %v12185_v32 = vor.u32 %v13271_v16, %v12184_v15  ;;  %7752 = vmatpush.bf16.msrb.mxu0 %v11929_v27  ;;  %v2716_v16 = vld [vmem:[%s16301_s0 + $0x18] sm:$0x1] }
 0x250   : > { %v14823_v22 = vld [vmem:[#allocation1 + $0x9] sm:$0xff]  ;;  %v13203_v35 = vld [vmem:[%s14417_s21 + $0x14ac] sm:$0xf0]  ;;  %v12313_v37 = vor.u32 %v13303_v19, %v12312_v18  ;;  %7746 = vmatmul.bf16.vlgmr.msra.gmra.mxu3 %v14825_v26  ;;  %7765 = vmatpush.bf16.msrb.mxu1 %v12057_v31  ;;  %v14871_v15 = vld [vmem:[#allocation1 + $0x3f] sm:$0xff] }
 0x251   : > { %v11912_v33 = vld [vmem:[%s14417_s21 + $0x14a0] sm:$0xf]  ;;  %v13235_v38 = vld [vmem:[%s14417_s21 + $0x15ac] sm:$0xf0]  ;;  %7720 = vmatmul.bf16.vlgmr.msra.gmra.mxu1 %v14823_v22  ;;  %7778 = vmatpush.bf16.msrb.mxu2 %v12185_v32 }
 0x252   : > { %v12040_v36 = vld [vmem:[%s14417_s21 + $0x15a0] sm:$0xf]  ;;  %v13267_v40 = vld [vmem:[%s14417_s21 + $0x16ac] sm:$0xf0]  ;;  %v11913_v43 = vor.u32 %v13203_v35, %v11912_v33  ;;  %7791 = vmatpush.bf16.msrb.mxu3 %v12313_v37  ;;  %v3503_v35 = vperm.slane %v3501_v11, 0 }
 0x253   : > { %v12168_v39 = vld [vmem:[%s14417_s21 + $0x16a0] sm:$0xf]  ;;  %v13299_v42 = vld [vmem:[%s14417_s21 + $0x17ac] sm:$0xf0]  ;;  %v12041_v45 = vor.u32 %v13235_v38, %v12040_v36 }
 0x254   : > { %v12296_v41 = vld [vmem:[%s14417_s21 + $0x17a0] sm:$0xf]  ;;  %v12169_v46 = vor.u32 %v13267_v40, %v12168_v39  ;;  %v13199_v47 = vld [vmem:[%s14417_s21 + $0x148c] sm:$0xf0]  ;;  %7753 = vmatpush.bf16.msrb.mxu0 %v11913_v43  ;;  %v7500_v43 = vpop.f32.mrf.mxu0 }
 0x255   : > { %v11896_v44 = vld [vmem:[%s14417_s21 + $0x1480] sm:$0xf]  ;;  %v13231_v49 = vld [vmem:[%s14417_s21 + $0x158c] sm:$0xf0]  ;;  %v12297_v50 = vor.u32 %v13299_v42, %v12296_v41  ;;  %7766 = vmatpush.bf16.msrb.mxu1 %v12041_v45 }
 0x256   : > { %v12024_v48 = vld [vmem:[%s14417_s21 + $0x1580] sm:$0xf]  ;;  %v13263_v52 = vld [vmem:[%s14417_s21 + $0x168c] sm:$0xf0]  ;;  %v11897_v61 = vor.u32 %v13199_v47, %v11896_v44  ;;  %7779 = vmatpush.bf16.msrb.mxu2 %v12169_v46 }
 0x257   : > { %v12152_v51 = vld [vmem:[%s14417_s21 + $0x1680] sm:$0xf]  ;;  %v13295_v58 = vld [vmem:[%s14417_s21 + $0x178c] sm:$0xf0]  ;;  %v12025_v1 = vor.u32 %v13231_v49, %v12024_v48  ;;  %7792 = vmatpush.bf16.msrb.mxu3 %v12297_v50  ;;  %v7501_v49 = vadd.f32 %v7500_v43, %v3503_v35  ;;  %v7513_v50 = vpop.f32.mrf.mxu1  ;;  %v12569_v35 = vld [vmem:[%s14417_s21 + $0xe4] sm:$0xf] }
 0x258   : > { %v12280_v53 = vld [vmem:[%s14417_s21 + $0x1780] sm:$0xf]  ;;  %v13195_v60 = vld [vmem:[%s14417_s21 + $0x146c] sm:$0xf0]  ;;  %v12153_v2 = vor.u32 %v13263_v52, %v12152_v51  ;;  %7754 = vmatpush.bf16.msrb.mxu0 %v11897_v61 }
 0x259   : > { %v11880_v59 = vld [vmem:[%s14417_s21 + $0x1460] sm:$0xf]  ;;  %v13227_v63 = vld [vmem:[%s14417_s21 + $0x156c] sm:$0xf0]  ;;  %v12281_v7 = vor.u32 %v13295_v58, %v12280_v53  ;;  %7767 = vmatpush.bf16.msrb.mxu1 %v12025_v1  ;;  %v7514_v61 = vadd.f32 %v7513_v50, %v7501_v49 }
 0x25a   : > { %v12008_v62 = vld [vmem:[%s14417_s21 + $0x1560] sm:$0xf]  ;;  %v13259_v3 = vld [vmem:[%s14417_s21 + $0x166c] sm:$0xf0]  ;;  %v11881_v18 = vor.u32 %v13195_v60, %v11880_v59  ;;  %7780 = vmatpush.bf16.msrb.mxu2 %v12153_v2 }
 0x25b   : > { %v12136_v0 = vld [vmem:[%s14417_s21 + $0x1660] sm:$0xf]  ;;  %v13291_v6 = vld [vmem:[%s14417_s21 + $0x176c] sm:$0xf0]  ;;  %v12009_v27 = vor.u32 %v13227_v63, %v12008_v62  ;;  %7793 = vmatpush.bf16.msrb.mxu3 %v12281_v7  ;;  %v7526_v7 = vpop.f32.mrf.mxu2 }
 0x25c   : > { %v12264_v5 = vld [vmem:[%s14417_s21 + $0x1760] sm:$0xf]  ;;  %v14867_v13 = vld [vmem:[#allocation1 + $0x36] sm:$0xff]  ;;  %v12137_v31 = vor.u32 %v13259_v3, %v12136_v0  ;;  %7755 = vmatpush.bf16.msrb.mxu0 %v11881_v18 }
 0x25d   : > { %v14865_v12 = vld [vmem:[#allocation1 + $0x24] sm:$0xff]  ;;  %v14869_v14 = vld [vmem:[#allocation1 + $0x2d] sm:$0xff]  ;;  %v13191_v32 = vld [vmem:[%s14417_s21 + $0x144c] sm:$0xf0]  ;;  %v12265_v36 = vor.u32 %v13291_v6, %v12264_v5  ;;  %7768 = vmatpush.bf16.msrb.mxu1 %v12009_v27  ;;  %v7527_v27 = vadd.f32 %v7526_v7, %v7514_v61 }
 0x25e   : > { %v11864_v19 = vld [vmem:[%s14417_s21 + $0x1440] sm:$0xf]  ;;  %3542 = vst [vmem:[#allocation1] ss:$9 sm:$0xff] %v2716_v16  ;;  %v13223_v37 = vld [vmem:[%s14417_s21 + $0x154c] sm:$0xf0]  ;;  %7781 = vmatpush.bf16.msrb.mxu2 %v12137_v31  ;;  %v7539_v31 = vpop.f32.mrf.mxu3 }
 0x25f   : > { %v11992_v33 = vld [vmem:[%s14417_s21 + $0x1540] sm:$0xf]  ;;  %v13255_v39 = vld [vmem:[%s14417_s21 + $0x164c] sm:$0xf0]  ;;  %v11865_v42 = vor.u32 %v13191_v32, %v11864_v19  ;;  %7794 = vmatpush.bf16.msrb.mxu3 %v12265_v36  ;;  %v9498_v61 = vld [vmem:[%s14417_s21 + $0x1d0] sm:$0xf0] }
 0x260   : > { %v12120_v38 = vld [vmem:[%s14417_s21 + $0x1640] sm:$0xf]  ;;  %v13287_v41 = vld [vmem:[%s14417_s21 + $0x174c] sm:$0xf0]  ;;  %v11993_v44 = vor.u32 %v13223_v37, %v11992_v33  ;;  %v9386_v37 = vld [vmem:[%s14417_s21 + $0xf0] sm:$0xf0] }
 0x261   : > { %v12248_v40 = vld [vmem:[%s14417_s21 + $0x1740] sm:$0xf]  ;;  %v12121_v45 = vor.u32 %v13255_v39, %v12120_v38  ;;  %v13187_v47 = vld [vmem:[%s14417_s21 + $0x142c] sm:$0xf0]  ;;  %7756 = vmatpush.bf16.msrb.mxu0 %v11865_v42  ;;  %v12601_v38 = vld [vmem:[%s14417_s21 + $0x1e4] sm:$0xf]  ;;  %v9389_v49 = vor.u32 %v12569_v35, %v9386_v37 }
 0x262   : > { %v11848_v46 = vld [vmem:[%s14417_s21 + $0x1420] sm:$0xf]  ;;  %v12249_v51 = vor.u32 %v13287_v41, %v12248_v40  ;;  %v13219_v52 = vld [vmem:[%s14417_s21 + $0x152c] sm:$0xf0]  ;;  %7769 = vmatpush.bf16.msrb.mxu1 %v11993_v44  ;;  %v9514_v39 = vld [vmem:[%s14417_s21 + $0x1f0] sm:$0xf0]  ;;  %v14906_v40 = vadd.f32 %v7539_v31, %v7527_v27  ;;  %v7502_v41 = vpop.f32.mrf.mxu0 }
 0x263   : > { %v11976_v48 = vld [vmem:[%s14417_s21 + $0x1520] sm:$0xf]  ;;  %v13251_v58 = vld [vmem:[%s14417_s21 + $0x162c] sm:$0xf0]  ;;  %v11849_v62 = vor.u32 %v13187_v47, %v11848_v46  ;;  %7782 = vmatpush.bf16.msrb.mxu2 %v12121_v45  ;;  %v12633_v44 = vld [vmem:[%s14417_s21 + $0x2e4] sm:$0xf]  ;;  %v7515_v46 = vpop.f32.mrf.mxu1  ;;  %v9517_v50 = vor.u32 %v12601_v38, %v9514_v39 }
 0x264   : > { %v12104_v53 = vld [vmem:[%s14417_s21 + $0x1620] sm:$0xf]  ;;  %v13283_v60 = vld [vmem:[%s14417_s21 + $0x172c] sm:$0xf0]  ;;  %v11977_v1 = vor.u32 %v13219_v52, %v11976_v48  ;;  %7795 = vmatpush.bf16.msrb.mxu3 %v12249_v51  ;;  %v9642_v45 = vld [vmem:[%s14417_s21 + $0x2f0] sm:$0xf0] }
 0x265   : > { %v12232_v59 = vld [vmem:[%s14417_s21 + $0x1720] sm:$0xf]  ;;  %v13183_v0 = vld [vmem:[%s14417_s21 + $0x140c] sm:$0xf0]  ;;  %v12105_v2 = vor.u32 %v13251_v58, %v12104_v53  ;;  %7757 = vmatpush.bf16.msrb.mxu0 %v11849_v62  ;;  %v12565_v53 = vld [vmem:[%s14417_s21 + $0xc4] sm:$0xf]  ;;  %v9645_v58 = vor.u32 %v12633_v44, %v9642_v45 }
 0x266   : > { %v11832_v63 = vld [vmem:[%s14417_s21 + $0x1400] sm:$0xf]  ;;  %v13215_v5 = vld [vmem:[%s14417_s21 + $0x150c] sm:$0xf0]  ;;  %v12233_v11 = vor.u32 %v13283_v60, %v12232_v59  ;;  %7770 = vmatpush.bf16.msrb.mxu1 %v11977_v1  ;;  %v9370_v59 = vld [vmem:[%s14417_s21 + $0xd0] sm:$0xf0] }
 0x267   : > { %v11960_v3 = vld [vmem:[%s14417_s21 + $0x1500] sm:$0xf]  ;;  %v13247_v16 = vld [vmem:[%s14417_s21 + $0x160c] sm:$0xf0]  ;;  %v11833_v36 = vor.u32 %v13183_v0, %v11832_v63  ;;  %7783 = vmatpush.bf16.msrb.mxu2 %v12105_v2  ;;  %v12597_v60 = vld [vmem:[%s14417_s21 + $0x1c4] sm:$0xf]  ;;  %v7528_v0 = vpop.f32.mrf.mxu2  ;;  %v7541_v2 = vpop.f32.mrf.mxu3 }
 0x268   : > { %v12088_v6 = vld [vmem:[%s14417_s21 + $0x1600] sm:$0xf]  ;;  %v13279_v19 = vld [vmem:[%s14417_s21 + $0x170c] sm:$0xf0]  ;;  %v11961_v42 = vor.u32 %v13215_v5, %v11960_v3  ;;  %7796 = vmatpush.bf16.msrb.mxu3 %v12233_v11  ;;  %v12629_v62 = vld [vmem:[%s14417_s21 + $0x2c4] sm:$0xf]  ;;  %v9373_v3 = vor.u32 %v12565_v53, %v9370_v59  ;;  %v9501_v5 = vor.u32 %v12597_v60, %v9498_v61 }
 0x269   : > { %v12216_v18 = vld [vmem:[%s14417_s21 + $0x1700] sm:$0xf]  ;;  %v13323_v33 = vld [vmem:[%s14417_s21 + $0x186c] sm:$0xf0]  ;;  %v12089_v43 = vor.u32 %v13247_v16, %v12088_v6  ;;  %7758 = vmatpush.bf16.msrb.mxu0 %v11833_v36  ;;  %v9626_v63 = vld [vmem:[%s14417_s21 + $0x2d0] sm:$0xf0] }
 0x26a   : > { %v12392_v32 = vld [vmem:[%s14417_s21 + $0x1860] sm:$0xf]  ;;  %v12217_v47 = vor.u32 %v13279_v19, %v12216_v18  ;;  %v13319_v52 = vld [vmem:[%s14417_s21 + $0x184c] sm:$0xf0]  ;;  %7771 = vmatpush.bf16.msrb.mxu1 %v11961_v42  ;;  %v12561_v11 = vld [vmem:[%s14417_s21 + $0xa4] sm:$0xf]  ;;  %v9629_v16 = vor.u32 %v12629_v62, %v9626_v63 }
 0x26b   : > { %v12393_v48 = vor.u32 %v13323_v33, %v12392_v32  ;;  %v12376_v51 = vld [vmem:[%s14417_s21 + $0x1840] sm:$0xf]  ;;  %7784 = vmatpush.bf16.msrb.mxu2 %v12089_v43  ;;  %v13315_v7 = vld [vmem:[%s14417_s21 + $0x182c] sm:$0xf0]  ;;  %v9354_v18 = vld [vmem:[%s14417_s21 + $0xb0] sm:$0xf0]  ;;  %v7565_v60 = vpop.f32.mrf.mxu1 }
 0x26c   : > { %7797 = vmatpush.bf16.msrb.mxu3 %v12217_v47  ;;  %v12377_v1 = vor.u32 %v13319_v52, %v12376_v51  ;;  %v12360_v6 = vld [vmem:[%s14417_s21 + $0x1820] sm:$0xf]  ;;  %7759 = vmatmul.bf16.vlgmr.msrb.gmra.mxu0 %v14865_v12  ;;  %v12593_v19 = vld [vmem:[%s14417_s21 + $0x1a4] sm:$0xf]  ;;  %v9482_v27 = vld [vmem:[%s14417_s21 + $0x1b0] sm:$0xf0]  ;;  %v9357_v36 = vor.u32 %v12561_v11, %v9354_v18 }
 0x26d   : > { %7807 = vmatpush.bf16.msra.mxu0 %v12393_v48  ;;  %7772 = vmatmul.bf16.vlgmr.msrb.gmra.mxu1 %v14869_v14  ;;  %v12625_v31 = vld [vmem:[%s14417_s21 + $0x2a4] sm:$0xf]  ;;  %v9610_v32 = vld [vmem:[%s14417_s21 + $0x2b0] sm:$0xf0]  ;;  %v12361_v33 = vor.u32 %v13315_v7, %v12360_v6  ;;  %v12344_v35 = vld [vmem:[%s14417_s21 + $0x1800] sm:$0xf]  ;;  %v9485_v37 = vor.u32 %v12593_v19, %v9482_v27 }
 0x26e   : > { %7816 = vmatpush.bf16.msra.mxu1 %v9389_v49  ;;  %7785 = vmatmul.bf16.vlgmr.msrb.gmra.mxu2 %v14867_v13  ;;  %v13311_v38 = vld [vmem:[%s14417_s21 + $0x180c] sm:$0xf0]  ;;  %v12557_v39 = vld [vmem:[%s14417_s21 + $0x84] sm:$0xf]  ;;  %v9338_v41 = vld [vmem:[%s14417_s21 + $0x90] sm:$0xf0]  ;;  %v9613_v42 = vor.u32 %v12625_v31, %v9610_v32 }
 0x26f   : > { %7829 = vmatpush.bf16.msra.mxu2 %v9517_v50  ;;  %7798 = vmatmul.bf16.vlgmr.msrb.gmra.mxu3 %v14871_v15  ;;  %v12589_v43 = vld [vmem:[%s14417_s21 + $0x184] sm:$0xf]  ;;  %v9466_v44 = vld [vmem:[%s14417_s21 + $0x190] sm:$0xf0]  ;;  %v12345_v49 = vor.u32 %v13311_v38, %v12344_v35  ;;  %v7552_v50 = vpop.f32.mrf.mxu0  ;;  %v9341_v51 = vor.u32 %v12557_v39, %v9338_v41  ;;  %v7578_v18 = vpop.f32.mrf.mxu2 }
 0x270   : > { %7842 = vmatpush.bf16.msra.mxu3 %v9645_v58  ;;  %v12621_v45 = vld [vmem:[%s14417_s21 + $0x284] sm:$0xf]  ;;  %v9594_v46 = vld [vmem:[%s14417_s21 + $0x290] sm:$0xf0]  ;;  %v9469_v52 = vor.u32 %v12589_v43, %v9466_v44  ;;  %v7553_v59 = vadd.f32 %v7552_v50, %v14906_v40 }
 0x271   : > { %7808 = vmatpush.bf16.msra.mxu0 %v12377_v1  ;;  %v12665_v47 = vld [vmem:[%s14417_s21 + $0x3e4] sm:$0xf]  ;;  %v9770_v48 = vld [vmem:[%s14417_s21 + $0x3f0] sm:$0xf0]  ;;  %v9597_v61 = vor.u32 %v12621_v45, %v9594_v46 }
 0x272   : > { %7817 = vmatpush.bf16.msra.mxu1 %v9373_v3  ;;  %v12553_v53 = vld [vmem:[%s14417_s21 + $0x64] sm:$0xf]  ;;  %v9322_v58 = vld [vmem:[%s14417_s21 + $0x70] sm:$0xf0]  ;;  %v9773_v62 = vor.u32 %v12665_v47, %v9770_v48  ;;  %v7566_v6 = vadd.f32 %v7565_v60, %v7553_v59 }
 0x273   : > { %7830 = vmatpush.bf16.msra.mxu2 %v9501_v5  ;;  %v12585_v63 = vld [vmem:[%s14417_s21 + $0x164] sm:$0xf]  ;;  %v9450_v0 = vld [vmem:[%s14417_s21 + $0x170] sm:$0xf0]  ;;  %v9325_v40 = vor.u32 %v12553_v53, %v9322_v58  ;;  %v7567_v48 = vpop.f32.mrf.mxu1 }
 0x274   : > { %7843 = vmatpush.bf16.msra.mxu3 %v9629_v16  ;;  %v12617_v1 = vld [vmem:[%s14417_s21 + $0x264] sm:$0xf]  ;;  %v9578_v2 = vld [vmem:[%s14417_s21 + $0x270] sm:$0xf0]  ;;  %v9453_v7 = vor.u32 %v12585_v63, %v9450_v0  ;;  %v7579_v35 = vadd.f32 %v7578_v18, %v7566_v6 }
 0x275   : > { %7809 = vmatpush.bf16.msra.mxu0 %v12361_v33  ;;  %v12661_v3 = vld [vmem:[%s14417_s21 + $0x3c4] sm:$0xf]  ;;  %v9754_v5 = vld [vmem:[%s14417_s21 + $0x3d0] sm:$0xf0]  ;;  %v9581_v19 = vor.u32 %v12617_v1, %v9578_v2 }
 0x276   : > { %7818 = vmatpush.bf16.msra.mxu1 %v9357_v36  ;;  %v12549_v11 = vld [vmem:[%s14417_s21 + $0x44] sm:$0xf]  ;;  %v9306_v16 = vld [vmem:[%s14417_s21 + $0x50] sm:$0xf0]  ;;  %v9757_v27 = vor.u32 %v12661_v3, %v9754_v5  ;;  %v7591_v36 = vpop.f32.mrf.mxu3 }
 0x277   : > { %7831 = vmatpush.bf16.msra.mxu2 %v9485_v37  ;;  %v12581_v31 = vld [vmem:[%s14417_s21 + $0x144] sm:$0xf]  ;;  %v9434_v32 = vld [vmem:[%s14417_s21 + $0x150] sm:$0xf0]  ;;  %v7554_v43 = vpop.f32.mrf.mxu0  ;;  %v9309_v44 = vor.u32 %v12549_v11, %v9306_v16  ;;  %v7580_v2 = vpop.f32.mrf.mxu2 }
 0x278   : > { %7844 = vmatpush.bf16.msra.mxu3 %v9613_v42  ;;  %v12613_v33 = vld [vmem:[%s14417_s21 + $0x244] sm:$0xf]  ;;  %v9562_v37 = vld [vmem:[%s14417_s21 + $0x250] sm:$0xf0]  ;;  %v14957_v42 = vadd.f32 %v7591_v36, %v7579_v35  ;;  %v9437_v45 = vor.u32 %v12581_v31, %v9434_v32 }
 0x279   : > { %7810 = vmatpush.bf16.msra.mxu0 %v12345_v49  ;;  %v12657_v38 = vld [vmem:[%s14417_s21 + $0x3a4] sm:$0xf]  ;;  %v9738_v39 = vld [vmem:[%s14417_s21 + $0x3b0] sm:$0xf0]  ;;  %v9565_v49 = vor.u32 %v12613_v33, %v9562_v37 }
 0x27a   : > { %7819 = vmatpush.bf16.msra.mxu1 %v9341_v51  ;;  %v3543_v41 = vld [vmem:[#allocation1] sm:$0xff]  ;;  %v12545_v46 = vld [vmem:[%s14417_s21 + $0x24] sm:$0xf]  ;;  %v9741_v50 = vor.u32 %v12657_v38, %v9738_v39 }
 0x27b   : > { %7832 = vmatpush.bf16.msra.mxu2 %v9469_v52  ;;  %v9290_v47 = vld [vmem:[%s14417_s21 + $0x30] sm:$0xf0]  ;;  %v12577_v51 = vld [vmem:[%s14417_s21 + $0x124] sm:$0xf] }
 0x27c   : > { %7845 = vmatpush.bf16.msra.mxu3 %v9597_v61  ;;  %v9418_v52 = vld [vmem:[%s14417_s21 + $0x130] sm:$0xf0]  ;;  %v12609_v53 = vld [vmem:[%s14417_s21 + $0x224] sm:$0xf]  ;;  %12406 = vmatmul.msk.bf16.vlgmr.msra.gmra.mxu0 %vm7488_vm0, %v3543_v41  ;;  %v9293_v61 = vor.u32 %v12545_v46, %v9290_v47 }
 0x27d   : > { %7855 = vmatpush.bf16.msrb.mxu0 %v9773_v62  ;;  %v9546_v58 = vld [vmem:[%s14417_s21 + $0x230] sm:$0xf0]  ;;  %v12653_v59 = vld [vmem:[%s14417_s21 + $0x384] sm:$0xf]  ;;  %v9421_v62 = vor.u32 %v12577_v51, %v9418_v52 }
 0x27e   : > { %7820 = vmatpush.bf16.msra.mxu1 %v9325_v40  ;;  %v9722_v60 = vld [vmem:[%s14417_s21 + $0x390] sm:$0xf0]  ;;  %v12541_v63 = vld [vmem:[%s14417_s21 + $0x4] sm:$0xf]  ;;  %v9549_v3 = vor.u32 %v12609_v53, %v9546_v58  ;;  %v7593_v11 = vpop.f32.mrf.mxu3 }
 0x27f   : > { %7833 = vmatpush.bf16.msra.mxu2 %v9453_v7  ;;  %v9274_v0 = vld [vmem:[%s14417_s21 + $0x10] sm:$0xf0]  ;;  %v12573_v1 = vld [vmem:[%s14417_s21 + $0x104] sm:$0xf]  ;;  %v9725_v5 = vor.u32 %v12653_v59, %v9722_v60 }
 0x280   : > { %7846 = vmatpush.bf16.msra.mxu3 %v9581_v19  ;;  %v9402_v6 = vld [vmem:[%s14417_s21 + $0x110] sm:$0xf0]  ;;  %v12605_v40 = vld [vmem:[%s14417_s21 + $0x204] sm:$0xf]  ;;  %v9277_v33 = vor.u32 %v12541_v63, %v9274_v0 }
 0x281   : > { %7856 = vmatpush.bf16.msrb.mxu0 %v9757_v27  ;;  %v9530_v7 = vld [vmem:[%s14417_s21 + $0x210] sm:$0xf0]  ;;  %v12649_v16 = vld [vmem:[%s14417_s21 + $0x364] sm:$0xf]  ;;  %v9405_v35 = vor.u32 %v12573_v1, %v9402_v6 }
 0x282   : > { %7821 = vmatpush.bf16.msra.mxu1 %v9309_v44  ;;  %v9706_v18 = vld [vmem:[%s14417_s21 + $0x370] sm:$0xf0]  ;;  %v12697_v19 = vld [vmem:[%s14417_s21 + $0x4e4] sm:$0xf]  ;;  %v9533_v38 = vor.u32 %v12605_v40, %v9530_v7 }
 0x283   : > { %7834 = vmatpush.bf16.msra.mxu2 %v9437_v45  ;;  %v9898_v27 = vld [vmem:[%s14417_s21 + $0x4f0] sm:$0xf0]  ;;  %v12729_v31 = vld [vmem:[%s14417_s21 + $0x5e4] sm:$0xf]  ;;  %v9709_v39 = vor.u32 %v12649_v16, %v9706_v18 }
 0x284   : > { %7847 = vmatpush.bf16.msra.mxu3 %v9565_v49  ;;  %v10026_v32 = vld [vmem:[%s14417_s21 + $0x5f0] sm:$0xf0]  ;;  %v12761_v36 = vld [vmem:[%s14417_s21 + $0x6e4] sm:$0xf]  ;;  %v9901_v41 = vor.u32 %v12697_v19, %v9898_v27 }
 0x285   : > { %7857 = vmatpush.bf16.msrb.mxu0 %v9741_v50  ;;  %v10154_v37 = vld [vmem:[%s14417_s21 + $0x6f0] sm:$0xf0]  ;;  %v10029_v43 = vor.u32 %v12729_v31, %v10026_v32  ;;  %v12645_v44 = vld [vmem:[%s14417_s21 + $0x344] sm:$0xf] }
 0x286   : > { %7822 = vmatpush.bf16.msra.mxu1 %v9293_v61  ;;  %v9690_v45 = vld [vmem:[%s14417_s21 + $0x350] sm:$0xf0]  ;;  %v12693_v46 = vld [vmem:[%s14417_s21 + $0x4c4] sm:$0xf]  ;;  %v10157_v47 = vor.u32 %v12761_v36, %v10154_v37 }
 0x287   : > { %7835 = vmatpush.bf16.msra.mxu2 %v9421_v62  ;;  %v9882_v48 = vld [vmem:[%s14417_s21 + $0x4d0] sm:$0xf0]  ;;  %v12725_v49 = vld [vmem:[%s14417_s21 + $0x5c4] sm:$0xf]  ;;  %v9693_v53 = vor.u32 %v12645_v44, %v9690_v45 }
 0x288   : > { %7848 = vmatpush.bf16.msra.mxu3 %v9549_v3  ;;  %v10010_v50 = vld [vmem:[%s14417_s21 + $0x5d0] sm:$0xf0]  ;;  %v12757_v51 = vld [vmem:[%s14417_s21 + $0x6c4] sm:$0xf]  ;;  %v9885_v58 = vor.u32 %v12693_v46, %v9882_v48 }
 0x289   : > { %7858 = vmatpush.bf16.msrb.mxu0 %v9725_v5  ;;  %v10138_v52 = vld [vmem:[%s14417_s21 + $0x6d0] sm:$0xf0]  ;;  %v10013_v59 = vor.u32 %v12725_v49, %v10010_v50  ;;  %v12641_v60 = vld [vmem:[%s14417_s21 + $0x324] sm:$0xf] }
 0x28a   : > { %7823 = vmatpush.bf16.msra.mxu1 %v9277_v33  ;;  %v9674_v61 = vld [vmem:[%s14417_s21 + $0x330] sm:$0xf0]  ;;  %v12689_v62 = vld [vmem:[%s14417_s21 + $0x4a4] sm:$0xf]  ;;  %v10141_v63 = vor.u32 %v12757_v51, %v10138_v52 }
 0x28b   : > { %7836 = vmatpush.bf16.msra.mxu2 %v9405_v35  ;;  %v9866_v0 = vld [vmem:[%s14417_s21 + $0x4b0] sm:$0xf0]  ;;  %v12721_v1 = vld [vmem:[%s14417_s21 + $0x5a4] sm:$0xf]  ;;  %v9677_v6 = vor.u32 %v12641_v60, %v9674_v61  ;;  %v7604_v35 = vpop.f32.mrf.mxu0 }
 0x28c   : > { %7849 = vmatpush.bf16.msra.mxu3 %v9533_v38  ;;  %v9994_v2 = vld [vmem:[%s14417_s21 + $0x5b0] sm:$0xf0]  ;;  %v12753_v3 = vld [vmem:[%s14417_s21 + $0x6a4] sm:$0xf]  ;;  %v9869_v7 = vor.u32 %v12689_v62, %v9866_v0 }
 0x28d   : > { %7859 = vmatpush.bf16.msrb.mxu0 %v9709_v39  ;;  %v10122_v5 = vld [vmem:[%s14417_s21 + $0x6b0] sm:$0xf0]  ;;  %7824 = vmatmul.bf16.vlgmr.msra.gmra.mxu1 %v14524_v29  ;;  %v12637_v40 = vld [vmem:[%s14417_s21 + $0x304] sm:$0xf]  ;;  %v9997_v11 = vor.u32 %v12721_v1, %v9994_v2  ;;  %v7605_v39 = vadd.f32 %v7604_v35, %v14957_v42  ;;  %v7630_v1 = vpop.f32.mrf.mxu2 }
 0x28e   : > { %7868 = vmatpush.bf16.msrb.mxu1 %v9901_v41  ;;  %7837 = vmatmul.bf16.vlgmr.msra.gmra.mxu2 %v14531_v34  ;;  %v9658_v16 = vld [vmem:[%s14417_s21 + $0x310] sm:$0xf0]  ;;  %v12685_v18 = vld [vmem:[%s14417_s21 + $0x484] sm:$0xf]  ;;  %v10125_v27 = vor.u32 %v12753_v3, %v10122_v5 }
 0x28f   : > { %7881 = vmatpush.bf16.msrb.mxu2 %v10029_v43  ;;  %7850 = vmatmul.bf16.vlgmr.msra.gmra.mxu3 %v14522_v28  ;;  %v9850_v19 = vld [vmem:[%s14417_s21 + $0x490] sm:$0xf0]  ;;  %v12717_v31 = vld [vmem:[%s14417_s21 + $0x584] sm:$0xf]  ;;  %v9661_v41 = vor.u32 %v12637_v40, %v9658_v16  ;;  %v7617_v43 = vpop.f32.mrf.mxu1 }
 0x290   : > { %7894 = vmatpush.bf16.msrb.mxu3 %v10157_v47  ;;  %v9978_v32 = vld [vmem:[%s14417_s21 + $0x590] sm:$0xf0]  ;;  %v12749_v33 = vld [vmem:[%s14417_s21 + $0x684] sm:$0xf]  ;;  %v9853_v44 = vor.u32 %v12685_v18, %v9850_v19  ;;  %v7618_v49 = vadd.f32 %v7617_v43, %v7605_v39 }
 0x291   : > { %7860 = vmatpush.bf16.msrb.mxu0 %v9693_v53  ;;  %v10106_v36 = vld [vmem:[%s14417_s21 + $0x690] sm:$0xf0]  ;;  %v12793_v37 = vld [vmem:[%s14417_s21 + $0x7e4] sm:$0xf]  ;;  %v9981_v45 = vor.u32 %v12717_v31, %v9978_v32 }
 0x292   : > { %7869 = vmatpush.bf16.msrb.mxu1 %v9885_v58  ;;  %v10282_v38 = vld [vmem:[%s14417_s21 + $0x7f0] sm:$0xf0]  ;;  %v12681_v46 = vld [vmem:[%s14417_s21 + $0x464] sm:$0xf]  ;;  %v10109_v48 = vor.u32 %v12749_v33, %v10106_v36  ;;  %v7631_v40 = vadd.f32 %v7630_v1, %v7618_v49 }
 0x293   : > { %7882 = vmatpush.bf16.msrb.mxu2 %v10013_v59  ;;  %v9834_v47 = vld [vmem:[%s14417_s21 + $0x470] sm:$0xf0]  ;;  %v10285_v50 = vor.u32 %v12793_v37, %v10282_v38  ;;  %v12713_v51 = vld [vmem:[%s14417_s21 + $0x564] sm:$0xf]  ;;  %v7606_v19 = vpop.f32.mrf.mxu0 }
 0x294   : > { %7895 = vmatpush.bf16.msrb.mxu3 %v10141_v63  ;;  %v9962_v52 = vld [vmem:[%s14417_s21 + $0x570] sm:$0xf0]  ;;  %v12745_v42 = vld [vmem:[%s14417_s21 + $0x664] sm:$0xf]  ;;  %v9837_v60 = vor.u32 %v12681_v46, %v9834_v47 }
 0x295   : > { %7861 = vmatpush.bf16.msrb.mxu0 %v9677_v6  ;;  %v10090_v53 = vld [vmem:[%s14417_s21 + $0x670] sm:$0xf0]  ;;  %v12789_v58 = vld [vmem:[%s14417_s21 + $0x7c4] sm:$0xf]  ;;  %v9965_v61 = vor.u32 %v12713_v51, %v9962_v52 }
 0x296   : > { %7870 = vmatpush.bf16.msrb.mxu1 %v9869_v7  ;;  %v10266_v59 = vld [vmem:[%s14417_s21 + $0x7d0] sm:$0xf0]  ;;  %v12677_v62 = vld [vmem:[%s14417_s21 + $0x444] sm:$0xf]  ;;  %v10093_v0 = vor.u32 %v12745_v42, %v10090_v53  ;;  %v7643_v7 = vpop.f32.mrf.mxu3 }
 0x297   : > { %7883 = vmatpush.bf16.msrb.mxu2 %v9997_v11  ;;  %v9818_v63 = vld [vmem:[%s14417_s21 + $0x450] sm:$0xf0]  ;;  %v10269_v2 = vor.u32 %v12789_v58, %v10266_v59  ;;  %v12709_v3 = vld [vmem:[%s14417_s21 + $0x544] sm:$0xf]  ;;  %v15029_v31 = vadd.f32 %v7643_v7, %v7631_v40 }
 0x298   : > { %7896 = vmatpush.bf16.msrb.mxu3 %v10125_v27  ;;  %v9946_v5 = vld [vmem:[%s14417_s21 + $0x550] sm:$0xf0]  ;;  %v12741_v6 = vld [vmem:[%s14417_s21 + $0x644] sm:$0xf]  ;;  %v7619_v27 = vpop.f32.mrf.mxu1  ;;  %v9821_v32 = vor.u32 %v12677_v62, %v9818_v63 }
 0x299   : > { %7862 = vmatpush.bf16.msrb.mxu0 %v9661_v41  ;;  %v10074_v11 = vld [vmem:[%s14417_s21 + $0x650] sm:$0xf0]  ;;  %v12785_v16 = vld [vmem:[%s14417_s21 + $0x7a4] sm:$0xf]  ;;  %v9949_v33 = vor.u32 %v12709_v3, %v9946_v5 }
 0x29a   : > { %7871 = vmatpush.bf16.msrb.mxu1 %v9853_v44  ;;  %v10250_v18 = vld [vmem:[%s14417_s21 + $0x7b0] sm:$0xf0]  ;;  %v12673_v35 = vld [vmem:[%s14417_s21 + $0x424] sm:$0xf]  ;;  %v10077_v37 = vor.u32 %v12741_v6, %v10074_v11 }
 0x29b   : > { %7884 = vmatpush.bf16.msrb.mxu2 %v9981_v45  ;;  %v9802_v36 = vld [vmem:[%s14417_s21 + $0x430] sm:$0xf0]  ;;  %v10253_v38 = vor.u32 %v12785_v16, %v10250_v18  ;;  %v12705_v39 = vld [vmem:[%s14417_s21 + $0x524] sm:$0xf] }
 0x29c   : > { %7897 = vmatpush.bf16.msrb.mxu3 %v10109_v48  ;;  %7863 = vmatmul.bf16.vlgmr.msrb.gmra.mxu0 %v14526_v30  ;;  %v9930_v41 = vld [vmem:[%s14417_s21 + $0x530] sm:$0xf0]  ;;  %v12737_v43 = vld [vmem:[%s14417_s21 + $0x624] sm:$0xf]  ;;  %v9805_v47 = vor.u32 %v12673_v35, %v9802_v36 }
 0x29d   : > { %7907 = vmatpush.bf16.msra.mxu0 %v10285_v50  ;;  %v10058_v44 = vld [vmem:[%s14417_s21 + $0x630] sm:$0xf0]  ;;  %v12781_v45 = vld [vmem:[%s14417_s21 + $0x784] sm:$0xf]  ;;  %v9933_v48 = vor.u32 %v12705_v39, %v9930_v41 }
 0x29e   : > { %7872 = vmatpush.bf16.msrb.mxu1 %v9837_v60  ;;  %v10234_v46 = vld [vmem:[%s14417_s21 + $0x790] sm:$0xf0]  ;;  %v12669_v49 = vld [vmem:[%s14417_s21 + $0x404] sm:$0xf]  ;;  %v10061_v52 = vor.u32 %v12737_v43, %v10058_v44  ;;  %v7632_v60 = vpop.f32.mrf.mxu2 }
 0x29f   : > { %7885 = vmatpush.bf16.msrb.mxu2 %v9965_v61  ;;  %v9786_v50 = vld [vmem:[%s14417_s21 + $0x410] sm:$0xf0]  ;;  %v12701_v51 = vld [vmem:[%s14417_s21 + $0x504] sm:$0xf]  ;;  %v10237_v42 = vor.u32 %v12781_v45, %v10234_v46 }
 0x2a0   : > { %7898 = vmatpush.bf16.msrb.mxu3 %v10093_v0  ;;  %v9914_v53 = vld [vmem:[%s14417_s21 + $0x510] sm:$0xf0]  ;;  %v12733_v58 = vld [vmem:[%s14417_s21 + $0x604] sm:$0xf]  ;;  %v7645_v0 = vpop.f32.mrf.mxu3  ;;  %v9789_v5 = vor.u32 %v12669_v49, %v9786_v50 }
 0x2a1   : > { %7908 = vmatpush.bf16.msra.mxu0 %v10269_v2  ;;  %v10042_v59 = vld [vmem:[%s14417_s21 + $0x610] sm:$0xf0]  ;;  %v12777_v61 = vld [vmem:[%s14417_s21 + $0x764] sm:$0xf]  ;;  %v9917_v6 = vor.u32 %v12701_v51, %v9914_v53 }
 0x2a2   : > { %7873 = vmatpush.bf16.msrb.mxu1 %v9821_v32  ;;  %v10218_v62 = vld [vmem:[%s14417_s21 + $0x770] sm:$0xf0]  ;;  %v12825_v63 = vld [vmem:[%s14417_s21 + $0x8e4] sm:$0xf]  ;;  %v10045_v11 = vor.u32 %v12733_v58, %v10042_v59 }
 0x2a3   : > { %7886 = vmatpush.bf16.msrb.mxu2 %v9949_v33  ;;  %v10410_v1 = vld [vmem:[%s14417_s21 + $0x8f0] sm:$0xf0]  ;;  %v12857_v2 = vld [vmem:[%s14417_s21 + $0x9e4] sm:$0xf]  ;;  %v10221_v16 = vor.u32 %v12777_v61, %v10218_v62 }
 0x2a4   : > { %7899 = vmatpush.bf16.msrb.mxu3 %v10077_v37  ;;  %v10538_v3 = vld [vmem:[%s14417_s21 + $0x9f0] sm:$0xf0]  ;;  %v12889_v40 = vld [vmem:[%s14417_s21 + $0xae4] sm:$0xf]  ;;  %v10413_v18 = vor.u32 %v12825_v63, %v10410_v1 }
 0x2a5   : > { %7909 = vmatpush.bf16.msra.mxu0 %v10253_v38  ;;  %v10666_v7 = vld [vmem:[%s14417_s21 + $0xaf0] sm:$0xf0]  ;;  %v10541_v19 = vor.u32 %v12857_v2, %v10538_v3  ;;  %v12773_v27 = vld [vmem:[%s14417_s21 + $0x744] sm:$0xf] }
 0x2a6   : > { %7874 = vmatpush.bf16.msrb.mxu1 %v9805_v47  ;;  %v10202_v32 = vld [vmem:[%s14417_s21 + $0x750] sm:$0xf0]  ;;  %v12821_v33 = vld [vmem:[%s14417_s21 + $0x8c4] sm:$0xf]  ;;  %v10669_v35 = vor.u32 %v12889_v40, %v10666_v7 }
 0x2a7   : > { %7887 = vmatpush.bf16.msrb.mxu2 %v9933_v48  ;;  %v10394_v36 = vld [vmem:[%s14417_s21 + $0x8d0] sm:$0xf0]  ;;  %v12853_v37 = vld [vmem:[%s14417_s21 + $0x9c4] sm:$0xf]  ;;  %v10205_v43 = vor.u32 %v12773_v27, %v10202_v32 }
 0x2a8   : > { %7900 = vmatpush.bf16.msrb.mxu3 %v10061_v52  ;;  %v10522_v38 = vld [vmem:[%s14417_s21 + $0x9d0] sm:$0xf0]  ;;  %v12885_v39 = vld [vmem:[%s14417_s21 + $0xac4] sm:$0xf]  ;;  %v10397_v44 = vor.u32 %v12821_v33, %v10394_v36 }
 0x2a9   : > { %7910 = vmatpush.bf16.msra.mxu0 %v10237_v42  ;;  %v10650_v41 = vld [vmem:[%s14417_s21 + $0xad0] sm:$0xf0]  ;;  %v10525_v45 = vor.u32 %v12853_v37, %v10522_v38  ;;  %v12769_v46 = vld [vmem:[%s14417_s21 + $0x724] sm:$0xf] }
 0x2aa   : > { %7875 = vmatpush.bf16.msrb.mxu1 %v9789_v5  ;;  %v10186_v47 = vld [vmem:[%s14417_s21 + $0x730] sm:$0xf0]  ;;  %v12817_v48 = vld [vmem:[%s14417_s21 + $0x8a4] sm:$0xf]  ;;  %v10653_v49 = vor.u32 %v12885_v39, %v10650_v41 }
 0x2ab   : > { %7888 = vmatpush.bf16.msrb.mxu2 %v9917_v6  ;;  %v10378_v50 = vld [vmem:[%s14417_s21 + $0x8b0] sm:$0xf0]  ;;  %v12849_v51 = vld [vmem:[%s14417_s21 + $0x9a4] sm:$0xf]  ;;  %v10189_v58 = vor.u32 %v12769_v46, %v10186_v47  ;;  %v7656_v6 = vpop.f32.mrf.mxu0 }
 0x2ac   : > { %7901 = vmatpush.bf16.msrb.mxu3 %v10045_v11  ;;  %v10506_v52 = vld [vmem:[%s14417_s21 + $0x9b0] sm:$0xf0]  ;;  %v12881_v42 = vld [vmem:[%s14417_s21 + $0xaa4] sm:$0xf]  ;;  %v10381_v60 = vor.u32 %v12817_v48, %v10378_v50 }
 0x2ad   : > { %7911 = vmatpush.bf16.msra.mxu0 %v10221_v16  ;;  %v10634_v53 = vld [vmem:[%s14417_s21 + $0xab0] sm:$0xf0]  ;;  %7876 = vmatmul.bf16.vlgmr.msrb.gmra.mxu1 %v14565_v8  ;;  %v12765_v59 = vld [vmem:[%s14417_s21 + $0x704] sm:$0xf]  ;;  %v10509_v61 = vor.u32 %v12849_v51, %v10506_v52  ;;  %v7657_v16 = vadd.f32 %v7656_v6, %v15029_v31 }
 0x2ae   : > { %7920 = vmatpush.bf16.msra.mxu1 %v10413_v18  ;;  %7889 = vmatmul.bf16.vlgmr.msrb.gmra.mxu2 %v14569_v10  ;;  %v10170_v62 = vld [vmem:[%s14417_s21 + $0x710] sm:$0xf0]  ;;  %v12813_v63 = vld [vmem:[%s14417_s21 + $0x884] sm:$0xf]  ;;  %v10637_v1 = vor.u32 %v12881_v42, %v10634_v53 }
 0x2af   : > { %7933 = vmatpush.bf16.msra.mxu2 %v10541_v19  ;;  %7902 = vmatmul.bf16.vlgmr.msrb.gmra.mxu3 %v14560_v4  ;;  %v10362_v0 = vld [vmem:[%s14417_s21 + $0x890] sm:$0xf0]  ;;  %v12845_v2 = vld [vmem:[%s14417_s21 + $0x984] sm:$0xf]  ;;  %v10173_v18 = vor.u32 %v12765_v59, %v10170_v62  ;;  %v7669_v19 = vpop.f32.mrf.mxu1  ;;  %v7682_v51 = vpop.f32.mrf.mxu2 }
 0x2b0   : > { %7946 = vmatpush.bf16.msra.mxu3 %v10669_v35  ;;  %v10490_v3 = vld [vmem:[%s14417_s21 + $0x990] sm:$0xf0]  ;;  %v12877_v5 = vld [vmem:[%s14417_s21 + $0xa84] sm:$0xf]  ;;  %v10365_v27 = vor.u32 %v12813_v63, %v10362_v0  ;;  %v7670_v37 = vadd.f32 %v7669_v19, %v7657_v16 }
 0x2b1   : > { %7912 = vmatpush.bf16.msra.mxu0 %v10205_v43  ;;  %v10618_v40 = vld [vmem:[%s14417_s21 + $0xa90] sm:$0xf0]  ;;  %v12921_v7 = vld [vmem:[%s14417_s21 + $0xbe4] sm:$0xf]  ;;  %v10493_v32 = vor.u32 %v12845_v2, %v10490_v3 }
 0x2b2   : > { %7921 = vmatpush.bf16.msra.mxu1 %v10397_v44  ;;  %v10794_v11 = vld [vmem:[%s14417_s21 + $0xbf0] sm:$0xf0]  ;;  %v12809_v33 = vld [vmem:[%s14417_s21 + $0x864] sm:$0xf]  ;;  %v10621_v36 = vor.u32 %v12877_v5, %v10618_v40  ;;  %v7683_v59 = vadd.f32 %v7682_v51, %v7670_v37 }
 0x2b3   : > { %7934 = vmatpush.bf16.msra.mxu2 %v10525_v45  ;;  %v10346_v35 = vld [vmem:[%s14417_s21 + $0x870] sm:$0xf0]  ;;  %v10797_v38 = vor.u32 %v12921_v7, %v10794_v11  ;;  %v12841_v39 = vld [vmem:[%s14417_s21 + $0x964] sm:$0xf]  ;;  %v7658_v0 = vpop.f32.mrf.mxu0 }
 0x2b4   : > { %7947 = vmatpush.bf16.msra.mxu3 %v10653_v49  ;;  %v10474_v41 = vld [vmem:[%s14417_s21 + $0x970] sm:$0xf0]  ;;  %v12873_v31 = vld [vmem:[%s14417_s21 + $0xa64] sm:$0xf]  ;;  %v10349_v46 = vor.u32 %v12809_v33, %v10346_v35 }
 0x2b5   : > { %7913 = vmatpush.bf16.msra.mxu0 %v10189_v58  ;;  %v10602_v43 = vld [vmem:[%s14417_s21 + $0xa70] sm:$0xf0]  ;;  %v12917_v44 = vld [vmem:[%s14417_s21 + $0xbc4] sm:$0xf]  ;;  %v10477_v47 = vor.u32 %v12841_v39, %v10474_v41 }
 0x2b6   : > { %7922 = vmatpush.bf16.msra.mxu1 %v10381_v60  ;;  %v10778_v45 = vld [vmem:[%s14417_s21 + $0xbd0] sm:$0xf0]  ;;  %v12805_v48 = vld [vmem:[%s14417_s21 + $0x844] sm:$0xf]  ;;  %v10605_v50 = vor.u32 %v12873_v31, %v10602_v43  ;;  %v7695_v60 = vpop.f32.mrf.mxu3 }
 0x2b7   : > { %7935 = vmatpush.bf16.msra.mxu2 %v10509_v61  ;;  %v10330_v49 = vld [vmem:[%s14417_s21 + $0x850] sm:$0xf0]  ;;  %v10781_v52 = vor.u32 %v12917_v44, %v10778_v45  ;;  %v12837_v42 = vld [vmem:[%s14417_s21 + $0x944] sm:$0xf]  ;;  %v15100_v2 = vadd.f32 %v7695_v60, %v7683_v59 }
 0x2b8   : > { %7948 = vmatpush.bf16.msra.mxu3 %v10637_v1  ;;  %v10458_v53 = vld [vmem:[%s14417_s21 + $0x950] sm:$0xf0]  ;;  %v12869_v58 = vld [vmem:[%s14417_s21 + $0xa44] sm:$0xf]  ;;  %v7671_v1 = vpop.f32.mrf.mxu1  ;;  %v10333_v3 = vor.u32 %v12805_v48, %v10330_v49 }
 0x2b9   : > { %7914 = vmatpush.bf16.msra.mxu0 %v10173_v18  ;;  %v10586_v61 = vld [vmem:[%s14417_s21 + $0xa50] sm:$0xf0]  ;;  %v12913_v62 = vld [vmem:[%s14417_s21 + $0xba4] sm:$0xf]  ;;  %v10461_v5 = vor.u32 %v12837_v42, %v10458_v53 }
 0x2ba   : > { %7923 = vmatpush.bf16.msra.mxu1 %v10365_v27  ;;  %v10762_v63 = vld [vmem:[%s14417_s21 + $0xbb0] sm:$0xf0]  ;;  %v12801_v6 = vld [vmem:[%s14417_s21 + $0x824] sm:$0xf]  ;;  %v10589_v7 = vor.u32 %v12869_v58, %v10586_v61 }
 0x2bb   : > { %7936 = vmatpush.bf16.msra.mxu2 %v10493_v32  ;;  %v10314_v40 = vld [vmem:[%s14417_s21 + $0x830] sm:$0xf0]  ;;  %v10765_v11 = vor.u32 %v12913_v62, %v10762_v63  ;;  %v12833_v16 = vld [vmem:[%s14417_s21 + $0x924] sm:$0xf] }
 0x2bc   : > { %7949 = vmatpush.bf16.msra.mxu3 %v10621_v36  ;;  %7915 = vmatmul.bf16.vlgmr.msra.gmra.mxu0 %v14567_v9  ;;  %v10442_v18 = vld [vmem:[%s14417_s21 + $0x930] sm:$0xf0]  ;;  %v12865_v19 = vld [vmem:[%s14417_s21 + $0xa24] sm:$0xf]  ;;  %v10317_v35 = vor.u32 %v12801_v6, %v10314_v40 }
 0x2bd   : > { %7959 = vmatpush.bf16.msrb.mxu0 %v10797_v38  ;;  %v10570_v27 = vld [vmem:[%s14417_s21 + $0xa30] sm:$0xf0]  ;;  %v12909_v32 = vld [vmem:[%s14417_s21 + $0xb84] sm:$0xf]  ;;  %v10445_v36 = vor.u32 %v12833_v16, %v10442_v18 }
 0x2be   : > { %7924 = vmatpush.bf16.msra.mxu1 %v10349_v46  ;;  %v10746_v33 = vld [vmem:[%s14417_s21 + $0xb90] sm:$0xf0]  ;;  %v12797_v37 = vld [vmem:[%s14417_s21 + $0x804] sm:$0xf]  ;;  %v10573_v41 = vor.u32 %v12865_v19, %v10570_v27  ;;  %v7684_v46 = vpop.f32.mrf.mxu2 }
 0x2bf   : > { %7937 = vmatpush.bf16.msra.mxu2 %v10477_v47  ;;  %v10298_v38 = vld [vmem:[%s14417_s21 + $0x810] sm:$0xf0]  ;;  %v12829_v39 = vld [vmem:[%s14417_s21 + $0x904] sm:$0xf]  ;;  %v10749_v31 = vor.u32 %v12909_v32, %v10746_v33 }
 0x2c0   : > { %7950 = vmatpush.bf16.msra.mxu3 %v10605_v50  ;;  %v10426_v43 = vld [vmem:[%s14417_s21 + $0x910] sm:$0xf0]  ;;  %v12861_v44 = vld [vmem:[%s14417_s21 + $0xa04] sm:$0xf]  ;;  %v7697_v50 = vpop.f32.mrf.mxu3  ;;  %v10301_v53 = vor.u32 %v12797_v37, %v10298_v38 }
 0x2c1   : > { %7960 = vmatpush.bf16.msrb.mxu0 %v10781_v52  ;;  %v10554_v45 = vld [vmem:[%s14417_s21 + $0xa10] sm:$0xf0]  ;;  %v12905_v47 = vld [vmem:[%s14417_s21 + $0xb64] sm:$0xf]  ;;  %v10429_v58 = vor.u32 %v12829_v39, %v10426_v43 }
 0x2c2   : > { %7925 = vmatpush.bf16.msra.mxu1 %v10333_v3  ;;  %v10730_v48 = vld [vmem:[%s14417_s21 + $0xb70] sm:$0xf0]  ;;  %v12953_v49 = vld [vmem:[%s14417_s21 + $0xce4] sm:$0xf]  ;;  %v10557_v61 = vor.u32 %v12861_v44, %v10554_v45 }
 0x2c3   : > { %7938 = vmatpush.bf16.msra.mxu2 %v10461_v5  ;;  %v10922_v51 = vld [vmem:[%s14417_s21 + $0xcf0] sm:$0xf0]  ;;  %v12985_v52 = vld [vmem:[%s14417_s21 + $0xde4] sm:$0xf]  ;;  %v10733_v62 = vor.u32 %v12905_v47, %v10730_v48 }
 0x2c4   : > { %7951 = vmatpush.bf16.msra.mxu3 %v10589_v7  ;;  %v11050_v42 = vld [vmem:[%s14417_s21 + $0xdf0] sm:$0xf0]  ;;  %v13017_v59 = vld [vmem:[%s14417_s21 + $0xee4] sm:$0xf]  ;;  %v10925_v63 = vor.u32 %v12953_v49, %v10922_v51 }
 0x2c5   : > { %7961 = vmatpush.bf16.msrb.mxu0 %v10765_v11  ;;  %v11178_v60 = vld [vmem:[%s14417_s21 + $0xef0] sm:$0xf0]  ;;  %v11053_v0 = vor.u32 %v12985_v52, %v11050_v42  ;;  %v12901_v1 = vld [vmem:[%s14417_s21 + $0xb44] sm:$0xf] }
 0x2c6   : > { %7926 = vmatpush.bf16.msra.mxu1 %v10317_v35  ;;  %v10714_v3 = vld [vmem:[%s14417_s21 + $0xb50] sm:$0xf0]  ;;  %v12949_v5 = vld [vmem:[%s14417_s21 + $0xcc4] sm:$0xf]  ;;  %v11181_v6 = vor.u32 %v13017_v59, %v11178_v60 }
 0x2c7   : > { %7939 = vmatpush.bf16.msra.mxu2 %v10445_v36  ;;  %v10906_v40 = vld [vmem:[%s14417_s21 + $0xcd0] sm:$0xf0]  ;;  %v12981_v7 = vld [vmem:[%s14417_s21 + $0xdc4] sm:$0xf]  ;;  %v10717_v19 = vor.u32 %v12901_v1, %v10714_v3 }
 0x2c8   : > { %7952 = vmatpush.bf16.msra.mxu3 %v10573_v41  ;;  %v11034_v11 = vld [vmem:[%s14417_s21 + $0xdd0] sm:$0xf0]  ;;  %v13013_v16 = vld [vmem:[%s14417_s21 + $0xec4] sm:$0xf]  ;;  %v10909_v27 = vor.u32 %v12949_v5, %v10906_v40 }
 0x2c9   : > { %7962 = vmatpush.bf16.msrb.mxu0 %v10749_v31  ;;  %v11162_v18 = vld [vmem:[%s14417_s21 + $0xed0] sm:$0xf0]  ;;  %v11037_v32 = vor.u32 %v12981_v7, %v11034_v11  ;;  %v12897_v33 = vld [vmem:[%s14417_s21 + $0xb24] sm:$0xf] }
 0x2ca   : > { %7927 = vmatpush.bf16.msra.mxu1 %v10301_v53  ;;  %v10698_v35 = vld [vmem:[%s14417_s21 + $0xb30] sm:$0xf0]  ;;  %v12945_v36 = vld [vmem:[%s14417_s21 + $0xca4] sm:$0xf]  ;;  %v11165_v37 = vor.u32 %v13013_v16, %v11162_v18 }
 0x2cb   : > { %7940 = vmatpush.bf16.msra.mxu2 %v10429_v58  ;;  %v10890_v38 = vld [vmem:[%s14417_s21 + $0xcb0] sm:$0xf0]  ;;  %v12977_v39 = vld [vmem:[%s14417_s21 + $0xda4] sm:$0xf]  ;;  %v10701_v44 = vor.u32 %v12897_v33, %v10698_v35  ;;  %v7708_v58 = vpop.f32.mrf.mxu0 }
 0x2cc   : > { %7953 = vmatpush.bf16.msra.mxu3 %v10557_v61  ;;  %v11018_v41 = vld [vmem:[%s14417_s21 + $0xdb0] sm:$0xf0]  ;;  %v13009_v31 = vld [vmem:[%s14417_s21 + $0xea4] sm:$0xf]  ;;  %v10893_v46 = vor.u32 %v12945_v36, %v10890_v38 }
 0x2cd   : > { %7963 = vmatpush.bf16.msrb.mxu0 %v10733_v62  ;;  %7928 = vmatmul.bf16.vlgmr.msra.gmra.mxu1 %v14655_v20  ;;  %v11146_v43 = vld [vmem:[%s14417_s21 + $0xeb0] sm:$0xf0]  ;;  %v12893_v45 = vld [vmem:[%s14417_s21 + $0xb04] sm:$0xf]  ;;  %v11021_v47 = vor.u32 %v12977_v39, %v11018_v41  ;;  %v7709_v62 = vadd.f32 %v7708_v58, %v15100_v2 }
 0x2ce   : > { %7972 = vmatpush.bf16.msrb.mxu1 %v10925_v63  ;;  %7941 = vmatmul.bf16.vlgmr.msra.gmra.mxu2 %v14661_v24  ;;  %v10682_v48 = vld [vmem:[%s14417_s21 + $0xb10] sm:$0xf0]  ;;  %v12941_v49 = vld [vmem:[%s14417_s21 + $0xc84] sm:$0xf]  ;;  %v11149_v51 = vor.u32 %v13009_v31, %v11146_v43 }
 0x2cf   : > { %7985 = vmatpush.bf16.msrb.mxu2 %v11053_v0  ;;  %7954 = vmatmul.bf16.vlgmr.msra.gmra.mxu3 %v14659_v23  ;;  %v10874_v50 = vld [vmem:[%s14417_s21 + $0xc90] sm:$0xf0]  ;;  %v12973_v52 = vld [vmem:[%s14417_s21 + $0xd84] sm:$0xf]  ;;  %v10685_v63 = vor.u32 %v12893_v45, %v10682_v48  ;;  %v7721_v0 = vpop.f32.mrf.mxu1  ;;  %v7734_v39 = vpop.f32.mrf.mxu2 }
 0x2d0   : > { %7998 = vmatpush.bf16.msrb.mxu3 %v11181_v6  ;;  %v11002_v42 = vld [vmem:[%s14417_s21 + $0xd90] sm:$0xf0]  ;;  %v13005_v53 = vld [vmem:[%s14417_s21 + $0xe84] sm:$0xf]  ;;  %v10877_v1 = vor.u32 %v12941_v49, %v10874_v50  ;;  %v7722_v7 = vadd.f32 %v7721_v0, %v7709_v62 }
 0x2d1   : > { %7964 = vmatpush.bf16.msrb.mxu0 %v10717_v19  ;;  %v11130_v59 = vld [vmem:[%s14417_s21 + $0xe90] sm:$0xf0]  ;;  %v13049_v60 = vld [vmem:[%s14417_s21 + $0xfe4] sm:$0xf]  ;;  %v11005_v3 = vor.u32 %v12973_v52, %v11002_v42 }
 0x2d2   : > { %7973 = vmatpush.bf16.msrb.mxu1 %v10909_v27  ;;  %v11306_v61 = vld [vmem:[%s14417_s21 + $0xff0] sm:$0xf0]  ;;  %v12937_v5 = vld [vmem:[%s14417_s21 + $0xc64] sm:$0xf]  ;;  %v11133_v40 = vor.u32 %v13005_v53, %v11130_v59  ;;  %v7735_v45 = vadd.f32 %v7734_v39, %v7722_v7 }
 0x2d3   : > { %7986 = vmatpush.bf16.msrb.mxu2 %v11037_v32  ;;  %v10858_v6 = vld [vmem:[%s14417_s21 + $0xc70] sm:$0xf0]  ;;  %v11309_v11 = vor.u32 %v13049_v60, %v11306_v61  ;;  %v12969_v16 = vld [vmem:[%s14417_s21 + $0xd64] sm:$0xf]  ;;  %v7710_v50 = vpop.f32.mrf.mxu0 }
 0x2d4   : > { %7999 = vmatpush.bf16.msrb.mxu3 %v11165_v37  ;;  %v10986_v18 = vld [vmem:[%s14417_s21 + $0xd70] sm:$0xf0]  ;;  %v13001_v2 = vld [vmem:[%s14417_s21 + $0xe64] sm:$0xf]  ;;  %v10861_v33 = vor.u32 %v12937_v5, %v10858_v6 }
 0x2d5   : > { %7965 = vmatpush.bf16.msrb.mxu0 %v10701_v44  ;;  %v11114_v19 = vld [vmem:[%s14417_s21 + $0xe70] sm:$0xf0]  ;;  %v13045_v27 = vld [vmem:[%s14417_s21 + $0xfc4] sm:$0xf]  ;;  %v10989_v35 = vor.u32 %v12969_v16, %v10986_v18 }
 0x2d6   : > { %7974 = vmatpush.bf16.msrb.mxu1 %v10893_v46  ;;  %v11290_v32 = vld [vmem:[%s14417_s21 + $0xfd0] sm:$0xf0]  ;;  %v12933_v36 = vld [vmem:[%s14417_s21 + $0xc44] sm:$0xf]  ;;  %v11117_v38 = vor.u32 %v13001_v2, %v11114_v19  ;;  %v7747_v46 = vpop.f32.mrf.mxu3 }
 0x2d7   : > { %7987 = vmatpush.bf16.msrb.mxu2 %v11021_v47  ;;  %v10842_v37 = vld [vmem:[%s14417_s21 + $0xc50] sm:$0xf0]  ;;  %v11293_v41 = vor.u32 %v13045_v27, %v11290_v32  ;;  %v12965_v31 = vld [vmem:[%s14417_s21 + $0xd44] sm:$0xf]  ;;  %v15171_v52 = vadd.f32 %v7747_v46, %v7735_v45 }
 0x2d8   : > { %8000 = vmatpush.bf16.msrb.mxu3 %v11149_v51  ;;  %v10970_v43 = vld [vmem:[%s14417_s21 + $0xd50] sm:$0xf0]  ;;  %v12997_v44 = vld [vmem:[%s14417_s21 + $0xe44] sm:$0xf]  ;;  %v7723_v51 = vpop.f32.mrf.mxu1  ;;  %v10845_v42 = vor.u32 %v12933_v36, %v10842_v37 }
 0x2d9   : > { %7966 = vmatpush.bf16.msrb.mxu0 %v10685_v63  ;;  %v11098_v47 = vld [vmem:[%s14417_s21 + $0xe50] sm:$0xf0]  ;;  %v13041_v48 = vld [vmem:[%s14417_s21 + $0xfa4] sm:$0xf]  ;;  %v10973_v53 = vor.u32 %v12965_v31, %v10970_v43 }
 0x2da   : > { %7975 = vmatpush.bf16.msrb.mxu1 %v10877_v1  ;;  %v11274_v49 = vld [vmem:[%s14417_s21 + $0xfb0] sm:$0xf0]  ;;  %v12929_v58 = vld [vmem:[%s14417_s21 + $0xc24] sm:$0xf]  ;;  %v11101_v60 = vor.u32 %v12997_v44, %v11098_v47 }
 0x2db   : > { %7988 = vmatpush.bf16.msrb.mxu2 %v11005_v3  ;;  %v10826_v59 = vld [vmem:[%s14417_s21 + $0xc30] sm:$0xf0]  ;;  %v11277_v61 = vor.u32 %v13041_v48, %v11274_v49  ;;  %v12961_v62 = vld [vmem:[%s14417_s21 + $0xd24] sm:$0xf] }
 0x2dc   : > { %8001 = vmatpush.bf16.msrb.mxu3 %v11133_v40  ;;  %7967 = vmatmul.bf16.vlgmr.msrb.gmra.mxu0 %v14663_v25  ;;  %v10954_v63 = vld [vmem:[%s14417_s21 + $0xd30] sm:$0xf0]  ;;  %v12993_v0 = vld [vmem:[%s14417_s21 + $0xe24] sm:$0xf]  ;;  %v10829_v6 = vor.u32 %v12929_v58, %v10826_v59 }
 0x2dd   : > { %8011 = vmatpush.bf16.msra.mxu0 %v11309_v11  ;;  %v11082_v1 = vld [vmem:[%s14417_s21 + $0xe30] sm:$0xf0]  ;;  %v13037_v3 = vld [vmem:[%s14417_s21 + $0xf84] sm:$0xf]  ;;  %v10957_v40 = vor.u32 %v12961_v62, %v10954_v63 }
 0x2de   : > { %7976 = vmatpush.bf16.msrb.mxu1 %v10861_v33  ;;  %v11258_v5 = vld [vmem:[%s14417_s21 + $0xf90] sm:$0xf0]  ;;  %v12925_v7 = vld [vmem:[%s14417_s21 + $0xc04] sm:$0xf]  ;;  %v11085_v18 = vor.u32 %v12993_v0, %v11082_v1  ;;  %v7736_v33 = vpop.f32.mrf.mxu2 }
 0x2df   : > { %7989 = vmatpush.bf16.msrb.mxu2 %v10989_v35  ;;  %v10810_v11 = vld [vmem:[%s14417_s21 + $0xc10] sm:$0xf0]  ;;  %v12957_v16 = vld [vmem:[%s14417_s21 + $0xd04] sm:$0xf]  ;;  %v11261_v2 = vor.u32 %v13037_v3, %v11258_v5 }
 0x2e0   : > { %8002 = vmatpush.bf16.msrb.mxu3 %v11117_v38  ;;  %v10938_v19 = vld [vmem:[%s14417_s21 + $0xd10] sm:$0xf0]  ;;  %v12989_v27 = vld [vmem:[%s14417_s21 + $0xe04] sm:$0xf]  ;;  %v7749_v38 = vpop.f32.mrf.mxu3  ;;  %v10813_v43 = vor.u32 %v12925_v7, %v10810_v11 }
 0x2e1   : > { %8012 = vmatpush.bf16.msra.mxu0 %v11293_v41  ;;  %v11066_v32 = vld [vmem:[%s14417_s21 + $0xe10] sm:$0xf0]  ;;  %v13033_v35 = vld [vmem:[%s14417_s21 + $0xf64] sm:$0xf]  ;;  %v10941_v44 = vor.u32 %v12957_v16, %v10938_v19 }
 0x2e2   : > { %7977 = vmatpush.bf16.msrb.mxu1 %v10845_v42  ;;  %v11242_v36 = vld [vmem:[%s14417_s21 + $0xf70] sm:$0xf0]  ;;  %v13081_v37 = vld [vmem:[%s14417_s21 + $0x10e4] sm:$0xf]  ;;  %v11069_v47 = vor.u32 %v12989_v27, %v11066_v32 }
 0x2e3   : > { %7990 = vmatpush.bf16.msrb.mxu2 %v10973_v53  ;;  %v11434_v39 = vld [vmem:[%s14417_s21 + $0x10f0] sm:$0xf0]  ;;  %v13113_v41 = vld [vmem:[%s14417_s21 + $0x11e4] sm:$0xf]  ;;  %v11245_v48 = vor.u32 %v13033_v35, %v11242_v36 }
 0x2e4   : > { %8003 = vmatpush.bf16.msrb.mxu3 %v11101_v60  ;;  %v11562_v31 = vld [vmem:[%s14417_s21 + $0x11f0] sm:$0xf0]  ;;  %v13145_v45 = vld [vmem:[%s14417_s21 + $0x12e4] sm:$0xf]  ;;  %v11437_v49 = vor.u32 %v13081_v37, %v11434_v39 }
 0x2e5   : > { %8013 = vmatpush.bf16.msra.mxu0 %v11277_v61  ;;  %v11690_v46 = vld [vmem:[%s14417_s21 + $0x12f0] sm:$0xf0]  ;;  %v11565_v50 = vor.u32 %v13113_v41, %v11562_v31  ;;  %v13029_v51 = vld [vmem:[%s14417_s21 + $0xf44] sm:$0xf] }
 0x2e6   : > { %7978 = vmatpush.bf16.msrb.mxu1 %v10829_v6  ;;  %v11226_v42 = vld [vmem:[%s14417_s21 + $0xf50] sm:$0xf0]  ;;  %v13077_v53 = vld [vmem:[%s14417_s21 + $0x10c4] sm:$0xf]  ;;  %v11693_v58 = vor.u32 %v13145_v45, %v11690_v46 }
 0x2e7   : > { %7991 = vmatpush.bf16.msrb.mxu2 %v10957_v40  ;;  %v11418_v59 = vld [vmem:[%s14417_s21 + $0x10d0] sm:$0xf0]  ;;  %v13109_v60 = vld [vmem:[%s14417_s21 + $0x11c4] sm:$0xf]  ;;  %v11229_v0 = vor.u32 %v13029_v51, %v11226_v42 }
 0x2e8   : > { %8004 = vmatpush.bf16.msrb.mxu3 %v11085_v18  ;;  %v11546_v61 = vld [vmem:[%s14417_s21 + $0x11d0] sm:$0xf0]  ;;  %v13141_v62 = vld [vmem:[%s14417_s21 + $0x12c4] sm:$0xf]  ;;  %v11421_v1 = vor.u32 %v13077_v53, %v11418_v59 }
 0x2e9   : > { %8014 = vmatpush.bf16.msra.mxu0 %v11261_v2  ;;  %v11674_v63 = vld [vmem:[%s14417_s21 + $0x12d0] sm:$0xf0]  ;;  %v11549_v3 = vor.u32 %v13109_v60, %v11546_v61  ;;  %v13025_v5 = vld [vmem:[%s14417_s21 + $0xf24] sm:$0xf] }
 0x2ea   : > { %7979 = vmatpush.bf16.msrb.mxu1 %v10813_v43  ;;  %v11210_v6 = vld [vmem:[%s14417_s21 + $0xf30] sm:$0xf0]  ;;  %v13073_v40 = vld [vmem:[%s14417_s21 + $0x10a4] sm:$0xf]  ;;  %v11677_v7 = vor.u32 %v13141_v62, %v11674_v63 }
 0x2eb   : > { %7992 = vmatpush.bf16.msrb.mxu2 %v10941_v44  ;;  %v11402_v11 = vld [vmem:[%s14417_s21 + $0x10b0] sm:$0xf0]  ;;  %v13105_v16 = vld [vmem:[%s14417_s21 + $0x11a4] sm:$0xf]  ;;  %v11213_v27 = vor.u32 %v13025_v5, %v11210_v6  ;;  %v7760_v44 = vpop.f32.mrf.mxu0 }
 0x2ec   : > { %8005 = vmatpush.bf16.msrb.mxu3 %v11069_v47  ;;  %v11530_v18 = vld [vmem:[%s14417_s21 + $0x11b0] sm:$0xf0]  ;;  %v13137_v2 = vld [vmem:[%s14417_s21 + $0x12a4] sm:$0xf]  ;;  %v11405_v33 = vor.u32 %v13073_v40, %v11402_v11 }
 0x2ed   : > { %8015 = vmatpush.bf16.msra.mxu0 %v11245_v48  ;;  %7980 = vmatmul.bf16.vlgmr.msrb.gmra.mxu1 %v14721_v54  ;;  %v11658_v19 = vld [vmem:[%s14417_s21 + $0x12b0] sm:$0xf0]  ;;  %v13021_v32 = vld [vmem:[%s14417_s21 + $0xf04] sm:$0xf]  ;;  %v11533_v35 = vor.u32 %v13105_v16, %v11530_v18  ;;  %v7761_v48 = vadd.f32 %v7760_v44, %v15171_v52 }
 0x2ee   : > { %8024 = vmatpush.bf16.msra.mxu1 %v11437_v49  ;;  %7993 = vmatmul.bf16.vlgmr.msrb.gmra.mxu2 %v14725_v56  ;;  %v11194_v36 = vld [vmem:[%s14417_s21 + $0xf10] sm:$0xf0]  ;;  %v13069_v37 = vld [vmem:[%s14417_s21 + $0x1084] sm:$0xf]  ;;  %v11661_v39 = vor.u32 %v13137_v2, %v11658_v19 }
 0x2ef   : > { %8037 = vmatpush.bf16.msra.mxu2 %v11565_v50  ;;  %8006 = vmatmul.bf16.vlgmr.msrb.gmra.mxu3 %v14723_v55  ;;  %v11386_v38 = vld [vmem:[%s14417_s21 + $0x1090] sm:$0xf0]  ;;  %v13101_v41 = vld [vmem:[%s14417_s21 + $0x1184] sm:$0xf]  ;;  %v11197_v49 = vor.u32 %v13021_v32, %v11194_v36  ;;  %v7773_v50 = vpop.f32.mrf.mxu1 }
 0x2f0   : > { %8050 = vmatpush.bf16.msra.mxu3 %v11693_v58  ;;  %v11514_v31 = vld [vmem:[%s14417_s21 + $0x1190] sm:$0xf0]  ;;  %v13133_v43 = vld [vmem:[%s14417_s21 + $0x1284] sm:$0xf]  ;;  %v11389_v51 = vor.u32 %v13069_v37, %v11386_v38  ;;  %v7774_v60 = vadd.f32 %v7773_v50, %v7761_v48 }
 0x2f1   : > { %8016 = vmatpush.bf16.msra.mxu0 %v11229_v0  ;;  %v11642_v45 = vld [vmem:[%s14417_s21 + $0x1290] sm:$0xf0]  ;;  %v13177_v46 = vld [vmem:[%s14417_s21 + $0x13e4] sm:$0xf]  ;;  %v11517_v42 = vor.u32 %v13101_v41, %v11514_v31  ;;  %v7786_v16 = vpop.f32.mrf.mxu2 }
 0x2f2   : > { %8025 = vmatpush.bf16.msra.mxu1 %v11421_v1  ;;  %v11818_v47 = vld [vmem:[%s14417_s21 + $0x13f0] sm:$0xf0]  ;;  %v13065_v53 = vld [vmem:[%s14417_s21 + $0x1064] sm:$0xf]  ;;  %v11645_v59 = vor.u32 %v13133_v43, %v11642_v45  ;;  %v7787_v32 = vadd.f32 %v7786_v16, %v7774_v60 }
 0x2f3   : > { %8038 = vmatpush.bf16.msra.mxu2 %v11549_v3  ;;  %v11370_v58 = vld [vmem:[%s14417_s21 + $0x1070] sm:$0xf0]  ;;  %v11821_v61 = vor.u32 %v13177_v46, %v11818_v47  ;;  %v13097_v62 = vld [vmem:[%s14417_s21 + $0x1164] sm:$0xf] }
 0x2f4   : > { %8051 = vmatpush.bf16.msra.mxu3 %v11677_v7  ;;  %v11498_v63 = vld [vmem:[%s14417_s21 + $0x1170] sm:$0xf0]  ;;  %v13129_v52 = vld [vmem:[%s14417_s21 + $0x1264] sm:$0xf]  ;;  %v11373_v5 = vor.u32 %v13065_v53, %v11370_v58 }
 0x2f5   : > { %8017 = vmatpush.bf16.msra.mxu0 %v11213_v27  ;;  %v11626_v0 = vld [vmem:[%s14417_s21 + $0x1270] sm:$0xf0]  ;;  %v13173_v1 = vld [vmem:[%s14417_s21 + $0x13c4] sm:$0xf]  ;;  %v11501_v6 = vor.u32 %v13097_v62, %v11498_v63 }
 0x2f6   : > { %8026 = vmatpush.bf16.msra.mxu1 %v11405_v33  ;;  %v11802_v3 = vld [vmem:[%s14417_s21 + $0x13d0] sm:$0xf0]  ;;  %v13061_v40 = vld [vmem:[%s14417_s21 + $0x1044] sm:$0xf]  ;;  %v11629_v11 = vor.u32 %v13129_v52, %v11626_v0  ;;  %v7762_v33 = vpop.f32.mrf.mxu0 }
 0x2f7   : > { %8039 = vmatpush.bf16.msra.mxu2 %v11533_v35  ;;  %v11354_v7 = vld [vmem:[%s14417_s21 + $0x1050] sm:$0xf0]  ;;  %v11805_v18 = vor.u32 %v13173_v1, %v11802_v3  ;;  %v13093_v2 = vld [vmem:[%s14417_s21 + $0x1144] sm:$0xf]  ;;  %v7799_v35 = vpop.f32.mrf.mxu3 }
 0x2f8   : > { %8052 = vmatpush.bf16.msra.mxu3 %v11661_v39  ;;  %v11482_v19 = vld [vmem:[%s14417_s21 + $0x1150] sm:$0xf0]  ;;  %v13125_v27 = vld [vmem:[%s14417_s21 + $0x1244] sm:$0xf]  ;;  %v7775_v39 = vpop.f32.mrf.mxu1  ;;  %v7800_v41 = vadd.f32 %v7799_v35, %v7787_v32  ;;  %v11357_v31 = vor.u32 %v13061_v40, %v11354_v7 }
 0x2f9   : > { %8018 = vmatpush.bf16.msra.mxu0 %v11197_v49  ;;  %v11610_v36 = vld [vmem:[%s14417_s21 + $0x1250] sm:$0xf0]  ;;  %v13169_v37 = vld [vmem:[%s14417_s21 + $0x13a4] sm:$0xf]  ;;  %v11485_v43 = vor.u32 %v13093_v2, %v11482_v19 }
 0x2fa   : > { %8027 = vmatpush.bf16.msra.mxu1 %v11389_v51  ;;  %v11786_v38 = vld [vmem:[%s14417_s21 + $0x13b0] sm:$0xf0]  ;;  %v13057_v44 = vld [vmem:[%s14417_s21 + $0x1024] sm:$0xf]  ;;  %v11613_v46 = vor.u32 %v13125_v27, %v11610_v36 }
 0x2fb   : > { %8040 = vmatpush.bf16.msra.mxu2 %v11517_v42  ;;  %v11338_v45 = vld [vmem:[%s14417_s21 + $0x1030] sm:$0xf0]  ;;  %v11789_v47 = vor.u32 %v13169_v37, %v11786_v38  ;;  %v13089_v48 = vld [vmem:[%s14417_s21 + $0x1124] sm:$0xf] }
 0x2fc   : > { %8053 = vmatpush.bf16.msra.mxu3 %v11645_v59  ;;  %8019 = vmatmul.bf16.vlgmr.msra.gmra.mxu0 %v14727_v57  ;;  %v11466_v49 = vld [vmem:[%s14417_s21 + $0x1130] sm:$0xf0]  ;;  %v13121_v50 = vld [vmem:[%s14417_s21 + $0x1224] sm:$0xf]  ;;  %v11341_v58 = vor.u32 %v13057_v44, %v11338_v45 }
 0x2fd   : > { %8063 = vmatpush.bf16.msrb.mxu0 %v11821_v61  ;;  %v11594_v51 = vld [vmem:[%s14417_s21 + $0x1230] sm:$0xf0]  ;;  %v13165_v42 = vld [vmem:[%s14417_s21 + $0x1384] sm:$0xf]  ;;  %v11469_v59 = vor.u32 %v13089_v48, %v11466_v49 }
 0x2fe   : > { %8028 = vmatpush.bf16.msra.mxu1 %v11373_v5  ;;  %v11770_v53 = vld [vmem:[%s14417_s21 + $0x1390] sm:$0xf0]  ;;  %v13053_v60 = vld [vmem:[%s14417_s21 + $0x1004] sm:$0xf]  ;;  %v11597_v63 = vor.u32 %v13121_v50, %v11594_v51  ;;  %v7788_v5 = vpop.f32.mrf.mxu2  ;;  %v7812_v16 = vpop.f32.mrf.mxu0 }
 0x2ff   : > { %8041 = vmatpush.bf16.msra.mxu2 %v11501_v6  ;;  %v11322_v61 = vld [vmem:[%s14417_s21 + $0x1010] sm:$0xf0]  ;;  %v13085_v62 = vld [vmem:[%s14417_s21 + $0x1104] sm:$0xf]  ;;  %v11773_v52 = vor.u32 %v13165_v42, %v11770_v53  ;;  %v15262_v27 = vadd.f32 %v7812_v16, %v7800_v41 }
 0x300   : > { %8054 = vmatpush.bf16.msra.mxu3 %v11629_v11  ;;  %v11450_v0 = vld [vmem:[%s14417_s21 + $0x1110] sm:$0xf0]  ;;  %v13117_v1 = vld [vmem:[%s14417_s21 + $0x1204] sm:$0xf]  ;;  %v7801_v11 = vpop.f32.mrf.mxu3  ;;  %v11325_v32 = vor.u32 %v13053_v60, %v11322_v61 }
 0x301   : > { %8064 = vmatpush.bf16.msrb.mxu0 %v11805_v18  ;;  %v11578_v3 = vld [vmem:[%s14417_s21 + $0x1210] sm:$0xf0]  ;;  %v13161_v6 = vld [vmem:[%s14417_s21 + $0x1364] sm:$0xf]  ;;  %v11453_v33 = vor.u32 %v13085_v62, %v11450_v0 }
 0x302   : > { %8029 = vmatpush.bf16.msra.mxu1 %v11357_v31  ;;  %v11754_v40 = vld [vmem:[%s14417_s21 + $0x1370] sm:$0xf0]  ;;  %v13209_v7 = vld [vmem:[%s14417_s21 + $0x14e4] sm:$0xf]  ;;  %v11581_v37 = vor.u32 %v13117_v1, %v11578_v3 }
 0x303   : > { %8042 = vmatpush.bf16.msra.mxu2 %v11485_v43  ;;  %v11946_v18 = vld [vmem:[%s14417_s21 + $0x14f0] sm:$0xf0]  ;;  %v13241_v2 = vld [vmem:[%s14417_s21 + $0x15e4] sm:$0xf]  ;;  %v11757_v38 = vor.u32 %v13161_v6, %v11754_v40 }
 0x304   : > { %8055 = vmatpush.bf16.msra.mxu3 %v11613_v46  ;;  %v12074_v19 = vld [vmem:[%s14417_s21 + $0x15f0] sm:$0xf0]  ;;  %v13273_v35 = vld [vmem:[%s14417_s21 + $0x16e4] sm:$0xf]  ;;  %v11949_v39 = vor.u32 %v13209_v7, %v11946_v18 }
 0x305   : > { %8065 = vmatpush.bf16.msrb.mxu0 %v11789_v47  ;;  %v12202_v36 = vld [vmem:[%s14417_s21 + $0x16f0] sm:$0xf0]  ;;  %v12077_v31 = vor.u32 %v13241_v2, %v12074_v19  ;;  %v13157_v43 = vld [vmem:[%s14417_s21 + $0x1344] sm:$0xf] }
 0x306   : > { %8030 = vmatpush.bf16.msra.mxu1 %v11341_v58  ;;  %v11738_v44 = vld [vmem:[%s14417_s21 + $0x1350] sm:$0xf0]  ;;  %v13205_v45 = vld [vmem:[%s14417_s21 + $0x14c4] sm:$0xf]  ;;  %v12205_v41 = vor.u32 %v13273_v35, %v12202_v36  ;;  %v7814_v0 = vpop.f32.mrf.mxu0 }
 0x307   : > { %8043 = vmatpush.bf16.msra.mxu2 %v11469_v59  ;;  %v11930_v46 = vld [vmem:[%s14417_s21 + $0x14d0] sm:$0xf0]  ;;  %v13237_v47 = vld [vmem:[%s14417_s21 + $0x15c4] sm:$0xf]  ;;  %v11741_v51 = vor.u32 %v13157_v43, %v11738_v44 }
 0x308   : > { %8056 = vmatpush.bf16.msra.mxu3 %v11597_v63  ;;  %v12058_v48 = vld [vmem:[%s14417_s21 + $0x15d0] sm:$0xf0]  ;;  %v13269_v49 = vld [vmem:[%s14417_s21 + $0x16c4] sm:$0xf]  ;;  %v11933_v42 = vor.u32 %v13205_v45, %v11930_v46 }
 0x309   : > { %8066 = vmatpush.bf16.msrb.mxu0 %v11773_v52  ;;  %v12186_v50 = vld [vmem:[%s14417_s21 + $0x16d0] sm:$0xf0]  ;;  %v12061_v53 = vor.u32 %v13237_v47, %v12058_v48  ;;  %v13153_v58 = vld [vmem:[%s14417_s21 + $0x1324] sm:$0xf] }
 0x30a   : > { %8031 = vmatpush.bf16.msra.mxu1 %v11325_v32  ;;  %v11722_v59 = vld [vmem:[%s14417_s21 + $0x1330] sm:$0xf0]  ;;  %v13201_v60 = vld [vmem:[%s14417_s21 + $0x14a4] sm:$0xf]  ;;  %v12189_v61 = vor.u32 %v13269_v49, %v12186_v50  ;;  %v7825_v43 = vpop.f32.mrf.mxu1 }
 0x30b   : > { %8044 = vmatpush.bf16.msra.mxu2 %v11453_v33  ;;  %v11914_v62 = vld [vmem:[%s14417_s21 + $0x14b0] sm:$0xf0]  ;;  %v13233_v63 = vld [vmem:[%s14417_s21 + $0x15a4] sm:$0xf]  ;;  %v11725_v5 = vor.u32 %v13153_v58, %v11722_v59 }
 0x30c   : > { %8057 = vmatpush.bf16.msra.mxu3 %v11581_v37  ;;  %v12042_v52 = vld [vmem:[%s14417_s21 + $0x15b0] sm:$0xf0]  ;;  %v13265_v1 = vld [vmem:[%s14417_s21 + $0x16a4] sm:$0xf]  ;;  %v11917_v7 = vor.u32 %v13201_v60, %v11914_v62 }
 0x30d   : > { %8067 = vmatpush.bf16.msrb.mxu0 %v11757_v38  ;;  %8032 = vmatmul.bf16.vlgmr.msra.gmra.mxu1 %v14811_v17  ;;  %v12170_v3 = vld [vmem:[%s14417_s21 + $0x16b0] sm:$0xf0]  ;;  %v13149_v6 = vld [vmem:[%s14417_s21 + $0x1304] sm:$0xf]  ;;  %v12045_v11 = vor.u32 %v13233_v63, %v12042_v52 }
 0x30e   : > { %8076 = vmatpush.bf16.msrb.mxu1 %v11949_v39  ;;  %8045 = vmatmul.bf16.vlgmr.msra.gmra.mxu2 %v14823_v22  ;;  %v11706_v40 = vld [vmem:[%s14417_s21 + $0x1310] sm:$0xf0]  ;;  %v13197_v16 = vld [vmem:[%s14417_s21 + $0x1484] sm:$0xf]  ;;  %v12173_v19 = vor.u32 %v13265_v1, %v12170_v3 }
 0x30f   : > { %8089 = vmatpush.bf16.msrb.mxu2 %v12077_v31  ;;  %8058 = vmatmul.bf16.vlgmr.msra.gmra.mxu3 %v14821_v21  ;;  %v11898_v18 = vld [vmem:[%s14417_s21 + $0x1490] sm:$0xf0]  ;;  %v13229_v2 = vld [vmem:[%s14417_s21 + $0x1584] sm:$0xf]  ;;  %v11709_v31 = vor.u32 %v13149_v6, %v11706_v40 }
 0x310   : > { %8102 = vmatpush.bf16.msrb.mxu3 %v12205_v41  ;;  %v12026_v32 = vld [vmem:[%s14417_s21 + $0x1590] sm:$0xf0]  ;;  %v13261_v33 = vld [vmem:[%s14417_s21 + $0x1684] sm:$0xf]  ;;  %v11901_v44 = vor.u32 %v13197_v16, %v11898_v18 }
 0x311   : > { %8068 = vmatpush.bf16.msrb.mxu0 %v11741_v51  ;;  %v13432_v35 = vld [vmem:[%s14856_s6] sm:$0xf]  ;;  %v13305_v38 = vld [vmem:[%s14417_s21 + $0x17e4] sm:$0xf]  ;;  %v12029_v45 = vor.u32 %v13229_v2, %v12026_v32  ;;  %v7838_v52 = vpop.f32.mrf.mxu2 }
 0x312   : > { %8077 = vmatpush.bf16.msrb.mxu1 %v11933_v42  ;;  %v3504_v36 = vperm.slane %v13432_v35, 1  ;;  %v12154_v37 = vld [vmem:[%s14417_s21 + $0x1690] sm:$0xf0]  ;;  %v13193_v41 = vld [vmem:[%s14417_s21 + $0x1464] sm:$0xf] }
 0x313   : > { %8090 = vmatpush.bf16.msrb.mxu2 %v12061_v53  ;;  %v12330_v39 = vld [vmem:[%s14417_s21 + $0x17f0] sm:$0xf0]  ;;  %v12157_v47 = vor.u32 %v13261_v33, %v12154_v37  ;;  %v13225_v49 = vld [vmem:[%s14417_s21 + $0x1564] sm:$0xf] }
 0x314   : > { %8103 = vmatpush.bf16.msrb.mxu3 %v12189_v61  ;;  %v11882_v46 = vld [vmem:[%s14417_s21 + $0x1470] sm:$0xf0]  ;;  %v12333_v48 = vor.u32 %v13305_v38, %v12330_v39  ;;  %v13257_v51 = vld [vmem:[%s14417_s21 + $0x1664] sm:$0xf]  ;;  %v7826_v42 = vadd.f32 %v7825_v43, %v3504_v36 }
 0x315   : > { %8069 = vmatpush.bf16.msrb.mxu0 %v11725_v5  ;;  %v12010_v50 = vld [vmem:[%s14417_s21 + $0x1570] sm:$0xf0]  ;;  %v13301_v58 = vld [vmem:[%s14417_s21 + $0x17c4] sm:$0xf]  ;;  %v11885_v60 = vor.u32 %v13193_v41, %v11882_v46 }
 0x316   : > { %8078 = vmatpush.bf16.msrb.mxu1 %v11917_v7  ;;  %v12138_v53 = vld [vmem:[%s14417_s21 + $0x1670] sm:$0xf0]  ;;  %v12013_v61 = vor.u32 %v13225_v49, %v12010_v50  ;;  %v13189_v62 = vld [vmem:[%s14417_s21 + $0x1444] sm:$0xf]  ;;  %v7839_v40 = vadd.f32 %v7838_v52, %v7826_v42  ;;  %v7851_v7 = vpop.f32.mrf.mxu3 }
 0x317   : > { %8091 = vmatpush.bf16.msrb.mxu2 %v12045_v11  ;;  %v12314_v59 = vld [vmem:[%s14417_s21 + $0x17d0] sm:$0xf0]  ;;  %v12141_v0 = vor.u32 %v13257_v51, %v12138_v53  ;;  %v13221_v3 = vld [vmem:[%s14417_s21 + $0x1544] sm:$0xf] }
 0x318   : > { %8104 = vmatpush.bf16.msrb.mxu3 %v12173_v19  ;;  %v11866_v63 = vld [vmem:[%s14417_s21 + $0x1450] sm:$0xf0]  ;;  %v12317_v1 = vor.u32 %v13301_v58, %v12314_v59  ;;  %v13253_v6 = vld [vmem:[%s14417_s21 + $0x1644] sm:$0xf]  ;;  %v7852_v2 = vadd.f32 %v7851_v7, %v7839_v40  ;;  %v7827_v19 = vpop.f32.mrf.mxu1 }
 0x319   : > { %8070 = vmatpush.bf16.msrb.mxu0 %v11709_v31  ;;  %v11994_v5 = vld [vmem:[%s14417_s21 + $0x1550] sm:$0xf0]  ;;  %v13297_v16 = vld [vmem:[%s14417_s21 + $0x17a4] sm:$0xf]  ;;  %v11869_v32 = vor.u32 %v13189_v62, %v11866_v63  ;;  %v7864_v46 = vpop.f32.mrf.mxu0  ;;  %v7840_v53 = vpop.f32.mrf.mxu2 }
 0x31a   : > { %8079 = vmatpush.bf16.msrb.mxu1 %v11901_v44  ;;  %v12122_v11 = vld [vmem:[%s14417_s21 + $0x1650] sm:$0xf0]  ;;  %v11997_v33 = vor.u32 %v13221_v3, %v11994_v5  ;;  %v13185_v35 = vld [vmem:[%s14417_s21 + $0x1424] sm:$0xf]  ;;  %v15324_v42 = vadd.f32 %v7864_v46, %v7852_v2  ;;  %v9392_v5 = vld [vmem:[%s14417_s21 + $0xe8] sm:$0xf] }
 0x31b   : > { %8092 = vmatpush.bf16.msrb.mxu2 %v12029_v45  ;;  %v12298_v18 = vld [vmem:[%s14417_s21 + $0x17b0] sm:$0xf0]  ;;  %v12125_v37 = vor.u32 %v13253_v6, %v12122_v11  ;;  %v13217_v39 = vld [vmem:[%s14417_s21 + $0x1524] sm:$0xf]  ;;  %v12572_v6 = vld [vmem:[%s14417_s21 + $0xf4] sm:$0xf0] }
 0x31c   : > { %8105 = vmatpush.bf16.msrb.mxu3 %v12157_v47  ;;  %8071 = vmatmul.bf16.vlgmr.msrb.gmra.mxu0 %v14825_v26  ;;  %v11850_v36 = vld [vmem:[%s14417_s21 + $0x1430] sm:$0xf0]  ;;  %v12301_v38 = vor.u32 %v13297_v16, %v12298_v18  ;;  %v13249_v43 = vld [vmem:[%s14417_s21 + $0x1624] sm:$0xf]  ;;  %v9520_v11 = vld [vmem:[%s14417_s21 + $0x1e8] sm:$0xf] }
 0x31d   : > { %8115 = vmatpush.bf16.msra.mxu0 %v12333_v48  ;;  %v11978_v31 = vld [vmem:[%s14417_s21 + $0x1530] sm:$0xf0]  ;;  %v13293_v45 = vld [vmem:[%s14417_s21 + $0x1784] sm:$0xf]  ;;  %v11853_v47 = vor.u32 %v13185_v35, %v11850_v36  ;;  %v12604_v16 = vld [vmem:[%s14417_s21 + $0x1f4] sm:$0xf0] }
 0x31e   : > { %8080 = vmatpush.bf16.msrb.mxu1 %v11885_v60  ;;  %v12106_v44 = vld [vmem:[%s14417_s21 + $0x1630] sm:$0xf0]  ;;  %v11981_v48 = vor.u32 %v13217_v39, %v11978_v31  ;;  %v13181_v49 = vld [vmem:[%s14417_s21 + $0x1404] sm:$0xf]  ;;  %v7853_v63 = vpop.f32.mrf.mxu3  ;;  %v9376_v39 = vld [vmem:[%s14417_s21 + $0xc8] sm:$0xf] }
 0x31f   : > { %8093 = vmatpush.bf16.msrb.mxu2 %v12013_v61  ;;  %v12282_v41 = vld [vmem:[%s14417_s21 + $0x1790] sm:$0xf0]  ;;  %v13213_v51 = vld [vmem:[%s14417_s21 + $0x1504] sm:$0xf]  ;;  %v12109_v58 = vor.u32 %v13249_v43, %v12106_v44  ;;  %v12568_v31 = vld [vmem:[%s14417_s21 + $0xd4] sm:$0xf0] }
 0x320   : > { %8106 = vmatpush.bf16.msrb.mxu3 %v12141_v0  ;;  %v11834_v50 = vld [vmem:[%s14417_s21 + $0x1410] sm:$0xf0]  ;;  %v12285_v59 = vor.u32 %v13293_v45, %v12282_v41  ;;  %v13245_v61 = vld [vmem:[%s14417_s21 + $0x1604] sm:$0xf]  ;;  %v9504_v44 = vld [vmem:[%s14417_s21 + $0x1c8] sm:$0xf] }
 0x321   : > { %8116 = vmatpush.bf16.msra.mxu0 %v12317_v1  ;;  %v11962_v60 = vld [vmem:[%s14417_s21 + $0x1510] sm:$0xf0]  ;;  %v13289_v52 = vld [vmem:[%s14417_s21 + $0x1764] sm:$0xf]  ;;  %v11837_v40 = vor.u32 %v13181_v49, %v11834_v50  ;;  %v7866_v43 = vpop.f32.mrf.mxu0  ;;  %v12600_v45 = vld [vmem:[%s14417_s21 + $0x1d4] sm:$0xf0] }
 0x322   : > { %8081 = vmatpush.bf16.msrb.mxu1 %v11869_v32  ;;  %v12090_v62 = vld [vmem:[%s14417_s21 + $0x1610] sm:$0xf0]  ;;  %v13321_v1 = vld [vmem:[%s14417_s21 + $0x1864] sm:$0xf]  ;;  %v11965_v7 = vor.u32 %v13213_v51, %v11962_v60  ;;  %v9393_v32 = vor.u32 %v12572_v6, %v9392_v5  ;;  %v9505_v51 = vor.u32 %v12600_v45, %v9504_v44  ;;  %v9488_v60 = vld [vmem:[%s14417_s21 + $0x1a8] sm:$0xf] }
 0x323   : > { %8094 = vmatpush.bf16.msrb.mxu2 %v11997_v33  ;;  %v12266_v0 = vld [vmem:[%s14417_s21 + $0x1770] sm:$0xf0]  ;;  %v12093_v18 = vor.u32 %v13245_v61, %v12090_v62  ;;  %v13285_v33 = vld [vmem:[%s14417_s21 + $0x1744] sm:$0xf]  ;;  %v12596_v61 = vld [vmem:[%s14417_s21 + $0x1b4] sm:$0xf0] }
 0x324   : > { %8107 = vmatpush.bf16.msrb.mxu3 %v12125_v37  ;;  %v12394_v3 = vld [vmem:[%s14417_s21 + $0x1870] sm:$0xf0]  ;;  %v12269_v2 = vor.u32 %v13289_v52, %v12266_v0  ;;  %v13317_v36 = vld [vmem:[%s14417_s21 + $0x1844] sm:$0xf]  ;;  %v9521_v37 = vor.u32 %v12604_v16, %v9520_v11  ;;  %v9489_v6 = vor.u32 %v12596_v61, %v9488_v60  ;;  %v9472_v11 = vld [vmem:[%s14417_s21 + $0x188] sm:$0xf] }
 0x325   : > { %8117 = vmatpush.bf16.msra.mxu0 %v12301_v38  ;;  %v12397_v19 = vor.u32 %v13321_v1, %v12394_v3  ;;  %v12250_v35 = vld [vmem:[%s14417_s21 + $0x1750] sm:$0xf0]  ;;  %v13313_v50 = vld [vmem:[%s14417_s21 + $0x1824] sm:$0xf]  ;;  %v12592_v16 = vld [vmem:[%s14417_s21 + $0x194] sm:$0xf0] }
 0x326   : > { %8082 = vmatpush.bf16.msrb.mxu1 %v11853_v47  ;;  %v12378_v38 = vld [vmem:[%s14417_s21 + $0x1850] sm:$0xf0]  ;;  %v12253_v41 = vor.u32 %v13285_v33, %v12250_v35  ;;  %v9377_v47 = vor.u32 %v12568_v31, %v9376_v39  ;;  %v13277_v63 = vld [vmem:[%s14417_s21 + $0x1704] sm:$0xf]  ;;  %v12668_v33 = vld [vmem:[%s14417_s21 + $0x3f4] sm:$0xf0]  ;;  %v9473_v39 = vor.u32 %v12592_v16, %v9472_v11 }
 0x327   : > { %8095 = vmatpush.bf16.msrb.mxu2 %v11981_v48  ;;  %v12381_v46 = vor.u32 %v13317_v36, %v12378_v38  ;;  %v13281_v48 = vld [vmem:[%s14417_s21 + $0x1724] sm:$0xf]  ;;  %v12234_v49 = vld [vmem:[%s14417_s21 + $0x1730] sm:$0xf0]  ;;  %v9328_v43 = vld [vmem:[%s14417_s21 + $0x68] sm:$0xf] }
 0x328   : > { %8108 = vmatpush.bf16.msrb.mxu3 %v12109_v58  ;;  %v12362_v53 = vld [vmem:[%s14417_s21 + $0x1830] sm:$0xf0]  ;;  %v9360_v58 = vld [vmem:[%s14417_s21 + $0xa8] sm:$0xf]  ;;  %v12237_v62 = vor.u32 %v13281_v48, %v12234_v49  ;;  %v13309_v3 = vld [vmem:[%s14417_s21 + $0x1804] sm:$0xf] }
 0x329   : > { %8118 = vmatpush.bf16.msra.mxu0 %v12285_v59  ;;  %v12564_v59 = vld [vmem:[%s14417_s21 + $0xb4] sm:$0xf0]  ;;  %v12365_v52 = vor.u32 %v13313_v50, %v12362_v53  ;;  %v12218_v1 = vld [vmem:[%s14417_s21 + $0x1710] sm:$0xf0]  ;;  %v9456_v45 = vld [vmem:[%s14417_s21 + $0x168] sm:$0xf] }
 0x32a   : > { %8083 = vmatpush.bf16.msrb.mxu1 %v11837_v40  ;;  %v9361_v0 = vor.u32 %v12564_v59, %v9360_v58  ;;  %v12346_v5 = vld [vmem:[%s14417_s21 + $0x1810] sm:$0xf0]  ;;  %v9344_v40 = vld [vmem:[%s14417_s21 + $0x88] sm:$0xf]  ;;  %v7877_v35 = vpop.f32.mrf.mxu1  ;;  %v12556_v44 = vld [vmem:[%s14417_s21 + $0x74] sm:$0xf0] }
 0x32b   : > { %8096 = vmatpush.bf16.msrb.mxu2 %v11965_v7  ;;  %v12560_v7 = vld [vmem:[%s14417_s21 + $0x94] sm:$0xf0]  ;;  %v12349_v36 = vor.u32 %v13309_v3, %v12346_v5  ;;  %v7878_v38 = vadd.f32 %v7877_v35, %v15324_v42  ;;  %v9760_v49 = vld [vmem:[%s14417_s21 + $0x3c8] sm:$0xf]  ;;  %v9329_v42 = vor.u32 %v12556_v44, %v9328_v43 }
 0x32c   : > { %8109 = vmatpush.bf16.msrb.mxu3 %v12093_v18  ;;  %v9648_v18 = vld [vmem:[%s14417_s21 + $0x2e8] sm:$0xf]  ;;  %v12632_v48 = vld [vmem:[%s14417_s21 + $0x2d4] sm:$0xf0] }
 0x32d   : > { %8119 = vmatpush.bf16.msra.mxu0 %v12269_v2  ;;  %8084 = vmatmul.bf16.vlgmr.msrb.gmra.mxu1 %v14865_v12  ;;  %v12636_v2 = vld [vmem:[%s14417_s21 + $0x2f4] sm:$0xf0]  ;;  %v9312_v59 = vld [vmem:[%s14417_s21 + $0x48] sm:$0xf] }
 0x32e   : > { %8132 = vmatpush.bf16.msra.mxu1 %v12397_v19  ;;  %8097 = vmatmul.bf16.vlgmr.msrb.gmra.mxu2 %v14869_v14  ;;  %v12221_v19 = vor.u32 %v13277_v63, %v12218_v1  ;;  %v9649_v31 = vor.u32 %v12636_v2, %v9648_v18  ;;  %v12664_v50 = vld [vmem:[%s14417_s21 + $0x3d4] sm:$0xf0]  ;;  %v9440_v61 = vld [vmem:[%s14417_s21 + $0x148] sm:$0xf] }
 0x32f   : > { %8141 = vmatpush.bf16.msra.mxu2 %v9393_v32  ;;  %8110 = vmatmul.bf16.vlgmr.msrb.gmra.mxu3 %v14867_v13  ;;  %v9776_v32 = vld [vmem:[%s14417_s21 + $0x3e8] sm:$0xf]  ;;  %v12552_v60 = vld [vmem:[%s14417_s21 + $0x54] sm:$0xf0] }
 0x330   : > { %8154 = vmatpush.bf16.msra.mxu3 %v9521_v37  ;;  %v9345_v37 = vor.u32 %v12560_v7, %v9344_v40  ;;  %v9616_v1 = vld [vmem:[%s14417_s21 + $0x2a8] sm:$0xf]  ;;  %v12628_v3 = vld [vmem:[%s14417_s21 + $0x2b4] sm:$0xf0]  ;;  %v9313_v11 = vor.u32 %v12552_v60, %v9312_v59 }
 0x331   : > { %8120 = vmatpush.bf16.msra.mxu0 %v12253_v41  ;;  %v9777_v41 = vor.u32 %v12668_v33, %v9776_v32  ;;  %v9744_v5 = vld [vmem:[%s14417_s21 + $0x3a8] sm:$0xf]  ;;  %v9617_v18 = vor.u32 %v12628_v3, %v9616_v1  ;;  %v12580_v35 = vld [vmem:[%s14417_s21 + $0x134] sm:$0xf0] }
 0x332   : > { %8133 = vmatpush.bf16.msra.mxu1 %v12381_v46  ;;  %v12588_v46 = vld [vmem:[%s14417_s21 + $0x174] sm:$0xf0]  ;;  %v7903_v63 = vpop.f32.mrf.mxu3  ;;  %v7879_v7 = vpop.f32.mrf.mxu1  ;;  %v9296_v2 = vld [vmem:[%s14417_s21 + $0x28] sm:$0xf] }
 0x333   : > { %8142 = vmatpush.bf16.msra.mxu2 %v9377_v47  ;;  %v9632_v47 = vld [vmem:[%s14417_s21 + $0x2c8] sm:$0xf]  ;;  %v9457_v53 = vor.u32 %v12588_v46, %v9456_v45  ;;  %v12656_v43 = vld [vmem:[%s14417_s21 + $0x394] sm:$0xf0] }
 0x334   : > { %8155 = vmatpush.bf16.msra.mxu3 %v9505_v51  ;;  %v7890_v51 = vpop.f32.mrf.mxu2  ;;  %v9633_v58 = vor.u32 %v12632_v48, %v9632_v47  ;;  %v9424_v32 = vld [vmem:[%s14417_s21 + $0x128] sm:$0xf]  ;;  %v12620_v59 = vld [vmem:[%s14417_s21 + $0x274] sm:$0xf0] }
 0x335   : > { %8121 = vmatpush.bf16.msra.mxu0 %v12237_v62  ;;  %v7891_v62 = vadd.f32 %v7890_v51, %v7878_v38  ;;  %v13433_v38 = vld [vmem:[#allocation1] sm:$0xff]  ;;  %v9425_v47 = vor.u32 %v12580_v35, %v9424_v32  ;;  %v9712_v60 = vld [vmem:[%s14417_s21 + $0x368] sm:$0xf] }
 0x336   : > { %8134 = vmatpush.bf16.msra.mxu1 %v12365_v52  ;;  %v9761_v52 = vor.u32 %v12664_v50, %v9760_v49  ;;  %v12544_v49 = vld [vmem:[%s14417_s21 + $0x14] sm:$0xf0]  ;;  %v9408_v50 = vld [vmem:[%s14417_s21 + $0x108] sm:$0xf] }
 0x337   : > { %8143 = vmatpush.bf16.msra.mxu2 %v9361_v0  ;;  %v12584_v0 = vld [vmem:[%s14417_s21 + $0x154] sm:$0xf0]  ;;  %v7904_v40 = vadd.f32 %v7903_v63, %v7891_v62  ;;  %v9904_v62 = vld [vmem:[%s14417_s21 + $0x4e8] sm:$0xf] }
 0x338   : > { %8156 = vmatpush.bf16.msra.mxu3 %v9489_v6  ;;  %v12660_v6 = vld [vmem:[%s14417_s21 + $0x3b4] sm:$0xf0]  ;;  %v9441_v16 = vor.u32 %v12584_v0, %v9440_v61  ;;  %v10032_v0 = vld [vmem:[%s14417_s21 + $0x5e8] sm:$0xf] }
 0x339   : > { %8122 = vmatpush.bf16.msra.mxu0 %v12221_v19  ;;  %v12548_v19 = vld [vmem:[%s14417_s21 + $0x34] sm:$0xf0]  ;;  %v9745_v33 = vor.u32 %v12660_v6, %v9744_v5  ;;  %v9568_v7 = vld [vmem:[%s14417_s21 + $0x248] sm:$0xf] }
 0x33a   : > { %8135 = vmatpush.bf16.msra.mxu1 %v12349_v36  ;;  %v9600_v36 = vld [vmem:[%s14417_s21 + $0x288] sm:$0xf]  ;;  %v9297_v44 = vor.u32 %v12548_v19, %v9296_v2  ;;  %v7905_v51 = vpop.f32.mrf.mxu3  ;;  %v12652_v61 = vld [vmem:[%s14417_s21 + $0x374] sm:$0xf0] }
 0x33b   : > { %8144 = vmatpush.bf16.msra.mxu2 %v9345_v37  ;;  %v12624_v37 = vld [vmem:[%s14417_s21 + $0x294] sm:$0xf0]  ;;  %v9713_v6 = vor.u32 %v12652_v61, %v9712_v60  ;;  %v9888_v19 = vld [vmem:[%s14417_s21 + $0x4c8] sm:$0xf] }
 0x33c   : > { %8157 = vmatpush.bf16.msra.mxu3 %v9473_v39  ;;  %8123 = vmatmul.bf16.vlgmr.msra.gmra.mxu0 %v14871_v15  ;;  %v7916_v39 = vpop.f32.mrf.mxu0  ;;  %v7892_v46 = vpop.f32.mrf.mxu2  ;;  %v9601_v48 = vor.u32 %v12624_v37, %v9600_v36  ;;  %v12700_v63 = vld [vmem:[%s14417_s21 + $0x4f4] sm:$0xf0]  ;;  %v10016_v35 = vld [vmem:[%s14417_s21 + $0x5c8] sm:$0xf] }
 0x33d   : > { %8167 = vmatpush.bf16.msrb.mxu0 %v9649_v31  ;;  %12407 = vmatmul.msk.bf16.vlgmr.msra.gmra.mxu1 %vm7488_vm0, %v13433_v38  ;;  %v9728_v31 = vld [vmem:[%s14417_s21 + $0x388] sm:$0xf]  ;;  %v15395_v45 = vadd.f32 %v7916_v39, %v7904_v40  ;;  %v12732_v1 = vld [vmem:[%s14417_s21 + $0x5f4] sm:$0xf0]  ;;  %v9905_v40 = vor.u32 %v12700_v63, %v9904_v62 }
 0x33e   : > { %8180 = vmatpush.bf16.msrb.mxu1 %v9777_v41  ;;  %v9280_v41 = vld [vmem:[%s14417_s21 + $0x8] sm:$0xf]  ;;  %v12648_v2 = vld [vmem:[%s14417_s21 + $0x354] sm:$0xf0] }
 0x33f   : > { %8145 = vmatpush.bf16.msra.mxu2 %v9329_v42  ;;  %v12576_v42 = vld [vmem:[%s14417_s21 + $0x114] sm:$0xf0]  ;;  %v9536_v51 = vld [vmem:[%s14417_s21 + $0x208] sm:$0xf] }
 0x340   : > { %8158 = vmatpush.bf16.msra.mxu3 %v9457_v53  ;;  %v9729_v53 = vor.u32 %v12656_v43, %v9728_v31  ;;  %v9409_v3 = vor.u32 %v12576_v42, %v9408_v50  ;;  %v12696_v32 = vld [vmem:[%s14417_s21 + $0x4d4] sm:$0xf0]  ;;  %v9552_v31 = vld [vmem:[%s14417_s21 + $0x228] sm:$0xf] }
 0x341   : > { %8168 = vmatpush.bf16.msrb.mxu0 %v9633_v58  ;;  %v9584_v58 = vld [vmem:[%s14417_s21 + $0x268] sm:$0xf]  ;;  %v12728_v36 = vld [vmem:[%s14417_s21 + $0x5d4] sm:$0xf0]  ;;  %v9889_v39 = vor.u32 %v12696_v32, %v9888_v19 }
 0x342   : > { %8181 = vmatpush.bf16.msrb.mxu1 %v9761_v52  ;;  %v9281_v52 = vor.u32 %v12544_v49, %v9280_v41  ;;  %v9585_v5 = vor.u32 %v12620_v59, %v9584_v58  ;;  %v12612_v43 = vld [vmem:[%s14417_s21 + $0x234] sm:$0xf0]  ;;  %v10017_v41 = vor.u32 %v12728_v36, %v10016_v35  ;;  %v10000_v49 = vld [vmem:[%s14417_s21 + $0x5a8] sm:$0xf] }
 0x343   : > { %8146 = vmatpush.bf16.msra.mxu2 %v9313_v11  ;;  %v12616_v11 = vld [vmem:[%s14417_s21 + $0x254] sm:$0xf0]  ;;  %v9553_v42 = vor.u32 %v12612_v43, %v9552_v31  ;;  %v9664_v60 = vld [vmem:[%s14417_s21 + $0x308] sm:$0xf] }
 0x344   : > { %8159 = vmatpush.bf16.msra.mxu3 %v9441_v16  ;;  %v9696_v16 = vld [vmem:[%s14417_s21 + $0x348] sm:$0xf]  ;;  %v9569_v37 = vor.u32 %v12616_v11, %v9568_v7  ;;  %v12644_v46 = vld [vmem:[%s14417_s21 + $0x334] sm:$0xf0] }
 0x345   : > { %8169 = vmatpush.bf16.msrb.mxu0 %v9617_v18  ;;  %v10033_v18 = vor.u32 %v12732_v1, %v10032_v0  ;;  %v9697_v38 = vor.u32 %v12648_v2, %v9696_v16  ;;  %v12724_v50 = vld [vmem:[%s14417_s21 + $0x5b4] sm:$0xf0]  ;;  %v9856_v63 = vld [vmem:[%s14417_s21 + $0x488] sm:$0xf] }
 0x346   : > { %8182 = vmatpush.bf16.msrb.mxu1 %v9745_v33  ;;  %v7918_v33 = vpop.f32.mrf.mxu0  ;;  %v12608_v59 = vld [vmem:[%s14417_s21 + $0x214] sm:$0xf0]  ;;  %v10001_v62 = vor.u32 %v12724_v50, %v10000_v49  ;;  %v9984_v0 = vld [vmem:[%s14417_s21 + $0x588] sm:$0xf] }
 0x347   : > { %8147 = vmatpush.bf16.msra.mxu2 %v9297_v44  ;;  %v9680_v44 = vld [vmem:[%s14417_s21 + $0x328] sm:$0xf]  ;;  %v12640_v61 = vld [vmem:[%s14417_s21 + $0x314] sm:$0xf0]  ;;  %v9537_v7 = vor.u32 %v12608_v59, %v9536_v51 }
 0x348   : > { %8160 = vmatpush.bf16.msra.mxu3 %v9425_v47  ;;  %v9872_v47 = vld [vmem:[%s14417_s21 + $0x4a8] sm:$0xf]  ;;  %v12796_v16 = vld [vmem:[%s14417_s21 + $0x7f4] sm:$0xf0] }
 0x349   : > { %8170 = vmatpush.bf16.msrb.mxu0 %v9601_v48  ;;  %v12692_v48 = vld [vmem:[%s14417_s21 + $0x4b4] sm:$0xf0]  ;;  %v10288_v11 = vld [vmem:[%s14417_s21 + $0x7e8] sm:$0xf] }
 0x34a   : > { %8183 = vmatpush.bf16.msrb.mxu1 %v9729_v53  ;;  %v9681_v53 = vor.u32 %v12644_v46, %v9680_v44  ;;  %v9873_v58 = vor.u32 %v12692_v48, %v9872_v47  ;;  %v7929_v1 = vpop.f32.mrf.mxu1  ;;  %v9840_v33 = vld [vmem:[%s14417_s21 + $0x468] sm:$0xf]  ;;  %v12684_v35 = vld [vmem:[%s14417_s21 + $0x474] sm:$0xf0] }
 0x34b   : > { %8148 = vmatpush.bf16.msra.mxu2 %v9281_v52  ;;  %v12688_v52 = vld [vmem:[%s14417_s21 + $0x494] sm:$0xf0]  ;;  %v9968_v36 = vld [vmem:[%s14417_s21 + $0x568] sm:$0xf]  ;;  %v9841_v44 = vor.u32 %v12684_v35, %v9840_v33 }
 0x34c   : > { %8161 = vmatpush.bf16.msra.mxu3 %v9409_v3  ;;  %v12720_v3 = vld [vmem:[%s14417_s21 + $0x594] sm:$0xf0]  ;;  %v9857_v2 = vor.u32 %v12688_v52, %v9856_v63  ;;  %v10272_v31 = vld [vmem:[%s14417_s21 + $0x7c8] sm:$0xf] }
 0x34d   : > { %8171 = vmatpush.bf16.msrb.mxu0 %v9585_v5  ;;  %v10160_v5 = vld [vmem:[%s14417_s21 + $0x6e8] sm:$0xf]  ;;  %v9985_v19 = vor.u32 %v12720_v3, %v9984_v0  ;;  %v12792_v43 = vld [vmem:[%s14417_s21 + $0x7d4] sm:$0xf0] }
 0x34e   : > { %8184 = vmatpush.bf16.msrb.mxu1 %v9713_v6  ;;  %8149 = vmatmul.bf16.vlgmr.msra.gmra.mxu2 %v14524_v29  ;;  %v12764_v6 = vld [vmem:[%s14417_s21 + $0x6f4] sm:$0xf0]  ;;  %v9824_v49 = vld [vmem:[%s14417_s21 + $0x448] sm:$0xf] }
 0x34f   : > { %8193 = vmatpush.bf16.msrb.mxu2 %v9905_v40  ;;  %8162 = vmatmul.bf16.vlgmr.msra.gmra.mxu3 %v14531_v34  ;;  %v7930_v40 = vadd.f32 %v7929_v1, %v15395_v45  ;;  %v10161_v32 = vor.u32 %v12764_v6, %v10160_v5  ;;  %v12716_v45 = vld [vmem:[%s14417_s21 + $0x574] sm:$0xf0]  ;;  %v10128_v59 = vld [vmem:[%s14417_s21 + $0x6a8] sm:$0xf] }
 0x350   : > { %8206 = vmatpush.bf16.msrb.mxu3 %v10033_v18  ;;  %v9665_v18 = vor.u32 %v12640_v61, %v9664_v60  ;;  %v12680_v50 = vld [vmem:[%s14417_s21 + $0x454] sm:$0xf0]  ;;  %v9808_v5 = vld [vmem:[%s14417_s21 + $0x428] sm:$0xf] }
 0x351   : > { %8172 = vmatpush.bf16.msrb.mxu0 %v9569_v37  ;;  %v10289_v37 = vor.u32 %v12796_v16, %v10288_v11  ;;  %v7942_v46 = vpop.f32.mrf.mxu2  ;;  %v12756_v60 = vld [vmem:[%s14417_s21 + $0x6b4] sm:$0xf0]  ;;  %v9825_v0 = vor.u32 %v12680_v50, %v9824_v49  ;;  %v10112_v16 = vld [vmem:[%s14417_s21 + $0x688] sm:$0xf] }
 0x352   : > { %8185 = vmatpush.bf16.msrb.mxu1 %v9697_v38  ;;  %v10144_v38 = vld [vmem:[%s14417_s21 + $0x6c8] sm:$0xf]  ;;  %v7955_v48 = vpop.f32.mrf.mxu3  ;;  %v7943_v51 = vadd.f32 %v7942_v46, %v7930_v40  ;;  %v7931_v61 = vpop.f32.mrf.mxu1  ;;  %v12788_v63 = vld [vmem:[%s14417_s21 + $0x7b4] sm:$0xf0]  ;;  %v10129_v3 = vor.u32 %v12756_v60, %v10128_v59 }
 0x353   : > { %8194 = vmatpush.bf16.msrb.mxu2 %v9889_v39  ;;  %v12760_v39 = vld [vmem:[%s14417_s21 + $0x6d4] sm:$0xf0]  ;;  %v9936_v40 = vld [vmem:[%s14417_s21 + $0x528] sm:$0xf] }
 0x354   : > { %8207 = vmatpush.bf16.msrb.mxu3 %v10017_v41  ;;  %v9969_v41 = vor.u32 %v12716_v45, %v9968_v36  ;;  %v10145_v47 = vor.u32 %v12760_v39, %v10144_v38  ;;  %v7956_v52 = vadd.f32 %v7955_v48, %v7943_v51  ;;  %v12676_v6 = vld [vmem:[%s14417_s21 + $0x434] sm:$0xf0]  ;;  %v9792_v36 = vld [vmem:[%s14417_s21 + $0x408] sm:$0xf] }
 0x355   : > { %8173 = vmatpush.bf16.msrb.mxu0 %v9553_v42  ;;  %v9952_v42 = vld [vmem:[%s14417_s21 + $0x548] sm:$0xf]  ;;  %v12708_v11 = vld [vmem:[%s14417_s21 + $0x534] sm:$0xf0]  ;;  %v9809_v35 = vor.u32 %v12676_v6, %v9808_v5 }
 0x356   : > { %8186 = vmatpush.bf16.msrb.mxu1 %v9681_v53  ;;  %v10273_v53 = vor.u32 %v12792_v43, %v10272_v31  ;;  %v12672_v38 = vld [vmem:[%s14417_s21 + $0x414] sm:$0xf0]  ;;  %v9920_v39 = vld [vmem:[%s14417_s21 + $0x508] sm:$0xf] }
 0x357   : > { %8195 = vmatpush.bf16.msrb.mxu2 %v9873_v58  ;;  %v12712_v58 = vld [vmem:[%s14417_s21 + $0x554] sm:$0xf0]  ;;  %v10096_v46 = vld [vmem:[%s14417_s21 + $0x668] sm:$0xf]  ;;  %v9793_v51 = vor.u32 %v12672_v38, %v9792_v36 }
 0x358   : > { %8208 = vmatpush.bf16.msrb.mxu3 %v10001_v62  ;;  %v10256_v62 = vld [vmem:[%s14417_s21 + $0x7a8] sm:$0xf]  ;;  %v9953_v1 = vor.u32 %v12712_v58, %v9952_v42  ;;  %v12704_v31 = vld [vmem:[%s14417_s21 + $0x514] sm:$0xf0] }
 0x359   : > { %8174 = vmatpush.bf16.msrb.mxu0 %v9537_v7  ;;  %v10257_v7 = vor.u32 %v12788_v63, %v10256_v62  ;;  %v7944_v43 = vpop.f32.mrf.mxu2  ;;  %v10224_v48 = vld [vmem:[%s14417_s21 + $0x768] sm:$0xf]  ;;  %v12780_v49 = vld [vmem:[%s14417_s21 + $0x774] sm:$0xf0]  ;;  %v9921_v59 = vor.u32 %v12704_v31, %v9920_v39 }
 0x35a   : > { %8187 = vmatpush.bf16.msrb.mxu1 %v9665_v18  ;;  %v12752_v18 = vld [vmem:[%s14417_s21 + $0x694] sm:$0xf0]  ;;  %v10416_v50 = vld [vmem:[%s14417_s21 + $0x8e8] sm:$0xf]  ;;  %v10225_v61 = vor.u32 %v12780_v49, %v10224_v48 }
 0x35b   : > { %8196 = vmatpush.bf16.msrb.mxu2 %v9857_v2  ;;  %v7968_v2 = vpop.f32.mrf.mxu0  ;;  %v10113_v45 = vor.u32 %v12752_v18, %v10112_v16  ;;  %v12828_v42 = vld [vmem:[%s14417_s21 + $0x8f4] sm:$0xf0]  ;;  %v10080_v63 = vld [vmem:[%s14417_s21 + $0x648] sm:$0xf] }
 0x35c   : > { %8209 = vmatpush.bf16.msrb.mxu3 %v9985_v19  ;;  %8175 = vmatmul.bf16.vlgmr.msrb.gmra.mxu0 %v14522_v28  ;;  %v10240_v19 = vld [vmem:[%s14417_s21 + $0x788] sm:$0xf]  ;;  %v15466_v33 = vadd.f32 %v7968_v2, %v7956_v52  ;;  %v12860_v58 = vld [vmem:[%s14417_s21 + $0x9f4] sm:$0xf0]  ;;  %v10417_v62 = vor.u32 %v12828_v42, %v10416_v50 }
 0x35d   : > { %8219 = vmatpush.bf16.msra.mxu0 %v10161_v32  ;;  %8188 = vmatmul.bf16.vlgmr.msrb.gmra.mxu1 %v14526_v30  ;;  %v12784_v32 = vld [vmem:[%s14417_s21 + $0x794] sm:$0xf0]  ;;  %v10400_v5 = vld [vmem:[%s14417_s21 + $0x8c8] sm:$0xf] }
 0x35e   : > { %8232 = vmatpush.bf16.msra.mxu1 %v10289_v37  ;;  %v9937_v37 = vor.u32 %v12708_v11, %v9936_v40  ;;  %v12744_v52 = vld [vmem:[%s14417_s21 + $0x654] sm:$0xf0]  ;;  %v10512_v39 = vld [vmem:[%s14417_s21 + $0x9a8] sm:$0xf] }
 0x35f   : > { %8197 = vmatpush.bf16.msrb.mxu2 %v9841_v44  ;;  %v7957_v44 = vpop.f32.mrf.mxu3  ;;  %v12824_v6 = vld [vmem:[%s14417_s21 + $0x8d4] sm:$0xf0]  ;;  %v10081_v16 = vor.u32 %v12744_v52, %v10080_v63  ;;  %v10176_v48 = vld [vmem:[%s14417_s21 + $0x708] sm:$0xf] }
 0x360   : > { %8210 = vmatpush.bf16.msrb.mxu3 %v9969_v41  ;;  %v10241_v41 = vor.u32 %v12784_v32, %v10240_v19  ;;  %v12856_v11 = vld [vmem:[%s14417_s21 + $0x9d4] sm:$0xf0]  ;;  %v10401_v2 = vor.u32 %v12824_v6, %v10400_v5  ;;  %v10064_v19 = vld [vmem:[%s14417_s21 + $0x628] sm:$0xf] }
 0x361   : > { %8220 = vmatpush.bf16.msra.mxu0 %v10145_v47  ;;  %v12748_v47 = vld [vmem:[%s14417_s21 + $0x674] sm:$0xf0]  ;;  %v10048_v44 = vld [vmem:[%s14417_s21 + $0x608] sm:$0xf] }
 0x362   : > { %8233 = vmatpush.bf16.msra.mxu1 %v10273_v53  ;;  %v10544_v53 = vld [vmem:[%s14417_s21 + $0x9e8] sm:$0xf]  ;;  %v10097_v60 = vor.u32 %v12748_v47, %v10096_v46  ;;  %v12740_v32 = vld [vmem:[%s14417_s21 + $0x634] sm:$0xf0] }
 0x363   : > { %8198 = vmatpush.bf16.msrb.mxu2 %v9825_v0  ;;  %v10208_v0 = vld [vmem:[%s14417_s21 + $0x748] sm:$0xf]  ;;  %v7970_v40 = vpop.f32.mrf.mxu0  ;;  %v12820_v38 = vld [vmem:[%s14417_s21 + $0x8b4] sm:$0xf0]  ;;  %v10065_v43 = vor.u32 %v12740_v32, %v10064_v19 }
 0x364   : > { %8211 = vmatpush.bf16.msrb.mxu3 %v9953_v1  ;;  %v10545_v1 = vor.u32 %v12860_v58, %v10544_v53  ;;  %v12852_v31 = vld [vmem:[%s14417_s21 + $0x9b4] sm:$0xf0]  ;;  %v10368_v42 = vld [vmem:[%s14417_s21 + $0x888] sm:$0xf] }
 0x365   : > { %8221 = vmatpush.bf16.msra.mxu0 %v10129_v3  ;;  %v12776_v3 = vld [vmem:[%s14417_s21 + $0x754] sm:$0xf0]  ;;  %v10513_v50 = vor.u32 %v12852_v31, %v10512_v39  ;;  %v10496_v53 = vld [vmem:[%s14417_s21 + $0x988] sm:$0xf] }
 0x366   : > { %8234 = vmatpush.bf16.msra.mxu1 %v10257_v7  ;;  %v10528_v7 = vld [vmem:[%s14417_s21 + $0x9c8] sm:$0xf]  ;;  %v10209_v18 = vor.u32 %v12776_v3, %v10208_v0  ;;  %v12736_v47 = vld [vmem:[%s14417_s21 + $0x614] sm:$0xf0] }
 0x367   : > { %8199 = vmatpush.bf16.msrb.mxu2 %v9809_v35  ;;  %v10192_v35 = vld [vmem:[%s14417_s21 + $0x728] sm:$0xf]  ;;  %v10529_v36 = vor.u32 %v12856_v11, %v10528_v7  ;;  %v12768_v49 = vld [vmem:[%s14417_s21 + $0x714] sm:$0xf0]  ;;  %v10049_v63 = vor.u32 %v12736_v47, %v10048_v44 }
 0x368   : > { %8212 = vmatpush.bf16.msrb.mxu3 %v9937_v37  ;;  %v12772_v37 = vld [vmem:[%s14417_s21 + $0x734] sm:$0xf0]  ;;  %v10800_v52 = vld [vmem:[%s14417_s21 + $0xbe8] sm:$0xf] }
 0x369   : > { %8222 = vmatpush.bf16.msra.mxu0 %v10113_v45  ;;  %v10384_v45 = vld [vmem:[%s14417_s21 + $0x8a8] sm:$0xf]  ;;  %v12924_v0 = vld [vmem:[%s14417_s21 + $0xbf4] sm:$0xf0] }
 0x36a   : > { %8235 = vmatpush.bf16.msra.mxu1 %v10241_v41  ;;  %v10193_v41 = vor.u32 %v12772_v37, %v10192_v35  ;;  %v10385_v46 = vor.u32 %v12820_v38, %v10384_v45  ;;  %v7981_v58 = vpop.f32.mrf.mxu1  ;;  %v10352_v40 = vld [vmem:[%s14417_s21 + $0x868] sm:$0xf]  ;;  %v12812_v7 = vld [vmem:[%s14417_s21 + $0x874] sm:$0xf0] }
 0x36b   : > { %8200 = vmatpush.bf16.msrb.mxu2 %v9793_v51  ;;  %v12816_v51 = vld [vmem:[%s14417_s21 + $0x894] sm:$0xf0]  ;;  %v10480_v11 = vld [vmem:[%s14417_s21 + $0x968] sm:$0xf]  ;;  %v10353_v35 = vor.u32 %v12812_v7, %v10352_v40 }
 0x36c   : > { %8213 = vmatpush.bf16.msrb.mxu3 %v9921_v59  ;;  %v12848_v59 = vld [vmem:[%s14417_s21 + $0x994] sm:$0xf0]  ;;  %v10369_v3 = vor.u32 %v12816_v51, %v10368_v42  ;;  %v10784_v19 = vld [vmem:[%s14417_s21 + $0xbc8] sm:$0xf] }
 0x36d   : > { %8223 = vmatpush.bf16.msra.mxu0 %v10097_v60  ;;  %v10672_v60 = vld [vmem:[%s14417_s21 + $0xae8] sm:$0xf]  ;;  %v10497_v5 = vor.u32 %v12848_v59, %v10496_v53  ;;  %v12920_v32 = vld [vmem:[%s14417_s21 + $0xbd4] sm:$0xf0] }
 0x36e   : > { %8236 = vmatpush.bf16.msra.mxu1 %v10225_v61  ;;  %8201 = vmatmul.bf16.vlgmr.msrb.gmra.mxu2 %v14565_v8  ;;  %v12892_v61 = vld [vmem:[%s14417_s21 + $0xaf4] sm:$0xf0]  ;;  %v10336_v39 = vld [vmem:[%s14417_s21 + $0x848] sm:$0xf] }
 0x36f   : > { %8245 = vmatpush.bf16.msra.mxu2 %v10417_v62  ;;  %8214 = vmatmul.bf16.vlgmr.msrb.gmra.mxu3 %v14569_v10  ;;  %v7982_v62 = vadd.f32 %v7981_v58, %v15466_v33  ;;  %v10673_v6 = vor.u32 %v12892_v61, %v10672_v60  ;;  %v12844_v33 = vld [vmem:[%s14417_s21 + $0x974] sm:$0xf0]  ;;  %v10640_v47 = vld [vmem:[%s14417_s21 + $0xaa8] sm:$0xf] }
 0x370   : > { %8258 = vmatpush.bf16.msra.mxu3 %v10545_v1  ;;  %v10177_v1 = vor.u32 %v12768_v49, %v10176_v48  ;;  %v12808_v31 = vld [vmem:[%s14417_s21 + $0x854] sm:$0xf0]  ;;  %v10320_v60 = vld [vmem:[%s14417_s21 + $0x828] sm:$0xf] }
 0x371   : > { %8224 = vmatpush.bf16.msra.mxu0 %v10081_v16  ;;  %v10801_v16 = vor.u32 %v12924_v0, %v10800_v52  ;;  %v7994_v37 = vpop.f32.mrf.mxu2  ;;  %v12884_v48 = vld [vmem:[%s14417_s21 + $0xab4] sm:$0xf0]  ;;  %v10337_v53 = vor.u32 %v12808_v31, %v10336_v39  ;;  %v10624_v0 = vld [vmem:[%s14417_s21 + $0xa88] sm:$0xf] }
 0x372   : > { %8237 = vmatpush.bf16.msra.mxu1 %v10209_v18  ;;  %v10656_v18 = vld [vmem:[%s14417_s21 + $0xac8] sm:$0xf]  ;;  %v8007_v38 = vpop.f32.mrf.mxu3  ;;  %v7995_v44 = vadd.f32 %v7994_v37, %v7982_v62  ;;  %v7983_v49 = vpop.f32.mrf.mxu1  ;;  %v12916_v42 = vld [vmem:[%s14417_s21 + $0xbb4] sm:$0xf0]  ;;  %v10641_v59 = vor.u32 %v12884_v48, %v10640_v47 }
 0x373   : > { %8246 = vmatpush.bf16.msra.mxu2 %v10401_v2  ;;  %v12888_v2 = vld [vmem:[%s14417_s21 + $0xad4] sm:$0xf0]  ;;  %v10448_v62 = vld [vmem:[%s14417_s21 + $0x928] sm:$0xf] }
 0x374   : > { %8259 = vmatpush.bf16.msra.mxu3 %v10529_v36  ;;  %v10481_v36 = vor.u32 %v12844_v33, %v10480_v11  ;;  %v10657_v45 = vor.u32 %v12888_v2, %v10656_v18  ;;  %v8008_v51 = vadd.f32 %v8007_v38, %v7995_v44  ;;  %v12804_v61 = vld [vmem:[%s14417_s21 + $0x834] sm:$0xf0]  ;;  %v10304_v11 = vld [vmem:[%s14417_s21 + $0x808] sm:$0xf] }
 0x375   : > { %8225 = vmatpush.bf16.msra.mxu0 %v10065_v43  ;;  %v10464_v43 = vld [vmem:[%s14417_s21 + $0x948] sm:$0xf]  ;;  %v12836_v52 = vld [vmem:[%s14417_s21 + $0x934] sm:$0xf0]  ;;  %v10321_v7 = vor.u32 %v12804_v61, %v10320_v60 }
 0x376   : > { %8238 = vmatpush.bf16.msra.mxu1 %v10193_v41  ;;  %v10785_v41 = vor.u32 %v12920_v32, %v10784_v19  ;;  %v12800_v18 = vld [vmem:[%s14417_s21 + $0x814] sm:$0xf0]  ;;  %v10432_v2 = vld [vmem:[%s14417_s21 + $0x908] sm:$0xf] }
 0x377   : > { %8247 = vmatpush.bf16.msra.mxu2 %v10385_v46  ;;  %v12840_v46 = vld [vmem:[%s14417_s21 + $0x954] sm:$0xf0]  ;;  %v10608_v37 = vld [vmem:[%s14417_s21 + $0xa68] sm:$0xf]  ;;  %v10305_v44 = vor.u32 %v12800_v18, %v10304_v11 }
 0x378   : > { %8260 = vmatpush.bf16.msra.mxu3 %v10513_v50  ;;  %v10768_v50 = vld [vmem:[%s14417_s21 + $0xba8] sm:$0xf]  ;;  %v10465_v58 = vor.u32 %v12840_v46, %v10464_v43  ;;  %v12832_v19 = vld [vmem:[%s14417_s21 + $0x914] sm:$0xf0] }
 0x379   : > { %8226 = vmatpush.bf16.msra.mxu0 %v10049_v63  ;;  %v10769_v63 = vor.u32 %v12916_v42, %v10768_v50  ;;  %v7996_v32 = vpop.f32.mrf.mxu2  ;;  %v10736_v38 = vld [vmem:[%s14417_s21 + $0xb68] sm:$0xf]  ;;  %v12908_v39 = vld [vmem:[%s14417_s21 + $0xb74] sm:$0xf0]  ;;  %v10433_v47 = vor.u32 %v12832_v19, %v10432_v2 }
 0x37a   : > { %8239 = vmatpush.bf16.msra.mxu1 %v10177_v1  ;;  %v12880_v1 = vld [vmem:[%s14417_s21 + $0xa94] sm:$0xf0]  ;;  %v10928_v31 = vld [vmem:[%s14417_s21 + $0xce8] sm:$0xf]  ;;  %v10737_v49 = vor.u32 %v12908_v39, %v10736_v38 }
 0x37b   : > { %8248 = vmatpush.bf16.msra.mxu2 %v10369_v3  ;;  %v8020_v3 = vpop.f32.mrf.mxu0  ;;  %v10625_v33 = vor.u32 %v12880_v1, %v10624_v0  ;;  %v12956_v43 = vld [vmem:[%s14417_s21 + $0xcf4] sm:$0xf0]  ;;  %v10592_v42 = vld [vmem:[%s14417_s21 + $0xa48] sm:$0xf] }
 0x37c   : > { %8261 = vmatpush.bf16.msra.mxu3 %v10497_v5  ;;  %8227 = vmatmul.bf16.vlgmr.msra.gmra.mxu0 %v14560_v4  ;;  %v10752_v5 = vld [vmem:[%s14417_s21 + $0xb88] sm:$0xf]  ;;  %v15537_v40 = vadd.f32 %v8020_v3, %v8008_v51  ;;  %v12988_v46 = vld [vmem:[%s14417_s21 + $0xdf4] sm:$0xf0]  ;;  %v10929_v50 = vor.u32 %v12956_v43, %v10928_v31 }
 0x37d   : > { %8271 = vmatpush.bf16.msrb.mxu0 %v10673_v6  ;;  %8240 = vmatmul.bf16.vlgmr.msra.gmra.mxu1 %v14567_v9  ;;  %v12912_v6 = vld [vmem:[%s14417_s21 + $0xb94] sm:$0xf0]  ;;  %v10912_v60 = vld [vmem:[%s14417_s21 + $0xcc8] sm:$0xf] }
 0x37e   : > { %8284 = vmatpush.bf16.msrb.mxu1 %v10801_v16  ;;  %v10449_v16 = vor.u32 %v12836_v52, %v10448_v62  ;;  %v12872_v51 = vld [vmem:[%s14417_s21 + $0xa54] sm:$0xf0]  ;;  %v11024_v2 = vld [vmem:[%s14417_s21 + $0xda8] sm:$0xf] }
 0x37f   : > { %8249 = vmatpush.bf16.msra.mxu2 %v10353_v35  ;;  %v8009_v35 = vpop.f32.mrf.mxu3  ;;  %v12952_v61 = vld [vmem:[%s14417_s21 + $0xcd4] sm:$0xf0]  ;;  %v10593_v0 = vor.u32 %v12872_v51, %v10592_v42  ;;  %v10688_v38 = vld [vmem:[%s14417_s21 + $0xb08] sm:$0xf] }
 0x380   : > { %8262 = vmatpush.bf16.msra.mxu3 %v10481_v36  ;;  %v10753_v36 = vor.u32 %v12912_v6, %v10752_v5  ;;  %v12984_v52 = vld [vmem:[%s14417_s21 + $0xdd4] sm:$0xf0]  ;;  %v10913_v3 = vor.u32 %v12952_v61, %v10912_v60  ;;  %v10576_v5 = vld [vmem:[%s14417_s21 + $0xa28] sm:$0xf] }
 0x381   : > { %8272 = vmatpush.bf16.msrb.mxu0 %v10657_v45  ;;  %v12876_v45 = vld [vmem:[%s14417_s21 + $0xa74] sm:$0xf0]  ;;  %v10560_v35 = vld [vmem:[%s14417_s21 + $0xa08] sm:$0xf] }
 0x382   : > { %8285 = vmatpush.bf16.msrb.mxu1 %v10785_v41  ;;  %v11056_v41 = vld [vmem:[%s14417_s21 + $0xde8] sm:$0xf]  ;;  %v10609_v48 = vor.u32 %v12876_v45, %v10608_v37  ;;  %v12868_v6 = vld [vmem:[%s14417_s21 + $0xa34] sm:$0xf0] }
 0x383   : > { %8250 = vmatpush.bf16.msra.mxu2 %v10337_v53  ;;  %v10720_v53 = vld [vmem:[%s14417_s21 + $0xb48] sm:$0xf]  ;;  %v8022_v62 = vpop.f32.mrf.mxu0  ;;  %v12948_v18 = vld [vmem:[%s14417_s21 + $0xcb4] sm:$0xf0]  ;;  %v10577_v32 = vor.u32 %v12868_v6, %v10576_v5 }
 0x384   : > { %8263 = vmatpush.bf16.msra.mxu3 %v10465_v58  ;;  %v11057_v58 = vor.u32 %v12988_v46, %v11056_v41  ;;  %v12980_v19 = vld [vmem:[%s14417_s21 + $0xdb4] sm:$0xf0]  ;;  %v10880_v43 = vld [vmem:[%s14417_s21 + $0xc88] sm:$0xf] }
 0x385   : > { %8273 = vmatpush.bf16.msrb.mxu0 %v10641_v59  ;;  %v12904_v59 = vld [vmem:[%s14417_s21 + $0xb54] sm:$0xf0]  ;;  %v11025_v31 = vor.u32 %v12980_v19, %v11024_v2  ;;  %v11008_v41 = vld [vmem:[%s14417_s21 + $0xd88] sm:$0xf] }
 0x386   : > { %8286 = vmatpush.bf16.msrb.mxu1 %v10769_v63  ;;  %v11040_v63 = vld [vmem:[%s14417_s21 + $0xdc8] sm:$0xf]  ;;  %v10721_v1 = vor.u32 %v12904_v59, %v10720_v53  ;;  %v12864_v45 = vld [vmem:[%s14417_s21 + $0xa14] sm:$0xf0] }
 0x387   : > { %8251 = vmatpush.bf16.msra.mxu2 %v10321_v7  ;;  %v10704_v7 = vld [vmem:[%s14417_s21 + $0xb28] sm:$0xf]  ;;  %v11041_v11 = vor.u32 %v12984_v52, %v11040_v63  ;;  %v12896_v39 = vld [vmem:[%s14417_s21 + $0xb14] sm:$0xf0]  ;;  %v10561_v42 = vor.u32 %v12864_v45, %v10560_v35 }
 0x388   : > { %8264 = vmatpush.bf16.msra.mxu3 %v10449_v16  ;;  %v12900_v16 = vld [vmem:[%s14417_s21 + $0xb34] sm:$0xf0]  ;;  %v11312_v51 = vld [vmem:[%s14417_s21 + $0xfe8] sm:$0xf] }
 0x389   : > { %8274 = vmatpush.bf16.msrb.mxu0 %v10625_v33  ;;  %v10896_v33 = vld [vmem:[%s14417_s21 + $0xca8] sm:$0xf]  ;;  %v13052_v53 = vld [vmem:[%s14417_s21 + $0xff4] sm:$0xf0] }
 0x38a   : > { %8287 = vmatpush.bf16.msrb.mxu1 %v10753_v36  ;;  %v10705_v36 = vor.u32 %v12900_v16, %v10704_v7  ;;  %v10897_v37 = vor.u32 %v12948_v18, %v10896_v33  ;;  %v8033_v46 = vpop.f32.mrf.mxu1  ;;  %v10864_v62 = vld [vmem:[%s14417_s21 + $0xc68] sm:$0xf]  ;;  %v12940_v63 = vld [vmem:[%s14417_s21 + $0xc74] sm:$0xf0] }
 0x38b   : > { %8252 = vmatpush.bf16.msra.mxu2 %v10305_v44  ;;  %v12944_v44 = vld [vmem:[%s14417_s21 + $0xc94] sm:$0xf0]  ;;  %v10992_v52 = vld [vmem:[%s14417_s21 + $0xd68] sm:$0xf]  ;;  %v10865_v7 = vor.u32 %v12940_v63, %v10864_v62 }
 0x38c   : > { %8265 = vmatpush.bf16.msra.mxu3 %v10433_v47  ;;  %v12976_v47 = vld [vmem:[%s14417_s21 + $0xd94] sm:$0xf0]  ;;  %v10881_v59 = vor.u32 %v12944_v44, %v10880_v43  ;;  %v11296_v5 = vld [vmem:[%s14417_s21 + $0xfc8] sm:$0xf] }
 0x38d   : > { %8275 = vmatpush.bf16.msrb.mxu0 %v10609_v48  ;;  %v11184_v48 = vld [vmem:[%s14417_s21 + $0xee8] sm:$0xf]  ;;  %v11009_v60 = vor.u32 %v12976_v47, %v11008_v41  ;;  %v13048_v6 = vld [vmem:[%s14417_s21 + $0xfd4] sm:$0xf0] }
 0x38e   : > { %8288 = vmatpush.bf16.msrb.mxu1 %v10737_v49  ;;  %8253 = vmatmul.bf16.vlgmr.msra.gmra.mxu2 %v14655_v20  ;;  %v13020_v49 = vld [vmem:[%s14417_s21 + $0xef4] sm:$0xf0]  ;;  %v10848_v2 = vld [vmem:[%s14417_s21 + $0xc48] sm:$0xf] }
 0x38f   : > { %8297 = vmatpush.bf16.msrb.mxu2 %v10929_v50  ;;  %8266 = vmatmul.bf16.vlgmr.msra.gmra.mxu3 %v14661_v24  ;;  %v8034_v50 = vadd.f32 %v8033_v46, %v15537_v40  ;;  %v11185_v61 = vor.u32 %v13020_v49, %v11184_v48  ;;  %v12972_v40 = vld [vmem:[%s14417_s21 + $0xd74] sm:$0xf0]  ;;  %v11152_v45 = vld [vmem:[%s14417_s21 + $0xea8] sm:$0xf] }
 0x390   : > { %8310 = vmatpush.bf16.msrb.mxu3 %v11057_v58  ;;  %v10689_v58 = vor.u32 %v12896_v39, %v10688_v38  ;;  %v12936_v19 = vld [vmem:[%s14417_s21 + $0xc54] sm:$0xf0]  ;;  %v10832_v48 = vld [vmem:[%s14417_s21 + $0xc28] sm:$0xf] }
 0x391   : > { %8276 = vmatpush.bf16.msrb.mxu0 %v10593_v0  ;;  %v11313_v0 = vor.u32 %v13052_v53, %v11312_v51  ;;  %v8046_v16 = vpop.f32.mrf.mxu2  ;;  %v13012_v38 = vld [vmem:[%s14417_s21 + $0xeb4] sm:$0xf0]  ;;  %v10849_v41 = vor.u32 %v12936_v19, %v10848_v2  ;;  %v11136_v53 = vld [vmem:[%s14417_s21 + $0xe88] sm:$0xf] }
 0x392   : > { %8289 = vmatpush.bf16.msrb.mxu1 %v10721_v1  ;;  %v11168_v1 = vld [vmem:[%s14417_s21 + $0xec8] sm:$0xf]  ;;  %v8059_v18 = vpop.f32.mrf.mxu3  ;;  %v8047_v35 = vadd.f32 %v8046_v16, %v8034_v50  ;;  %v8035_v39 = vpop.f32.mrf.mxu1  ;;  %v13044_v43 = vld [vmem:[%s14417_s21 + $0xfb4] sm:$0xf0]  ;;  %v11153_v47 = vor.u32 %v13012_v38, %v11152_v45 }
 0x393   : > { %8298 = vmatpush.bf16.msrb.mxu2 %v10913_v3  ;;  %v13016_v3 = vld [vmem:[%s14417_s21 + $0xed4] sm:$0xf0]  ;;  %v10960_v50 = vld [vmem:[%s14417_s21 + $0xd28] sm:$0xf] }
 0x394   : > { %8311 = vmatpush.bf16.msrb.mxu3 %v11041_v11  ;;  %v10993_v11 = vor.u32 %v12972_v40, %v10992_v52  ;;  %v11169_v33 = vor.u32 %v13016_v3, %v11168_v1  ;;  %v8060_v44 = vadd.f32 %v8059_v18, %v8047_v35  ;;  %v12932_v49 = vld [vmem:[%s14417_s21 + $0xc34] sm:$0xf0]  ;;  %v10816_v52 = vld [vmem:[%s14417_s21 + $0xc08] sm:$0xf] }
 0x395   : > { %8277 = vmatpush.bf16.msrb.mxu0 %v10577_v32  ;;  %v10976_v32 = vld [vmem:[%s14417_s21 + $0xd48] sm:$0xf]  ;;  %v12964_v51 = vld [vmem:[%s14417_s21 + $0xd34] sm:$0xf0]  ;;  %v10833_v63 = vor.u32 %v12932_v49, %v10832_v48 }
 0x396   : > { %8290 = vmatpush.bf16.msrb.mxu1 %v10705_v36  ;;  %v11297_v36 = vor.u32 %v13048_v6, %v11296_v5  ;;  %v12928_v1 = vld [vmem:[%s14417_s21 + $0xc14] sm:$0xf0]  ;;  %v10944_v3 = vld [vmem:[%s14417_s21 + $0xd08] sm:$0xf] }
 0x397   : > { %8299 = vmatpush.bf16.msrb.mxu2 %v10897_v37  ;;  %v12968_v37 = vld [vmem:[%s14417_s21 + $0xd54] sm:$0xf0]  ;;  %v11120_v16 = vld [vmem:[%s14417_s21 + $0xe68] sm:$0xf]  ;;  %v10817_v35 = vor.u32 %v12928_v1, %v10816_v52 }
 0x398   : > { %8312 = vmatpush.bf16.msrb.mxu3 %v11025_v31  ;;  %v11280_v31 = vld [vmem:[%s14417_s21 + $0xfa8] sm:$0xf]  ;;  %v10977_v46 = vor.u32 %v12968_v37, %v10976_v32  ;;  %v12960_v5 = vld [vmem:[%s14417_s21 + $0xd14] sm:$0xf0] }
 0x399   : > { %8278 = vmatpush.bf16.msrb.mxu0 %v10561_v42  ;;  %v11281_v42 = vor.u32 %v13044_v43, %v11280_v31  ;;  %v8048_v6 = vpop.f32.mrf.mxu2  ;;  %v11248_v18 = vld [vmem:[%s14417_s21 + $0xf68] sm:$0xf]  ;;  %v13036_v2 = vld [vmem:[%s14417_s21 + $0xf74] sm:$0xf0]  ;;  %v10945_v45 = vor.u32 %v12960_v5, %v10944_v3 }
 0x39a   : > { %8291 = vmatpush.bf16.msrb.mxu1 %v10689_v58  ;;  %v13008_v58 = vld [vmem:[%s14417_s21 + $0xe94] sm:$0xf0]  ;;  %v11440_v19 = vld [vmem:[%s14417_s21 + $0x10e8] sm:$0xf]  ;;  %v11249_v39 = vor.u32 %v13036_v2, %v11248_v18 }
 0x39b   : > { %8300 = vmatpush.bf16.msrb.mxu2 %v10881_v59  ;;  %v8072_v59 = vpop.f32.mrf.mxu0  ;;  %v11137_v40 = vor.u32 %v13008_v58, %v11136_v53  ;;  %v13084_v32 = vld [vmem:[%s14417_s21 + $0x10f4] sm:$0xf0]  ;;  %v11104_v43 = vld [vmem:[%s14417_s21 + $0xe48] sm:$0xf] }
 0x39c   : > { %8313 = vmatpush.bf16.msrb.mxu3 %v11009_v60  ;;  %8279 = vmatmul.bf16.vlgmr.msrb.gmra.mxu0 %v14659_v23  ;;  %v11264_v60 = vld [vmem:[%s14417_s21 + $0xf88] sm:$0xf]  ;;  %v15608_v62 = vadd.f32 %v8072_v59, %v8060_v44  ;;  %v13116_v37 = vld [vmem:[%s14417_s21 + $0x11f4] sm:$0xf0]  ;;  %v11441_v31 = vor.u32 %v13084_v32, %v11440_v19 }
 0x39d   : > { %8323 = vmatpush.bf16.msra.mxu0 %v11185_v61  ;;  %8292 = vmatmul.bf16.vlgmr.msrb.gmra.mxu1 %v14663_v25  ;;  %v13040_v61 = vld [vmem:[%s14417_s21 + $0xf94] sm:$0xf0]  ;;  %v11424_v48 = vld [vmem:[%s14417_s21 + $0x10c8] sm:$0xf] }
 0x39e   : > { %8336 = vmatpush.bf16.msra.mxu1 %v11313_v0  ;;  %v10961_v0 = vor.u32 %v12964_v51, %v10960_v50  ;;  %v13000_v44 = vld [vmem:[%s14417_s21 + $0xe54] sm:$0xf0]  ;;  %v11536_v3 = vld [vmem:[%s14417_s21 + $0x11a8] sm:$0xf] }
 0x39f   : > { %8301 = vmatpush.bf16.msrb.mxu2 %v10865_v7  ;;  %v8061_v7 = vpop.f32.mrf.mxu3  ;;  %v13080_v49 = vld [vmem:[%s14417_s21 + $0x10d4] sm:$0xf0]  ;;  %v11105_v53 = vor.u32 %v13000_v44, %v11104_v43  ;;  %v11200_v18 = vld [vmem:[%s14417_s21 + $0xf08] sm:$0xf] }
 0x3a0   : > { %8314 = vmatpush.bf16.msrb.mxu3 %v10993_v11  ;;  %v11265_v11 = vor.u32 %v13040_v61, %v11264_v60  ;;  %v13112_v51 = vld [vmem:[%s14417_s21 + $0x11d4] sm:$0xf0]  ;;  %v11425_v59 = vor.u32 %v13080_v49, %v11424_v48  ;;  %v11088_v60 = vld [vmem:[%s14417_s21 + $0xe28] sm:$0xf] }
 0x3a1   : > { %8324 = vmatpush.bf16.msra.mxu0 %v11169_v33  ;;  %v13004_v33 = vld [vmem:[%s14417_s21 + $0xe74] sm:$0xf0]  ;;  %v11072_v7 = vld [vmem:[%s14417_s21 + $0xe08] sm:$0xf] }
 0x3a2   : > { %8337 = vmatpush.bf16.msra.mxu1 %v11297_v36  ;;  %v11568_v36 = vld [vmem:[%s14417_s21 + $0x11e8] sm:$0xf]  ;;  %v11121_v38 = vor.u32 %v13004_v33, %v11120_v16  ;;  %v12996_v61 = vld [vmem:[%s14417_s21 + $0xe34] sm:$0xf0] }
 0x3a3   : > { %8302 = vmatpush.bf16.msrb.mxu2 %v10849_v41  ;;  %v11232_v41 = vld [vmem:[%s14417_s21 + $0xf48] sm:$0xf]  ;;  %v8074_v50 = vpop.f32.mrf.mxu0  ;;  %v13076_v1 = vld [vmem:[%s14417_s21 + $0x10b4] sm:$0xf0]  ;;  %v11089_v6 = vor.u32 %v12996_v61, %v11088_v60 }
 0x3a4   : > { %8315 = vmatpush.bf16.msrb.mxu3 %v10977_v46  ;;  %v11569_v46 = vor.u32 %v13116_v37, %v11568_v36  ;;  %v13108_v5 = vld [vmem:[%s14417_s21 + $0x11b4] sm:$0xf0]  ;;  %v11392_v32 = vld [vmem:[%s14417_s21 + $0x1088] sm:$0xf] }
 0x3a5   : > { %8325 = vmatpush.bf16.msra.mxu0 %v11153_v47  ;;  %v13032_v47 = vld [vmem:[%s14417_s21 + $0xf54] sm:$0xf0]  ;;  %v11537_v19 = vor.u32 %v13108_v5, %v11536_v3  ;;  %v11520_v36 = vld [vmem:[%s14417_s21 + $0x1188] sm:$0xf] }
 0x3a6   : > { %8338 = vmatpush.bf16.msra.mxu1 %v11281_v42  ;;  %v11552_v42 = vld [vmem:[%s14417_s21 + $0x11c8] sm:$0xf]  ;;  %v11233_v58 = vor.u32 %v13032_v47, %v11232_v41  ;;  %v12992_v33 = vld [vmem:[%s14417_s21 + $0xe14] sm:$0xf0] }
 0x3a7   : > { %8303 = vmatpush.bf16.msrb.mxu2 %v10833_v63  ;;  %v11216_v63 = vld [vmem:[%s14417_s21 + $0xf28] sm:$0xf]  ;;  %v11553_v52 = vor.u32 %v13112_v51, %v11552_v42  ;;  %v13024_v2 = vld [vmem:[%s14417_s21 + $0xf14] sm:$0xf0]  ;;  %v11073_v43 = vor.u32 %v12992_v33, %v11072_v7 }
 0x3a8   : > { %8316 = vmatpush.bf16.msrb.mxu3 %v10961_v0  ;;  %v13028_v0 = vld [vmem:[%s14417_s21 + $0xf34] sm:$0xf0]  ;;  %v11824_v44 = vld [vmem:[%s14417_s21 + $0x13e8] sm:$0xf] }
 0x3a9   : > { %8326 = vmatpush.bf16.msra.mxu0 %v11137_v40  ;;  %v11408_v40 = vld [vmem:[%s14417_s21 + $0x10a8] sm:$0xf]  ;;  %v13180_v41 = vld [vmem:[%s14417_s21 + $0x13f4] sm:$0xf0] }
 0x3aa   : > { %8339 = vmatpush.bf16.msra.mxu1 %v11265_v11  ;;  %v11217_v11 = vor.u32 %v13028_v0, %v11216_v63  ;;  %v11409_v16 = vor.u32 %v13076_v1, %v11408_v40  ;;  %v8085_v37 = vpop.f32.mrf.mxu1  ;;  %v11376_v50 = vld [vmem:[%s14417_s21 + $0x1068] sm:$0xf]  ;;  %v13068_v42 = vld [vmem:[%s14417_s21 + $0x1074] sm:$0xf0] }
 0x3ab   : > { %8304 = vmatpush.bf16.msrb.mxu2 %v10817_v35  ;;  %v13072_v35 = vld [vmem:[%s14417_s21 + $0x1094] sm:$0xf0]  ;;  %v11504_v51 = vld [vmem:[%s14417_s21 + $0x1168] sm:$0xf]  ;;  %v11377_v63 = vor.u32 %v13068_v42, %v11376_v50 }
 0x3ac   : > { %8317 = vmatpush.bf16.msrb.mxu3 %v10945_v45  ;;  %v13104_v45 = vld [vmem:[%s14417_s21 + $0x1194] sm:$0xf0]  ;;  %v11393_v47 = vor.u32 %v13072_v35, %v11392_v32  ;;  %v11808_v60 = vld [vmem:[%s14417_s21 + $0x13c8] sm:$0xf] }
 0x3ad   : > { %8327 = vmatpush.bf16.msra.mxu0 %v11121_v38  ;;  %v11696_v38 = vld [vmem:[%s14417_s21 + $0x12e8] sm:$0xf]  ;;  %v11521_v48 = vor.u32 %v13104_v45, %v11520_v36  ;;  %v13176_v61 = vld [vmem:[%s14417_s21 + $0x13d4] sm:$0xf0] }
 0x3ae   : > { %8340 = vmatpush.bf16.msra.mxu1 %v11249_v39  ;;  %8305 = vmatmul.bf16.vlgmr.msrb.gmra.mxu2 %v14721_v54  ;;  %v13148_v39 = vld [vmem:[%s14417_s21 + $0x12f4] sm:$0xf0]  ;;  %v11360_v3 = vld [vmem:[%s14417_s21 + $0x1048] sm:$0xf] }
 0x3af   : > { %8349 = vmatpush.bf16.msra.mxu2 %v11441_v31  ;;  %8318 = vmatmul.bf16.vlgmr.msrb.gmra.mxu3 %v14725_v56  ;;  %v8086_v31 = vadd.f32 %v8085_v37, %v15608_v62  ;;  %v11697_v49 = vor.u32 %v13148_v39, %v11696_v38  ;;  %v13100_v62 = vld [vmem:[%s14417_s21 + $0x1174] sm:$0xf0]  ;;  %v11344_v38 = vld [vmem:[%s14417_s21 + $0x1028] sm:$0xf] }
 0x3b0   : > { %8362 = vmatpush.bf16.msra.mxu3 %v11569_v46  ;;  %v11201_v46 = vor.u32 %v13024_v2, %v11200_v18  ;;  %v13064_v5 = vld [vmem:[%s14417_s21 + $0x1054] sm:$0xf0]  ;;  %v11664_v18 = vld [vmem:[%s14417_s21 + $0x12a8] sm:$0xf] }
 0x3b1   : > { %8328 = vmatpush.bf16.msra.mxu0 %v11105_v53  ;;  %v11825_v53 = vor.u32 %v13180_v41, %v11824_v44  ;;  %v8098_v0 = vpop.f32.mrf.mxu2  ;;  %v13096_v33 = vld [vmem:[%s14417_s21 + $0x1154] sm:$0xf0]  ;;  %v11361_v36 = vor.u32 %v13064_v5, %v11360_v3  ;;  %v11648_v41 = vld [vmem:[%s14417_s21 + $0x1288] sm:$0xf] }
 0x3b2   : > { %8341 = vmatpush.bf16.msra.mxu1 %v11233_v58  ;;  %v11680_v58 = vld [vmem:[%s14417_s21 + $0x12c8] sm:$0xf]  ;;  %v8111_v1 = vpop.f32.mrf.mxu3  ;;  %v8099_v7 = vadd.f32 %v8098_v0, %v8086_v31  ;;  %v13140_v2 = vld [vmem:[%s14417_s21 + $0x12b4] sm:$0xf0] }
 0x3b3   : > { %8350 = vmatpush.bf16.msra.mxu2 %v11425_v59  ;;  %v13144_v59 = vld [vmem:[%s14417_s21 + $0x12d4] sm:$0xf0]  ;;  %v11665_v45 = vor.u32 %v13140_v2, %v11664_v18  ;;  %v11472_v31 = vld [vmem:[%s14417_s21 + $0x1128] sm:$0xf] }
 0x3b4   : > { %8363 = vmatpush.bf16.msra.mxu3 %v11553_v52  ;;  %v11505_v52 = vor.u32 %v13100_v62, %v11504_v51  ;;  %v11681_v40 = vor.u32 %v13144_v59, %v11680_v58  ;;  %v13172_v32 = vld [vmem:[%s14417_s21 + $0x13b4] sm:$0xf0]  ;;  %v8112_v35 = vadd.f32 %v8111_v1, %v8099_v7  ;;  %v11328_v51 = vld [vmem:[%s14417_s21 + $0x1008] sm:$0xf] }
 0x3b5   : > { %8329 = vmatpush.bf16.msra.mxu0 %v11089_v6  ;;  %v11488_v6 = vld [vmem:[%s14417_s21 + $0x1148] sm:$0xf]  ;;  %v13060_v39 = vld [vmem:[%s14417_s21 + $0x1034] sm:$0xf0] }
 0x3b6   : > { %8342 = vmatpush.bf16.msra.mxu1 %v11217_v11  ;;  %v11809_v11 = vor.u32 %v13176_v61, %v11808_v60  ;;  %v11489_v37 = vor.u32 %v13096_v33, %v11488_v6  ;;  %v13092_v44 = vld [vmem:[%s14417_s21 + $0x1134] sm:$0xf0]  ;;  %v11345_v42 = vor.u32 %v13060_v39, %v11344_v38  ;;  %v11456_v59 = vld [vmem:[%s14417_s21 + $0x1108] sm:$0xf] }
 0x3b7   : > { %8351 = vmatpush.bf16.msra.mxu2 %v11409_v16  ;;  %v8087_v16 = vpop.f32.mrf.mxu1  ;;  %v13056_v58 = vld [vmem:[%s14417_s21 + $0x1014] sm:$0xf0]  ;;  %v11632_v0 = vld [vmem:[%s14417_s21 + $0x1268] sm:$0xf] }
 0x3b8   : > { %8364 = vmatpush.bf16.msra.mxu3 %v11537_v19  ;;  %v11792_v19 = vld [vmem:[%s14417_s21 + $0x13a8] sm:$0xf]  ;;  %v13088_v60 = vld [vmem:[%s14417_s21 + $0x1114] sm:$0xf0] }
 0x3b9   : > { %8330 = vmatpush.bf16.msra.mxu0 %v11073_v43  ;;  %v11793_v43 = vor.u32 %v13172_v32, %v11792_v19  ;;  %v11760_v1 = vld [vmem:[%s14417_s21 + $0x1368] sm:$0xf]  ;;  %v13164_v3 = vld [vmem:[%s14417_s21 + $0x1374] sm:$0xf0]  ;;  %v11457_v2 = vor.u32 %v13088_v60, %v11456_v59 }
 0x3ba   : > { %8343 = vmatpush.bf16.msra.mxu1 %v11201_v46  ;;  %v13136_v46 = vld [vmem:[%s14417_s21 + $0x1294] sm:$0xf0]  ;;  %v8113_v61 = vpop.f32.mrf.mxu3  ;;  %v11952_v5 = vld [vmem:[%s14417_s21 + $0x14e8] sm:$0xf]  ;;  %v11761_v32 = vor.u32 %v13164_v3, %v11760_v1 }
 0x3bb   : > { %8352 = vmatpush.bf16.msra.mxu2 %v11393_v47  ;;  %v8124_v47 = vpop.f32.mrf.mxu0  ;;  %v11649_v62 = vor.u32 %v13136_v46, %v11648_v41  ;;  %v13212_v6 = vld [vmem:[%s14417_s21 + $0x14f4] sm:$0xf0]  ;;  %v12080_v16 = vld [vmem:[%s14417_s21 + $0x15e8] sm:$0xf] }
 0x3bc   : > { %8365 = vmatpush.bf16.msra.mxu3 %v11521_v48  ;;  %8331 = vmatmul.bf16.vlgmr.msra.gmra.mxu0 %v14723_v55  ;;  %v11776_v48 = vld [vmem:[%s14417_s21 + $0x1388] sm:$0xf]  ;;  %v8125_v50 = vadd.f32 %v8124_v47, %v8112_v35  ;;  %v13244_v33 = vld [vmem:[%s14417_s21 + $0x15f4] sm:$0xf0]  ;;  %v11953_v35 = vor.u32 %v13212_v6, %v11952_v5 }
 0x3bd   : > { %8375 = vmatpush.bf16.msrb.mxu0 %v11697_v49  ;;  %8344 = vmatmul.bf16.vlgmr.msra.gmra.mxu1 %v14727_v57  ;;  %v13168_v49 = vld [vmem:[%s14417_s21 + $0x1394] sm:$0xf0]  ;;  %v12081_v38 = vor.u32 %v13244_v33, %v12080_v16  ;;  %v12064_v41 = vld [vmem:[%s14417_s21 + $0x15c8] sm:$0xf] }
 0x3be   : > { %8388 = vmatpush.bf16.msrb.mxu1 %v11825_v53  ;;  %v11473_v53 = vor.u32 %v13092_v44, %v11472_v31  ;;  %v13160_v39 = vld [vmem:[%s14417_s21 + $0x1354] sm:$0xf0]  ;;  %v11936_v31 = vld [vmem:[%s14417_s21 + $0x14c8] sm:$0xf] }
 0x3bf   : > { %8353 = vmatpush.bf16.msra.mxu2 %v11377_v63  ;;  %v8100_v63 = vpop.f32.mrf.mxu2  ;;  %v8137_v7 = vpop.f32.mrf.mxu1  ;;  %v13240_v46 = vld [vmem:[%s14417_s21 + $0x15d4] sm:$0xf0]  ;;  %v12048_v60 = vld [vmem:[%s14417_s21 + $0x15a8] sm:$0xf] }
 0x3c0   : > { %8366 = vmatpush.bf16.msra.mxu3 %v11505_v52  ;;  %v11777_v52 = vor.u32 %v13168_v49, %v11776_v48  ;;  %v15691_v18 = vadd.f32 %v8137_v7, %v8125_v50  ;;  %v11600_v50 = vld [vmem:[%s14417_s21 + $0x1228] sm:$0xf]  ;;  %v13204_v59 = vld [vmem:[%s14417_s21 + $0x14b4] sm:$0xf0] }
 0x3c1   : > { %8376 = vmatpush.bf16.msrb.mxu0 %v11681_v40  ;;  %v13132_v40 = vld [vmem:[%s14417_s21 + $0x1274] sm:$0xf0]  ;;  %v11712_v5 = vld [vmem:[%s14417_s21 + $0x1308] sm:$0xf] }
 0x3c2   : > { %8389 = vmatpush.bf16.msrb.mxu1 %v11809_v11  ;;  %v11329_v11 = vor.u32 %v13056_v58, %v11328_v51  ;;  %v11633_v19 = vor.u32 %v13132_v40, %v11632_v0  ;;  %v11728_v51 = vld [vmem:[%s14417_s21 + $0x1328] sm:$0xf]  ;;  %v13236_v61 = vld [vmem:[%s14417_s21 + $0x15b4] sm:$0xf0] }
 0x3c3   : > { %8354 = vmatpush.bf16.msra.mxu2 %v11361_v36  ;;  %v11616_v36 = vld [vmem:[%s14417_s21 + $0x1248] sm:$0xf]  ;;  %v8126_v44 = vpop.f32.mrf.mxu0  ;;  %v13120_v3 = vld [vmem:[%s14417_s21 + $0x1214] sm:$0xf0]  ;;  %v12049_v7 = vor.u32 %v13236_v61, %v12048_v60 }
 0x3c4   : > { %8367 = vmatpush.bf16.msra.mxu3 %v11489_v37  ;;  %v13128_v37 = vld [vmem:[%s14417_s21 + $0x1254] sm:$0xf0]  ;;  %v11920_v58 = vld [vmem:[%s14417_s21 + $0x14a8] sm:$0xf] }
 0x3c5   : > { %8377 = vmatpush.bf16.msrb.mxu0 %v11665_v45  ;;  %v11744_v45 = vld [vmem:[%s14417_s21 + $0x1348] sm:$0xf]  ;;  %v11617_v47 = vor.u32 %v13128_v37, %v11616_v36  ;;  %v11921_v1 = vor.u32 %v13204_v59, %v11920_v58  ;;  %v13152_v6 = vld [vmem:[%s14417_s21 + $0x1314] sm:$0xf0] }
 0x3c6   : > { %8390 = vmatpush.bf16.msrb.mxu1 %v11793_v43  ;;  %v13208_v43 = vld [vmem:[%s14417_s21 + $0x14d4] sm:$0xf0]  ;;  %v11745_v48 = vor.u32 %v13160_v39, %v11744_v45  ;;  %v11584_v0 = vld [vmem:[%s14417_s21 + $0x1208] sm:$0xf]  ;;  %v11713_v45 = vor.u32 %v13152_v6, %v11712_v5 }
 0x3c7   : > { %8355 = vmatpush.bf16.msra.mxu2 %v11345_v42  ;;  %v11937_v49 = vor.u32 %v13208_v43, %v11936_v31  ;;  %v13124_v42 = vld [vmem:[%s14417_s21 + $0x1234] sm:$0xf0]  ;;  %v8139_v63 = vpop.f32.mrf.mxu1  ;;  %v12032_v33 = vld [vmem:[%s14417_s21 + $0x1588] sm:$0xf] }
 0x3c8   : > { %8368 = vmatpush.bf16.msra.mxu3 %v11473_v53  ;;  %v12065_v53 = vor.u32 %v13240_v46, %v12064_v41  ;;  %v13200_v16 = vld [vmem:[%s14417_s21 + $0x1494] sm:$0xf0]  ;;  %v12336_v36 = vld [vmem:[%s14417_s21 + $0x17e8] sm:$0xf] }
 0x3c9   : > { %8378 = vmatpush.bf16.msrb.mxu0 %v11649_v62  ;;  %v13156_v62 = vld [vmem:[%s14417_s21 + $0x1334] sm:$0xf0]  ;;  %v11888_v39 = vld [vmem:[%s14417_s21 + $0x1468] sm:$0xf] }
 0x3ca   : > { %8391 = vmatpush.bf16.msrb.mxu1 %v11777_v52  ;;  %v11601_v52 = vor.u32 %v13124_v42, %v11600_v50  ;;  %v11729_v40 = vor.u32 %v13156_v62, %v11728_v51  ;;  %v13308_v37 = vld [vmem:[%s14417_s21 + $0x17f4] sm:$0xf0]  ;;  %v12016_v41 = vld [vmem:[%s14417_s21 + $0x1568] sm:$0xf] }
 0x3cb   : > { %8356 = vmatpush.bf16.msra.mxu2 %v11329_v11  ;;  %v11904_v11 = vld [vmem:[%s14417_s21 + $0x1488] sm:$0xf]  ;;  %v13196_v44 = vld [vmem:[%s14417_s21 + $0x1474] sm:$0xf0] }
 0x3cc   : > { %8369 = vmatpush.bf16.msra.mxu3 %v11457_v2  ;;  %v13232_v2 = vld [vmem:[%s14417_s21 + $0x1594] sm:$0xf0]  ;;  %v12192_v50 = vld [vmem:[%s14417_s21 + $0x16c8] sm:$0xf]  ;;  %v11889_v62 = vor.u32 %v13196_v44, %v11888_v39 }
 0x3cd   : > { %8379 = vmatpush.bf16.msrb.mxu0 %v11633_v19  ;;  %v12208_v19 = vld [vmem:[%s14417_s21 + $0x16e8] sm:$0xf]  ;;  %v12033_v31 = vor.u32 %v13232_v2, %v12032_v33  ;;  %v13434_v46 = vld [vmem:[%s14856_s6] sm:$0xf] }
 0x3ce   : > { %8392 = vmatpush.bf16.msrb.mxu1 %v11761_v32  ;;  %8357 = vmatmul.bf16.vlgmr.msra.gmra.mxu2 %v14811_v17  ;;  %v13276_v32 = vld [vmem:[%s14417_s21 + $0x16f4] sm:$0xf0]  ;;  %v12320_v51 = vld [vmem:[%s14417_s21 + $0x17c8] sm:$0xf] }
 0x3cf   : > { %8401 = vmatpush.bf16.msrb.mxu2 %v11953_v35  ;;  %8370 = vmatmul.bf16.vlgmr.msra.gmra.mxu3 %v14823_v22  ;;  %v11585_v35 = vor.u32 %v13120_v3, %v11584_v0  ;;  %v12209_v43 = vor.u32 %v13276_v32, %v12208_v19  ;;  %v13272_v42 = vld [vmem:[%s14417_s21 + $0x16d4] sm:$0xf0]  ;;  %v11872_v61 = vld [vmem:[%s14417_s21 + $0x1448] sm:$0xf] }
 0x3d0   : > { %8414 = vmatpush.bf16.msrb.mxu3 %v12081_v38  ;;  %v11905_v38 = vor.u32 %v13200_v16, %v11904_v11  ;;  %v12193_v60 = vor.u32 %v13272_v42, %v12192_v50  ;;  %v13192_v63 = vld [vmem:[%s14417_s21 + $0x1454] sm:$0xf0]  ;;  %v12176_v5 = vld [vmem:[%s14417_s21 + $0x16a8] sm:$0xf] }
 0x3d1   : > { %8380 = vmatpush.bf16.msrb.mxu0 %v11617_v47  ;;  %v3505_v47 = vperm.slane %v13434_v46, 2  ;;  %v8150_v58 = vpop.f32.mrf.mxu2  ;;  %v13224_v3 = vld [vmem:[%s14417_s21 + $0x1554] sm:$0xf0]  ;;  %v11873_v33 = vor.u32 %v13192_v63, %v11872_v61  ;;  %v11856_v32 = vld [vmem:[%s14417_s21 + $0x1428] sm:$0xf] }
 0x3d2   : > { %8393 = vmatpush.bf16.msrb.mxu1 %v11745_v48  ;;  %v12337_v48 = vor.u32 %v13308_v37, %v12336_v36  ;;  %v13268_v6 = vld [vmem:[%s14417_s21 + $0x16b4] sm:$0xf0]  ;;  %v11984_v36 = vld [vmem:[%s14417_s21 + $0x1528] sm:$0xf] }
 0x3d3   : > { %8402 = vmatpush.bf16.msrb.mxu2 %v11937_v49  ;;  %v13228_v49 = vld [vmem:[%s14417_s21 + $0x1574] sm:$0xf0]  ;;  %v8151_v0 = vadd.f32 %v8150_v58, %v3505_v47  ;;  %v12177_v19 = vor.u32 %v13268_v6, %v12176_v5  ;;  %v11840_v46 = vld [vmem:[%s14417_s21 + $0x1408] sm:$0xf]  ;;  %v12570_v5 = vld [vmem:[%s14417_s21 + $0xec] sm:$0xf] }
 0x3d4   : > { %8415 = vmatpush.bf16.msrb.mxu3 %v12065_v53  ;;  %v13304_v53 = vld [vmem:[%s14417_s21 + $0x17d4] sm:$0xf0]  ;;  %v12017_v59 = vor.u32 %v13228_v49, %v12016_v41  ;;  %v12272_v63 = vld [vmem:[%s14417_s21 + $0x1768] sm:$0xf]  ;;  %v9394_v6 = vld [vmem:[%s14417_s21 + $0xf8] sm:$0xf0] }
 0x3d5   : > { %8381 = vmatpush.bf16.msrb.mxu0 %v11601_v52  ;;  %v12000_v52 = vld [vmem:[%s14417_s21 + $0x1548] sm:$0xf]  ;;  %v13300_v11 = vld [vmem:[%s14417_s21 + $0x17b4] sm:$0xf0] }
 0x3d6   : > { %8394 = vmatpush.bf16.msrb.mxu1 %v11729_v40  ;;  %v8163_v40 = vpop.f32.mrf.mxu3  ;;  %v12001_v2 = vor.u32 %v13224_v3, %v12000_v52  ;;  %v13264_v39 = vld [vmem:[%s14417_s21 + $0x1694] sm:$0xf0] }
 0x3d7   : > { %8403 = vmatpush.bf16.msrb.mxu2 %v11921_v1  ;;  %v12321_v1 = vor.u32 %v13304_v53, %v12320_v51  ;;  %v8164_v16 = vadd.f32 %v8163_v40, %v8151_v0  ;;  %v13184_v51 = vld [vmem:[%s14417_s21 + $0x1414] sm:$0xf0]  ;;  %v11968_v53 = vld [vmem:[%s14417_s21 + $0x1508] sm:$0xf] }
 0x3d8   : > { %8416 = vmatpush.bf16.msrb.mxu3 %v12049_v7  ;;  %v12304_v7 = vld [vmem:[%s14417_s21 + $0x17a8] sm:$0xf]  ;;  %v13260_v61 = vld [vmem:[%s14417_s21 + $0x1674] sm:$0xf0]  ;;  %v11841_v3 = vor.u32 %v13184_v51, %v11840_v46 }
 0x3d9   : > { %8382 = vmatpush.bf16.msrb.mxu0 %v11585_v35  ;;  %v13188_v35 = vld [vmem:[%s14417_s21 + $0x1434] sm:$0xf0]  ;;  %v12305_v37 = vor.u32 %v13300_v11, %v12304_v7  ;;  %v8176_v44 = vpop.f32.mrf.mxu0  ;;  %v8152_v49 = vpop.f32.mrf.mxu2  ;;  %v12400_v40 = vld [vmem:[%s14417_s21 + $0x1868] sm:$0xf] }
 0x3da   : > { %8395 = vmatpush.bf16.msrb.mxu1 %v11713_v45  ;;  %v13220_v45 = vld [vmem:[%s14417_s21 + $0x1534] sm:$0xf0]  ;;  %v11857_v41 = vor.u32 %v13188_v35, %v11856_v32  ;;  %v8177_v47 = vadd.f32 %v8176_v44, %v8164_v16  ;;  %v12256_v32 = vld [vmem:[%s14417_s21 + $0x1748] sm:$0xf]  ;;  %v9397_v35 = vor.u32 %v12570_v5, %v9394_v6 }
 0x3db   : > { %8404 = vmatpush.bf16.msrb.mxu2 %v11905_v38  ;;  %v12160_v38 = vld [vmem:[%s14417_s21 + $0x1688] sm:$0xf]  ;;  %v11985_v50 = vor.u32 %v13220_v45, %v11984_v36  ;;  %v13292_v0 = vld [vmem:[%s14417_s21 + $0x1774] sm:$0xf0] }
 0x3dc   : > { %8417 = vmatpush.bf16.msrb.mxu3 %v12033_v31  ;;  %8383 = vmatmul.bf16.vlgmr.msrb.gmra.mxu0 %v14821_v21  ;;  %v12288_v31 = vld [vmem:[%s14417_s21 + $0x1788] sm:$0xf]  ;;  %v12161_v42 = vor.u32 %v13264_v39, %v12160_v38  ;;  %v12273_v16 = vor.u32 %v13292_v0, %v12272_v63  ;;  %v13288_v36 = vld [vmem:[%s14417_s21 + $0x1754] sm:$0xf0]  ;;  %v12566_v39 = vld [vmem:[%s14417_s21 + $0xcc] sm:$0xf] }
 0x3dd   : > { %8427 = vmatpush.bf16.msra.mxu0 %v12209_v43  ;;  %8396 = vmatmul.bf16.vlgmr.msrb.gmra.mxu1 %v14825_v26  ;;  %v13296_v43 = vld [vmem:[%s14417_s21 + $0x1794] sm:$0xf0]  ;;  %v12240_v49 = vld [vmem:[%s14417_s21 + $0x1728] sm:$0xf] }
 0x3de   : > { %8440 = vmatpush.bf16.msra.mxu1 %v12337_v48  ;;  %v8189_v48 = vpop.f32.mrf.mxu1  ;;  %v8165_v58 = vpop.f32.mrf.mxu3  ;;  %v13320_v45 = vld [vmem:[%s14417_s21 + $0x1854] sm:$0xf0]  ;;  %v12368_v51 = vld [vmem:[%s14417_s21 + $0x1828] sm:$0xf] }
 0x3df   : > { %8405 = vmatpush.bf16.msrb.mxu2 %v11889_v62  ;;  %v13216_v62 = vld [vmem:[%s14417_s21 + $0x1514] sm:$0xf0]  ;;  %v15757_v52 = vadd.f32 %v8189_v48, %v8177_v47  ;;  %v12112_v47 = vld [vmem:[%s14417_s21 + $0x1628] sm:$0xf]  ;;  %v9362_v58 = vld [vmem:[%s14417_s21 + $0xb8] sm:$0xf0] }
 0x3e0   : > { %8418 = vmatpush.bf16.msrb.mxu3 %v12017_v59  ;;  %v12289_v59 = vor.u32 %v13296_v43, %v12288_v31  ;;  %v11969_v7 = vor.u32 %v13216_v62, %v11968_v53  ;;  %v9378_v31 = vld [vmem:[%s14417_s21 + $0xd8] sm:$0xf0]  ;;  %v13252_v48 = vld [vmem:[%s14417_s21 + $0x1634] sm:$0xf0]  ;;  %v12562_v62 = vld [vmem:[%s14417_s21 + $0xac] sm:$0xf] }
 0x3e1   : > { %8428 = vmatpush.bf16.msra.mxu0 %v12193_v60  ;;  %v12144_v60 = vld [vmem:[%s14417_s21 + $0x1668] sm:$0xf]  ;;  %v8178_v38 = vpop.f32.mrf.mxu0  ;;  %v13316_v53 = vld [vmem:[%s14417_s21 + $0x1834] sm:$0xf0]  ;;  %v9365_v5 = vor.u32 %v12562_v62, %v9362_v58  ;;  %v12550_v58 = vld [vmem:[%s14417_s21 + $0x4c] sm:$0xf] }
 0x3e2   : > { %8441 = vmatpush.bf16.msra.mxu1 %v12321_v1  ;;  %v13324_v1 = vld [vmem:[%s14417_s21 + $0x1874] sm:$0xf0]  ;;  %v12145_v11 = vor.u32 %v13260_v61, %v12144_v60  ;;  %v12096_v60 = vld [vmem:[%s14417_s21 + $0x1608] sm:$0xf]  ;;  %v12369_v0 = vor.u32 %v13316_v53, %v12368_v51 }
 0x3e3   : > { %8406 = vmatpush.bf16.msrb.mxu2 %v11873_v33  ;;  %v12401_v33 = vor.u32 %v13324_v1, %v12400_v40  ;;  %v13248_v61 = vld [vmem:[%s14417_s21 + $0x1614] sm:$0xf0]  ;;  %v12224_v40 = vld [vmem:[%s14417_s21 + $0x1708] sm:$0xf] }
 0x3e4   : > { %8419 = vmatpush.bf16.msrb.mxu3 %v12001_v2  ;;  %v12128_v2 = vld [vmem:[%s14417_s21 + $0x1648] sm:$0xf]  ;;  %v13280_v1 = vld [vmem:[%s14417_s21 + $0x1714] sm:$0xf0] }
 0x3e5   : > { %8429 = vmatpush.bf16.msra.mxu0 %v12177_v19  ;;  %v13256_v19 = vld [vmem:[%s14417_s21 + $0x1654] sm:$0xf0] }
 0x3e6   : > { %8442 = vmatpush.bf16.msra.mxu1 %v12305_v37  ;;  %v12384_v37 = vld [vmem:[%s14417_s21 + $0x1848] sm:$0xf]  ;;  %v8191_v43 = vpop.f32.mrf.mxu1  ;;  %v12129_v44 = vor.u32 %v13256_v19, %v12128_v2  ;;  %v13312_v6 = vld [vmem:[%s14417_s21 + $0x1814] sm:$0xf0]  ;;  %v12634_v2 = vld [vmem:[%s14417_s21 + $0x2ec] sm:$0xf]  ;;  %v12097_v19 = vor.u32 %v13248_v61, %v12096_v60 }
 0x3e7   : > { %8407 = vmatpush.bf16.msrb.mxu2 %v11857_v41  ;;  %v12257_v41 = vor.u32 %v13288_v36, %v12256_v32  ;;  %v12385_v46 = vor.u32 %v13320_v45, %v12384_v37  ;;  %v9650_v32 = vld [vmem:[%s14417_s21 + $0x2f8] sm:$0xf0]  ;;  %v12225_v37 = vor.u32 %v13280_v1, %v12224_v40  ;;  %v12594_v40 = vld [vmem:[%s14417_s21 + $0x1ac] sm:$0xf] }
 0x3e8   : > { %8420 = vmatpush.bf16.msrb.mxu3 %v11985_v50  ;;  %v9381_v50 = vor.u32 %v12566_v39, %v9378_v31  ;;  %v9778_v36 = vld [vmem:[%s14417_s21 + $0x3f8] sm:$0xf0]  ;;  %v12554_v31 = vld [vmem:[%s14417_s21 + $0x6c] sm:$0xf] }
 0x3e9   : > { %8430 = vmatpush.bf16.msra.mxu0 %v12161_v42  ;;  %v13284_v42 = vld [vmem:[%s14417_s21 + $0x1734] sm:$0xf0]  ;;  %v9330_v43 = vld [vmem:[%s14417_s21 + $0x78] sm:$0xf0] }
 0x3ea   : > { %8443 = vmatpush.bf16.msra.mxu1 %v12289_v59  ;;  %v12113_v59 = vor.u32 %v13252_v48, %v12112_v47  ;;  %v12241_v63 = vor.u32 %v13284_v42, %v12240_v49  ;;  %v9506_v47 = vld [vmem:[%s14417_s21 + $0x1d8] sm:$0xf0]  ;;  %v12630_v48 = vld [vmem:[%s14417_s21 + $0x2cc] sm:$0xf]  ;;  %v9333_v53 = vor.u32 %v12554_v31, %v9330_v43 }
 0x3eb   : > { %8408 = vmatpush.bf16.msrb.mxu2 %v11841_v3  ;;  %v12352_v3 = vld [vmem:[%s14417_s21 + $0x1808] sm:$0xf]  ;;  %v9634_v49 = vld [vmem:[%s14417_s21 + $0x2d8] sm:$0xf0]  ;;  %v12654_v31 = vld [vmem:[%s14417_s21 + $0x38c] sm:$0xf] }
 0x3ec   : > { %8421 = vmatpush.bf16.msrb.mxu3 %v11969_v7  ;;  %v12558_v7 = vld [vmem:[%s14417_s21 + $0x8c] sm:$0xf]  ;;  %v12353_v45 = vor.u32 %v13312_v6, %v12352_v3  ;;  %v9762_v42 = vld [vmem:[%s14417_s21 + $0x3d8] sm:$0xf0] }
 0x3ed   : > { %8431 = vmatpush.bf16.msra.mxu0 %v12145_v11  ;;  %v9346_v11 = vld [vmem:[%s14417_s21 + $0x98] sm:$0xf0]  ;;  %v12626_v3 = vld [vmem:[%s14417_s21 + $0x2ac] sm:$0xf] }
 0x3ee   : > { %8444 = vmatpush.bf16.msra.mxu1 %v12273_v16  ;;  %8409 = vmatmul.bf16.vlgmr.msrb.gmra.mxu2 %v14865_v12  ;;  %v12602_v16 = vld [vmem:[%s14417_s21 + $0x1ec] sm:$0xf]  ;;  %v9349_v38 = vor.u32 %v12558_v7, %v9346_v11  ;;  %v9490_v1 = vld [vmem:[%s14417_s21 + $0x1b8] sm:$0xf0] }
 0x3ef   : > { %8457 = vmatpush.bf16.msra.mxu2 %v12401_v33  ;;  %8422 = vmatmul.bf16.vlgmr.msrb.gmra.mxu3 %v14869_v14  ;;  %v9522_v33 = vld [vmem:[%s14417_s21 + $0x1f8] sm:$0xf0]  ;;  %v12658_v6 = vld [vmem:[%s14417_s21 + $0x3ac] sm:$0xf] }
 0x3f0   : > { %8466 = vmatpush.bf16.msra.mxu3 %v9397_v35  ;;  %v12666_v35 = vld [vmem:[%s14417_s21 + $0x3ec] sm:$0xf]  ;;  %v9525_v39 = vor.u32 %v12602_v16, %v9522_v33  ;;  %v9493_v16 = vor.u32 %v12594_v40, %v9490_v1  ;;  %v9730_v43 = vld [vmem:[%s14417_s21 + $0x398] sm:$0xf0] }
 0x3f1   : > { %8432 = vmatpush.bf16.msra.mxu0 %v12129_v44  ;;  %v9653_v44 = vor.u32 %v12634_v2, %v9650_v32  ;;  %v8202_v51 = vpop.f32.mrf.mxu2  ;;  %v12546_v33 = vld [vmem:[%s14417_s21 + $0x2c] sm:$0xf]  ;;  %v9298_v2 = vld [vmem:[%s14417_s21 + $0x38] sm:$0xf0] }
 0x3f2   : > { %8445 = vmatpush.bf16.msra.mxu1 %v12257_v41  ;;  %v9781_v41 = vor.u32 %v12666_v35, %v9778_v36  ;;  %v8203_v60 = vadd.f32 %v8202_v51, %v15757_v52  ;;  %v8215_v61 = vpop.f32.mrf.mxu3  ;;  %v9746_v52 = vld [vmem:[%s14417_s21 + $0x3b8] sm:$0xf0]  ;;  %v12590_v35 = vld [vmem:[%s14417_s21 + $0x18c] sm:$0xf] }
 0x3f3   : > { %8458 = vmatpush.bf16.msra.mxu2 %v12385_v46  ;;  %v12598_v46 = vld [vmem:[%s14417_s21 + $0x1cc] sm:$0xf]  ;;  %v9749_v32 = vor.u32 %v12658_v6, %v9746_v52  ;;  %v9474_v36 = vld [vmem:[%s14417_s21 + $0x198] sm:$0xf0] }
 0x3f4   : > { %8467 = vmatpush.bf16.msra.mxu3 %v9381_v50  ;;  %v12662_v50 = vld [vmem:[%s14417_s21 + $0x3cc] sm:$0xf]  ;;  %v9509_v62 = vor.u32 %v12598_v46, %v9506_v47  ;;  %v8216_v7 = vadd.f32 %v8215_v61, %v8203_v60  ;;  %v9301_v47 = vor.u32 %v12546_v33, %v9298_v2  ;;  %v9586_v61 = vld [vmem:[%s14417_s21 + $0x278] sm:$0xf0] }
 0x3f5   : > { %8433 = vmatpush.bf16.msra.mxu0 %v12113_v59  ;;  %v9314_v59 = vld [vmem:[%s14417_s21 + $0x58] sm:$0xf0]  ;;  %v12618_v60 = vld [vmem:[%s14417_s21 + $0x26c] sm:$0xf] }
 0x3f6   : > { %8446 = vmatpush.bf16.msra.mxu1 %v12241_v63  ;;  %v9637_v63 = vor.u32 %v12630_v48, %v9634_v49  ;;  %v9317_v11 = vor.u32 %v12550_v58, %v9314_v59  ;;  %v9477_v48 = vor.u32 %v12590_v35, %v9474_v36  ;;  %v12542_v49 = vld [vmem:[%s14417_s21 + $0xc] sm:$0xf]  ;;  %v9458_v59 = vld [vmem:[%s14417_s21 + $0x178] sm:$0xf0]  ;;  %v9589_v6 = vor.u32 %v12618_v60, %v9586_v61 }
 0x3f7   : > { %8459 = vmatpush.bf16.msra.mxu2 %v12369_v0  ;;  %v9765_v0 = vor.u32 %v12662_v50, %v9762_v42  ;;  %v9282_v50 = vld [vmem:[%s14417_s21 + $0x18] sm:$0xf0]  ;;  %v12586_v58 = vld [vmem:[%s14417_s21 + $0x16c] sm:$0xf] }
 0x3f8   : > { %8468 = vmatpush.bf16.msra.mxu3 %v9365_v5  ;;  %v9618_v5 = vld [vmem:[%s14417_s21 + $0x2b8] sm:$0xf0]  ;;  %v12698_v40 = vld [vmem:[%s14417_s21 + $0x4ec] sm:$0xf] }
 0x3f9   : > { %8434 = vmatpush.bf16.msra.mxu0 %v12097_v19  ;;  %v9621_v19 = vor.u32 %v12626_v3, %v9618_v5  ;;  %v8204_v46 = vpop.f32.mrf.mxu2  ;;  %v9906_v1 = vld [vmem:[%s14417_s21 + $0x4f8] sm:$0xf0]  ;;  %v9285_v3 = vor.u32 %v12542_v49, %v9282_v50  ;;  %v9461_v5 = vor.u32 %v12586_v58, %v9458_v59  ;;  %v12694_v36 = vld [vmem:[%s14417_s21 + $0x4cc] sm:$0xf] }
 0x3fa   : > { %8447 = vmatpush.bf16.msra.mxu1 %v12225_v37  ;;  %v12622_v37 = vld [vmem:[%s14417_s21 + $0x28c] sm:$0xf]  ;;  %v8217_v42 = vpop.f32.mrf.mxu3  ;;  %v9909_v33 = vor.u32 %v12698_v40, %v9906_v1  ;;  %v9570_v2 = vld [vmem:[%s14417_s21 + $0x258] sm:$0xf0] }
 0x3fb   : > { %8460 = vmatpush.bf16.msra.mxu2 %v12353_v45  ;;  %v13435_v45 = vld [vmem:[#allocation1] sm:$0xff]  ;;  %v12690_v50 = vld [vmem:[%s14417_s21 + $0x4ac] sm:$0xf] }
 0x3fc   : > { %8469 = vmatpush.bf16.msra.mxu3 %v9349_v38  ;;  %8435 = vmatmul.bf16.vlgmr.msra.gmra.mxu0 %v14867_v13  ;;  %v8228_v38 = vpop.f32.mrf.mxu0  ;;  %v9682_v49 = vld [vmem:[%s14417_s21 + $0x338] sm:$0xf0]  ;;  %v12606_v61 = vld [vmem:[%s14417_s21 + $0x20c] sm:$0xf] }
 0x3fd   : > { %8479 = vmatpush.bf16.msrb.mxu0 %v9525_v39  ;;  %8448 = vmatmul.bf16.vlgmr.msra.gmra.mxu1 %v14871_v15  ;;  %v9602_v39 = vld [vmem:[%s14417_s21 + $0x298] sm:$0xf0]  ;;  %v12686_v1 = vld [vmem:[%s14417_s21 + $0x48c] sm:$0xf] }
 0x3fe   : > { %8492 = vmatpush.bf16.msrb.mxu1 %v9653_v44  ;;  %12408 = vmatmul.msk.bf16.vlgmr.msra.gmra.mxu2 %vm7488_vm0, %v13435_v45  ;;  %v8229_v44 = vadd.f32 %v8228_v38, %v8216_v7  ;;  %v9605_v51 = vor.u32 %v12622_v37, %v9602_v39  ;;  %v12582_v7 = vld [vmem:[%s14417_s21 + $0x14c] sm:$0xf]  ;;  %v9890_v37 = vld [vmem:[%s14417_s21 + $0x4d8] sm:$0xf0] }
 0x3ff   : > { %8505 = vmatpush.bf16.msrb.mxu2 %v9781_v41  ;;  %v8241_v41 = vpop.f32.mrf.mxu1  ;;  %v9893_v46 = vor.u32 %v12694_v36, %v9890_v37  ;;  %v9874_v42 = vld [vmem:[%s14417_s21 + $0x4b8] sm:$0xf0]  ;;  %v12682_v36 = vld [vmem:[%s14417_s21 + $0x46c] sm:$0xf] }
 0x400   : > { %8470 = vmatpush.bf16.msra.mxu3 %v9333_v53  ;;  %v9733_v53 = vor.u32 %v12654_v31, %v9730_v43  ;;  %v12578_v43 = vld [vmem:[%s14417_s21 + $0x12c] sm:$0xf]  ;;  %v9410_v58 = vld [vmem:[%s14417_s21 + $0x118] sm:$0xf0] }
 0x401   : > { %8480 = vmatpush.bf16.msrb.mxu0 %v9509_v62  ;;  %v15826_v62 = vadd.f32 %v8241_v41, %v8229_v44  ;;  %v9426_v44 = vld [vmem:[%s14417_s21 + $0x138] sm:$0xf0]  ;;  %v12610_v41 = vld [vmem:[%s14417_s21 + $0x22c] sm:$0xf] }
 0x402   : > { %8493 = vmatpush.bf16.msrb.mxu1 %v9637_v63  ;;  %v12650_v63 = vld [vmem:[%s14417_s21 + $0x36c] sm:$0xf]  ;;  %v9666_v40 = vld [vmem:[%s14417_s21 + $0x318] sm:$0xf0] }
 0x403   : > { %8506 = vmatpush.bf16.msrb.mxu2 %v9765_v0  ;;  %v9714_v0 = vld [vmem:[%s14417_s21 + $0x378] sm:$0xf0] }
 0x404   : > { %8471 = vmatpush.bf16.msra.mxu3 %v9317_v11  ;;  %v9717_v52 = vor.u32 %v12650_v63, %v9714_v0  ;;  %v9442_v11 = vld [vmem:[%s14417_s21 + $0x158] sm:$0xf0]  ;;  %v8230_v35 = vpop.f32.mrf.mxu0  ;;  %v12638_v0 = vld [vmem:[%s14417_s21 + $0x30c] sm:$0xf] }
 0x405   : > { %8481 = vmatpush.bf16.msrb.mxu0 %v9493_v16  ;;  %v12614_v16 = vld [vmem:[%s14417_s21 + $0x24c] sm:$0xf]  ;;  %v9445_v38 = vor.u32 %v12582_v7, %v9442_v11  ;;  %v9538_v63 = vld [vmem:[%s14417_s21 + $0x218] sm:$0xf0] }
 0x406   : > { %8494 = vmatpush.bf16.msrb.mxu1 %v9621_v19  ;;  %v12646_v19 = vld [vmem:[%s14417_s21 + $0x34c] sm:$0xf]  ;;  %v9573_v39 = vor.u32 %v12614_v16, %v9570_v2  ;;  %v10162_v11 = vld [vmem:[%s14417_s21 + $0x6f8] sm:$0xf0]  ;;  %v9541_v2 = vor.u32 %v12606_v61, %v9538_v63 }
 0x407   : > { %8507 = vmatpush.bf16.msrb.mxu2 %v9749_v32  ;;  %v9698_v32 = vld [vmem:[%s14417_s21 + $0x358] sm:$0xf0]  ;;  %v8243_v45 = vpop.f32.mrf.mxu1  ;;  %v12794_v16 = vld [vmem:[%s14417_s21 + $0x7ec] sm:$0xf] }
 0x408   : > { %8472 = vmatpush.bf16.msra.mxu3 %v9301_v47  ;;  %v9701_v31 = vor.u32 %v12646_v19, %v9698_v32  ;;  %v9554_v47 = vld [vmem:[%s14417_s21 + $0x238] sm:$0xf0]  ;;  %v9669_v19 = vor.u32 %v12638_v0, %v9666_v40  ;;  %v12754_v63 = vld [vmem:[%s14417_s21 + $0x6ac] sm:$0xf] }
 0x409   : > { %8482 = vmatpush.bf16.msrb.mxu0 %v9477_v48  ;;  %v12642_v48 = vld [vmem:[%s14417_s21 + $0x32c] sm:$0xf]  ;;  %v9557_v59 = vor.u32 %v12610_v41, %v9554_v47  ;;  %v9842_v37 = vld [vmem:[%s14417_s21 + $0x478] sm:$0xf0] }
 0x40a   : > { %8495 = vmatpush.bf16.msrb.mxu1 %v9605_v51  ;;  %v9429_v51 = vor.u32 %v12578_v43, %v9426_v44  ;;  %v9685_v60 = vor.u32 %v12642_v48, %v9682_v49  ;;  %v12758_v43 = vld [vmem:[%s14417_s21 + $0x6cc] sm:$0xf]  ;;  %v10146_v44 = vld [vmem:[%s14417_s21 + $0x6d8] sm:$0xf0]  ;;  %v9845_v48 = vor.u32 %v12682_v36, %v9842_v37 }
 0x40b   : > { %8508 = vmatpush.bf16.msrb.mxu2 %v9733_v53  ;;  %v12574_v53 = vld [vmem:[%s14417_s21 + $0x10c] sm:$0xf]  ;;  %v10002_v61 = vld [vmem:[%s14417_s21 + $0x5b8] sm:$0xf0] }
 0x40c   : > { %8473 = vmatpush.bf16.msra.mxu3 %v9285_v3  ;;  %v9858_v3 = vld [vmem:[%s14417_s21 + $0x498] sm:$0xf0]  ;;  %v9413_v7 = vor.u32 %v12574_v53, %v9410_v58  ;;  %v12790_v41 = vld [vmem:[%s14417_s21 + $0x7cc] sm:$0xf]  ;;  %v10149_v58 = vor.u32 %v12758_v43, %v10146_v44 }
 0x40d   : > { %8483 = vmatpush.bf16.msrb.mxu0 %v9461_v5  ;;  %v12730_v5 = vld [vmem:[%s14417_s21 + $0x5ec] sm:$0xf]  ;;  %v9861_v32 = vor.u32 %v12686_v1, %v9858_v3  ;;  %v9826_v53 = vld [vmem:[%s14417_s21 + $0x458] sm:$0xf0] }
 0x40e   : > { %8496 = vmatpush.bf16.msrb.mxu1 %v9589_v6  ;;  %v10034_v6 = vld [vmem:[%s14417_s21 + $0x5f8] sm:$0xf0]  ;;  %v12786_v40 = vld [vmem:[%s14417_s21 + $0x7ac] sm:$0xf] }
 0x40f   : > { %8509 = vmatpush.bf16.msrb.mxu2 %v9717_v52  ;;  %8474 = vmatmul.bf16.vlgmr.msra.gmra.mxu3 %v14524_v29  ;;  %v9877_v29 = vor.u32 %v12690_v50, %v9874_v42  ;;  %v12762_v52 = vld [vmem:[%s14417_s21 + $0x6ec] sm:$0xf]  ;;  %v10037_v35 = vor.u32 %v12730_v5, %v10034_v6  ;;  %v10258_v1 = vld [vmem:[%s14417_s21 + $0x7b8] sm:$0xf0] }
 0x410   : > { %8518 = vmatpush.bf16.msrb.mxu3 %v9909_v33  ;;  %v10290_v33 = vld [vmem:[%s14417_s21 + $0x7f8] sm:$0xf0]  ;;  %v10165_v45 = vor.u32 %v12762_v52, %v10162_v11  ;;  %v12674_v5 = vld [vmem:[%s14417_s21 + $0x42c] sm:$0xf] }
 0x411   : > { %8484 = vmatpush.bf16.msrb.mxu0 %v9445_v38  ;;  %v10293_v38 = vor.u32 %v12794_v16, %v10290_v33  ;;  %v8254_v47 = vpop.f32.mrf.mxu2  ;;  %v9810_v6 = vld [vmem:[%s14417_s21 + $0x438] sm:$0xf0] }
 0x412   : > { %8497 = vmatpush.bf16.msrb.mxu1 %v9573_v39  ;;  %v12726_v39 = vld [vmem:[%s14417_s21 + $0x5cc] sm:$0xf]  ;;  %v8255_v49 = vadd.f32 %v8254_v47, %v15826_v62  ;;  %v8267_v42 = vpop.f32.mrf.mxu3  ;;  %v9986_v11 = vld [vmem:[%s14417_s21 + $0x598] sm:$0xf0]  ;;  %v9813_v36 = vor.u32 %v12674_v5, %v9810_v6 }
 0x413   : > { %8510 = vmatpush.bf16.msrb.mxu2 %v9701_v31  ;;  %v10018_v31 = vld [vmem:[%s14417_s21 + $0x5d8] sm:$0xf0]  ;;  %v12746_v47 = vld [vmem:[%s14417_s21 + $0x66c] sm:$0xf] }
 0x414   : > { %8519 = vmatpush.bf16.msrb.mxu3 %v9893_v46  ;;  %v10274_v46 = vld [vmem:[%s14417_s21 + $0x7d8] sm:$0xf0]  ;;  %v10021_v50 = vor.u32 %v12726_v39, %v10018_v31  ;;  %v8268_v0 = vadd.f32 %v8267_v42, %v8255_v49  ;;  %v12778_v49 = vld [vmem:[%s14417_s21 + $0x76c] sm:$0xf] }
 0x415   : > { %8485 = vmatpush.bf16.msrb.mxu0 %v9429_v51  ;;  %v12678_v51 = vld [vmem:[%s14417_s21 + $0x44c] sm:$0xf]  ;;  %v10114_v33 = vld [vmem:[%s14417_s21 + $0x698] sm:$0xf0] }
 0x416   : > { %8498 = vmatpush.bf16.msrb.mxu1 %v9557_v59  ;;  %v10277_v59 = vor.u32 %v12790_v41, %v10274_v46  ;;  %v9829_v62 = vor.u32 %v12678_v51, %v9826_v53  ;;  %v12714_v41 = vld [vmem:[%s14417_s21 + $0x56c] sm:$0xf]  ;;  %v9970_v46 = vld [vmem:[%s14417_s21 + $0x578] sm:$0xf0] }
 0x417   : > { %8511 = vmatpush.bf16.msrb.mxu2 %v9685_v60  ;;  %v12722_v60 = vld [vmem:[%s14417_s21 + $0x5ac] sm:$0xf]  ;;  %v10418_v51 = vld [vmem:[%s14417_s21 + $0x8f8] sm:$0xf0] }
 0x418   : > { %8520 = vmatpush.bf16.msrb.mxu3 %v9877_v29  ;;  %v10130_v29 = vld [vmem:[%s14417_s21 + $0x6b8] sm:$0xf0]  ;;  %v10005_v3 = vor.u32 %v12722_v60, %v10002_v61  ;;  %v12826_v42 = vld [vmem:[%s14417_s21 + $0x8ec] sm:$0xf] }
 0x419   : > { %8486 = vmatpush.bf16.msrb.mxu0 %v9413_v7  ;;  %v10133_v52 = vor.u32 %v12754_v63, %v10130_v29  ;;  %v10261_v7 = vor.u32 %v12786_v40, %v10258_v1  ;;  %v8280_v16 = vpop.f32.mrf.mxu0  ;;  %v12710_v61 = vld [vmem:[%s14417_s21 + $0x54c] sm:$0xf]  ;;  %v9954_v63 = vld [vmem:[%s14417_s21 + $0x558] sm:$0xf0]  ;;  %v10421_v29 = vor.u32 %v12826_v42, %v10418_v51 }
 0x41a   : > { %8499 = vmatpush.bf16.msrb.mxu1 %v9541_v2  ;;  %v10242_v2 = vld [vmem:[%s14417_s21 + $0x798] sm:$0xf0]  ;;  %v8269_v39 = vpop.f32.mrf.mxu3  ;;  %v12774_v1 = vld [vmem:[%s14417_s21 + $0x74c] sm:$0xf] }
 0x41b   : > { %8512 = vmatpush.bf16.msrb.mxu2 %v9669_v19  ;;  %v8281_v19 = vadd.f32 %v8280_v16, %v8268_v0  ;;  %v12742_v0 = vld [vmem:[%s14417_s21 + $0x64c] sm:$0xf]  ;;  %v10082_v40 = vld [vmem:[%s14417_s21 + $0x658] sm:$0xf0] }
 0x41c   : > { %8521 = vmatpush.bf16.msrb.mxu3 %v9861_v32  ;;  %8487 = vmatmul.bf16.vlgmr.msrb.gmra.mxu0 %v14531_v34  ;;  %v12750_v34 = vld [vmem:[%s14417_s21 + $0x68c] sm:$0xf]  ;;  %v8293_v32 = vpop.f32.mrf.mxu1  ;;  %v10402_v6 = vld [vmem:[%s14417_s21 + $0x8d8] sm:$0xf0] }
 0x41d   : > { %8531 = vmatpush.bf16.msra.mxu0 %v10037_v35  ;;  %8500 = vmatmul.bf16.vlgmr.msrb.gmra.mxu1 %v14522_v28  ;;  %v12782_v28 = vld [vmem:[%s14417_s21 + $0x78c] sm:$0xf]  ;;  %v8256_v35 = vpop.f32.mrf.mxu2  ;;  %v10117_v31 = vor.u32 %v12750_v34, %v10114_v33  ;;  %v15897_v44 = vadd.f32 %v8293_v32, %v8281_v19  ;;  %v9938_v16 = vld [vmem:[%s14417_s21 + $0x538] sm:$0xf0] }
 0x41e   : > { %8544 = vmatpush.bf16.msra.mxu1 %v10165_v45  ;;  %8513 = vmatmul.bf16.vlgmr.msrb.gmra.mxu2 %v14526_v30  ;;  %v12718_v30 = vld [vmem:[%s14417_s21 + $0x58c] sm:$0xf]  ;;  %v10245_v43 = vor.u32 %v12782_v28, %v10242_v2  ;;  %v10066_v2 = vld [vmem:[%s14417_s21 + $0x638] sm:$0xf0] }
 0x41f   : > { %8557 = vmatpush.bf16.msra.mxu2 %v10293_v38  ;;  %v9989_v37 = vor.u32 %v12718_v30, %v9986_v11  ;;  %v12670_v45 = vld [vmem:[%s14417_s21 + $0x40c] sm:$0xf]  ;;  %v9794_v38 = vld [vmem:[%s14417_s21 + $0x418] sm:$0xf0]  ;;  %v10085_v30 = vor.u32 %v12742_v0, %v10082_v40 }
 0x420   : > { %8522 = vmatpush.bf16.msrb.mxu3 %v9845_v48  ;;  %v10098_v48 = vld [vmem:[%s14417_s21 + $0x678] sm:$0xf0]  ;;  %v9797_v53 = vor.u32 %v12670_v45, %v9794_v38  ;;  %v12822_v5 = vld [vmem:[%s14417_s21 + $0x8cc] sm:$0xf] }
 0x421   : > { %8532 = vmatpush.bf16.msra.mxu0 %v10021_v50  ;;  %v10226_v50 = vld [vmem:[%s14417_s21 + $0x778] sm:$0xf0]  ;;  %v12706_v34 = vld [vmem:[%s14417_s21 + $0x52c] sm:$0xf]  ;;  %v10405_v28 = vor.u32 %v12822_v5, %v10402_v6 }
 0x422   : > { %8545 = vmatpush.bf16.msra.mxu1 %v10149_v58  ;;  %v9973_v58 = vor.u32 %v12714_v41, %v9970_v46  ;;  %v10229_v60 = vor.u32 %v12778_v49, %v10226_v50  ;;  %v12738_v33 = vld [vmem:[%s14417_s21 + $0x62c] sm:$0xf]  ;;  %v10194_v32 = vld [vmem:[%s14417_s21 + $0x738] sm:$0xf0] }
 0x423   : > { %8558 = vmatpush.bf16.msra.mxu2 %v10277_v59  ;;  %v10101_v59 = vor.u32 %v12746_v47, %v10098_v48  ;;  %v12770_v19 = vld [vmem:[%s14417_s21 + $0x72c] sm:$0xf]  ;;  %v9922_v38 = vld [vmem:[%s14417_s21 + $0x518] sm:$0xf0]  ;;  %v10069_v39 = vor.u32 %v12738_v33, %v10066_v2 }
 0x424   : > { %8523 = vmatpush.bf16.msrb.mxu3 %v9829_v62  ;;  %v10210_v62 = vld [vmem:[%s14417_s21 + $0x758] sm:$0xf0]  ;;  %v12818_v35 = vld [vmem:[%s14417_s21 + $0x8ac] sm:$0xf] }
 0x425   : > { %8533 = vmatpush.bf16.msra.mxu0 %v10005_v3  ;;  %v8282_v3 = vpop.f32.mrf.mxu0  ;;  %v10213_v11 = vor.u32 %v12774_v1, %v10210_v62  ;;  %v12702_v45 = vld [vmem:[%s14417_s21 + $0x50c] sm:$0xf]  ;;  %v10178_v47 = vld [vmem:[%s14417_s21 + $0x718] sm:$0xf0] }
 0x426   : > { %8546 = vmatpush.bf16.msra.mxu1 %v10133_v52  ;;  %v8295_v52 = vpop.f32.mrf.mxu1  ;;  %v12766_v41 = vld [vmem:[%s14417_s21 + $0x70c] sm:$0xf]  ;;  %v10370_v49 = vld [vmem:[%s14417_s21 + $0x898] sm:$0xf0] }
 0x427   : > { %8559 = vmatpush.bf16.msra.mxu2 %v10261_v7  ;;  %v9957_v7 = vor.u32 %v12710_v61, %v9954_v63  ;;  %v12814_v48 = vld [vmem:[%s14417_s21 + $0x88c] sm:$0xf]  ;;  %v10546_v42 = vld [vmem:[%s14417_s21 + $0x9f8] sm:$0xf0]  ;;  %v10181_v63 = vor.u32 %v12766_v41, %v10178_v47 }
 0x428   : > { %8524 = vmatpush.bf16.msrb.mxu3 %v9813_v36  ;;  %v10386_v36 = vld [vmem:[%s14417_s21 + $0x8b8] sm:$0xf0]  ;;  %v12858_v50 = vld [vmem:[%s14417_s21 + $0x9ec] sm:$0xf]  ;;  %v10373_v0 = vor.u32 %v12814_v48, %v10370_v49 }
 0x429   : > { %8534 = vmatpush.bf16.msra.mxu0 %v9989_v37  ;;  %v9941_v37 = vor.u32 %v12706_v34, %v9938_v16  ;;  %v10389_v46 = vor.u32 %v12818_v35, %v10386_v36  ;;  %v12890_v51 = vld [vmem:[%s14417_s21 + $0xaec] sm:$0xf]  ;;  %v10354_v1 = vld [vmem:[%s14417_s21 + $0x878] sm:$0xf0] }
 0x42a   : > { %8547 = vmatpush.bf16.msra.mxu1 %v10117_v31  ;;  %v10197_v31 = vor.u32 %v12770_v19, %v10194_v32  ;;  %v12810_v40 = vld [vmem:[%s14417_s21 + $0x86c] sm:$0xf]  ;;  %v10530_v6 = vld [vmem:[%s14417_s21 + $0x9d8] sm:$0xf0] }
 0x42b   : > { %8560 = vmatpush.bf16.msra.mxu2 %v10245_v43  ;;  %v10050_v43 = vld [vmem:[%s14417_s21 + $0x618] sm:$0xf0]  ;;  %v12854_v5 = vld [vmem:[%s14417_s21 + $0x9cc] sm:$0xf]  ;;  %v10357_v16 = vor.u32 %v12810_v40, %v10354_v1 }
 0x42c   : > { %8525 = vmatpush.bf16.msrb.mxu3 %v9797_v53  ;;  %v9925_v53 = vor.u32 %v12702_v45, %v9922_v38  ;;  %v12886_v52 = vld [vmem:[%s14417_s21 + $0xacc] sm:$0xf]  ;;  %v10338_v32 = vld [vmem:[%s14417_s21 + $0x858] sm:$0xf0] }
 0x42d   : > { %8535 = vmatpush.bf16.msra.mxu0 %v9973_v58  ;;  %v10674_v58 = vld [vmem:[%s14417_s21 + $0xaf8] sm:$0xf0]  ;;  %v12806_v19 = vld [vmem:[%s14417_s21 + $0x84c] sm:$0xf] }
 0x42e   : > { %8548 = vmatpush.bf16.msra.mxu1 %v10101_v59  ;;  %v12922_v59 = vld [vmem:[%s14417_s21 + $0xbec] sm:$0xf]  ;;  %v10677_v62 = vor.u32 %v12890_v51, %v10674_v58  ;;  %v10514_v45 = vld [vmem:[%s14417_s21 + $0x9b8] sm:$0xf0] }
 0x42f   : > { %8561 = vmatpush.bf16.msra.mxu2 %v10229_v60  ;;  %8526 = vmatmul.bf16.vlgmr.msrb.gmra.mxu3 %v14565_v8  ;;  %v12734_v8 = vld [vmem:[%s14417_s21 + $0x60c] sm:$0xf]  ;;  %v10802_v60 = vld [vmem:[%s14417_s21 + $0xbf8] sm:$0xf0] }
 0x430   : > { %8570 = vmatpush.bf16.msra.mxu3 %v10421_v29  ;;  %v10053_v61 = vor.u32 %v12734_v8, %v10050_v43  ;;  %v10549_v29 = vor.u32 %v12858_v50, %v10546_v42  ;;  %v10805_v3 = vor.u32 %v12922_v59, %v10802_v60  ;;  %v12882_v38 = vld [vmem:[%s14417_s21 + $0xaac] sm:$0xf]  ;;  %v10770_v8 = vld [vmem:[%s14417_s21 + $0xbb8] sm:$0xf0]  ;;  %v10341_v43 = vor.u32 %v12806_v19, %v10338_v32 }
 0x431   : > { %8536 = vmatpush.bf16.msra.mxu0 %v9957_v7  ;;  %v10658_v7 = vld [vmem:[%s14417_s21 + $0xad8] sm:$0xf0]  ;;  %v8306_v34 = vpop.f32.mrf.mxu2  ;;  %v12846_v48 = vld [vmem:[%s14417_s21 + $0x98c] sm:$0xf] }
 0x432   : > { %8549 = vmatpush.bf16.msra.mxu1 %v10085_v30  ;;  %v12918_v30 = vld [vmem:[%s14417_s21 + $0xbcc] sm:$0xf]  ;;  %v8307_v33 = vadd.f32 %v8306_v34, %v15897_v44  ;;  %v8319_v2 = vpop.f32.mrf.mxu3  ;;  %v10661_v35 = vor.u32 %v12886_v52, %v10658_v7  ;;  %v10498_v49 = vld [vmem:[%s14417_s21 + $0x998] sm:$0xf0] }
 0x433   : > { %8562 = vmatpush.bf16.msra.mxu2 %v10213_v11  ;;  %v10786_v11 = vld [vmem:[%s14417_s21 + $0xbd8] sm:$0xf0]  ;;  %v12878_v50 = vld [vmem:[%s14417_s21 + $0xa8c] sm:$0xf] }
 0x434   : > { %8571 = vmatpush.bf16.msra.mxu3 %v10405_v28  ;;  %v10533_v28 = vor.u32 %v12854_v5, %v10530_v6  ;;  %v10789_v36 = vor.u32 %v12918_v30, %v10786_v11  ;;  %v8320_v44 = vadd.f32 %v8319_v2, %v8307_v33  ;;  %v10626_v51 = vld [vmem:[%s14417_s21 + $0xa98] sm:$0xf0]  ;;  %v12842_v5 = vld [vmem:[%s14417_s21 + $0x96c] sm:$0xf] }
 0x435   : > { %8537 = vmatpush.bf16.msra.mxu0 %v9941_v37  ;;  %v12850_v37 = vld [vmem:[%s14417_s21 + $0x9ac] sm:$0xf]  ;;  %v10629_v1 = vor.u32 %v12878_v50, %v10626_v51  ;;  %v10482_v6 = vld [vmem:[%s14417_s21 + $0x978] sm:$0xf0] }
 0x436   : > { %8550 = vmatpush.bf16.msra.mxu1 %v10069_v39  ;;  %v10642_v39 = vld [vmem:[%s14417_s21 + $0xab8] sm:$0xf0]  ;;  %v10517_v41 = vor.u32 %v12850_v37, %v10514_v45  ;;  %v12874_v52 = vld [vmem:[%s14417_s21 + $0xa6c] sm:$0xf] }
 0x437   : > { %8563 = vmatpush.bf16.msra.mxu2 %v10197_v31  ;;  %v12914_v31 = vld [vmem:[%s14417_s21 + $0xbac] sm:$0xf]  ;;  %v10610_v7 = vld [vmem:[%s14417_s21 + $0xa78] sm:$0xf0] }
 0x438   : > { %8572 = vmatpush.bf16.msra.mxu3 %v10389_v46  ;;  %v12802_v46 = vld [vmem:[%s14417_s21 + $0x82c] sm:$0xf]  ;;  %v10773_v47 = vor.u32 %v12914_v31, %v10770_v8  ;;  %v10738_v11 = vld [vmem:[%s14417_s21 + $0xb78] sm:$0xf0]  ;;  %v10613_v2 = vor.u32 %v12874_v52, %v10610_v7 }
 0x439   : > { %8538 = vmatpush.bf16.msra.mxu0 %v9925_v53  ;;  %v8332_v42 = vpop.f32.mrf.mxu0  ;;  %v10754_v53 = vld [vmem:[%s14417_s21 + $0xb98] sm:$0xf0]  ;;  %v8308_v60 = vpop.f32.mrf.mxu2  ;;  %v12906_v30 = vld [vmem:[%s14417_s21 + $0xb6c] sm:$0xf] }
 0x43a   : > { %8551 = vmatpush.bf16.msra.mxu1 %v10053_v61  ;;  %v8333_v58 = vadd.f32 %v8332_v42, %v8320_v44  ;;  %v8345_v59 = vpop.f32.mrf.mxu1  ;;  %v8321_v40 = vpop.f32.mrf.mxu3  ;;  %v12954_v34 = vld [vmem:[%s14417_s21 + $0xcec] sm:$0xf]  ;;  %v10741_v19 = vor.u32 %v12906_v30, %v10738_v11  ;;  %v10594_v45 = vld [vmem:[%s14417_s21 + $0xa58] sm:$0xf0] }
 0x43b   : > { %8564 = vmatpush.bf16.msra.mxu2 %v10181_v63  ;;  %v10501_v63 = vor.u32 %v12846_v48, %v10498_v49  ;;  %v12838_v32 = vld [vmem:[%s14417_s21 + $0x94c] sm:$0xf]  ;;  %v10722_v44 = vld [vmem:[%s14417_s21 + $0xb58] sm:$0xf0] }
 0x43c   : > { %8573 = vmatpush.bf16.msra.mxu3 %v10373_v0  ;;  %8539 = vmatmul.bf16.vlgmr.msra.gmra.mxu0 %v14569_v10  ;;  %v10645_v10 = vor.u32 %v12882_v38, %v10642_v39  ;;  %v12798_v0 = vld [vmem:[%s14417_s21 + $0x80c] sm:$0xf]  ;;  %v10914_v8 = vld [vmem:[%s14417_s21 + $0xcd8] sm:$0xf0] }
 0x43d   : > { %8583 = vmatpush.bf16.msrb.mxu0 %v10549_v29  ;;  %8552 = vmatmul.bf16.vlgmr.msra.gmra.mxu1 %v14560_v4  ;;  %v12910_v4 = vld [vmem:[%s14417_s21 + $0xb8c] sm:$0xf]  ;;  %v10306_v29 = vld [vmem:[%s14417_s21 + $0x818] sm:$0xf0] }
 0x43e   : > { %8596 = vmatpush.bf16.msrb.mxu1 %v10677_v62  ;;  %8565 = vmatmul.bf16.vlgmr.msra.gmra.mxu2 %v14567_v9  ;;  %v10322_v9 = vld [vmem:[%s14417_s21 + $0x838] sm:$0xf0]  ;;  %v10757_v62 = vor.u32 %v12910_v4, %v10754_v53  ;;  %v10309_v33 = vor.u32 %v12798_v0, %v10306_v29  ;;  %v12902_v38 = vld [vmem:[%s14417_s21 + $0xb4c] sm:$0xf] }
 0x43f   : > { %8609 = vmatpush.bf16.msrb.mxu2 %v10805_v3  ;;  %v10325_v61 = vor.u32 %v12802_v46, %v10322_v9  ;;  %v15968_v3 = vadd.f32 %v8345_v59, %v8333_v58  ;;  %v12950_v31 = vld [vmem:[%s14417_s21 + $0xccc] sm:$0xf]  ;;  %v10725_v9 = vor.u32 %v12902_v38, %v10722_v44  ;;  %v10578_v50 = vld [vmem:[%s14417_s21 + $0xa38] sm:$0xf0] }
 0x440   : > { %8574 = vmatpush.bf16.msra.mxu3 %v10357_v16  ;;  %v10930_v16 = vld [vmem:[%s14417_s21 + $0xcf8] sm:$0xf0]  ;;  %v12866_v48 = vld [vmem:[%s14417_s21 + $0xa2c] sm:$0xf]  ;;  %v10917_v49 = vor.u32 %v12950_v31, %v10914_v8 }
 0x441   : > { %8584 = vmatpush.bf16.msrb.mxu0 %v10533_v28  ;;  %v10485_v28 = vor.u32 %v12842_v5, %v10482_v6  ;;  %v10933_v37 = vor.u32 %v12954_v34, %v10930_v16  ;;  %v8334_v39 = vpop.f32.mrf.mxu0  ;;  %v12898_v42 = vld [vmem:[%s14417_s21 + $0xb2c] sm:$0xf]  ;;  %v10706_v51 = vld [vmem:[%s14417_s21 + $0xb38] sm:$0xf0] }
 0x442   : > { %8597 = vmatpush.bf16.msrb.mxu1 %v10661_v35  ;;  %v10466_v35 = vld [vmem:[%s14417_s21 + $0x958] sm:$0xf0]  ;;  %v12946_v4 = vld [vmem:[%s14417_s21 + $0xcac] sm:$0xf] }
 0x443   : > { %8610 = vmatpush.bf16.msrb.mxu2 %v10789_v36  ;;  %v12870_v36 = vld [vmem:[%s14417_s21 + $0xa4c] sm:$0xf]  ;;  %v10898_v53 = vld [vmem:[%s14417_s21 + $0xcb8] sm:$0xf0] }
 0x444   : > { %8575 = vmatpush.bf16.msra.mxu3 %v10341_v43  ;;  %v8347_v43 = vpop.f32.mrf.mxu1  ;;  %v10597_v46 = vor.u32 %v12870_v36, %v10594_v45  ;;  %v12830_v59 = vld [vmem:[%s14417_s21 + $0x90c] sm:$0xf]  ;;  %v10434_v60 = vld [vmem:[%s14417_s21 + $0x918] sm:$0xf0]  ;;  %v10901_v40 = vor.u32 %v12946_v4, %v10898_v53 }
 0x445   : > { %8585 = vmatpush.bf16.msrb.mxu0 %v10517_v41  ;;  %v10469_v41 = vor.u32 %v12838_v32, %v10466_v35  ;;  %v10562_v0 = vld [vmem:[%s14417_s21 + $0xa18] sm:$0xf0]  ;;  %v12894_v29 = vld [vmem:[%s14417_s21 + $0xb0c] sm:$0xf]  ;;  %v10437_v30 = vor.u32 %v12830_v59, %v10434_v60 }
 0x446   : > { %8598 = vmatpush.bf16.msrb.mxu1 %v10645_v10  ;;  %v12834_v10 = vld [vmem:[%s14417_s21 + $0x92c] sm:$0xf]  ;;  %v10882_v5 = vld [vmem:[%s14417_s21 + $0xc98] sm:$0xf0] }
 0x447   : > { %8611 = vmatpush.bf16.msrb.mxu2 %v10773_v47  ;;  %v10450_v47 = vld [vmem:[%s14417_s21 + $0x938] sm:$0xf0]  ;;  %v12986_v6 = vld [vmem:[%s14417_s21 + $0xdec] sm:$0xf] }
 0x448   : > { %8576 = vmatpush.bf16.msra.mxu3 %v10325_v61  ;;  %v10453_v58 = vor.u32 %v12834_v10, %v10450_v47  ;;  %v10581_v61 = vor.u32 %v12866_v48, %v10578_v50  ;;  %v11058_v52 = vld [vmem:[%s14417_s21 + $0xdf8] sm:$0xf0]  ;;  %v13018_v7 = vld [vmem:[%s14417_s21 + $0xeec] sm:$0xf] }
 0x449   : > { %8586 = vmatpush.bf16.msrb.mxu0 %v10501_v63  ;;  %v10709_v63 = vor.u32 %v12898_v42, %v10706_v51  ;;  %v11186_v11 = vld [vmem:[%s14417_s21 + $0xef8] sm:$0xf0]  ;;  %v13050_v34 = vld [vmem:[%s14417_s21 + $0xfec] sm:$0xf] }
 0x44a   : > { %8599 = vmatpush.bf16.msrb.mxu1 %v10629_v1  ;;  %v10690_v1 = vld [vmem:[%s14417_s21 + $0xb18] sm:$0xf0]  ;;  %v12938_v32 = vld [vmem:[%s14417_s21 + $0xc6c] sm:$0xf]  ;;  %v11189_v36 = vor.u32 %v13018_v7, %v11186_v11 }
 0x44b   : > { %8612 = vmatpush.bf16.msrb.mxu2 %v10757_v62  ;;  %v12942_v62 = vld [vmem:[%s14417_s21 + $0xc8c] sm:$0xf]  ;;  %v11314_v16 = vld [vmem:[%s14417_s21 + $0xff8] sm:$0xf0] }
 0x44c   : > { %8577 = vmatpush.bf16.msra.mxu3 %v10309_v33  ;;  %v10866_v35 = vld [vmem:[%s14417_s21 + $0xc78] sm:$0xf0]  ;;  %v12982_v45 = vld [vmem:[%s14417_s21 + $0xdcc] sm:$0xf] }
 0x44d   : > { %8587 = vmatpush.bf16.msrb.mxu0 %v10485_v28  ;;  %v10693_v28 = vor.u32 %v12894_v29, %v10690_v1  ;;  %v11042_v38 = vld [vmem:[%s14417_s21 + $0xdd8] sm:$0xf0]  ;;  %v13014_v44 = vld [vmem:[%s14417_s21 + $0xecc] sm:$0xf] }
 0x44e   : > { %8600 = vmatpush.bf16.msrb.mxu1 %v10613_v2  ;;  %v10885_v2 = vor.u32 %v12942_v62, %v10882_v5  ;;  %v11170_v39 = vld [vmem:[%s14417_s21 + $0xed8] sm:$0xf0]  ;;  %v13046_v31 = vld [vmem:[%s14417_s21 + $0xfcc] sm:$0xf] }
 0x44f   : > { %8613 = vmatpush.bf16.msrb.mxu2 %v10741_v19  ;;  %8578 = vmatmul.bf16.vlgmr.msra.gmra.mxu3 %v14655_v20  ;;  %v12862_v20 = vld [vmem:[%s14417_s21 + $0xa0c] sm:$0xf]  ;;  %v11061_v19 = vor.u32 %v12986_v6, %v11058_v52  ;;  %v11298_v8 = vld [vmem:[%s14417_s21 + $0xfd8] sm:$0xf0] }
 0x450   : > { %8622 = vmatpush.bf16.msrb.mxu3 %v10933_v37  ;;  %v10565_v33 = vor.u32 %v12862_v20, %v10562_v0  ;;  %v11317_v37 = vor.u32 %v13050_v34, %v11314_v16  ;;  %v12934_v47 = vld [vmem:[%s14417_s21 + $0xc4c] sm:$0xf]  ;;  %v10850_v48 = vld [vmem:[%s14417_s21 + $0xc58] sm:$0xf0]  ;;  %v11301_v50 = vor.u32 %v13046_v31, %v11298_v8 }
 0x451   : > { %8588 = vmatpush.bf16.msrb.mxu0 %v10469_v41  ;;  %v8358_v43 = vpop.f32.mrf.mxu2  ;;  %v10869_v41 = vor.u32 %v12938_v32, %v10866_v35  ;;  %v12978_v42 = vld [vmem:[%s14417_s21 + $0xdac] sm:$0xf]  ;;  %v11026_v51 = vld [vmem:[%s14417_s21 + $0xdb8] sm:$0xf0]  ;;  %v10853_v60 = vor.u32 %v12934_v47, %v10850_v48 }
 0x452   : > { %8601 = vmatpush.bf16.msrb.mxu1 %v10597_v46  ;;  %v8359_v46 = vadd.f32 %v8358_v43, %v15968_v3  ;;  %v8371_v10 = vpop.f32.mrf.mxu3  ;;  %v13010_v4 = vld [vmem:[%s14417_s21 + $0xeac] sm:$0xf]  ;;  %v11154_v53 = vld [vmem:[%s14417_s21 + $0xeb8] sm:$0xf0] }
 0x453   : > { %8614 = vmatpush.bf16.msrb.mxu2 %v10725_v9  ;;  %v11045_v9 = vor.u32 %v12982_v45, %v11042_v38  ;;  %v11282_v59 = vld [vmem:[%s14417_s21 + $0xfb8] sm:$0xf0]  ;;  %v12974_v0 = vld [vmem:[%s14417_s21 + $0xd8c] sm:$0xf] }
 0x454   : > { %8623 = vmatpush.bf16.msrb.mxu3 %v10917_v49  ;;  %v11173_v49 = vor.u32 %v13014_v44, %v11170_v39  ;;  %v8372_v3 = vadd.f32 %v8371_v10, %v8359_v46  ;;  %v11010_v29 = vld [vmem:[%s14417_s21 + $0xd98] sm:$0xf0]  ;;  %v12926_v34 = vld [vmem:[%s14417_s21 + $0xc0c] sm:$0xf] }
 0x455   : > { %8589 = vmatpush.bf16.msrb.mxu0 %v10453_v58  ;;  %v13042_v58 = vld [vmem:[%s14417_s21 + $0xfac] sm:$0xf]  ;;  %v11138_v62 = vld [vmem:[%s14417_s21 + $0xe98] sm:$0xf0]  ;;  %v11013_v11 = vor.u32 %v12974_v0, %v11010_v29 }
 0x456   : > { %8602 = vmatpush.bf16.msrb.mxu1 %v10581_v61  ;;  %v11029_v61 = vor.u32 %v12978_v42, %v11026_v51  ;;  %v11285_v20 = vor.u32 %v13042_v58, %v11282_v59  ;;  %v11266_v5 = vld [vmem:[%s14417_s21 + $0xf98] sm:$0xf0]  ;;  %v12970_v32 = vld [vmem:[%s14417_s21 + $0xd6c] sm:$0xf] }
 0x457   : > { %8615 = vmatpush.bf16.msrb.mxu2 %v10709_v63  ;;  %v12930_v63 = vld [vmem:[%s14417_s21 + $0xc2c] sm:$0xf]  ;;  %v10818_v16 = vld [vmem:[%s14417_s21 + $0xc18] sm:$0xf0] }
 0x458   : > { %8624 = vmatpush.bf16.msrb.mxu3 %v10901_v40  ;;  %v13006_v40 = vld [vmem:[%s14417_s21 + $0xe8c] sm:$0xf]  ;;  %v10994_v35 = vld [vmem:[%s14417_s21 + $0xd78] sm:$0xf0]  ;;  %v10821_v31 = vor.u32 %v12926_v34, %v10818_v16 }
 0x459   : > { %8590 = vmatpush.bf16.msrb.mxu0 %v10437_v30  ;;  %v8384_v1 = vpop.f32.mrf.mxu0  ;;  %v8360_v7 = vpop.f32.mrf.mxu2  ;;  %v13034_v45 = vld [vmem:[%s14417_s21 + $0xf6c] sm:$0xf]  ;;  %v11250_v38 = vld [vmem:[%s14417_s21 + $0xf78] sm:$0xf0]  ;;  %v10997_v8 = vor.u32 %v12970_v32, %v10994_v35 }
 0x45a   : > { %8603 = vmatpush.bf16.msrb.mxu1 %v10565_v33  ;;  %v8385_v6 = vadd.f32 %v8384_v1, %v8372_v3  ;;  %v8397_v52 = vpop.f32.mrf.mxu1  ;;  %v8373_v33 = vpop.f32.mrf.mxu3  ;;  %v13082_v44 = vld [vmem:[%s14417_s21 + $0x10ec] sm:$0xf]  ;;  %v11442_v39 = vld [vmem:[%s14417_s21 + $0x10f8] sm:$0xf0] }
 0x45b   : > { %8616 = vmatpush.bf16.msrb.mxu2 %v10693_v28  ;;  %v11141_v28 = vor.u32 %v13006_v40, %v11138_v62  ;;  %v12966_v46 = vld [vmem:[%s14417_s21 + $0xd4c] sm:$0xf]  ;;  %v11445_v47 = vor.u32 %v13082_v44, %v11442_v39  ;;  %v11106_v48 = vld [vmem:[%s14417_s21 + $0xe58] sm:$0xf0] }
 0x45c   : > { %8625 = vmatpush.bf16.msrb.mxu3 %v10885_v2  ;;  %8591 = vmatmul.bf16.vlgmr.msrb.gmra.mxu0 %v14661_v24  ;;  %v10834_v24 = vld [vmem:[%s14417_s21 + $0xc38] sm:$0xf0]  ;;  %v12998_v10 = vld [vmem:[%s14417_s21 + $0xe4c] sm:$0xf] }
 0x45d   : > { %8635 = vmatpush.bf16.msra.mxu0 %v11061_v19  ;;  %8604 = vmatmul.bf16.vlgmr.msrb.gmra.mxu1 %v14659_v23  ;;  %v13038_v23 = vld [vmem:[%s14417_s21 + $0xf8c] sm:$0xf]  ;;  %v10837_v30 = vor.u32 %v12930_v63, %v10834_v24  ;;  %v16039_v19 = vadd.f32 %v8397_v52, %v8385_v6  ;;  %v11109_v58 = vor.u32 %v12998_v10, %v11106_v48  ;;  %v11218_v0 = vld [vmem:[%s14417_s21 + $0xf38] sm:$0xf0] }
 0x45e   : > { %8648 = vmatpush.bf16.msra.mxu1 %v11189_v36  ;;  %8617 = vmatmul.bf16.vlgmr.msrb.gmra.mxu2 %v14663_v25  ;;  %v11157_v25 = vor.u32 %v13010_v4, %v11154_v53  ;;  %v11269_v2 = vor.u32 %v13038_v23, %v11266_v5  ;;  %v13002_v36 = vld [vmem:[%s14417_s21 + $0xe6c] sm:$0xf]  ;;  %v11426_v4 = vld [vmem:[%s14417_s21 + $0x10d8] sm:$0xf0] }
 0x45f   : > { %8661 = vmatpush.bf16.msra.mxu2 %v11317_v37  ;;  %v11122_v37 = vld [vmem:[%s14417_s21 + $0xe78] sm:$0xf0]  ;;  %v13078_v51 = vld [vmem:[%s14417_s21 + $0x10cc] sm:$0xf] }
 0x460   : > { %8626 = vmatpush.bf16.msrb.mxu3 %v10869_v41  ;;  %v11125_v43 = vor.u32 %v13002_v36, %v11122_v37  ;;  %v11253_v41 = vor.u32 %v13034_v45, %v11250_v38  ;;  %v12994_v63 = vld [vmem:[%s14417_s21 + $0xe2c] sm:$0xf]  ;;  %v11429_v24 = vor.u32 %v13078_v51, %v11426_v4  ;;  %v11410_v40 = vld [vmem:[%s14417_s21 + $0x10b8] sm:$0xf0] }
 0x461   : > { %8636 = vmatpush.bf16.msra.mxu0 %v11045_v9  ;;  %v10978_v9 = vld [vmem:[%s14417_s21 + $0xd58] sm:$0xf0]  ;;  %v8386_v42 = vpop.f32.mrf.mxu0  ;;  %v13074_v29 = vld [vmem:[%s14417_s21 + $0x10ac] sm:$0xf] }
 0x462   : > { %8649 = vmatpush.bf16.msra.mxu1 %v11173_v49  ;;  %v13030_v49 = vld [vmem:[%s14417_s21 + $0xf4c] sm:$0xf]  ;;  %v8399_v3 = vpop.f32.mrf.mxu1  ;;  %v10981_v53 = vor.u32 %v12966_v46, %v10978_v9  ;;  %v10946_v23 = vld [vmem:[%s14417_s21 + $0xd18] sm:$0xf0] }
 0x463   : > { %8662 = vmatpush.bf16.msra.mxu2 %v11301_v50  ;;  %v11234_v50 = vld [vmem:[%s14417_s21 + $0xf58] sm:$0xf0]  ;;  %v12958_v62 = vld [vmem:[%s14417_s21 + $0xd0c] sm:$0xf] }
 0x464   : > { %8627 = vmatpush.bf16.msrb.mxu3 %v10853_v60  ;;  %v11237_v59 = vor.u32 %v13030_v49, %v11234_v50  ;;  %v12962_v60 = vld [vmem:[%s14417_s21 + $0xd2c] sm:$0xf]  ;;  %v11074_v52 = vld [vmem:[%s14417_s21 + $0xe18] sm:$0xf0]  ;;  %v10949_v32 = vor.u32 %v12958_v62, %v10946_v23 }
 0x465   : > { %8637 = vmatpush.bf16.msra.mxu0 %v11029_v61  ;;  %v10962_v61 = vld [vmem:[%s14417_s21 + $0xd38] sm:$0xf0]  ;;  %v13022_v7 = vld [vmem:[%s14417_s21 + $0xf0c] sm:$0xf] }
 0x466   : > { %8650 = vmatpush.bf16.msra.mxu1 %v11157_v25  ;;  %v11090_v25 = vld [vmem:[%s14417_s21 + $0xe38] sm:$0xf0]  ;;  %v10965_v1 = vor.u32 %v12962_v60, %v10962_v61  ;;  %v13070_v34 = vld [vmem:[%s14417_s21 + $0x108c] sm:$0xf] }
 0x467   : > { %8663 = vmatpush.bf16.msra.mxu2 %v11285_v20  ;;  %v13026_v20 = vld [vmem:[%s14417_s21 + $0xf2c] sm:$0xf]  ;;  %v11093_v5 = vor.u32 %v12994_v63, %v11090_v25  ;;  %v11394_v16 = vld [vmem:[%s14417_s21 + $0x1098] sm:$0xf0] }
 0x468   : > { %8628 = vmatpush.bf16.msrb.mxu3 %v10837_v30  ;;  %v11221_v6 = vor.u32 %v13026_v20, %v11218_v0  ;;  %v11413_v30 = vor.u32 %v13074_v29, %v11410_v40  ;;  %v13114_v33 = vld [vmem:[%s14417_s21 + $0x11ec] sm:$0xf]  ;;  %v11698_v35 = vld [vmem:[%s14417_s21 + $0x12f8] sm:$0xf0]  ;;  %v11397_v44 = vor.u32 %v13070_v34, %v11394_v16 }
 0x469   : > { %8638 = vmatpush.bf16.msra.mxu0 %v11013_v11  ;;  %v11202_v11 = vld [vmem:[%s14417_s21 + $0xf18] sm:$0xf0]  ;;  %v13178_v36 = vld [vmem:[%s14417_s21 + $0x13ec] sm:$0xf] }
 0x46a   : > { %8651 = vmatpush.bf16.msra.mxu1 %v11141_v28  ;;  %v11570_v28 = vld [vmem:[%s14417_s21 + $0x11f8] sm:$0xf0]  ;;  %v11205_v38 = vor.u32 %v13022_v7, %v11202_v11  ;;  %v13110_v46 = vld [vmem:[%s14417_s21 + $0x11cc] sm:$0xf] }
 0x46b   : > { %8664 = vmatpush.bf16.msra.mxu2 %v11269_v2  ;;  %v13146_v2 = vld [vmem:[%s14417_s21 + $0x12ec] sm:$0xf]  ;;  %v11826_v37 = vld [vmem:[%s14417_s21 + $0x13f8] sm:$0xf0]  ;;  %v11573_v39 = vor.u32 %v13114_v33, %v11570_v28 }
 0x46c   : > { %8629 = vmatpush.bf16.msrb.mxu3 %v10821_v31  ;;  %v13066_v31 = vld [vmem:[%s14417_s21 + $0x106c] sm:$0xf]  ;;  %v11554_v9 = vld [vmem:[%s14417_s21 + $0x11d8] sm:$0xf0] }
 0x46d   : > { %8639 = vmatpush.bf16.msra.mxu0 %v10997_v8  ;;  %v11378_v8 = vld [vmem:[%s14417_s21 + $0x1078] sm:$0xf0]  ;;  %v13142_v10 = vld [vmem:[%s14417_s21 + $0x12cc] sm:$0xf]  ;;  %v11557_v4 = vor.u32 %v13110_v46, %v11554_v9 }
 0x46e   : > { %8652 = vmatpush.bf16.msra.mxu1 %v11125_v43  ;;  %v11701_v43 = vor.u32 %v13146_v2, %v11698_v35  ;;  %v13174_v48 = vld [vmem:[%s14417_s21 + $0x13cc] sm:$0xf]  ;;  %v11810_v49 = vld [vmem:[%s14417_s21 + $0x13d8] sm:$0xf0]  ;;  %v11381_v42 = vor.u32 %v13066_v31, %v11378_v8 }
 0x46f   : > { %8665 = vmatpush.bf16.msra.mxu2 %v11253_v41  ;;  %8630 = vmatmul.bf16.vlgmr.msrb.gmra.mxu3 %v14721_v54  ;;  %v12990_v54 = vld [vmem:[%s14417_s21 + $0xe0c] sm:$0xf]  ;;  %v11829_v41 = vor.u32 %v13178_v36, %v11826_v37  ;;  %v11813_v60 = vor.u32 %v13174_v48, %v11810_v49  ;;  %v11538_v63 = vld [vmem:[%s14417_s21 + $0x11b8] sm:$0xf0] }
 0x470   : > { %8674 = vmatpush.bf16.msra.mxu3 %v11445_v47  ;;  %v11077_v45 = vor.u32 %v12990_v54, %v11074_v52  ;;  %v11682_v47 = vld [vmem:[%s14417_s21 + $0x12d8] sm:$0xf0]  ;;  %v13106_v61 = vld [vmem:[%s14417_s21 + $0x11ac] sm:$0xf] }
 0x471   : > { %8640 = vmatpush.bf16.msra.mxu0 %v10981_v53  ;;  %v8410_v50 = vpop.f32.mrf.mxu2  ;;  %v13062_v53 = vld [vmem:[%s14417_s21 + $0x104c] sm:$0xf]  ;;  %v11666_v25 = vld [vmem:[%s14417_s21 + $0x12b8] sm:$0xf0]  ;;  %v11541_v40 = vor.u32 %v13106_v61, %v11538_v63 }
 0x472   : > { %8653 = vmatpush.bf16.msra.mxu1 %v11109_v58  ;;  %v8411_v51 = vadd.f32 %v8410_v50, %v16039_v19  ;;  %v8423_v3 = vpop.f32.mrf.mxu3  ;;  %v11362_v58 = vld [vmem:[%s14417_s21 + $0x1058] sm:$0xf0]  ;;  %v13170_v20 = vld [vmem:[%s14417_s21 + $0x13ac] sm:$0xf] }
 0x473   : > { %8666 = vmatpush.bf16.msra.mxu2 %v11237_v59  ;;  %v11685_v59 = vor.u32 %v13142_v10, %v11682_v47  ;;  %v11794_v0 = vld [vmem:[%s14417_s21 + $0x13b8] sm:$0xf0]  ;;  %v11365_v29 = vor.u32 %v13062_v53, %v11362_v58  ;;  %v13102_v23 = vld [vmem:[%s14417_s21 + $0x118c] sm:$0xf] }
 0x474   : > { %8675 = vmatpush.bf16.msra.mxu3 %v11429_v24  ;;  %v13138_v24 = vld [vmem:[%s14417_s21 + $0x12ac] sm:$0xf]  ;;  %v8424_v19 = vadd.f32 %v8423_v3, %v8411_v51  ;;  %v11797_v62 = vor.u32 %v13170_v20, %v11794_v0  ;;  %v11650_v54 = vld [vmem:[%s14417_s21 + $0x1298] sm:$0xf0] }
 0x475   : > { %8641 = vmatpush.bf16.msra.mxu0 %v10965_v1  ;;  %v13058_v1 = vld [vmem:[%s14417_s21 + $0x102c] sm:$0xf]  ;;  %v11778_v7 = vld [vmem:[%s14417_s21 + $0x1398] sm:$0xf0] }
 0x476   : > { %8654 = vmatpush.bf16.msra.mxu1 %v11093_v5  ;;  %v11522_v5 = vld [vmem:[%s14417_s21 + $0x1198] sm:$0xf0]  ;;  %v13166_v52 = vld [vmem:[%s14417_s21 + $0x138c] sm:$0xf] }
 0x477   : > { %8667 = vmatpush.bf16.msra.mxu2 %v11221_v6  ;;  %v13134_v6 = vld [vmem:[%s14417_s21 + $0x128c] sm:$0xf]  ;;  %v11525_v16 = vor.u32 %v13102_v23, %v11522_v5  ;;  %v11330_v2 = vld [vmem:[%s14417_s21 + $0x1018] sm:$0xf0]  ;;  %v11781_v36 = vor.u32 %v13166_v52, %v11778_v7 }
 0x478   : > { %8676 = vmatpush.bf16.msra.mxu3 %v11413_v30  ;;  %v13054_v28 = vld [vmem:[%s14417_s21 + $0x100c] sm:$0xf]  ;;  %v11653_v35 = vor.u32 %v13134_v6, %v11650_v54  ;;  %v11762_v8 = vld [vmem:[%s14417_s21 + $0x1378] sm:$0xf0] }
 0x479   : > { %8642 = vmatpush.bf16.msra.mxu0 %v10949_v32  ;;  %v8412_v30 = vpop.f32.mrf.mxu2  ;;  %v13098_v37 = vld [vmem:[%s14417_s21 + $0x116c] sm:$0xf]  ;;  %v11333_v46 = vor.u32 %v13054_v28, %v11330_v2  ;;  %v11490_v49 = vld [vmem:[%s14417_s21 + $0x1158] sm:$0xf0] }
 0x47a   : > { %8655 = vmatpush.bf16.msra.mxu1 %v11077_v45  ;;  %v8449_v33 = vpop.f32.mrf.mxu1  ;;  %v8425_v32 = vpop.f32.mrf.mxu3  ;;  %v11506_v45 = vld [vmem:[%s14417_s21 + $0x1178] sm:$0xf0]  ;;  %v13162_v31 = vld [vmem:[%s14417_s21 + $0x136c] sm:$0xf] }
 0x47b   : > { %8668 = vmatpush.bf16.msra.mxu2 %v11205_v38  ;;  %v13130_v38 = vld [vmem:[%s14417_s21 + $0x126c] sm:$0xf]  ;;  %v11509_v9 = vor.u32 %v13098_v37, %v11506_v45  ;;  %v11765_v47 = vor.u32 %v13162_v31, %v11762_v8  ;;  %v11618_v51 = vld [vmem:[%s14417_s21 + $0x1258] sm:$0xf0] }
 0x47c   : > { %8677 = vmatpush.bf16.msra.mxu3 %v11397_v44  ;;  %8643 = vmatmul.bf16.vlgmr.msra.gmra.mxu0 %v14725_v56  ;;  %v11346_v56 = vld [vmem:[%s14417_s21 + $0x1038] sm:$0xf0]  ;;  %v13094_v48 = vld [vmem:[%s14417_s21 + $0x114c] sm:$0xf] }
 0x47d   : > { %8687 = vmatpush.bf16.msrb.mxu0 %v11573_v39  ;;  %8656 = vmatmul.bf16.vlgmr.msra.gmra.mxu1 %v14723_v55  ;;  %v8436_v55 = vpop.f32.mrf.mxu0  ;;  %v11349_v34 = vor.u32 %v13058_v1, %v11346_v56  ;;  %v11634_v39 = vld [vmem:[%s14417_s21 + $0x1278] sm:$0xf0]  ;;  %v13126_v50 = vld [vmem:[%s14417_s21 + $0x124c] sm:$0xf] }
 0x47e   : > { %8700 = vmatpush.bf16.msrb.mxu1 %v11701_v43  ;;  %8669 = vmatmul.bf16.vlgmr.msra.gmra.mxu2 %v14727_v57  ;;  %v11669_v57 = vor.u32 %v13138_v24, %v11666_v25  ;;  %v8437_v11 = vadd.f32 %v8436_v55, %v8424_v19  ;;  %v13210_v43 = vld [vmem:[%s14417_s21 + $0x14ec] sm:$0xf]  ;;  %v11637_v10 = vor.u32 %v13130_v38, %v11634_v39  ;;  %v11746_v3 = vld [vmem:[%s14417_s21 + $0x1358] sm:$0xf0] }
 0x47f   : > { %8713 = vmatpush.bf16.msrb.mxu2 %v11829_v41  ;;  %v11954_v41 = vld [vmem:[%s14417_s21 + $0x14f8] sm:$0xf0]  ;;  %v13206_v53 = vld [vmem:[%s14417_s21 + $0x14cc] sm:$0xf]  ;;  %v11621_v24 = vor.u32 %v13126_v50, %v11618_v51 }
 0x480   : > { %8678 = vmatpush.bf16.msra.mxu3 %v11381_v42  ;;  %v8450_v44 = vadd.f32 %v8449_v33, %v8437_v11  ;;  %v11957_v42 = vor.u32 %v13210_v43, %v11954_v41  ;;  %v11938_v58 = vld [vmem:[%s14417_s21 + $0x14d8] sm:$0xf0]  ;;  %v13090_v25 = vld [vmem:[%s14417_s21 + $0x112c] sm:$0xf] }
 0x481   : > { %8688 = vmatpush.bf16.msrb.mxu0 %v11557_v4  ;;  %v13158_v4 = vld [vmem:[%s14417_s21 + $0x134c] sm:$0xf]  ;;  %v8462_v63 = vpop.f32.mrf.mxu2  ;;  %v11474_v20 = vld [vmem:[%s14417_s21 + $0x1138] sm:$0xf0] }
 0x482   : > { %8701 = vmatpush.bf16.msrb.mxu1 %v11685_v59  ;;  %v8451_v61 = vpop.f32.mrf.mxu1  ;;  %v11749_v19 = vor.u32 %v13158_v4, %v11746_v3  ;;  %v13122_v0 = vld [vmem:[%s14417_s21 + $0x122c] sm:$0xf]  ;;  %v11602_v1 = vld [vmem:[%s14417_s21 + $0x1238] sm:$0xf0]  ;;  %v11477_v5 = vor.u32 %v13090_v25, %v11474_v20 }
 0x483   : > { %8714 = vmatpush.bf16.msrb.mxu2 %v11813_v60  ;;  %v11493_v60 = vor.u32 %v13094_v48, %v11490_v49  ;;  %v13154_v56 = vld [vmem:[%s14417_s21 + $0x132c] sm:$0xf]  ;;  %v11922_v23 = vld [vmem:[%s14417_s21 + $0x14b8] sm:$0xf0]  ;;  %v11605_v52 = vor.u32 %v13122_v0, %v11602_v1 }
 0x484   : > { %8679 = vmatpush.bf16.msra.mxu3 %v11365_v29  ;;  %v16129_v29 = vadd.f32 %v8462_v63, %v8450_v44  ;;  %v13086_v6 = vld [vmem:[%s14417_s21 + $0x110c] sm:$0xf]  ;;  %v11458_v54 = vld [vmem:[%s14417_s21 + $0x1118] sm:$0xf0] }
 0x485   : > { %8689 = vmatpush.bf16.msrb.mxu0 %v11541_v40  ;;  %v8438_v59 = vpop.f32.mrf.mxu0  ;;  %v11941_v40 = vor.u32 %v13206_v53, %v11938_v58  ;;  %v11586_v55 = vld [vmem:[%s14417_s21 + $0x1218] sm:$0xf0]  ;;  %v13150_v30 = vld [vmem:[%s14417_s21 + $0x130c] sm:$0xf]  ;;  %v13436_v58 = vld [vmem:[%s14856_s6] sm:$0xf] }
 0x486   : > { %8702 = vmatpush.bf16.msrb.mxu1 %v11669_v57  ;;  %v11730_v57 = vld [vmem:[%s14417_s21 + $0x1338] sm:$0xf0]  ;;  %v13242_v28 = vld [vmem:[%s14417_s21 + $0x15ec] sm:$0xf]  ;;  %v3506_v59 = vperm.slane %v13436_v58, 3 }
 0x487   : > { %8715 = vmatpush.bf16.msrb.mxu2 %v11797_v62  ;;  %v13202_v62 = vld [vmem:[%s14417_s21 + $0x14ac] sm:$0xf]  ;;  %v11733_v7 = vor.u32 %v13154_v56, %v11730_v57  ;;  %v11906_v33 = vld [vmem:[%s14417_s21 + $0x1498] sm:$0xf0] }
 0x488   : > { %8680 = vmatpush.bf16.msra.mxu3 %v11349_v34  ;;  %v11925_v11 = vor.u32 %v13202_v62, %v11922_v23  ;;  %v11714_v34 = vld [vmem:[%s14417_s21 + $0x1318] sm:$0xf0]  ;;  %v13274_v32 = vld [vmem:[%s14417_s21 + $0x16ec] sm:$0xf] }
 0x489   : > { %8690 = vmatpush.bf16.msrb.mxu0 %v11525_v16  ;;  %v13198_v16 = vld [vmem:[%s14417_s21 + $0x148c] sm:$0xf]  ;;  %v12082_v2 = vld [vmem:[%s14417_s21 + $0x15f8] sm:$0xf0]  ;;  %v11717_v44 = vor.u32 %v13150_v30, %v11714_v34  ;;  %v8464_v39 = vpop.f32.mrf.mxu2 }
 0x48a   : > { %8703 = vmatpush.bf16.msrb.mxu1 %v11653_v35  ;;  %v11461_v35 = vor.u32 %v13086_v6, %v11458_v54  ;;  %v13306_v37 = vld [vmem:[%s14417_s21 + $0x17ec] sm:$0xf]  ;;  %v12338_v45 = vld [vmem:[%s14417_s21 + $0x17f8] sm:$0xf0]  ;;  %v11909_v31 = vor.u32 %v13198_v16, %v11906_v33  ;;  %v12085_v8 = vor.u32 %v13242_v28, %v12082_v2 }
 0x48b   : > { %8716 = vmatpush.bf16.msrb.mxu2 %v11781_v36  ;;  %v12210_v36 = vld [vmem:[%s14417_s21 + $0x16f8] sm:$0xf0]  ;;  %v13194_v43 = vld [vmem:[%s14417_s21 + $0x146c] sm:$0xf] }
 0x48c   : > { %8681 = vmatpush.bf16.msra.mxu3 %v11333_v46  ;;  %v11890_v41 = vld [vmem:[%s14417_s21 + $0x1478] sm:$0xf0]  ;;  %v12213_v46 = vor.u32 %v13274_v32, %v12210_v36  ;;  %v13270_v48 = vld [vmem:[%s14417_s21 + $0x16cc] sm:$0xf] }
 0x48d   : > { %8691 = vmatpush.bf16.msrb.mxu0 %v11509_v9  ;;  %v12341_v9 = vor.u32 %v13306_v37, %v12338_v45  ;;  %v12194_v49 = vld [vmem:[%s14417_s21 + $0x16d8] sm:$0xf0]  ;;  %v13302_v50 = vld [vmem:[%s14417_s21 + $0x17cc] sm:$0xf]  ;;  %v11893_v51 = vor.u32 %v13194_v43, %v11890_v41 }
 0x48e   : > { %8704 = vmatpush.bf16.msrb.mxu1 %v11637_v10  ;;  %v13238_v10 = vld [vmem:[%s14417_s21 + $0x15cc] sm:$0xf]  ;;  %v11874_v53 = vld [vmem:[%s14417_s21 + $0x1458] sm:$0xf0]  ;;  %v12197_v61 = vor.u32 %v13270_v48, %v12194_v49 }
 0x48f   : > { %8717 = vmatpush.bf16.msrb.mxu2 %v11765_v47  ;;  %8682 = vmatmul.bf16.vlgmr.msra.gmra.mxu3 %v14811_v17  ;;  %v13118_v17 = vld [vmem:[%s14417_s21 + $0x120c] sm:$0xf]  ;;  %v12066_v47 = vld [vmem:[%s14417_s21 + $0x15d8] sm:$0xf0] }
 0x490   : > { %8726 = vmatpush.bf16.msrb.mxu3 %v11957_v42  ;;  %v11589_v38 = vor.u32 %v13118_v17, %v11586_v55  ;;  %v12322_v42 = vld [vmem:[%s14417_s21 + $0x17d8] sm:$0xf0]  ;;  %v12069_v4 = vor.u32 %v13238_v10, %v12066_v47  ;;  %v13190_v3 = vld [vmem:[%s14417_s21 + $0x144c] sm:$0xf] }
 0x491   : > { %8692 = vmatpush.bf16.msrb.mxu0 %v11493_v60  ;;  %v12325_v63 = vor.u32 %v13302_v50, %v12322_v42  ;;  %v13266_v25 = vld [vmem:[%s14417_s21 + $0x16ac] sm:$0xf]  ;;  %v12178_v20 = vld [vmem:[%s14417_s21 + $0x16b8] sm:$0xf0]  ;;  %v11877_v1 = vor.u32 %v13190_v3, %v11874_v53 }
 0x492   : > { %8705 = vmatpush.bf16.msrb.mxu1 %v11621_v24  ;;  %v8475_v60 = vpop.f32.mrf.mxu3  ;;  %v13234_v24 = vld [vmem:[%s14417_s21 + $0x15ac] sm:$0xf]  ;;  %v11858_v62 = vld [vmem:[%s14417_s21 + $0x1438] sm:$0xf0] }
 0x493   : > { %8718 = vmatpush.bf16.msrb.mxu2 %v11749_v19  ;;  %v12050_v19 = vld [vmem:[%s14417_s21 + $0x15b8] sm:$0xf0]  ;;  %v13298_v0 = vld [vmem:[%s14417_s21 + $0x17ac] sm:$0xf] }
 0x494   : > { %8727 = vmatpush.bf16.msrb.mxu3 %v11941_v40  ;;  %v12306_v40 = vld [vmem:[%s14417_s21 + $0x17b8] sm:$0xf0]  ;;  %v12053_v56 = vor.u32 %v13234_v24, %v12050_v19  ;;  %v13186_v57 = vld [vmem:[%s14417_s21 + $0x142c] sm:$0xf] }
 0x495   : > { %8693 = vmatpush.bf16.msrb.mxu0 %v11477_v5  ;;  %v12309_v23 = vor.u32 %v13298_v0, %v12306_v40  ;;  %v13230_v5 = vld [vmem:[%s14417_s21 + $0x158c] sm:$0xf]  ;;  %v12034_v6 = vld [vmem:[%s14417_s21 + $0x1598] sm:$0xf0]  ;;  %v11861_v55 = vor.u32 %v13186_v57, %v11858_v62 }
 0x496   : > { %8706 = vmatpush.bf16.msrb.mxu1 %v11605_v52  ;;  %v13262_v54 = vld [vmem:[%s14417_s21 + $0x168c] sm:$0xf]  ;;  %v12037_v30 = vor.u32 %v13230_v5, %v12034_v6  ;;  %v11842_v34 = vld [vmem:[%s14417_s21 + $0x1418] sm:$0xf0] }
 0x497   : > { %8719 = vmatpush.bf16.msrb.mxu2 %v11733_v7  ;;  %v13294_v52 = vld [vmem:[%s14417_s21 + $0x178c] sm:$0xf]  ;;  %v12290_v7 = vld [vmem:[%s14417_s21 + $0x1798] sm:$0xf0] }
 0x498   : > { %8728 = vmatpush.bf16.msrb.mxu3 %v11925_v11  ;;  %v13182_v11 = vld [vmem:[%s14417_s21 + $0x140c] sm:$0xf]  ;;  %v12293_v32 = vor.u32 %v13294_v52, %v12290_v7  ;;  %v12018_v36 = vld [vmem:[%s14417_s21 + $0x1578] sm:$0xf0] }
 0x499   : > { %8694 = vmatpush.bf16.msrb.mxu0 %v11461_v35  ;;  %v8488_v17 = vpop.f32.mrf.mxu0  ;;  %v13226_v35 = vld [vmem:[%s14417_s21 + $0x156c] sm:$0xf]  ;;  %v12146_v45 = vld [vmem:[%s14417_s21 + $0x1678] sm:$0xf0]  ;;  %v11845_v43 = vor.u32 %v13182_v11, %v11842_v34 }
 0x49a   : > { %8707 = vmatpush.bf16.msrb.mxu1 %v11589_v38  ;;  %v8501_v33 = vpop.f32.mrf.mxu1  ;;  %v8477_v28 = vpop.f32.mrf.mxu3  ;;  %v13258_v37 = vld [vmem:[%s14417_s21 + $0x166c] sm:$0xf]  ;;  %v12021_v41 = vor.u32 %v13226_v35, %v12018_v36  ;;  %v12002_v47 = vld [vmem:[%s14417_s21 + $0x1558] sm:$0xf0] }
 0x49b   : > { %8720 = vmatpush.bf16.msrb.mxu2 %v11717_v44  ;;  %v13290_v38 = vld [vmem:[%s14417_s21 + $0x176c] sm:$0xf]  ;;  %v12274_v44 = vld [vmem:[%s14417_s21 + $0x1778] sm:$0xf0] }
 0x49c   : > { %8729 = vmatpush.bf16.msrb.mxu3 %v11909_v31  ;;  %8695 = vmatmul.bf16.vlgmr.msrb.gmra.mxu0 %v14823_v22  ;;  %v8476_v22 = vadd.f32 %v8475_v60, %v3506_v59  ;;  %v13322_v31 = vld [vmem:[%s14417_s21 + $0x186c] sm:$0xf]  ;;  %v12130_v42 = vld [vmem:[%s14417_s21 + $0x1658] sm:$0xf0] }
 0x49d   : > { %8739 = vmatpush.bf16.msra.mxu0 %v12085_v8  ;;  %8708 = vmatmul.bf16.vlgmr.msrb.gmra.mxu1 %v14821_v21  ;;  %v12162_v21 = vld [vmem:[%s14417_s21 + $0x1698] sm:$0xf0]  ;;  %v13222_v10 = vld [vmem:[%s14417_s21 + $0x154c] sm:$0xf] }
 0x49e   : > { %8752 = vmatpush.bf16.msra.mxu1 %v12213_v46  ;;  %8721 = vmatmul.bf16.vlgmr.msrb.gmra.mxu2 %v14825_v26  ;;  %v12181_v26 = vor.u32 %v13266_v25, %v12178_v20  ;;  %v8489_v16 = vadd.f32 %v8488_v17, %v8476_v22  ;;  %v12165_v2 = vor.u32 %v13262_v54, %v12162_v21  ;;  %v12402_v8 = vld [vmem:[%s14417_s21 + $0x1878] sm:$0xf0]  ;;  %v13254_v48 = vld [vmem:[%s14417_s21 + $0x164c] sm:$0xf] }
 0x49f   : > { %8765 = vmatpush.bf16.msra.mxu2 %v12341_v9  ;;  %v12149_v46 = vor.u32 %v13258_v37, %v12146_v45  ;;  %v12277_v9 = vor.u32 %v13290_v38, %v12274_v44  ;;  %v12405_v50 = vor.u32 %v13322_v31, %v12402_v8  ;;  %v13318_v53 = vld [vmem:[%s14417_s21 + $0x184c] sm:$0xf]  ;;  %v12386_v58 = vld [vmem:[%s14417_s21 + $0x1858] sm:$0xf0]  ;;  %v12005_v60 = vor.u32 %v13222_v10, %v12002_v47 }
 0x4a0   : > { %8730 = vmatpush.bf16.msrb.mxu3 %v11893_v51  ;;  %v8502_v39 = vadd.f32 %v8501_v33, %v8489_v16  ;;  %v13286_v51 = vld [vmem:[%s14417_s21 + $0x174c] sm:$0xf]  ;;  %v11986_v25 = vld [vmem:[%s14417_s21 + $0x1538] sm:$0xf0]  ;;  %v12389_v0 = vor.u32 %v13318_v53, %v12386_v58 }
 0x4a1   : > { %8740 = vmatpush.bf16.msra.mxu0 %v12069_v4  ;;  %v8514_v49 = vpop.f32.mrf.mxu2  ;;  %v12258_v4 = vld [vmem:[%s14417_s21 + $0x1758] sm:$0xf0]  ;;  %v8490_v59 = vpop.f32.mrf.mxu0  ;;  %v13218_v19 = vld [vmem:[%s14417_s21 + $0x152c] sm:$0xf] }
 0x4a2   : > { %8753 = vmatpush.bf16.msra.mxu1 %v12197_v61  ;;  %v16202_v3 = vadd.f32 %v8514_v49, %v8502_v39  ;;  %v8503_v61 = vpop.f32.mrf.mxu1  ;;  %v12261_v24 = vor.u32 %v13286_v51, %v12258_v4  ;;  %v13250_v20 = vld [vmem:[%s14417_s21 + $0x162c] sm:$0xf]  ;;  %v12114_v40 = vld [vmem:[%s14417_s21 + $0x1638] sm:$0xf0]  ;;  %v11989_v22 = vor.u32 %v13218_v19, %v11986_v25  ;;  %v8793_v25 = vmul.f32 0.2, %v16129_v29 }
 0x4a3   : > { %8766 = vmatpush.bf16.msra.mxu2 %v12325_v63  ;;  %v12133_v63 = vor.u32 %v13254_v48, %v12130_v42  ;;  %v13314_v57 = vld [vmem:[%s14417_s21 + $0x182c] sm:$0xf]  ;;  %v12370_v62 = vld [vmem:[%s14417_s21 + $0x1838] sm:$0xf0]  ;;  %v8791_v61 = vmul.f32 0.2, %v15262_v27 }
 0x4a4   : > { %8731 = vmatpush.bf16.msrb.mxu3 %v11877_v1  ;;  %v13282_v1 = vld [vmem:[%s14417_s21 + $0x172c] sm:$0xf]  ;;  %v11970_v6 = vld [vmem:[%s14417_s21 + $0x1518] sm:$0xf0] }
 0x4a5   : > { %8741 = vmatpush.bf16.msra.mxu0 %v12053_v56  ;;  %v12242_v56 = vld [vmem:[%s14417_s21 + $0x1738] sm:$0xf0]  ;;  %v13214_v5 = vld [vmem:[%s14417_s21 + $0x150c] sm:$0xf] }
 0x4a6   : > { %8754 = vmatpush.bf16.msra.mxu1 %v12181_v26  ;;  %v12117_v26 = vor.u32 %v13250_v20, %v12114_v40  ;;  %v13246_v54 = vld [vmem:[%s14417_s21 + $0x160c] sm:$0xf]  ;;  %v12098_v52 = vld [vmem:[%s14417_s21 + $0x1618] sm:$0xf0]  ;;  %v8795_v40 = vmax.f32 %v15262_v27, %v8791_v61 }
 0x4a7   : > { %8767 = vmatpush.bf16.msra.mxu2 %v12309_v23  ;;  %v12245_v23 = vor.u32 %v13282_v1, %v12242_v56  ;;  %v13278_v7 = vld [vmem:[%s14417_s21 + $0x170c] sm:$0xf]  ;;  %v12226_v17 = vld [vmem:[%s14417_s21 + $0x1718] sm:$0xf0]  ;;  %v12101_v34 = vor.u32 %v13246_v54, %v12098_v52 }
 0x4a8   : > { %8732 = vmatpush.bf16.msrb.mxu3 %v11861_v55  ;;  %v11973_v55 = vor.u32 %v13214_v5, %v11970_v6  ;;  %v12354_v11 = vld [vmem:[%s14417_s21 + $0x1818] sm:$0xf0]  ;;  %v12229_v16 = vor.u32 %v13278_v7, %v12226_v17  ;;  %v13332_v33 = vld [vmem:[%s16231_s14 + $0x38] sm:$0xff]  ;;  %v13331_v35 = vld [vmem:[%s16231_s14 + $0x30] sm:$0xff] }
 0x4a9   : > { %8742 = vmatpush.bf16.msra.mxu0 %v12037_v30  ;;  %v8516_v21 = vpop.f32.mrf.mxu2  ;;  %v13310_v30 = vld [vmem:[%s14417_s21 + $0x180c] sm:$0xf]  ;;  %v13330_v44 = vld [vmem:[%s16231_s14 + $0x28] sm:$0xff]  ;;  %v13437_v31 = vld [vmem:[#allocation1] sm:$0xff]  ;;  %s9269_s21 = sshll.u32 %s16326_s17, 1 }
 0x4aa   : > { %8755 = vmatpush.bf16.msra.mxu1 %v12165_v2  ;;  %v13340_v28 = vld [vmem:[%s16231_s14 + $0x78] sm:$0xff]  ;;  %v13339_v36 = vld [vmem:[%s16231_s14 + $0x70] sm:$0xff]  ;;  %v13338_v39 = vld [vmem:[%s16231_s14 + $0x68] sm:$0xff]  ;;  %s2705_s24 = scalar_lea.vmem %s16305_s4, %s9269_s21 }
 0x4ab   : > { %8768 = vmatpush.bf16.msra.mxu2 %v12293_v32  ;;  %v13348_v2 = vld [vmem:[%s16231_s14 + $0xb8] sm:$0xff]  ;;  %v12357_v32 = vor.u32 %v13310_v30, %v12354_v11  ;;  %v13347_v45 = vld [vmem:[%s16231_s14 + $0xb0] sm:$0xff]  ;;  %v13346_v8 = vld [vmem:[%s16231_s14 + $0xa8] sm:$0xff] }
 0x4ac   : > { %8733 = vmatpush.bf16.msrb.mxu3 %v11845_v43  ;;  %v13328_v47 = vld [vmem:[%s16231_s14 + $0x18] sm:$0xff]  ;;  %v13327_v4 = vld [vmem:[%s16231_s14 + $0x10] sm:$0xff]  ;;  %v13326_v59 = vld [vmem:[%s16231_s14 + $0x8] sm:$0xff] }
 0x4ad   : > { %8743 = vmatpush.bf16.msra.mxu0 %v12021_v41  ;;  %v13337_v41 = vld [vmem:[%s16231_s14 + $0x60] sm:$0xff]  ;;  %v13336_v48 = vld [vmem:[%s16231_s14 + $0x58] sm:$0xff]  ;;  %v13343_v58 = vld [vmem:[%s16231_s14 + $0x90] sm:$0xff] }
 0x4ae   : > { %8756 = vmatpush.bf16.msra.mxu1 %v12149_v46  ;;  %v13344_v49 = vld [vmem:[%s16231_s14 + $0x98] sm:$0xff]  ;;  %v13325_v20 = vld [vmem:[%s16231_s14] sm:$0xff] }
 0x4af   : > { %8769 = vmatpush.bf16.msra.mxu2 %v12277_v9  ;;  %8734 = vmatmul.bf16.vlgmr.msrb.gmra.mxu3 %v14865_v12  ;;  %v12373_v12 = vor.u32 %v13314_v57, %v12370_v62  ;;  %v13345_v9 = vld [vmem:[%s16231_s14 + $0xa0] sm:$0xff]  ;;  %v8797_v57 = vmax.f32 %v16129_v29, %v8793_v25  ;;  %v8800_v62 = vpack.c.bf16 %v8795_v40, %v8795_v40 }
 0x4b0   : > { %8782 = vmatpush.bf16.msra.mxu3 %v12405_v50  ;;  %v13341_v56 = vld [vmem:[%s16231_s14 + $0x80] sm:$0xff] }
 0x4b1   : > { %8744 = vmatpush.bf16.msra.mxu0 %v12005_v60  ;;  %v13334_v60 = vld [vmem:[%s16231_s14 + $0x48] sm:$0xff] }
 0x4b2   : > { %8757 = vmatpush.bf16.msra.mxu1 %v12133_v63  ;;  %v8527_v37 = vpop.f32.mrf.mxu3  ;;  %v8792_v63 = vmul.f32 0.2, %v15691_v18 }
 0x4b3   : > { %8770 = vmatpush.bf16.msra.mxu2 %v12261_v24  ;;  %v8528_v38 = vadd.f32 %v8527_v37, %v16202_v3  ;;  %v13335_v3 = vld [vmem:[%s16231_s14 + $0x50] sm:$0xff]  ;;  %v13342_v24 = vld [vmem:[%s16231_s14 + $0x88] sm:$0xff] }
 0x4b4   : > { %8783 = vmatpush.bf16.msra.mxu3 %v12389_v0  ;;  %v13333_v0 = vld [vmem:[%s16231_s14 + $0x40] sm:$0xff]  ;;  %v8796_v1 = vmax.f32 %v15691_v18, %v8792_v63 }
 0x4b5   : > { %8745 = vmatpush.bf16.msra.mxu0 %v11989_v22 }
 0x4b6   : > { %8758 = vmatpush.bf16.msra.mxu1 %v12117_v26  ;;  %v8801_v22 = vpack.c.bf16 %v8796_v1, %v8796_v1  ;;  %v8802_v26 = vpack.c.bf16 %v8797_v57, %v8797_v57  ;;  %v13510_v1 = vmov 0.0  }
 0x4b7   : > { %8771 = vmatpush.bf16.msra.mxu2 %v12245_v23  ;;  %2712 = vst.msk [vmem:[#allocation2] sm:$0x3] %vm2711_vm1, %v13510_v1 }
 0x4b8   : > { %8784 = vmatpush.bf16.msra.mxu3 %v12373_v12 }
 0x4b9   : > { %8746 = vmatpush.bf16.msra.mxu0 %v11973_v55  ;;  %v8540_v43 = vpop.f32.mrf.mxu0 }
 0x4ba   : > { %8759 = vmatpush.bf16.msra.mxu1 %v12101_v34  ;;  %v8529_v46 = vpop.f32.mrf.mxu3 }
 0x4bb   : > { %8772 = vmatpush.bf16.msra.mxu2 %v12229_v16 }
 0x4bc   : > { %8785 = vmatpush.bf16.msra.mxu3 %v12357_v32  ;;  %8747 = vmatmul.bf16.vlgmr.msra.gmra.mxu0 %v14869_v14  ;;  %v8541_v14 = vadd.f32 %v8540_v43, %v8528_v38  ;;  %v13355_v32 = vld [vmem:[%s16231_s14 + $0xf0] sm:$0xff] }
 0x4bd   : > { %9060 = vmatpush.bf16.msrb.mxu0 %v13332_v33  ;;  %8760 = vmatmul.bf16.vlgmr.msra.gmra.mxu1 %v14867_v13  ;;  %v13329_v13 = vld [vmem:[%s16231_s14 + $0x20] sm:$0xff]  ;;  %v13356_v33 = vld [vmem:[%s16231_s14 + $0xf8] sm:$0xff] }
 0x4be   : > { %9073 = vmatpush.bf16.msrb.mxu1 %v13340_v28  ;;  %8773 = vmatmul.bf16.vlgmr.msra.gmra.mxu2 %v14871_v15  ;;  %v8553_v15 = vpop.f32.mrf.mxu1 }
 0x4bf   : > { %9086 = vmatpush.bf16.msrb.mxu2 %v13348_v2  ;;  %12409 = vmatmul.msk.bf16.vlgmr.msra.gmra.mxu3 %vm7488_vm0, %v13437_v31  ;;  %v8554_v10 = vadd.f32 %v8553_v15, %v8541_v14 }
 0x4c0   : > { %9099 = vmatpush.bf16.msrb.mxu3 %v13356_v33 }
 0x4c1   : > { %9061 = vmatpush.bf16.msrb.mxu0 %v13331_v35  ;;  %v8566_v50 = vpop.f32.mrf.mxu2  ;;  %v8542_v51 = vpop.f32.mrf.mxu0 }
 0x4c2   : > { %9074 = vmatpush.bf16.msrb.mxu1 %v13339_v36  ;;  %v8567_v42 = vadd.f32 %v8566_v50, %v8554_v10  ;;  %v13354_v36 = vld [vmem:[%s16231_s14 + $0xe8] sm:$0xff] }
 0x4c3   : > { %9087 = vmatpush.bf16.msrb.mxu2 %v13347_v45  ;;  %v13353_v45 = vld [vmem:[%s16231_s14 + $0xe0] sm:$0xff] }
 0x4c4   : > { %9100 = vmatpush.bf16.msrb.mxu3 %v13355_v32 }
 0x4c5   : > { %9062 = vmatpush.bf16.msrb.mxu0 %v13330_v44  ;;  %v13352_v44 = vld [vmem:[%s16231_s14 + $0xd8] sm:$0xff] }
 0x4c6   : > { %9075 = vmatpush.bf16.msrb.mxu1 %v13338_v39  ;;  %v8555_v53 = vpop.f32.mrf.mxu1 }
 0x4c7   : > { %9088 = vmatpush.bf16.msrb.mxu2 %v13346_v8  ;;  %v13351_v8 = vld [vmem:[%s16231_s14 + $0xd0] sm:$0xff] }
 0x4c8   : > { %9101 = vmatpush.bf16.msrb.mxu3 %v13354_v36 }
 0x4c9   : > { %9063 = vmatpush.bf16.msrb.mxu0 %v13329_v13  ;;  %v8568_v19 = vpop.f32.mrf.mxu2  ;;  %v13350_v13 = vld [vmem:[%s16231_s14 + $0xc8] sm:$0xff] }
 0x4ca   : > { %9076 = vmatpush.bf16.msrb.mxu1 %v13337_v41 }
 0x4cb   : > { %9089 = vmatpush.bf16.msrb.mxu2 %v13345_v9  ;;  %v13349_v9 = vld [vmem:[%s16231_s14 + $0xc0] sm:$0xff] }
 0x4cc   : > { %9102 = vmatpush.bf16.msrb.mxu3 %v13353_v45 }
 0x4cd   : > { %9064 = vmatpush.bf16.msrb.mxu0 %v13328_v47 }
 0x4ce   : > { %9077 = vmatpush.bf16.msrb.mxu1 %v13336_v48 }
 0x4cf   : > { %9090 = vmatpush.bf16.msrb.mxu2 %v13344_v49 }
 0x4d0   : > { %9103 = vmatpush.bf16.msrb.mxu3 %v13352_v44 }
 0x4d1   : > { %9065 = vmatpush.bf16.msrb.mxu0 %v13327_v4 }
 0x4d2   : > { %9078 = vmatpush.bf16.msrb.mxu1 %v13335_v3  ;;  %v8579_v23 = vpop.f32.mrf.mxu3 }
 0x4d3   : > { %9091 = vmatpush.bf16.msrb.mxu2 %v13343_v58  ;;  %v8580_v5 = vadd.f32 %v8579_v23, %v8567_v42 }
 0x4d4   : > { %9104 = vmatpush.bf16.msrb.mxu3 %v13351_v8 }
 0x4d5   : > { %9066 = vmatpush.bf16.msrb.mxu0 %v13326_v59 }
 0x4d6   : > { %9079 = vmatpush.bf16.msrb.mxu1 %v13334_v60 }
 0x4d7   : > { %9092 = vmatpush.bf16.msrb.mxu2 %v13342_v24 }
 0x4d8   : > { %9105 = vmatpush.bf16.msrb.mxu3 %v13350_v13 }
 0x4d9   : > { %9067 = vmatpush.bf16.msrb.mxu0 %v13325_v20  ;;  %v8592_v6 = vpop.f32.mrf.mxu0 }
 0x4da   : > { %9080 = vmatpush.bf16.msrb.mxu1 %v13333_v0  ;;  %v8593_v27 = vadd.f32 %v8592_v6, %v8580_v5  ;;  %v8605_v54 = vpop.f32.mrf.mxu1  ;;  %v8581_v18 = vpop.f32.mrf.mxu3 }
 0x4db   : > { %9093 = vmatpush.bf16.msrb.mxu2 %v13341_v56 }
 0x4dc   : > { %9068 = vmatmul.bf16.vlgmr.msrb.gmra.mxu0 %v8800_v62  ;;  %v8606_v21 = vadd.f32 %v8605_v54, %v8593_v27  ;;  %9106 = vmatpush.bf16.msrb.mxu3 %v13349_v9 }
 0x4dd   : > { %9081 = vmatmul.bf16.vlgmr.msrb.gmra.mxu1 %v8801_v22 }
 0x4de   : > { %9094 = vmatmul.bf16.vlgmr.msrb.gmra.mxu2 %v8802_v26 }
 0x4e1   : > { %v8618_v12 = vpop.f32.mrf.mxu2  ;;  %v8594_v52 = vpop.f32.mrf.mxu0 }
 0x4e2   : > { %v8619_v29 = vadd.f32 %v8618_v12, %v8606_v21  ;;  %v8607_v7 = vpop.f32.mrf.mxu1  ;;  %v8799_v12 = vld [vmem:[#allocation2] sm:$0x3] }
 0x4e9   : > { %v8620_v17 = vpop.f32.mrf.mxu2 }
 0x4f2   : > { %v8631_v55 = vpop.f32.mrf.mxu3 }
 0x4f3   : > { %v8632_v15 = vadd.f32 %v8631_v55, %v8619_v29 }
 0x4f9   : > { %v8644_v30 = vpop.f32.mrf.mxu0 }
 0x4fa   : > { %v8657_v11 = vpop.f32.mrf.mxu1  ;;  %v8633_v34 = vpop.f32.mrf.mxu3  ;;  %v8645_v46 = vadd.f32 %v8644_v30, %v8632_v15 }
 0x4fc   : > { %v8658_v47 = vadd.f32 %v8657_v11, %v8645_v46 }
 0x501   : > { %v8670_v16 = vpop.f32.mrf.mxu2  ;;  %v8646_v28 = vpop.f32.mrf.mxu0 }
 0x502   : > { %v8659_v2 = vpop.f32.mrf.mxu1  ;;  %v8671_v48 = vadd.f32 %v8670_v16, %v8658_v47 }
 0x509   : > { %v8672_v35 = vpop.f32.mrf.mxu2 }
 0x512   : > { %v8683_v37 = vpop.f32.mrf.mxu3 }
 0x513   : > { %v8684_v49 = vadd.f32 %v8683_v37, %v8671_v48 }
 0x519   : > { %v8696_v38 = vpop.f32.mrf.mxu0 }
 0x51a   : > { %v8709_v39 = vpop.f32.mrf.mxu1  ;;  %v8685_v31 = vpop.f32.mrf.mxu3  ;;  %v8697_v50 = vadd.f32 %v8696_v38, %v8684_v49 }
 0x51c   : > { %v8710_v51 = vadd.f32 %v8709_v39, %v8697_v50 }
 0x521   : > { %v8722_v43 = vpop.f32.mrf.mxu2  ;;  %v8698_v14 = vpop.f32.mrf.mxu0 }
 0x522   : > { %v8711_v41 = vpop.f32.mrf.mxu1  ;;  %v8723_v4 = vadd.f32 %v8722_v43, %v8710_v51 }
 0x529   : > { %v8724_v10 = vpop.f32.mrf.mxu2 }
 0x532   : > { %v8735_v42 = vpop.f32.mrf.mxu3 }
 0x533   : > { %v8736_v3 = vadd.f32 %v8735_v42, %v8723_v4 }
 0x539   : > { %v8748_v53 = vpop.f32.mrf.mxu0 }
 0x53a   : > { %v8761_v58 = vpop.f32.mrf.mxu1  ;;  %v8737_v59 = vpop.f32.mrf.mxu3  ;;  %v8749_v60 = vadd.f32 %v8748_v53, %v8736_v3 }
 0x53c   : > { %v8762_v61 = vadd.f32 %v8761_v58, %v8749_v60 }
 0x541   : > { %v8774_v63 = vpop.f32.mrf.mxu2  ;;  %v8750_v19 = vpop.f32.mrf.mxu0 }
 0x542   : > { %v8775_v24 = vadd.f32 %v8774_v63, %v8762_v61  ;;  %v8763_v25 = vpop.f32.mrf.mxu1  ;;  %v8787_v20 = vpop.f32.mrf.mxu3 }
 0x544   : > { %v8788_v0 = vadd.f32 %v8787_v20, %v8775_v24 }
 0x546   : > { %v8794_v40 = vmul.f32 0.2, %v8788_v0 }
 0x548   : > { %v8798_v56 = vmax.f32 %v8788_v0, %v8794_v40 }
 0x549   : > { %v8776_v57 = vpop.f32.mrf.mxu2 }
 0x54a   : > { %v8803_v62 = vpack.c.bf16 %v8798_v56, %v8798_v56  ;;  %v8789_v22 = vpop.f32.mrf.mxu3 }
 0x54c   : > { %9107 = vmatmul.bf16.vlgmr.msrb.gmra.mxu3 %v8803_v62 }
 0x559   : > { %v9069_v26 = vpop.f32.mrf.mxu0 }
 0x55a   : > { %v9082_v23 = vpop.f32.mrf.mxu1 }
 0x55b   : > { %v9083_v5 = vadd.f32 %v9082_v23, %v9069_v26 }
 0x561   : > { %v9095_v6 = vpop.f32.mrf.mxu2  ;;  %v9071_v54 = vpop.f32.mrf.mxu0 }
 0x562   : > { %v9096_v27 = vadd.f32 %v9095_v6, %v9083_v5  ;;  %v9084_v18 = vpop.f32.mrf.mxu1 }
 0x569   : > { %v9097_v21 = vpop.f32.mrf.mxu2 }
 0x5cf   : > { %v9108_v29 = vpop.f32.mrf.mxu3 }
 0x5d0   : > { %v9109_v52 = vadd.f32 %v9108_v29, %v9096_v27 }
 0x5d2   : > { %v9112_v7 = vadd.f32 %v9109_v52, %v8799_v12 }
 0x5d4   : > { %9114 = vst.msk [vmem:[#allocation2] sm:$0x3] %vm2711_vm1, %v9112_v7 }
 0x5d7   : > { %v9110_v17 = vpop.f32.mrf.mxu3 }
 0x5db   : > { %v9118_v55 = vld [vmem:[#allocation2] sm:$0x3] }
 0x5dc   : > { %9119 = vst.msk [vmem:[%s2705_s24] sm:$0x3] %vm2711_vm1, %v9118_v55 }
 0x5dd PF: > { %s14_s19 = sadd.s32 1, %s13492_s19   ;;  %s16313_s15 = smov %s13480_s16 }
 0x5de   : > { %p11_p0 = scmp.ge.s32.totalorder %s14_s19, 4   ;;  %s16314_s16 = smov %s13571_s23 }
 0x5df   : > { %s16315_s17 = smov %s13488_s18  ;;  %s16316_s18 = smov %s16318_s20 }
 0x5e0   :  { %13 = sbr.rel (!%p11_p0) target bundleno = 3 (0x3), region = 138 }

</bundles_post_ra>
